<compile_context>
chip_gen: v5e
topology: v5e:2x2
jax: 0.10.0
libtpu: 0.0.40
codegen_flags: <defaults>
</compile_context>

<pallas_src>
import functools

import jax
import jax.numpy as jnp
from jax import lax
from jax.experimental import pallas as pl
from jax.experimental.pallas import tpu as pltpu


# ----------------------------------------------------------------------------
# Kernel
# ----------------------------------------------------------------------------
def _conv3x3_rows(x, w_ref, n_out, w_cols):
    """3x3 conv (zero pad in W) on a row-flattened window.

    x      : (n_in * W, Cin) bf16 value, n_in = n_out + 2 window rows.
    w_ref  : (3, Cin, 3*Cout) VMEM ref; lane block dx holds the (dy, dx) tap.
    n_out  : number of output rows (python int).
    w_cols : W, the row width (python int).
    Returns (n_out * W, Cout) f32 pre-activation.
    """
    n_rows = x.shape[0]
    cout = w_ref.shape[2] // 3

    # Column-within-row index of every flattened position (for edge masking).
    p = lax.broadcasted_iota(jnp.int32, (n_rows, 1), 0)
    if (w_cols & (w_cols - 1)) == 0:
        col = jnp.bitwise_and(p, w_cols - 1)
    else:
        col = lax.rem(p, w_cols)

    acc = None
    for dy in range(3):
        # One wide MXU matmul covering all three dx taps of kernel row dy.
        z = jnp.dot(x, w_ref[dy], preferred_element_type=jnp.float32)
        center = z[:, cout:2 * cout]
        # dx = 0 tap: output col c reads input col c-1 -> shift by +1 along the
        # flattened row axis (XLU roll); wrapped / cross-row cells are masked.
        left = jnp.where(col >= 1,
                         pltpu.roll(z[:, 0:cout], 1, axis=0), 0.0)
        # dx = 2 tap: output col c reads input col c+1 -> shift by -1
        # (expressed as the positive-equivalent n_rows - 1).
        right = jnp.where(col <= w_cols - 2,
                          pltpu.roll(z[:, 2 * cout:3 * cout], n_rows - 1, axis=0),
                          0.0)
        comb = center + left + right                         # (n_rows, Cout) f32
        # dy shift = aligned leading-row slice (rows k .. k + n_out).
        contrib = comb[dy * w_cols:dy * w_cols + n_out * w_cols, :]
        acc = contrib if acc is None else acc + contrib
    return acc


def up_kernel(x2_ref, xh_ref, x1w_ref, w1_ref, b1_ref, w2_ref, b2_ref,
              o_ref, xcat_ref, mid_ref, *, h_out):
    # x2_ref : (1, TR*W, C2)      bf16  tile's main rows, row-flattened
    # xh_ref : (1, 1, 4*W, C2)    bf16  2 halo rows above + 2 below (zeros off-image)
    # x1w_ref: (1, H1, W, C1)     bf16  low-res x1, already W-upsampled
    # w1_ref : (3, C1+C2, 3*Cout) bf16  conv1 taps (dx-concat), BN1 scale folded
    # b1_ref : (1, 1, Cout)       f32   folded BN1 bias
    # w2_ref : (3, Cout, 3*Cout)  bf16  conv2 taps, BN2 scale folded
    # b2_ref : (1, 1, Cout)       f32
    # o_ref  : (1, TR*W, Cout)    f32
    # xcat   : ((TR+4)*W, C1+C2)  bf16  scratch: channel-concat input window
    # mid    : ((TR+2)*W, Cout)   bf16  scratch: conv1 output (+1 halo row/side)
    t = pl.program_id(1)
    trw = o_ref.shape[1]
    cout = o_ref.shape[2]
    c2 = x2_ref.shape[2]
    h1 = x1w_ref.shape[1]
    w = x1w_ref.shape[2]
    tr = trw // w

    # ---- assemble the channel-concatenated (TR+4)-row input window ---------
    # x2 channel group (lanes [0, C2)): top halo, main rows, bottom halo.
    xcat_ref[0:2 * w, 0:c2] = xh_ref[0, 0, 0:2 * w, :]
    xcat_ref[2 * w:(tr + 2) * w, 0:c2] = x2_ref[0]
    xcat_ref[(tr + 2) * w:(tr + 4) * w, 0:c2] = xh_ref[0, 0, 2 * w:4 * w, :]

    # x1 channel group (lanes [C2, C2+C1)): fused H-direction bilinear upsample
    # (align_corners=True).  Rows outside the image are conv1's zero padding.
    ry = (h1 - 1) / (h_out - 1) if (h_out > 1 and h1 > 1) else 0.0
    for j in range(tr + 4):
        r = t * tr + (j - 2)                       # output-space row of this window row
        yf = r.astype(jnp.float32) * jnp.float32(ry)
        y0 = jnp.clip(jnp.floor(yf).astype(jnp.int32), 0, h1 - 1)
        y1 = jnp.minimum(y0 + 1, h1 - 1)
        wy = yf - y0.astype(jnp.float32)
        valid = jnp.logical_and(r >= 0, r < h_out)
        a1 = jnp.where(valid, wy, 0.0)
        a0 = jnp.where(valid, 1.0 - wy, 0.0)
        row = (x1w_ref[0, y0].astype(jnp.float32) * a0
               + x1w_ref[0, y1].astype(jnp.float32) * a1)
        xcat_ref[j * w:(j + 1) * w, c2:] = row.astype(jnp.bfloat16)

    # ---- conv1 (+ folded BN1) + ReLU: single fused K = C1+C2 contraction ---
    pre1 = _conv3x3_rows(xcat_ref[...], w1_ref, tr + 2, w)
    mid_ref[...] = jnp.maximum(pre1 + b1_ref[0], 0.0).astype(jnp.bfloat16)

    # mid rows that fall outside the image are conv2's zero padding, not ReLU(b1).
    @pl.when(t == 0)
    def _():
        mid_ref[0:w, :] = jnp.zeros((w, cout), jnp.bfloat16)

    @pl.when(t == pl.num_programs(1) - 1)
    def _():
        mid_ref[(tr + 1) * w:(tr + 2) * w, :] = jnp.zeros((w, cout), jnp.bfloat16)

    # ---- conv2 (+ folded BN2) + ReLU ----------------------------------------
    pre2 = _conv3x3_rows(mid_ref[...], w2_ref, tr, w)
    o_ref[0] = jnp.maximum(pre2 + b2_ref[0], 0.0).astype(o_ref.dtype)


# ----------------------------------------------------------------------------
# Wrapper-side helpers
# ----------------------------------------------------------------------------
def _bilinear_coords(out_size, in_size):
    if out_size == 1 or in_size == 1:
        s = jnp.zeros((out_size,), jnp.float32)
    else:
        s = jnp.arange(out_size, dtype=jnp.float32) * ((in_size - 1) / (out_size - 1))
    i0 = jnp.clip(jnp.floor(s).astype(jnp.int32), 0, in_size - 1)
    i1 = jnp.minimum(i0 + 1, in_size - 1)
    frac = s - i0.astype(jnp.float32)
    return i0, i1, frac


def upsample_w_align_corners(x_nhwc, out_w):
    """align_corners=True bilinear resize along W only (cheap, low-res rows)."""
    x0, x1i, fx = _bilinear_coords(out_w, x_nhwc.shape[2])
    fx = fx[None, None, :, None]
    return x_nhwc[:, :, x0, :] * (1.0 - fx) + x_nhwc[:, :, x1i, :] * fx


def bilinear_align_corners(x_nhwc, out_h, out_w):
    """Full 2-D align_corners bilinear resize (reference path only)."""
    y0, y1, fy = _bilinear_coords(out_h, x_nhwc.shape[1])
    fy = fy[None, :, None, None]
    rows = x_nhwc[:, y0, :, :] * (1.0 - fy) + x_nhwc[:, y1, :, :] * fy
    return upsample_w_align_corners(rows, out_w)


def make_up_params(key, c_x2, c_x1, out_channels):
    """Synthetic eval-mode parameters; BN scales pre-folded into conv weights."""
    in_channels = c_x2 + c_x1
    k = jax.random.split(key, 6)
    eps = 1e-5
    w1 = 0.1 * jax.random.normal(k[0], (out_channels, in_channels, 3, 3), jnp.float32)
    w2 = 0.1 * jax.random.normal(k[1], (out_channels, out_channels, 3, 3), jnp.float32)
    g1 = 1.0 + 0.1 * jax.random.normal(k[2], (out_channels,), jnp.float32)
    be1 = 0.05 * jax.random.normal(k[3], (out_channels,), jnp.float32)
    g2 = 1.0 + 0.1 * jax.random.normal(k[4], (out_channels,), jnp.float32)
    be2 = 0.05 * jax.random.normal(k[5], (out_channels,), jnp.float32)
    rm = jnp.zeros((out_channels,), jnp.float32)
    rv = jnp.ones((out_channels,), jnp.float32)

    def fold(g, b):
        scale = g / jnp.sqrt(rv + eps)
        return scale, b - rm * scale

    s1, b1 = fold(g1, be1)
    s2, b2 = fold(g2, be2)
    w1s = w1 * s1[:, None, None, None]
    w2s = w2 * s2[:, None, None, None]

    def to_dx_concat_taps(w_pt):
        # (Cout, Cin, ky, kx) -> (ky, Cin, kx*Cout) bf16, kx blocks along lanes.
        cout, cin = w_pt.shape[0], w_pt.shape[1]
        wt = jnp.transpose(w_pt, (2, 1, 3, 0))          # (ky, cin, kx, cout)
        return wt.reshape(3, cin, 3 * cout).astype(jnp.bfloat16)

    return dict(
        w1=to_dx_concat_taps(w1s),                      # (3, C2+C1, 3*Cout) (concat order [x2, x1])
        b1=b1.reshape(1, 1, -1),
        w2=to_dx_concat_taps(w2s),                      # (3, Cout, 3*Cout)
        b2=b2.reshape(1, 1, -1),
        # f32, scaled, HWIO copies for the pure-JAX reference check
        ref_w1=jnp.transpose(w1s, (2, 3, 1, 0)),
        ref_w2=jnp.transpose(w2s, (2, 3, 1, 0)),
    )


def _vmem_capacity_bytes():
    try:
        return int(pltpu.get_tpu_info().vmem_capacity_bytes)
    except Exception:
        return 64 << 20                                 # conservative (v7x-sized)


# ----------------------------------------------------------------------------
# Forward pass
# ----------------------------------------------------------------------------
def up_forward(x1_nchw, x2_nchw, params, tile_rows=None):
    """Up.forward: x1 (low-res), x2 (high-res) in NCHW; returns NCHW float32."""
    n, c1, h1, _ = x1_nchw.shape
    _, c2, h, w = x2_nchw.shape
    cout = params["b1"].shape[-1]

    # NCHW -> NHWC (channels on the 128-lane axis).
    x1_nhwc = jnp.transpose(x1_nchw, (0, 2, 3, 1))
    x2_nhwc = jnp.transpose(x2_nchw, (0, 2, 3, 1))

    # W-direction half of the bilinear resize on the low-resolution tensor;
    # the H-direction half is fused into the kernel (no full-res x1 round trip).
    x1w = upsample_w_align_corners(x1_nhwc, w).astype(jnp.bfloat16)   # (N, H1, W, C1)
    x2_b = x2_nhwc.astype(jnp.bfloat16)

    # --- row tiling (2-row halo per side for the two stacked 3x3 convs) -----
    vmem_cap = _vmem_capacity_bytes()
    if tile_rows is None:
        tile_rows = 8 if vmem_cap <= (96 << 20) else 16   # smaller tiles on 64-MiB parts
    tr = tile_rows if h % tile_rows == 0 else h
    num_tiles = h // tr

    x2_main = x2_b.reshape(n, h * w, c2)                  # row-flattened main rows
    x2_pad = jnp.pad(x2_b, ((0, 0), (2, 2), (0, 0), (0, 0)))
    hidx = (jnp.arange(num_tiles) * tr)[:, None] + jnp.array([0, 1, tr + 2, tr + 3])[None, :]
    x2_halo = x2_pad[:, hidx].reshape(n, num_tiles, 4 * w, c2)   # (N, T, 4*W, C2)

    # --- generation-aware VMEM budget ---------------------------------------
    bf, f4 = 2, 4
    vmem_bytes = (
        2 * tr * w * c2 * bf + 2 * 4 * w * c2 * bf            # x2 main + halo blocks
        + 2 * h1 * w * c1 * bf                                # x1w block (resident per batch)
        + 2 * tr * w * cout * f4                              # output block
        + 2 * 3 * (c1 + c2 + cout) * 3 * cout * bf            # weight blocks
        + 2 * 2 * cout * f4                                   # biases
        + (tr + 4) * w * (c1 + c2) * bf                       # xcat scratch
        + (tr + 2) * w * cout * bf                            # mid scratch
        + 3 * (tr + 4) * w * 3 * cout * f4                    # matmul / roll temporaries
    )
    vmem_limit = int(min(max(2 * vmem_bytes + (8 << 20), 32 << 20),
                         int(0.85 * vmem_cap)))

    grid_spec = pltpu.PrefetchScalarGridSpec(
        num_scalar_prefetch=0,
        grid=(n, num_tiles),
        in_specs=[
            pl.BlockSpec((1, tr * w, c2), lambda b, t: (b, t, 0)),
            pl.BlockSpec((1, 1, 4 * w, c2), lambda b, t: (b, t, 0, 0)),
            pl.BlockSpec((1, h1, w, c1), lambda b, t: (b, 0, 0, 0)),
            pl.BlockSpec((3, c1 + c2, 3 * cout), lambda b, t: (0, 0, 0)),
            pl.BlockSpec((1, 1, cout), lambda b, t: (0, 0, 0)),
            pl.BlockSpec((3, cout, 3 * cout), lambda b, t: (0, 0, 0)),
            pl.BlockSpec((1, 1, cout), lambda b, t: (0, 0, 0)),
        ],
        out_specs=pl.BlockSpec((1, tr * w, cout), lambda b, t: (b, t, 0)),
        scratch_shapes=[
            pltpu.VMEM(((tr + 4) * w, c1 + c2), jnp.bfloat16),   # concat input window
            pltpu.VMEM(((tr + 2) * w, cout), jnp.bfloat16),      # conv1 output rows
        ],
    )

    out_flat = pl.pallas_call(
        functools.partial(up_kernel, h_out=h),
        out_shape=jax.ShapeDtypeStruct((n, h * w, cout), jnp.float32),
        grid_spec=grid_spec,
        compiler_params=pltpu.CompilerParams(
            dimension_semantics=("parallel", "parallel"),
            vmem_limit_bytes=vmem_limit),
    )(x2_main, x2_halo, x1w, params["w1"], params["b1"], params["w2"], params["b2"])

    out = out_flat.reshape(n, h, w, cout)
    return jnp.transpose(out, (0, 3, 1, 2))


def up_forward_reference(x1_nchw, x2_nchw, params):
    """Pure-JAX f32 reference (folded BN, same math as the PyTorch module)."""
    h, w = x2_nchw.shape[2], x2_nchw.shape[3]
    x1_nhwc = jnp.transpose(x1_nchw, (0, 2, 3, 1))
    x2_nhwc = jnp.transpose(x2_nchw, (0, 2, 3, 1))
    x1_up = bilinear_align_corners(x1_nhwc, h, w)
    x = jnp.concatenate([x2_nhwc, x1_up], axis=-1)

    def conv_bn_relu(v, w_hwio, b):
        y = jax.lax.conv_general_dilated(
            v, w_hwio, (1, 1), 'SAME',
            dimension_numbers=('NHWC', 'HWIO', 'NHWC'))
        return jnp.maximum(y + b, 0.0)

    y = conv_bn_relu(x, params["ref_w1"], params["b1"][0, 0])
    y = conv_bn_relu(y, params["ref_w2"], params["b2"][0, 0])
    return jnp.transpose(y, (0, 3, 1, 2))


if __name__ == "__main__":
    key = jax.random.PRNGKey(0)
    k_x1, k_x2, k_p = jax.random.split(key, 3)

    # Small, lane-aligned shapes: x1 is the low-res feature, x2 the high-res one.
    N = 2
    C1, C2 = 128, 128            # channel concat -> conv1 in_channels = 256
    H1, W1 = 8, 8
    H, W = 16, 16
    OUT_CH = 128

    x1 = jax.random.normal(k_x1, (N, C1, H1, W1), jnp.float32)
    x2 = jax.random.normal(k_x2, (N, C2, H, W), jnp.float32)
    params = make_up_params(k_p, C2, C1, OUT_CH)

    # tile_rows=8 -> two row tiles per batch element: exercises the interior
    # halo path as well as both image-boundary paths.
    out = up_forward(x1, x2, params, tile_rows=8)
    jax.block_until_ready(out)
    assert out.shape == (N, OUT_CH, H, W)

    # Loose-tolerance check vs. f32 reference (kernel uses bf16 MXU inputs).
    ref = up_forward_reference(x1, x2, params)
    rel_err = float(jnp.max(jnp.abs(out - ref)) / (jnp.max(jnp.abs(ref)) + 1e-6))
    assert rel_err < 5e-2, f"kernel mismatch vs reference: rel_err={rel_err}"

    print("KERNEL_OK")
</pallas_src>

<mosaic_0001>
module attributes {stable_mosaic.version = 11 : i64} {
  func.func @up_kernel(%arg0: i32, %arg1: i32, %arg2: memref<1x128x128xbf16, #tpu.memory_space<vmem>>, %arg3: memref<1x1x64x128xbf16, #tpu.memory_space<vmem>>, %arg4: memref<1x8x16x128xbf16, #tpu.memory_space<vmem>>, %arg5: memref<3x256x384xbf16, #tpu.memory_space<vmem>>, %arg6: memref<1x1x128xf32, #tpu.memory_space<vmem>>, %arg7: memref<3x128x384xbf16, #tpu.memory_space<vmem>>, %arg8: memref<1x1x128xf32, #tpu.memory_space<vmem>>, %arg9: memref<1x128x128xf32, #tpu.memory_space<vmem>>, %arg10: memref<192x256xbf16, #tpu.memory_space<vmem>>, %arg11: memref<160x128xbf16, #tpu.memory_space<vmem>>) attributes {dimension_semantics = [#tpu.dimension_semantics<parallel>, #tpu.dimension_semantics<parallel>], iteration_bounds = array<i64: 2, 2>, scalar_prefetch = 0 : i64, scratch_operands = 2 : i64, tpu.core_type = #tpu.core_type<tc>, window_params = [{transform_indices = @transform_0, window_bounds = array<i64: 1, 128, 128>}, {transform_indices = @transform_1, window_bounds = array<i64: 1, 1, 64, 128>}, {transform_indices = @transform_2, window_bounds = array<i64: 1, 8, 16, 128>}, {pipeline_mode = #tpu.pipeline_mode<synchronous>, transform_indices = @transform_3, window_bounds = array<i64: 3, 256, 384>}, {pipeline_mode = #tpu.pipeline_mode<synchronous>, transform_indices = @transform_4, window_bounds = array<i64: 1, 1, 128>}, {pipeline_mode = #tpu.pipeline_mode<synchronous>, transform_indices = @transform_5, window_bounds = array<i64: 3, 128, 384>}, {pipeline_mode = #tpu.pipeline_mode<synchronous>, transform_indices = @transform_6, window_bounds = array<i64: 1, 1, 128>}, {transform_indices = @transform_7, window_bounds = array<i64: 1, 128, 128>}]} {
    %c0 = arith.constant 0 : index
    %c0_0 = arith.constant 0 : index
    %c0_1 = arith.constant 0 : index
    %c0_2 = arith.constant 0 : index
    %0 = vector.load %arg3[%c0, %c0_0, %c0_1, %c0_2] : memref<1x1x64x128xbf16, #tpu.memory_space<vmem>>, vector<1x1x32x128xbf16>
    %1 = vector.shape_cast %0 : vector<1x1x32x128xbf16> to vector<32x128xbf16>
    %c0_3 = arith.constant 0 : index
    %c0_4 = arith.constant 0 : index
    %2 = vector.load %arg10[%c0_3, %c0_4] : memref<192x256xbf16, #tpu.memory_space<vmem>>, vector<32x128xbf16>
    tpu.vector_store %arg10[%c0_3, %c0_4], %1 {strides = array<i32>} : memref<192x256xbf16, #tpu.memory_space<vmem>>, vector<32x128xbf16>,
    %c0_5 = arith.constant 0 : index
    %c0_6 = arith.constant 0 : index
    %c0_7 = arith.constant 0 : index
    %3 = vector.load %arg2[%c0_5, %c0_6, %c0_7] : memref<1x128x128xbf16, #tpu.memory_space<vmem>>, vector<1x128x128xbf16>
    %4 = vector.shape_cast %3 : vector<1x128x128xbf16> to vector<128x128xbf16>
    %c32 = arith.constant 32 : index
    %c0_8 = arith.constant 0 : index
    %5 = vector.load %arg10[%c32, %c0_8] : memref<192x256xbf16, #tpu.memory_space<vmem>>, vector<128x128xbf16>
    tpu.vector_store %arg10[%c32, %c0_8], %4 {strides = array<i32>} : memref<192x256xbf16, #tpu.memory_space<vmem>>, vector<128x128xbf16>,
    %c0_9 = arith.constant 0 : index
    %c0_10 = arith.constant 0 : index
    %c32_11 = arith.constant 32 : index
    %c0_12 = arith.constant 0 : index
    %6 = vector.load %arg3[%c0_9, %c0_10, %c32_11, %c0_12] : memref<1x1x64x128xbf16, #tpu.memory_space<vmem>>, vector<1x1x32x128xbf16>
    %7 = vector.shape_cast %6 : vector<1x1x32x128xbf16> to vector<32x128xbf16>
    %c160 = arith.constant 160 : index
    %c0_13 = arith.constant 0 : index
    %8 = vector.load %arg10[%c160, %c0_13] : memref<192x256xbf16, #tpu.memory_space<vmem>>, vector<32x128xbf16>
    tpu.vector_store %arg10[%c160, %c0_13], %7 {strides = array<i32>} : memref<192x256xbf16, #tpu.memory_space<vmem>>, vector<32x128xbf16>,
    %c8_i32 = arith.constant 8 : i32
    %9 = arith.muli %arg1, %c8_i32 : i32
    %c-2_i32 = arith.constant -2 : i32
    %10 = arith.addi %9, %c-2_i32 : i32
    %11 = arith.sitofp %10 : i32 to f32
    %cst = arith.constant 0.466666669 : f32
    %12 = arith.mulf %11, %cst : f32
    %13 = math.floor %12 : f32
    %14 = arith.fptosi %13 : f32 to i32
    %c0_i32 = arith.constant 0 : i32
    %c7_i32 = arith.constant 7 : i32
    %15 = arith.maxsi %c0_i32, %14 : i32
    %16 = arith.minsi %c7_i32, %15 : i32
    %c1_i32 = arith.constant 1 : i32
    %17 = arith.addi %16, %c1_i32 : i32
    %c7_i32_14 = arith.constant 7 : i32
    %18 = arith.minsi %17, %c7_i32_14 : i32
    %19 = arith.sitofp %16 : i32 to f32
    %20 = arith.subf %12, %19 : f32
    %c0_i32_15 = arith.constant 0 : i32
    %21 = arith.cmpi sge, %10, %c0_i32_15 : i32
    %c16_i32 = arith.constant 16 : i32
    %22 = arith.cmpi slt, %10, %c16_i32 : i32
    %23 = arith.andi %21, %22 : i1
    %cst_16 = arith.constant 0.000000e+00 : f32
    %24 = arith.select %23, %20, %cst_16 : f32
    %cst_17 = arith.constant 1.000000e+00 : f32
    %25 = arith.subf %cst_17, %20 : f32
    %cst_18 = arith.constant 0.000000e+00 : f32
    %26 = arith.select %23, %25, %cst_18 : f32
    %c0_19 = arith.constant 0 : index
    %27 = arith.index_cast %16 : i32 to index
    %c0_20 = arith.constant 0 : index
    %c0_21 = arith.constant 0 : index
    %28 = vector.load %arg4[%c0_19, %27, %c0_20, %c0_21] : memref<1x8x16x128xbf16, #tpu.memory_space<vmem>>, vector<1x1x16x128xbf16>
    %29 = vector.shape_cast %28 : vector<1x1x16x128xbf16> to vector<16x128xbf16>
    %30 = arith.extf %29 : vector<16x128xbf16> to vector<16x128xf32>
    %31 = vector.broadcast %26 : f32 to vector<16x128xf32>
    %32 = arith.mulf %30, %31 : vector<16x128xf32>
    %c0_22 = arith.constant 0 : index
    %33 = arith.index_cast %18 : i32 to index
    %c0_23 = arith.constant 0 : index
    %c0_24 = arith.constant 0 : index
    %34 = vector.load %arg4[%c0_22, %33, %c0_23, %c0_24] : memref<1x8x16x128xbf16, #tpu.memory_space<vmem>>, vector<1x1x16x128xbf16>
    %35 = vector.shape_cast %34 : vector<1x1x16x128xbf16> to vector<16x128xbf16>
    %36 = arith.extf %35 : vector<16x128xbf16> to vector<16x128xf32>
    %37 = vector.broadcast %24 : f32 to vector<16x128xf32>
    %38 = arith.mulf %36, %37 : vector<16x128xf32>
    %39 = arith.addf %32, %38 : vector<16x128xf32>
    %40 = arith.truncf %39 : vector<16x128xf32> to vector<16x128xbf16>
    %c0_25 = arith.constant 0 : index
    %c128 = arith.constant 128 : index
    %41 = vector.load %arg10[%c0_25, %c128] : memref<192x256xbf16, #tpu.memory_space<vmem>>, vector<16x128xbf16>
    tpu.vector_store %arg10[%c0_25, %c128], %40 {strides = array<i32>} : memref<192x256xbf16, #tpu.memory_space<vmem>>, vector<16x128xbf16>,
    %c8_i32_26 = arith.constant 8 : i32
    %42 = arith.muli %arg1, %c8_i32_26 : i32
    %c-1_i32 = arith.constant -1 : i32
    %43 = arith.addi %42, %c-1_i32 : i32
    %44 = arith.sitofp %43 : i32 to f32
    %cst_27 = arith.constant 0.466666669 : f32
    %45 = arith.mulf %44, %cst_27 : f32
    %46 = math.floor %45 : f32
    %47 = arith.fptosi %46 : f32 to i32
    %c0_i32_28 = arith.constant 0 : i32
    %c7_i32_29 = arith.constant 7 : i32
    %48 = arith.maxsi %c0_i32_28, %47 : i32
    %49 = arith.minsi %c7_i32_29, %48 : i32
    %c1_i32_30 = arith.constant 1 : i32
    %50 = arith.addi %49, %c1_i32_30 : i32
    %c7_i32_31 = arith.constant 7 : i32
    %51 = arith.minsi %50, %c7_i32_31 : i32
    %52 = arith.sitofp %49 : i32 to f32
    %53 = arith.subf %45, %52 : f32
    %c0_i32_32 = arith.constant 0 : i32
    %54 = arith.cmpi sge, %43, %c0_i32_32 : i32
    %c16_i32_33 = arith.constant 16 : i32
    %55 = arith.cmpi slt, %43, %c16_i32_33 : i32
    %56 = arith.andi %54, %55 : i1
    %cst_34 = arith.constant 0.000000e+00 : f32
    %57 = arith.select %56, %53, %cst_34 : f32
    %cst_35 = arith.constant 1.000000e+00 : f32
    %58 = arith.subf %cst_35, %53 : f32
    %cst_36 = arith.constant 0.000000e+00 : f32
    %59 = arith.select %56, %58, %cst_36 : f32
    %c0_37 = arith.constant 0 : index
    %60 = arith.index_cast %49 : i32 to index
    %c0_38 = arith.constant 0 : index
    %c0_39 = arith.constant 0 : index
    %61 = vector.load %arg4[%c0_37, %60, %c0_38, %c0_39] : memref<1x8x16x128xbf16, #tpu.memory_space<vmem>>, vector<1x1x16x128xbf16>
    %62 = vector.shape_cast %61 : vector<1x1x16x128xbf16> to vector<16x128xbf16>
    %63 = arith.extf %62 : vector<16x128xbf16> to vector<16x128xf32>
    %64 = vector.broadcast %59 : f32 to vector<16x128xf32>
    %65 = arith.mulf %63, %64 : vector<16x128xf32>
    %c0_40 = arith.constant 0 : index
    %66 = arith.index_cast %51 : i32 to index
    %c0_41 = arith.constant 0 : index
    %c0_42 = arith.constant 0 : index
    %67 = vector.load %arg4[%c0_40, %66, %c0_41, %c0_42] : memref<1x8x16x128xbf16, #tpu.memory_space<vmem>>, vector<1x1x16x128xbf16>
    %68 = vector.shape_cast %67 : vector<1x1x16x128xbf16> to vector<16x128xbf16>
    %69 = arith.extf %68 : vector<16x128xbf16> to vector<16x128xf32>
    %70 = vector.broadcast %57 : f32 to vector<16x128xf32>
    %71 = arith.mulf %69, %70 : vector<16x128xf32>
    %72 = arith.addf %65, %71 : vector<16x128xf32>
    %73 = arith.truncf %72 : vector<16x128xf32> to vector<16x128xbf16>
    %c16 = arith.constant 16 : index
    %c128_43 = arith.constant 128 : index
    %74 = vector.load %arg10[%c16, %c128_43] : memref<192x256xbf16, #tpu.memory_space<vmem>>, vector<16x128xbf16>
    tpu.vector_store %arg10[%c16, %c128_43], %73 {strides = array<i32>} : memref<192x256xbf16, #tpu.memory_space<vmem>>, vector<16x128xbf16>,
    %c8_i32_44 = arith.constant 8 : i32
    %75 = arith.muli %arg1, %c8_i32_44 : i32
    %c0_i32_45 = arith.constant 0 : i32
    %76 = arith.addi %75, %c0_i32_45 : i32
    %77 = arith.sitofp %76 : i32 to f32
    %cst_46 = arith.constant 0.466666669 : f32
    %78 = arith.mulf %77, %cst_46 : f32
    %79 = math.floor %78 : f32
    %80 = arith.fptosi %79 : f32 to i32
    %c0_i32_47 = arith.constant 0 : i32
    %c7_i32_48 = arith.constant 7 : i32
    %81 = arith.maxsi %c0_i32_47, %80 : i32
    %82 = arith.minsi %c7_i32_48, %81 : i32
    %c1_i32_49 = arith.constant 1 : i32
    %83 = arith.addi %82, %c1_i32_49 : i32
    %c7_i32_50 = arith.constant 7 : i32
    %84 = arith.minsi %83, %c7_i32_50 : i32
    %85 = arith.sitofp %82 : i32 to f32
    %86 = arith.subf %78, %85 : f32
    %c0_i32_51 = arith.constant 0 : i32
    %87 = arith.cmpi sge, %76, %c0_i32_51 : i32
    %c16_i32_52 = arith.constant 16 : i32
    %88 = arith.cmpi slt, %76, %c16_i32_52 : i32
    %89 = arith.andi %87, %88 : i1
    %cst_53 = arith.constant 0.000000e+00 : f32
    %90 = arith.select %89, %86, %cst_53 : f32
    %cst_54 = arith.constant 1.000000e+00 : f32
    %91 = arith.subf %cst_54, %86 : f32
    %cst_55 = arith.constant 0.000000e+00 : f32
    %92 = arith.select %89, %91, %cst_55 : f32
    %c0_56 = arith.constant 0 : index
    %93 = arith.index_cast %82 : i32 to index
    %c0_57 = arith.constant 0 : index
    %c0_58 = arith.constant 0 : index
    %94 = vector.load %arg4[%c0_56, %93, %c0_57, %c0_58] : memref<1x8x16x128xbf16, #tpu.memory_space<vmem>>, vector<1x1x16x128xbf16>
    %95 = vector.shape_cast %94 : vector<1x1x16x128xbf16> to vector<16x128xbf16>
    %96 = arith.extf %95 : vector<16x128xbf16> to vector<16x128xf32>
    %97 = vector.broadcast %92 : f32 to vector<16x128xf32>
    %98 = arith.mulf %96, %97 : vector<16x128xf32>
    %c0_59 = arith.constant 0 : index
    %99 = arith.index_cast %84 : i32 to index
    %c0_60 = arith.constant 0 : index
    %c0_61 = arith.constant 0 : index
    %100 = vector.load %arg4[%c0_59, %99, %c0_60, %c0_61] : memref<1x8x16x128xbf16, #tpu.memory_space<vmem>>, vector<1x1x16x128xbf16>
    %101 = vector.shape_cast %100 : vector<1x1x16x128xbf16> to vector<16x128xbf16>
    %102 = arith.extf %101 : vector<16x128xbf16> to vector<16x128xf32>
    %103 = vector.broadcast %90 : f32 to vector<16x128xf32>
    %104 = arith.mulf %102, %103 : vector<16x128xf32>
    %105 = arith.addf %98, %104 : vector<16x128xf32>
    %106 = arith.truncf %105 : vector<16x128xf32> to vector<16x128xbf16>
    %c32_62 = arith.constant 32 : index
    %c128_63 = arith.constant 128 : index
    %107 = vector.load %arg10[%c32_62, %c128_63] : memref<192x256xbf16, #tpu.memory_space<vmem>>, vector<16x128xbf16>
    tpu.vector_store %arg10[%c32_62, %c128_63], %106 {strides = array<i32>} : memref<192x256xbf16, #tpu.memory_space<vmem>>, vector<16x128xbf16>,
    %c8_i32_64 = arith.constant 8 : i32
    %108 = arith.muli %arg1, %c8_i32_64 : i32
    %c1_i32_65 = arith.constant 1 : i32
    %109 = arith.addi %108, %c1_i32_65 : i32
    %110 = arith.sitofp %109 : i32 to f32
    %cst_66 = arith.constant 0.466666669 : f32
    %111 = arith.mulf %110, %cst_66 : f32
    %112 = math.floor %111 : f32
    %113 = arith.fptosi %112 : f32 to i32
    %c0_i32_67 = arith.constant 0 : i32
    %c7_i32_68 = arith.constant 7 : i32
    %114 = arith.maxsi %c0_i32_67, %113 : i32
    %115 = arith.minsi %c7_i32_68, %114 : i32
    %c1_i32_69 = arith.constant 1 : i32
    %116 = arith.addi %115, %c1_i32_69 : i32
    %c7_i32_70 = arith.constant 7 : i32
    %117 = arith.minsi %116, %c7_i32_70 : i32
    %118 = arith.sitofp %115 : i32 to f32
    %119 = arith.subf %111, %118 : f32
    %c0_i32_71 = arith.constant 0 : i32
    %120 = arith.cmpi sge, %109, %c0_i32_71 : i32
    %c16_i32_72 = arith.constant 16 : i32
    %121 = arith.cmpi slt, %109, %c16_i32_72 : i32
    %122 = arith.andi %120, %121 : i1
    %cst_73 = arith.constant 0.000000e+00 : f32
    %123 = arith.select %122, %119, %cst_73 : f32
    %cst_74 = arith.constant 1.000000e+00 : f32
    %124 = arith.subf %cst_74, %119 : f32
    %cst_75 = arith.constant 0.000000e+00 : f32
    %125 = arith.select %122, %124, %cst_75 : f32
    %c0_76 = arith.constant 0 : index
    %126 = arith.index_cast %115 : i32 to index
    %c0_77 = arith.constant 0 : index
    %c0_78 = arith.constant 0 : index
    %127 = vector.load %arg4[%c0_76, %126, %c0_77, %c0_78] : memref<1x8x16x128xbf16, #tpu.memory_space<vmem>>, vector<1x1x16x128xbf16>
    %128 = vector.shape_cast %127 : vector<1x1x16x128xbf16> to vector<16x128xbf16>
    %129 = arith.extf %128 : vector<16x128xbf16> to vector<16x128xf32>
    %130 = vector.broadcast %125 : f32 to vector<16x128xf32>
    %131 = arith.mulf %129, %130 : vector<16x128xf32>
    %c0_79 = arith.constant 0 : index
    %132 = arith.index_cast %117 : i32 to index
    %c0_80 = arith.constant 0 : index
    %c0_81 = arith.constant 0 : index
    %133 = vector.load %arg4[%c0_79, %132, %c0_80, %c0_81] : memref<1x8x16x128xbf16, #tpu.memory_space<vmem>>, vector<1x1x16x128xbf16>
    %134 = vector.shape_cast %133 : vector<1x1x16x128xbf16> to vector<16x128xbf16>
    %135 = arith.extf %134 : vector<16x128xbf16> to vector<16x128xf32>
    %136 = vector.broadcast %123 : f32 to vector<16x128xf32>
    %137 = arith.mulf %135, %136 : vector<16x128xf32>
    %138 = arith.addf %131, %137 : vector<16x128xf32>
    %139 = arith.truncf %138 : vector<16x128xf32> to vector<16x128xbf16>
    %c48 = arith.constant 48 : index
    %c128_82 = arith.constant 128 : index
    %140 = vector.load %arg10[%c48, %c128_82] : memref<192x256xbf16, #tpu.memory_space<vmem>>, vector<16x128xbf16>
    tpu.vector_store %arg10[%c48, %c128_82], %139 {strides = array<i32>} : memref<192x256xbf16, #tpu.memory_space<vmem>>, vector<16x128xbf16>,
    %c8_i32_83 = arith.constant 8 : i32
    %141 = arith.muli %arg1, %c8_i32_83 : i32
    %c2_i32 = arith.constant 2 : i32
    %142 = arith.addi %141, %c2_i32 : i32
    %143 = arith.sitofp %142 : i32 to f32
    %cst_84 = arith.constant 0.466666669 : f32
    %144 = arith.mulf %143, %cst_84 : f32
    %145 = math.floor %144 : f32
    %146 = arith.fptosi %145 : f32 to i32
    %c0_i32_85 = arith.constant 0 : i32
    %c7_i32_86 = arith.constant 7 : i32
    %147 = arith.maxsi %c0_i32_85, %146 : i32
    %148 = arith.minsi %c7_i32_86, %147 : i32
    %c1_i32_87 = arith.constant 1 : i32
    %149 = arith.addi %148, %c1_i32_87 : i32
    %c7_i32_88 = arith.constant 7 : i32
    %150 = arith.minsi %149, %c7_i32_88 : i32
    %151 = arith.sitofp %148 : i32 to f32
    %152 = arith.subf %144, %151 : f32
    %c0_i32_89 = arith.constant 0 : i32
    %153 = arith.cmpi sge, %142, %c0_i32_89 : i32
    %c16_i32_90 = arith.constant 16 : i32
    %154 = arith.cmpi slt, %142, %c16_i32_90 : i32
    %155 = arith.andi %153, %154 : i1
    %cst_91 = arith.constant 0.000000e+00 : f32
    %156 = arith.select %155, %152, %cst_91 : f32
    %cst_92 = arith.constant 1.000000e+00 : f32
    %157 = arith.subf %cst_92, %152 : f32
    %cst_93 = arith.constant 0.000000e+00 : f32
    %158 = arith.select %155, %157, %cst_93 : f32
    %c0_94 = arith.constant 0 : index
    %159 = arith.index_cast %148 : i32 to index
    %c0_95 = arith.constant 0 : index
    %c0_96 = arith.constant 0 : index
    %160 = vector.load %arg4[%c0_94, %159, %c0_95, %c0_96] : memref<1x8x16x128xbf16, #tpu.memory_space<vmem>>, vector<1x1x16x128xbf16>
    %161 = vector.shape_cast %160 : vector<1x1x16x128xbf16> to vector<16x128xbf16>
    %162 = arith.extf %161 : vector<16x128xbf16> to vector<16x128xf32>
    %163 = vector.broadcast %158 : f32 to vector<16x128xf32>
    %164 = arith.mulf %162, %163 : vector<16x128xf32>
    %c0_97 = arith.constant 0 : index
    %165 = arith.index_cast %150 : i32 to index
    %c0_98 = arith.constant 0 : index
    %c0_99 = arith.constant 0 : index
    %166 = vector.load %arg4[%c0_97, %165, %c0_98, %c0_99] : memref<1x8x16x128xbf16, #tpu.memory_space<vmem>>, vector<1x1x16x128xbf16>
    %167 = vector.shape_cast %166 : vector<1x1x16x128xbf16> to vector<16x128xbf16>
    %168 = arith.extf %167 : vector<16x128xbf16> to vector<16x128xf32>
    %169 = vector.broadcast %156 : f32 to vector<16x128xf32>
    %170 = arith.mulf %168, %169 : vector<16x128xf32>
    %171 = arith.addf %164, %170 : vector<16x128xf32>
    %172 = arith.truncf %171 : vector<16x128xf32> to vector<16x128xbf16>
    %c64 = arith.constant 64 : index
    %c128_100 = arith.constant 128 : index
    %173 = vector.load %arg10[%c64, %c128_100] : memref<192x256xbf16, #tpu.memory_space<vmem>>, vector<16x128xbf16>
    tpu.vector_store %arg10[%c64, %c128_100], %172 {strides = array<i32>} : memref<192x256xbf16, #tpu.memory_space<vmem>>, vector<16x128xbf16>,
    %c8_i32_101 = arith.constant 8 : i32
    %174 = arith.muli %arg1, %c8_i32_101 : i32
    %c3_i32 = arith.constant 3 : i32
    %175 = arith.addi %174, %c3_i32 : i32
    %176 = arith.sitofp %175 : i32 to f32
    %cst_102 = arith.constant 0.466666669 : f32
    %177 = arith.mulf %176, %cst_102 : f32
    %178 = math.floor %177 : f32
    %179 = arith.fptosi %178 : f32 to i32
    %c0_i32_103 = arith.constant 0 : i32
    %c7_i32_104 = arith.constant 7 : i32
    %180 = arith.maxsi %c0_i32_103, %179 : i32
    %181 = arith.minsi %c7_i32_104, %180 : i32
    %c1_i32_105 = arith.constant 1 : i32
    %182 = arith.addi %181, %c1_i32_105 : i32
    %c7_i32_106 = arith.constant 7 : i32
    %183 = arith.minsi %182, %c7_i32_106 : i32
    %184 = arith.sitofp %181 : i32 to f32
    %185 = arith.subf %177, %184 : f32
    %c0_i32_107 = arith.constant 0 : i32
    %186 = arith.cmpi sge, %175, %c0_i32_107 : i32
    %c16_i32_108 = arith.constant 16 : i32
    %187 = arith.cmpi slt, %175, %c16_i32_108 : i32
    %188 = arith.andi %186, %187 : i1
    %cst_109 = arith.constant 0.000000e+00 : f32
    %189 = arith.select %188, %185, %cst_109 : f32
    %cst_110 = arith.constant 1.000000e+00 : f32
    %190 = arith.subf %cst_110, %185 : f32
    %cst_111 = arith.constant 0.000000e+00 : f32
    %191 = arith.select %188, %190, %cst_111 : f32
    %c0_112 = arith.constant 0 : index
    %192 = arith.index_cast %181 : i32 to index
    %c0_113 = arith.constant 0 : index
    %c0_114 = arith.constant 0 : index
    %193 = vector.load %arg4[%c0_112, %192, %c0_113, %c0_114] : memref<1x8x16x128xbf16, #tpu.memory_space<vmem>>, vector<1x1x16x128xbf16>
    %194 = vector.shape_cast %193 : vector<1x1x16x128xbf16> to vector<16x128xbf16>
    %195 = arith.extf %194 : vector<16x128xbf16> to vector<16x128xf32>
    %196 = vector.broadcast %191 : f32 to vector<16x128xf32>
    %197 = arith.mulf %195, %196 : vector<16x128xf32>
    %c0_115 = arith.constant 0 : index
    %198 = arith.index_cast %183 : i32 to index
    %c0_116 = arith.constant 0 : index
    %c0_117 = arith.constant 0 : index
    %199 = vector.load %arg4[%c0_115, %198, %c0_116, %c0_117] : memref<1x8x16x128xbf16, #tpu.memory_space<vmem>>, vector<1x1x16x128xbf16>
    %200 = vector.shape_cast %199 : vector<1x1x16x128xbf16> to vector<16x128xbf16>
    %201 = arith.extf %200 : vector<16x128xbf16> to vector<16x128xf32>
    %202 = vector.broadcast %189 : f32 to vector<16x128xf32>
    %203 = arith.mulf %201, %202 : vector<16x128xf32>
    %204 = arith.addf %197, %203 : vector<16x128xf32>
    %205 = arith.truncf %204 : vector<16x128xf32> to vector<16x128xbf16>
    %c80 = arith.constant 80 : index
    %c128_118 = arith.constant 128 : index
    %206 = vector.load %arg10[%c80, %c128_118] : memref<192x256xbf16, #tpu.memory_space<vmem>>, vector<16x128xbf16>
    tpu.vector_store %arg10[%c80, %c128_118], %205 {strides = array<i32>} : memref<192x256xbf16, #tpu.memory_space<vmem>>, vector<16x128xbf16>,
    %c8_i32_119 = arith.constant 8 : i32
    %207 = arith.muli %arg1, %c8_i32_119 : i32
    %c4_i32 = arith.constant 4 : i32
    %208 = arith.addi %207, %c4_i32 : i32
    %209 = arith.sitofp %208 : i32 to f32
    %cst_120 = arith.constant 0.466666669 : f32
    %210 = arith.mulf %209, %cst_120 : f32
    %211 = math.floor %210 : f32
    %212 = arith.fptosi %211 : f32 to i32
    %c0_i32_121 = arith.constant 0 : i32
    %c7_i32_122 = arith.constant 7 : i32
    %213 = arith.maxsi %c0_i32_121, %212 : i32
    %214 = arith.minsi %c7_i32_122, %213 : i32
    %c1_i32_123 = arith.constant 1 : i32
    %215 = arith.addi %214, %c1_i32_123 : i32
    %c7_i32_124 = arith.constant 7 : i32
    %216 = arith.minsi %215, %c7_i32_124 : i32
    %217 = arith.sitofp %214 : i32 to f32
    %218 = arith.subf %210, %217 : f32
    %c0_i32_125 = arith.constant 0 : i32
    %219 = arith.cmpi sge, %208, %c0_i32_125 : i32
    %c16_i32_126 = arith.constant 16 : i32
    %220 = arith.cmpi slt, %208, %c16_i32_126 : i32
    %221 = arith.andi %219, %220 : i1
    %cst_127 = arith.constant 0.000000e+00 : f32
    %222 = arith.select %221, %218, %cst_127 : f32
    %cst_128 = arith.constant 1.000000e+00 : f32
    %223 = arith.subf %cst_128, %218 : f32
    %cst_129 = arith.constant 0.000000e+00 : f32
    %224 = arith.select %221, %223, %cst_129 : f32
    %c0_130 = arith.constant 0 : index
    %225 = arith.index_cast %214 : i32 to index
    %c0_131 = arith.constant 0 : index
    %c0_132 = arith.constant 0 : index
    %226 = vector.load %arg4[%c0_130, %225, %c0_131, %c0_132] : memref<1x8x16x128xbf16, #tpu.memory_space<vmem>>, vector<1x1x16x128xbf16>
    %227 = vector.shape_cast %226 : vector<1x1x16x128xbf16> to vector<16x128xbf16>
    %228 = arith.extf %227 : vector<16x128xbf16> to vector<16x128xf32>
    %229 = vector.broadcast %224 : f32 to vector<16x128xf32>
    %230 = arith.mulf %228, %229 : vector<16x128xf32>
    %c0_133 = arith.constant 0 : index
    %231 = arith.index_cast %216 : i32 to index
    %c0_134 = arith.constant 0 : index
    %c0_135 = arith.constant 0 : index
    %232 = vector.load %arg4[%c0_133, %231, %c0_134, %c0_135] : memref<1x8x16x128xbf16, #tpu.memory_space<vmem>>, vector<1x1x16x128xbf16>
    %233 = vector.shape_cast %232 : vector<1x1x16x128xbf16> to vector<16x128xbf16>
    %234 = arith.extf %233 : vector<16x128xbf16> to vector<16x128xf32>
    %235 = vector.broadcast %222 : f32 to vector<16x128xf32>
    %236 = arith.mulf %234, %235 : vector<16x128xf32>
    %237 = arith.addf %230, %236 : vector<16x128xf32>
    %238 = arith.truncf %237 : vector<16x128xf32> to vector<16x128xbf16>
    %c96 = arith.constant 96 : index
    %c128_136 = arith.constant 128 : index
    %239 = vector.load %arg10[%c96, %c128_136] : memref<192x256xbf16, #tpu.memory_space<vmem>>, vector<16x128xbf16>
    tpu.vector_store %arg10[%c96, %c128_136], %238 {strides = array<i32>} : memref<192x256xbf16, #tpu.memory_space<vmem>>, vector<16x128xbf16>,
    %c8_i32_137 = arith.constant 8 : i32
    %240 = arith.muli %arg1, %c8_i32_137 : i32
    %c5_i32 = arith.constant 5 : i32
    %241 = arith.addi %240, %c5_i32 : i32
    %242 = arith.sitofp %241 : i32 to f32
    %cst_138 = arith.constant 0.466666669 : f32
    %243 = arith.mulf %242, %cst_138 : f32
    %244 = math.floor %243 : f32
    %245 = arith.fptosi %244 : f32 to i32
    %c0_i32_139 = arith.constant 0 : i32
    %c7_i32_140 = arith.constant 7 : i32
    %246 = arith.maxsi %c0_i32_139, %245 : i32
    %247 = arith.minsi %c7_i32_140, %246 : i32
    %c1_i32_141 = arith.constant 1 : i32
    %248 = arith.addi %247, %c1_i32_141 : i32
    %c7_i32_142 = arith.constant 7 : i32
    %249 = arith.minsi %248, %c7_i32_142 : i32
    %250 = arith.sitofp %247 : i32 to f32
    %251 = arith.subf %243, %250 : f32
    %c0_i32_143 = arith.constant 0 : i32
    %252 = arith.cmpi sge, %241, %c0_i32_143 : i32
    %c16_i32_144 = arith.constant 16 : i32
    %253 = arith.cmpi slt, %241, %c16_i32_144 : i32
    %254 = arith.andi %252, %253 : i1
    %cst_145 = arith.constant 0.000000e+00 : f32
    %255 = arith.select %254, %251, %cst_145 : f32
    %cst_146 = arith.constant 1.000000e+00 : f32
    %256 = arith.subf %cst_146, %251 : f32
    %cst_147 = arith.constant 0.000000e+00 : f32
    %257 = arith.select %254, %256, %cst_147 : f32
    %c0_148 = arith.constant 0 : index
    %258 = arith.index_cast %247 : i32 to index
    %c0_149 = arith.constant 0 : index
    %c0_150 = arith.constant 0 : index
    %259 = vector.load %arg4[%c0_148, %258, %c0_149, %c0_150] : memref<1x8x16x128xbf16, #tpu.memory_space<vmem>>, vector<1x1x16x128xbf16>
    %260 = vector.shape_cast %259 : vector<1x1x16x128xbf16> to vector<16x128xbf16>
    %261 = arith.extf %260 : vector<16x128xbf16> to vector<16x128xf32>
    %262 = vector.broadcast %257 : f32 to vector<16x128xf32>
    %263 = arith.mulf %261, %262 : vector<16x128xf32>
    %c0_151 = arith.constant 0 : index
    %264 = arith.index_cast %249 : i32 to index
    %c0_152 = arith.constant 0 : index
    %c0_153 = arith.constant 0 : index
    %265 = vector.load %arg4[%c0_151, %264, %c0_152, %c0_153] : memref<1x8x16x128xbf16, #tpu.memory_space<vmem>>, vector<1x1x16x128xbf16>
    %266 = vector.shape_cast %265 : vector<1x1x16x128xbf16> to vector<16x128xbf16>
    %267 = arith.extf %266 : vector<16x128xbf16> to vector<16x128xf32>
    %268 = vector.broadcast %255 : f32 to vector<16x128xf32>
    %269 = arith.mulf %267, %268 : vector<16x128xf32>
    %270 = arith.addf %263, %269 : vector<16x128xf32>
    %271 = arith.truncf %270 : vector<16x128xf32> to vector<16x128xbf16>
    %c112 = arith.constant 112 : index
    %c128_154 = arith.constant 128 : index
    %272 = vector.load %arg10[%c112, %c128_154] : memref<192x256xbf16, #tpu.memory_space<vmem>>, vector<16x128xbf16>
    tpu.vector_store %arg10[%c112, %c128_154], %271 {strides = array<i32>} : memref<192x256xbf16, #tpu.memory_space<vmem>>, vector<16x128xbf16>,
    %c8_i32_155 = arith.constant 8 : i32
    %273 = arith.muli %arg1, %c8_i32_155 : i32
    %c6_i32 = arith.constant 6 : i32
    %274 = arith.addi %273, %c6_i32 : i32
    %275 = arith.sitofp %274 : i32 to f32
    %cst_156 = arith.constant 0.466666669 : f32
    %276 = arith.mulf %275, %cst_156 : f32
    %277 = math.floor %276 : f32
    %278 = arith.fptosi %277 : f32 to i32
    %c0_i32_157 = arith.constant 0 : i32
    %c7_i32_158 = arith.constant 7 : i32
    %279 = arith.maxsi %c0_i32_157, %278 : i32
    %280 = arith.minsi %c7_i32_158, %279 : i32
    %c1_i32_159 = arith.constant 1 : i32
    %281 = arith.addi %280, %c1_i32_159 : i32
    %c7_i32_160 = arith.constant 7 : i32
    %282 = arith.minsi %281, %c7_i32_160 : i32
    %283 = arith.sitofp %280 : i32 to f32
    %284 = arith.subf %276, %283 : f32
    %c0_i32_161 = arith.constant 0 : i32
    %285 = arith.cmpi sge, %274, %c0_i32_161 : i32
    %c16_i32_162 = arith.constant 16 : i32
    %286 = arith.cmpi slt, %274, %c16_i32_162 : i32
    %287 = arith.andi %285, %286 : i1
    %cst_163 = arith.constant 0.000000e+00 : f32
    %288 = arith.select %287, %284, %cst_163 : f32
    %cst_164 = arith.constant 1.000000e+00 : f32
    %289 = arith.subf %cst_164, %284 : f32
    %cst_165 = arith.constant 0.000000e+00 : f32
    %290 = arith.select %287, %289, %cst_165 : f32
    %c0_166 = arith.constant 0 : index
    %291 = arith.index_cast %280 : i32 to index
    %c0_167 = arith.constant 0 : index
    %c0_168 = arith.constant 0 : index
    %292 = vector.load %arg4[%c0_166, %291, %c0_167, %c0_168] : memref<1x8x16x128xbf16, #tpu.memory_space<vmem>>, vector<1x1x16x128xbf16>
    %293 = vector.shape_cast %292 : vector<1x1x16x128xbf16> to vector<16x128xbf16>
    %294 = arith.extf %293 : vector<16x128xbf16> to vector<16x128xf32>
    %295 = vector.broadcast %290 : f32 to vector<16x128xf32>
    %296 = arith.mulf %294, %295 : vector<16x128xf32>
    %c0_169 = arith.constant 0 : index
    %297 = arith.index_cast %282 : i32 to index
    %c0_170 = arith.constant 0 : index
    %c0_171 = arith.constant 0 : index
    %298 = vector.load %arg4[%c0_169, %297, %c0_170, %c0_171] : memref<1x8x16x128xbf16, #tpu.memory_space<vmem>>, vector<1x1x16x128xbf16>
    %299 = vector.shape_cast %298 : vector<1x1x16x128xbf16> to vector<16x128xbf16>
    %300 = arith.extf %299 : vector<16x128xbf16> to vector<16x128xf32>
    %301 = vector.broadcast %288 : f32 to vector<16x128xf32>
    %302 = arith.mulf %300, %301 : vector<16x128xf32>
    %303 = arith.addf %296, %302 : vector<16x128xf32>
    %304 = arith.truncf %303 : vector<16x128xf32> to vector<16x128xbf16>
    %c128_172 = arith.constant 128 : index
    %c128_173 = arith.constant 128 : index
    %305 = vector.load %arg10[%c128_172, %c128_173] : memref<192x256xbf16, #tpu.memory_space<vmem>>, vector<16x128xbf16>
    tpu.vector_store %arg10[%c128_172, %c128_173], %304 {strides = array<i32>} : memref<192x256xbf16, #tpu.memory_space<vmem>>, vector<16x128xbf16>,
    %c8_i32_174 = arith.constant 8 : i32
    %306 = arith.muli %arg1, %c8_i32_174 : i32
    %c7_i32_175 = arith.constant 7 : i32
    %307 = arith.addi %306, %c7_i32_175 : i32
    %308 = arith.sitofp %307 : i32 to f32
    %cst_176 = arith.constant 0.466666669 : f32
    %309 = arith.mulf %308, %cst_176 : f32
    %310 = math.floor %309 : f32
    %311 = arith.fptosi %310 : f32 to i32
    %c0_i32_177 = arith.constant 0 : i32
    %c7_i32_178 = arith.constant 7 : i32
    %312 = arith.maxsi %c0_i32_177, %311 : i32
    %313 = arith.minsi %c7_i32_178, %312 : i32
    %c1_i32_179 = arith.constant 1 : i32
    %314 = arith.addi %313, %c1_i32_179 : i32
    %c7_i32_180 = arith.constant 7 : i32
    %315 = arith.minsi %314, %c7_i32_180 : i32
    %316 = arith.sitofp %313 : i32 to f32
    %317 = arith.subf %309, %316 : f32
    %c0_i32_181 = arith.constant 0 : i32
    %318 = arith.cmpi sge, %307, %c0_i32_181 : i32
    %c16_i32_182 = arith.constant 16 : i32
    %319 = arith.cmpi slt, %307, %c16_i32_182 : i32
    %320 = arith.andi %318, %319 : i1
    %cst_183 = arith.constant 0.000000e+00 : f32
    %321 = arith.select %320, %317, %cst_183 : f32
    %cst_184 = arith.constant 1.000000e+00 : f32
    %322 = arith.subf %cst_184, %317 : f32
    %cst_185 = arith.constant 0.000000e+00 : f32
    %323 = arith.select %320, %322, %cst_185 : f32
    %c0_186 = arith.constant 0 : index
    %324 = arith.index_cast %313 : i32 to index
    %c0_187 = arith.constant 0 : index
    %c0_188 = arith.constant 0 : index
    %325 = vector.load %arg4[%c0_186, %324, %c0_187, %c0_188] : memref<1x8x16x128xbf16, #tpu.memory_space<vmem>>, vector<1x1x16x128xbf16>
    %326 = vector.shape_cast %325 : vector<1x1x16x128xbf16> to vector<16x128xbf16>
    %327 = arith.extf %326 : vector<16x128xbf16> to vector<16x128xf32>
    %328 = vector.broadcast %323 : f32 to vector<16x128xf32>
    %329 = arith.mulf %327, %328 : vector<16x128xf32>
    %c0_189 = arith.constant 0 : index
    %330 = arith.index_cast %315 : i32 to index
    %c0_190 = arith.constant 0 : index
    %c0_191 = arith.constant 0 : index
    %331 = vector.load %arg4[%c0_189, %330, %c0_190, %c0_191] : memref<1x8x16x128xbf16, #tpu.memory_space<vmem>>, vector<1x1x16x128xbf16>
    %332 = vector.shape_cast %331 : vector<1x1x16x128xbf16> to vector<16x128xbf16>
    %333 = arith.extf %332 : vector<16x128xbf16> to vector<16x128xf32>
    %334 = vector.broadcast %321 : f32 to vector<16x128xf32>
    %335 = arith.mulf %333, %334 : vector<16x128xf32>
    %336 = arith.addf %329, %335 : vector<16x128xf32>
    %337 = arith.truncf %336 : vector<16x128xf32> to vector<16x128xbf16>
    %c144 = arith.constant 144 : index
    %c128_192 = arith.constant 128 : index
    %338 = vector.load %arg10[%c144, %c128_192] : memref<192x256xbf16, #tpu.memory_space<vmem>>, vector<16x128xbf16>
    tpu.vector_store %arg10[%c144, %c128_192], %337 {strides = array<i32>} : memref<192x256xbf16, #tpu.memory_space<vmem>>, vector<16x128xbf16>,
    %c8_i32_193 = arith.constant 8 : i32
    %339 = arith.muli %arg1, %c8_i32_193 : i32
    %c8_i32_194 = arith.constant 8 : i32
    %340 = arith.addi %339, %c8_i32_194 : i32
    %341 = arith.sitofp %340 : i32 to f32
    %cst_195 = arith.constant 0.466666669 : f32
    %342 = arith.mulf %341, %cst_195 : f32
    %343 = math.floor %342 : f32
    %344 = arith.fptosi %343 : f32 to i32
    %c0_i32_196 = arith.constant 0 : i32
    %c7_i32_197 = arith.constant 7 : i32
    %345 = arith.maxsi %c0_i32_196, %344 : i32
    %346 = arith.minsi %c7_i32_197, %345 : i32
    %c1_i32_198 = arith.constant 1 : i32
    %347 = arith.addi %346, %c1_i32_198 : i32
    %c7_i32_199 = arith.constant 7 : i32
    %348 = arith.minsi %347, %c7_i32_199 : i32
    %349 = arith.sitofp %346 : i32 to f32
    %350 = arith.subf %342, %349 : f32
    %c0_i32_200 = arith.constant 0 : i32
    %351 = arith.cmpi sge, %340, %c0_i32_200 : i32
    %c16_i32_201 = arith.constant 16 : i32
    %352 = arith.cmpi slt, %340, %c16_i32_201 : i32
    %353 = arith.andi %351, %352 : i1
    %cst_202 = arith.constant 0.000000e+00 : f32
    %354 = arith.select %353, %350, %cst_202 : f32
    %cst_203 = arith.constant 1.000000e+00 : f32
    %355 = arith.subf %cst_203, %350 : f32
    %cst_204 = arith.constant 0.000000e+00 : f32
    %356 = arith.select %353, %355, %cst_204 : f32
    %c0_205 = arith.constant 0 : index
    %357 = arith.index_cast %346 : i32 to index
    %c0_206 = arith.constant 0 : index
    %c0_207 = arith.constant 0 : index
    %358 = vector.load %arg4[%c0_205, %357, %c0_206, %c0_207] : memref<1x8x16x128xbf16, #tpu.memory_space<vmem>>, vector<1x1x16x128xbf16>
    %359 = vector.shape_cast %358 : vector<1x1x16x128xbf16> to vector<16x128xbf16>
    %360 = arith.extf %359 : vector<16x128xbf16> to vector<16x128xf32>
    %361 = vector.broadcast %356 : f32 to vector<16x128xf32>
    %362 = arith.mulf %360, %361 : vector<16x128xf32>
    %c0_208 = arith.constant 0 : index
    %363 = arith.index_cast %348 : i32 to index
    %c0_209 = arith.constant 0 : index
    %c0_210 = arith.constant 0 : index
    %364 = vector.load %arg4[%c0_208, %363, %c0_209, %c0_210] : memref<1x8x16x128xbf16, #tpu.memory_space<vmem>>, vector<1x1x16x128xbf16>
    %365 = vector.shape_cast %364 : vector<1x1x16x128xbf16> to vector<16x128xbf16>
    %366 = arith.extf %365 : vector<16x128xbf16> to vector<16x128xf32>
    %367 = vector.broadcast %354 : f32 to vector<16x128xf32>
    %368 = arith.mulf %366, %367 : vector<16x128xf32>
    %369 = arith.addf %362, %368 : vector<16x128xf32>
    %370 = arith.truncf %369 : vector<16x128xf32> to vector<16x128xbf16>
    %c160_211 = arith.constant 160 : index
    %c128_212 = arith.constant 128 : index
    %371 = vector.load %arg10[%c160_211, %c128_212] : memref<192x256xbf16, #tpu.memory_space<vmem>>, vector<16x128xbf16>
    tpu.vector_store %arg10[%c160_211, %c128_212], %370 {strides = array<i32>} : memref<192x256xbf16, #tpu.memory_space<vmem>>, vector<16x128xbf16>,
    %c8_i32_213 = arith.constant 8 : i32
    %372 = arith.muli %arg1, %c8_i32_213 : i32
    %c9_i32 = arith.constant 9 : i32
    %373 = arith.addi %372, %c9_i32 : i32
    %374 = arith.sitofp %373 : i32 to f32
    %cst_214 = arith.constant 0.466666669 : f32
    %375 = arith.mulf %374, %cst_214 : f32
    %376 = math.floor %375 : f32
    %377 = arith.fptosi %376 : f32 to i32
    %c0_i32_215 = arith.constant 0 : i32
    %c7_i32_216 = arith.constant 7 : i32
    %378 = arith.maxsi %c0_i32_215, %377 : i32
    %379 = arith.minsi %c7_i32_216, %378 : i32
    %c1_i32_217 = arith.constant 1 : i32
    %380 = arith.addi %379, %c1_i32_217 : i32
    %c7_i32_218 = arith.constant 7 : i32
    %381 = arith.minsi %380, %c7_i32_218 : i32
    %382 = arith.sitofp %379 : i32 to f32
    %383 = arith.subf %375, %382 : f32
    %c0_i32_219 = arith.constant 0 : i32
    %384 = arith.cmpi sge, %373, %c0_i32_219 : i32
    %c16_i32_220 = arith.constant 16 : i32
    %385 = arith.cmpi slt, %373, %c16_i32_220 : i32
    %386 = arith.andi %384, %385 : i1
    %cst_221 = arith.constant 0.000000e+00 : f32
    %387 = arith.select %386, %383, %cst_221 : f32
    %cst_222 = arith.constant 1.000000e+00 : f32
    %388 = arith.subf %cst_222, %383 : f32
    %cst_223 = arith.constant 0.000000e+00 : f32
    %389 = arith.select %386, %388, %cst_223 : f32
    %c0_224 = arith.constant 0 : index
    %390 = arith.index_cast %379 : i32 to index
    %c0_225 = arith.constant 0 : index
    %c0_226 = arith.constant 0 : index
    %391 = vector.load %arg4[%c0_224, %390, %c0_225, %c0_226] : memref<1x8x16x128xbf16, #tpu.memory_space<vmem>>, vector<1x1x16x128xbf16>
    %392 = vector.shape_cast %391 : vector<1x1x16x128xbf16> to vector<16x128xbf16>
    %393 = arith.extf %392 : vector<16x128xbf16> to vector<16x128xf32>
    %394 = vector.broadcast %389 : f32 to vector<16x128xf32>
    %395 = arith.mulf %393, %394 : vector<16x128xf32>
    %c0_227 = arith.constant 0 : index
    %396 = arith.index_cast %381 : i32 to index
    %c0_228 = arith.constant 0 : index
    %c0_229 = arith.constant 0 : index
    %397 = vector.load %arg4[%c0_227, %396, %c0_228, %c0_229] : memref<1x8x16x128xbf16, #tpu.memory_space<vmem>>, vector<1x1x16x128xbf16>
    %398 = vector.shape_cast %397 : vector<1x1x16x128xbf16> to vector<16x128xbf16>
    %399 = arith.extf %398 : vector<16x128xbf16> to vector<16x128xf32>
    %400 = vector.broadcast %387 : f32 to vector<16x128xf32>
    %401 = arith.mulf %399, %400 : vector<16x128xf32>
    %402 = arith.addf %395, %401 : vector<16x128xf32>
    %403 = arith.truncf %402 : vector<16x128xf32> to vector<16x128xbf16>
    %c176 = arith.constant 176 : index
    %c128_230 = arith.constant 128 : index
    %404 = vector.load %arg10[%c176, %c128_230] : memref<192x256xbf16, #tpu.memory_space<vmem>>, vector<16x128xbf16>
    tpu.vector_store %arg10[%c176, %c128_230], %403 {strides = array<i32>} : memref<192x256xbf16, #tpu.memory_space<vmem>>, vector<16x128xbf16>,
    %c0_231 = arith.constant 0 : index
    %c0_232 = arith.constant 0 : index
    %405 = vector.load %arg10[%c0_231, %c0_232] : memref<192x256xbf16, #tpu.memory_space<vmem>>, vector<192x256xbf16>
    %406 = tpu.iota {dimensions = array<i32: 0>} : vector<192x1xi32>
    %c15_i32 = arith.constant 15 : i32
    %407 = vector.broadcast %c15_i32 : i32 to vector<192x1xi32>
    %408 = arith.andi %406, %407 : vector<192x1xi32>
    %c0_233 = arith.constant 0 : index
    %c0_234 = arith.constant 0 : index
    %c0_235 = arith.constant 0 : index
    %409 = vector.load %arg5[%c0_233, %c0_234, %c0_235] : memref<3x256x384xbf16, #tpu.memory_space<vmem>>, vector<1x256x384xbf16>
    %410 = vector.shape_cast %409 : vector<1x256x384xbf16> to vector<256x384xbf16>
    %cst_236 = arith.constant dense<0.000000e+00> : vector<192x384xf32>
    %411 = tpu.matmul %405, %410, %cst_236 {dimension_numbers = #tpu.dot_dimension_numbers<[1], [0], [0], [1], [0, 0, 1, 1], [], []>} : vector<192x256xbf16>, vector<256x384xbf16>, vector<192x384xf32> -> vector<192x384xf32>
    %412 = vector.extract_strided_slice %411 {offsets = [0, 128], sizes = [192, 128], strides = [1, 1]} : vector<192x384xf32> to vector<192x128xf32>
    %c1_i32_237 = arith.constant 1 : i32
    %413 = vector.broadcast %c1_i32_237 : i32 to vector<192x1xi32>
    %414 = arith.cmpi sge, %408, %413 : vector<192x1xi32>
    %415 = vector.extract_strided_slice %411 {offsets = [0, 0], sizes = [192, 128], strides = [1, 1]} : vector<192x384xf32> to vector<192x128xf32>
    %c1_i32_238 = arith.constant 1 : i32
    %416 = tpu.dynamic_rotate %415 by %c1_i32_238 dim 0 : vector<192x128xf32>, i32 -> vector<192x128xf32>
    %cst_239 = arith.constant 0.000000e+00 : f32
    %417 = vector.shape_cast %414 : vector<192x1xi1> to vector<192x1xi1>
    %418 = vector.broadcast %417 : vector<192x1xi1> to vector<192x128xi1>
    %419 = vector.broadcast %cst_239 : f32 to vector<192x128xf32>
    %420 = arith.select %418, %416, %419 : vector<192x128xi1>, vector<192x128xf32>
    %c14_i32 = arith.constant 14 : i32
    %421 = vector.broadcast %c14_i32 : i32 to vector<192x1xi32>
    %422 = arith.cmpi sle, %408, %421 : vector<192x1xi32>
    %423 = vector.extract_strided_slice %411 {offsets = [0, 256], sizes = [192, 128], strides = [1, 1]} : vector<192x384xf32> to vector<192x128xf32>
    %c191_i32 = arith.constant 191 : i32
    %424 = tpu.dynamic_rotate %423 by %c191_i32 dim 0 : vector<192x128xf32>, i32 -> vector<192x128xf32>
    %cst_240 = arith.constant 0.000000e+00 : f32
    %425 = vector.shape_cast %422 : vector<192x1xi1> to vector<192x1xi1>
    %426 = vector.broadcast %425 : vector<192x1xi1> to vector<192x128xi1>
    %427 = vector.broadcast %cst_240 : f32 to vector<192x128xf32>
    %428 = arith.select %426, %424, %427 : vector<192x128xi1>, vector<192x128xf32>
    %429 = arith.addf %412, %420 : vector<192x128xf32>
    %430 = arith.addf %429, %428 : vector<192x128xf32>
    %431 = vector.extract_strided_slice %430 {offsets = [0, 0], sizes = [160, 128], strides = [1, 1]} : vector<192x128xf32> to vector<160x128xf32>
    %c1 = arith.constant 1 : index
    %c0_241 = arith.constant 0 : index
    %c0_242 = arith.constant 0 : index
    %432 = vector.load %arg5[%c1, %c0_241, %c0_242] : memref<3x256x384xbf16, #tpu.memory_space<vmem>>, vector<1x256x384xbf16>
    %433 = vector.shape_cast %432 : vector<1x256x384xbf16> to vector<256x384xbf16>
    %cst_243 = arith.constant dense<0.000000e+00> : vector<192x384xf32>
    %434 = tpu.matmul %405, %433, %cst_243 {dimension_numbers = #tpu.dot_dimension_numbers<[1], [0], [0], [1], [0, 0, 1, 1], [], []>} : vector<192x256xbf16>, vector<256x384xbf16>, vector<192x384xf32> -> vector<192x384xf32>
    %435 = vector.extract_strided_slice %434 {offsets = [0, 128], sizes = [192, 128], strides = [1, 1]} : vector<192x384xf32> to vector<192x128xf32>
    %c1_i32_244 = arith.constant 1 : i32
    %436 = vector.broadcast %c1_i32_244 : i32 to vector<192x1xi32>
    %437 = arith.cmpi sge, %408, %436 : vector<192x1xi32>
    %438 = vector.extract_strided_slice %434 {offsets = [0, 0], sizes = [192, 128], strides = [1, 1]} : vector<192x384xf32> to vector<192x128xf32>
    %c1_i32_245 = arith.constant 1 : i32
    %439 = tpu.dynamic_rotate %438 by %c1_i32_245 dim 0 : vector<192x128xf32>, i32 -> vector<192x128xf32>
    %cst_246 = arith.constant 0.000000e+00 : f32
    %440 = vector.shape_cast %437 : vector<192x1xi1> to vector<192x1xi1>
    %441 = vector.broadcast %440 : vector<192x1xi1> to vector<192x128xi1>
    %442 = vector.broadcast %cst_246 : f32 to vector<192x128xf32>
    %443 = arith.select %441, %439, %442 : vector<192x128xi1>, vector<192x128xf32>
    %c14_i32_247 = arith.constant 14 : i32
    %444 = vector.broadcast %c14_i32_247 : i32 to vector<192x1xi32>
    %445 = arith.cmpi sle, %408, %444 : vector<192x1xi32>
    %446 = vector.extract_strided_slice %434 {offsets = [0, 256], sizes = [192, 128], strides = [1, 1]} : vector<192x384xf32> to vector<192x128xf32>
    %c191_i32_248 = arith.constant 191 : i32
    %447 = tpu.dynamic_rotate %446 by %c191_i32_248 dim 0 : vector<192x128xf32>, i32 -> vector<192x128xf32>
    %cst_249 = arith.constant 0.000000e+00 : f32
    %448 = vector.shape_cast %445 : vector<192x1xi1> to vector<192x1xi1>
    %449 = vector.broadcast %448 : vector<192x1xi1> to vector<192x128xi1>
    %450 = vector.broadcast %cst_249 : f32 to vector<192x128xf32>
    %451 = arith.select %449, %447, %450 : vector<192x128xi1>, vector<192x128xf32>
    %452 = arith.addf %435, %443 : vector<192x128xf32>
    %453 = arith.addf %452, %451 : vector<192x128xf32>
    %454 = vector.extract_strided_slice %453 {offsets = [16, 0], sizes = [160, 128], strides = [1, 1]} : vector<192x128xf32> to vector<160x128xf32>
    %455 = arith.addf %431, %454 : vector<160x128xf32>
    %c2 = arith.constant 2 : index
    %c0_250 = arith.constant 0 : index
    %c0_251 = arith.constant 0 : index
    %456 = vector.load %arg5[%c2, %c0_250, %c0_251] : memref<3x256x384xbf16, #tpu.memory_space<vmem>>, vector<1x256x384xbf16>
    %457 = vector.shape_cast %456 : vector<1x256x384xbf16> to vector<256x384xbf16>
    %cst_252 = arith.constant dense<0.000000e+00> : vector<192x384xf32>
    %458 = tpu.matmul %405, %457, %cst_252 {dimension_numbers = #tpu.dot_dimension_numbers<[1], [0], [0], [1], [0, 0, 1, 1], [], []>} : vector<192x256xbf16>, vector<256x384xbf16>, vector<192x384xf32> -> vector<192x384xf32>
    %459 = vector.extract_strided_slice %458 {offsets = [0, 128], sizes = [192, 128], strides = [1, 1]} : vector<192x384xf32> to vector<192x128xf32>
    %c1_i32_253 = arith.constant 1 : i32
    %460 = vector.broadcast %c1_i32_253 : i32 to vector<192x1xi32>
    %461 = arith.cmpi sge, %408, %460 : vector<192x1xi32>
    %462 = vector.extract_strided_slice %458 {offsets = [0, 0], sizes = [192, 128], strides = [1, 1]} : vector<192x384xf32> to vector<192x128xf32>
    %c1_i32_254 = arith.constant 1 : i32
    %463 = tpu.dynamic_rotate %462 by %c1_i32_254 dim 0 : vector<192x128xf32>, i32 -> vector<192x128xf32>
    %cst_255 = arith.constant 0.000000e+00 : f32
    %464 = vector.shape_cast %461 : vector<192x1xi1> to vector<192x1xi1>
    %465 = vector.broadcast %464 : vector<192x1xi1> to vector<192x128xi1>
    %466 = vector.broadcast %cst_255 : f32 to vector<192x128xf32>
    %467 = arith.select %465, %463, %466 : vector<192x128xi1>, vector<192x128xf32>
    %c14_i32_256 = arith.constant 14 : i32
    %468 = vector.broadcast %c14_i32_256 : i32 to vector<192x1xi32>
    %469 = arith.cmpi sle, %408, %468 : vector<192x1xi32>
    %470 = vector.extract_strided_slice %458 {offsets = [0, 256], sizes = [192, 128], strides = [1, 1]} : vector<192x384xf32> to vector<192x128xf32>
    %c191_i32_257 = arith.constant 191 : i32
    %471 = tpu.dynamic_rotate %470 by %c191_i32_257 dim 0 : vector<192x128xf32>, i32 -> vector<192x128xf32>
    %cst_258 = arith.constant 0.000000e+00 : f32
    %472 = vector.shape_cast %469 : vector<192x1xi1> to vector<192x1xi1>
    %473 = vector.broadcast %472 : vector<192x1xi1> to vector<192x128xi1>
    %474 = vector.broadcast %cst_258 : f32 to vector<192x128xf32>
    %475 = arith.select %473, %471, %474 : vector<192x128xi1>, vector<192x128xf32>
    %476 = arith.addf %459, %467 : vector<192x128xf32>
    %477 = arith.addf %476, %475 : vector<192x128xf32>
    %478 = vector.extract_strided_slice %477 {offsets = [32, 0], sizes = [160, 128], strides = [1, 1]} : vector<192x128xf32> to vector<160x128xf32>
    %479 = arith.addf %455, %478 : vector<160x128xf32>
    %c0_259 = arith.constant 0 : index
    %c0_260 = arith.constant 0 : index
    %c0_261 = arith.constant 0 : index
    %480 = vector.load %arg6[%c0_259, %c0_260, %c0_261] : memref<1x1x128xf32, #tpu.memory_space<vmem>>, vector<1x1x128xf32>
    %481 = vector.shape_cast %480 : vector<1x1x128xf32> to vector<1x128xf32>
    %482 = vector.broadcast %481 : vector<1x128xf32> to vector<160x128xf32>
    %483 = arith.addf %479, %482 : vector<160x128xf32>
    %cst_262 = arith.constant 0.000000e+00 : f32
    %484 = vector.broadcast %cst_262 : f32 to vector<160x128xf32>
    %485 = arith.maximumf %483, %484 : vector<160x128xf32>
    %486 = arith.truncf %485 : vector<160x128xf32> to vector<160x128xbf16>
    %c0_263 = arith.constant 0 : index
    %c0_264 = arith.constant 0 : index
    %487 = vector.load %arg11[%c0_263, %c0_264] : memref<160x128xbf16, #tpu.memory_space<vmem>>, vector<160x128xbf16>
    tpu.vector_store %arg11[%c0_263, %c0_264], %486 {strides = array<i32>} : memref<160x128xbf16, #tpu.memory_space<vmem>>, vector<160x128xbf16>,
    %c0_i32_265 = arith.constant 0 : i32
    %488 = arith.cmpi eq, %arg1, %c0_i32_265 : i32
    %489 = arith.extui %488 : i1 to i32
    %c0_i32_266 = arith.constant 0 : i32
    %490 = arith.cmpi ne, %489, %c0_i32_266 : i32
    scf.if %490 {
      %cst_308 = arith.constant 0.000000e+00 : bf16
      %578 = vector.broadcast %cst_308 : bf16 to vector<16x128xbf16>
      %c0_309 = arith.constant 0 : index
      %c0_310 = arith.constant 0 : index
      %579 = vector.load %arg11[%c0_309, %c0_310] : memref<160x128xbf16, #tpu.memory_space<vmem>>, vector<16x128xbf16>
      tpu.vector_store %arg11[%c0_309, %c0_310], %578 {strides = array<i32>} : memref<160x128xbf16, #tpu.memory_space<vmem>>, vector<16x128xbf16>,
    } else {
    }
    %c1_i32_267 = arith.constant 1 : i32
    %491 = arith.cmpi eq, %arg1, %c1_i32_267 : i32
    %492 = arith.extui %491 : i1 to i32
    %c0_i32_268 = arith.constant 0 : i32
    %493 = arith.cmpi ne, %492, %c0_i32_268 : i32
    scf.if %493 {
      %cst_308 = arith.constant 0.000000e+00 : bf16
      %578 = vector.broadcast %cst_308 : bf16 to vector<16x128xbf16>
      %c144_309 = arith.constant 144 : index
      %c0_310 = arith.constant 0 : index
      %579 = vector.load %arg11[%c144_309, %c0_310] : memref<160x128xbf16, #tpu.memory_space<vmem>>, vector<16x128xbf16>
      tpu.vector_store %arg11[%c144_309, %c0_310], %578 {strides = array<i32>} : memref<160x128xbf16, #tpu.memory_space<vmem>>, vector<16x128xbf16>,
    } else {
    }
    %c0_269 = arith.constant 0 : index
    %c0_270 = arith.constant 0 : index
    %494 = vector.load %arg11[%c0_269, %c0_270] : memref<160x128xbf16, #tpu.memory_space<vmem>>, vector<160x128xbf16>
    %495 = tpu.iota {dimensions = array<i32: 0>} : vector<160x1xi32>
    %c15_i32_271 = arith.constant 15 : i32
    %496 = vector.broadcast %c15_i32_271 : i32 to vector<160x1xi32>
    %497 = arith.andi %495, %496 : vector<160x1xi32>
    %c0_272 = arith.constant 0 : index
    %c0_273 = arith.constant 0 : index
    %c0_274 = arith.constant 0 : index
    %498 = vector.load %arg7[%c0_272, %c0_273, %c0_274] : memref<3x128x384xbf16, #tpu.memory_space<vmem>>, vector<1x128x384xbf16>
    %499 = vector.shape_cast %498 : vector<1x128x384xbf16> to vector<128x384xbf16>
    %cst_275 = arith.constant dense<0.000000e+00> : vector<160x384xf32>
    %500 = tpu.matmul %494, %499, %cst_275 {dimension_numbers = #tpu.dot_dimension_numbers<[1], [0], [0], [1], [0, 0, 1, 1], [], []>} : vector<160x128xbf16>, vector<128x384xbf16>, vector<160x384xf32> -> vector<160x384xf32>
    %501 = vector.extract_strided_slice %500 {offsets = [0, 128], sizes = [160, 128], strides = [1, 1]} : vector<160x384xf32> to vector<160x128xf32>
    %c1_i32_276 = arith.constant 1 : i32
    %502 = vector.broadcast %c1_i32_276 : i32 to vector<160x1xi32>
    %503 = arith.cmpi sge, %497, %502 : vector<160x1xi32>
    %504 = vector.extract_strided_slice %500 {offsets = [0, 0], sizes = [160, 128], strides = [1, 1]} : vector<160x384xf32> to vector<160x128xf32>
    %c1_i32_277 = arith.constant 1 : i32
    %505 = tpu.dynamic_rotate %504 by %c1_i32_277 dim 0 : vector<160x128xf32>, i32 -> vector<160x128xf32>
    %cst_278 = arith.constant 0.000000e+00 : f32
    %506 = vector.shape_cast %503 : vector<160x1xi1> to vector<160x1xi1>
    %507 = vector.broadcast %506 : vector<160x1xi1> to vector<160x128xi1>
    %508 = vector.broadcast %cst_278 : f32 to vector<160x128xf32>
    %509 = arith.select %507, %505, %508 : vector<160x128xi1>, vector<160x128xf32>
    %c14_i32_279 = arith.constant 14 : i32
    %510 = vector.broadcast %c14_i32_279 : i32 to vector<160x1xi32>
    %511 = arith.cmpi sle, %497, %510 : vector<160x1xi32>
    %512 = vector.extract_strided_slice %500 {offsets = [0, 256], sizes = [160, 128], strides = [1, 1]} : vector<160x384xf32> to vector<160x128xf32>
    %c159_i32 = arith.constant 159 : i32
    %513 = tpu.dynamic_rotate %512 by %c159_i32 dim 0 : vector<160x128xf32>, i32 -> vector<160x128xf32>
    %cst_280 = arith.constant 0.000000e+00 : f32
    %514 = vector.shape_cast %511 : vector<160x1xi1> to vector<160x1xi1>
    %515 = vector.broadcast %514 : vector<160x1xi1> to vector<160x128xi1>
    %516 = vector.broadcast %cst_280 : f32 to vector<160x128xf32>
    %517 = arith.select %515, %513, %516 : vector<160x128xi1>, vector<160x128xf32>
    %518 = arith.addf %501, %509 : vector<160x128xf32>
    %519 = arith.addf %518, %517 : vector<160x128xf32>
    %520 = vector.extract_strided_slice %519 {offsets = [0, 0], sizes = [128, 128], strides = [1, 1]} : vector<160x128xf32> to vector<128x128xf32>
    %c1_281 = arith.constant 1 : index
    %c0_282 = arith.constant 0 : index
    %c0_283 = arith.constant 0 : index
    %521 = vector.load %arg7[%c1_281, %c0_282, %c0_283] : memref<3x128x384xbf16, #tpu.memory_space<vmem>>, vector<1x128x384xbf16>
    %522 = vector.shape_cast %521 : vector<1x128x384xbf16> to vector<128x384xbf16>
    %cst_284 = arith.constant dense<0.000000e+00> : vector<160x384xf32>
    %523 = tpu.matmul %494, %522, %cst_284 {dimension_numbers = #tpu.dot_dimension_numbers<[1], [0], [0], [1], [0, 0, 1, 1], [], []>} : vector<160x128xbf16>, vector<128x384xbf16>, vector<160x384xf32> -> vector<160x384xf32>
    %524 = vector.extract_strided_slice %523 {offsets = [0, 128], sizes = [160, 128], strides = [1, 1]} : vector<160x384xf32> to vector<160x128xf32>
    %c1_i32_285 = arith.constant 1 : i32
    %525 = vector.broadcast %c1_i32_285 : i32 to vector<160x1xi32>
    %526 = arith.cmpi sge, %497, %525 : vector<160x1xi32>
    %527 = vector.extract_strided_slice %523 {offsets = [0, 0], sizes = [160, 128], strides = [1, 1]} : vector<160x384xf32> to vector<160x128xf32>
    %c1_i32_286 = arith.constant 1 : i32
    %528 = tpu.dynamic_rotate %527 by %c1_i32_286 dim 0 : vector<160x128xf32>, i32 -> vector<160x128xf32>
    %cst_287 = arith.constant 0.000000e+00 : f32
    %529 = vector.shape_cast %526 : vector<160x1xi1> to vector<160x1xi1>
    %530 = vector.broadcast %529 : vector<160x1xi1> to vector<160x128xi1>
    %531 = vector.broadcast %cst_287 : f32 to vector<160x128xf32>
    %532 = arith.select %530, %528, %531 : vector<160x128xi1>, vector<160x128xf32>
    %c14_i32_288 = arith.constant 14 : i32
    %533 = vector.broadcast %c14_i32_288 : i32 to vector<160x1xi32>
    %534 = arith.cmpi sle, %497, %533 : vector<160x1xi32>
    %535 = vector.extract_strided_slice %523 {offsets = [0, 256], sizes = [160, 128], strides = [1, 1]} : vector<160x384xf32> to vector<160x128xf32>
    %c159_i32_289 = arith.constant 159 : i32
    %536 = tpu.dynamic_rotate %535 by %c159_i32_289 dim 0 : vector<160x128xf32>, i32 -> vector<160x128xf32>
    %cst_290 = arith.constant 0.000000e+00 : f32
    %537 = vector.shape_cast %534 : vector<160x1xi1> to vector<160x1xi1>
    %538 = vector.broadcast %537 : vector<160x1xi1> to vector<160x128xi1>
    %539 = vector.broadcast %cst_290 : f32 to vector<160x128xf32>
    %540 = arith.select %538, %536, %539 : vector<160x128xi1>, vector<160x128xf32>
    %541 = arith.addf %524, %532 : vector<160x128xf32>
    %542 = arith.addf %541, %540 : vector<160x128xf32>
    %543 = vector.extract_strided_slice %542 {offsets = [16, 0], sizes = [128, 128], strides = [1, 1]} : vector<160x128xf32> to vector<128x128xf32>
    %544 = arith.addf %520, %543 : vector<128x128xf32>
    %c2_291 = arith.constant 2 : index
    %c0_292 = arith.constant 0 : index
    %c0_293 = arith.constant 0 : index
    %545 = vector.load %arg7[%c2_291, %c0_292, %c0_293] : memref<3x128x384xbf16, #tpu.memory_space<vmem>>, vector<1x128x384xbf16>
    %546 = vector.shape_cast %545 : vector<1x128x384xbf16> to vector<128x384xbf16>
    %cst_294 = arith.constant dense<0.000000e+00> : vector<160x384xf32>
    %547 = tpu.matmul %494, %546, %cst_294 {dimension_numbers = #tpu.dot_dimension_numbers<[1], [0], [0], [1], [0, 0, 1, 1], [], []>} : vector<160x128xbf16>, vector<128x384xbf16>, vector<160x384xf32> -> vector<160x384xf32>
    %548 = vector.extract_strided_slice %547 {offsets = [0, 128], sizes = [160, 128], strides = [1, 1]} : vector<160x384xf32> to vector<160x128xf32>
    %c1_i32_295 = arith.constant 1 : i32
    %549 = vector.broadcast %c1_i32_295 : i32 to vector<160x1xi32>
    %550 = arith.cmpi sge, %497, %549 : vector<160x1xi32>
    %551 = vector.extract_strided_slice %547 {offsets = [0, 0], sizes = [160, 128], strides = [1, 1]} : vector<160x384xf32> to vector<160x128xf32>
    %c1_i32_296 = arith.constant 1 : i32
    %552 = tpu.dynamic_rotate %551 by %c1_i32_296 dim 0 : vector<160x128xf32>, i32 -> vector<160x128xf32>
    %cst_297 = arith.constant 0.000000e+00 : f32
    %553 = vector.shape_cast %550 : vector<160x1xi1> to vector<160x1xi1>
    %554 = vector.broadcast %553 : vector<160x1xi1> to vector<160x128xi1>
    %555 = vector.broadcast %cst_297 : f32 to vector<160x128xf32>
    %556 = arith.select %554, %552, %555 : vector<160x128xi1>, vector<160x128xf32>
    %c14_i32_298 = arith.constant 14 : i32
    %557 = vector.broadcast %c14_i32_298 : i32 to vector<160x1xi32>
    %558 = arith.cmpi sle, %497, %557 : vector<160x1xi32>
    %559 = vector.extract_strided_slice %547 {offsets = [0, 256], sizes = [160, 128], strides = [1, 1]} : vector<160x384xf32> to vector<160x128xf32>
    %c159_i32_299 = arith.constant 159 : i32
    %560 = tpu.dynamic_rotate %559 by %c159_i32_299 dim 0 : vector<160x128xf32>, i32 -> vector<160x128xf32>
    %cst_300 = arith.constant 0.000000e+00 : f32
    %561 = vector.shape_cast %558 : vector<160x1xi1> to vector<160x1xi1>
    %562 = vector.broadcast %561 : vector<160x1xi1> to vector<160x128xi1>
    %563 = vector.broadcast %cst_300 : f32 to vector<160x128xf32>
    %564 = arith.select %562, %560, %563 : vector<160x128xi1>, vector<160x128xf32>
    %565 = arith.addf %548, %556 : vector<160x128xf32>
    %566 = arith.addf %565, %564 : vector<160x128xf32>
    %567 = vector.extract_strided_slice %566 {offsets = [32, 0], sizes = [128, 128], strides = [1, 1]} : vector<160x128xf32> to vector<128x128xf32>
    %568 = arith.addf %544, %567 : vector<128x128xf32>
    %c0_301 = arith.constant 0 : index
    %c0_302 = arith.constant 0 : index
    %c0_303 = arith.constant 0 : index
    %569 = vector.load %arg8[%c0_301, %c0_302, %c0_303] : memref<1x1x128xf32, #tpu.memory_space<vmem>>, vector<1x1x128xf32>
    %570 = vector.shape_cast %569 : vector<1x1x128xf32> to vector<1x128xf32>
    %571 = vector.broadcast %570 : vector<1x128xf32> to vector<128x128xf32>
    %572 = arith.addf %568, %571 : vector<128x128xf32>
    %cst_304 = arith.constant 0.000000e+00 : f32
    %573 = vector.broadcast %cst_304 : f32 to vector<128x128xf32>
    %574 = arith.maximumf %572, %573 : vector<128x128xf32>
    %c0_305 = arith.constant 0 : index
    %c0_306 = arith.constant 0 : index
    %c0_307 = arith.constant 0 : index
    %575 = vector.load %arg9[%c0_305, %c0_306, %c0_307] : memref<1x128x128xf32, #tpu.memory_space<vmem>>, vector<1x128x128xf32>
    %576 = vector.shape_cast %575 : vector<1x128x128xf32> to vector<128x128xf32>
    %577 = vector.shape_cast %574 : vector<128x128xf32> to vector<1x128x128xf32>
    tpu.vector_store %arg9[%c0_305, %c0_306, %c0_307], %577 {strides = array<i32>} : memref<1x128x128xf32, #tpu.memory_space<vmem>>, vector<1x128x128xf32>,
    return
  }
  func.func @transform_0(%arg0: i32, %arg1: i32) -> (i32, i32, i32) {
    %c0_i32 = arith.constant 0 : i32
    %c0_i32_0 = arith.constant 0 : i32
    return %arg0, %arg1, %c0_i32 : i32, i32, i32
  }
  func.func @transform_1(%arg0: i32, %arg1: i32) -> (i32, i32, i32, i32) {
    %c0_i32 = arith.constant 0 : i32
    %c0_i32_0 = arith.constant 0 : i32
    %c0_i32_1 = arith.constant 0 : i32
    return %arg0, %arg1, %c0_i32, %c0_i32_0 : i32, i32, i32, i32
  }
  func.func @transform_2(%arg0: i32, %arg1: i32) -> (i32, i32, i32, i32) {
    %c0_i32 = arith.constant 0 : i32
    %c0_i32_0 = arith.constant 0 : i32
    %c0_i32_1 = arith.constant 0 : i32
    %c0_i32_2 = arith.constant 0 : i32
    return %arg0, %c0_i32, %c0_i32_0, %c0_i32_1 : i32, i32, i32, i32
  }
  func.func @transform_3(%arg0: i32, %arg1: i32) -> (i32, i32, i32) {
    %c0_i32 = arith.constant 0 : i32
    %c0_i32_0 = arith.constant 0 : i32
    %c0_i32_1 = arith.constant 0 : i32
    %c0_i32_2 = arith.constant 0 : i32
    return %c0_i32, %c0_i32_0, %c0_i32_1 : i32, i32, i32
  }
  func.func @transform_4(%arg0: i32, %arg1: i32) -> (i32, i32, i32) {
    %c0_i32 = arith.constant 0 : i32
    %c0_i32_0 = arith.constant 0 : i32
    %c0_i32_1 = arith.constant 0 : i32
    %c0_i32_2 = arith.constant 0 : i32
    return %c0_i32, %c0_i32_0, %c0_i32_1 : i32, i32, i32
  }
  func.func @transform_5(%arg0: i32, %arg1: i32) -> (i32, i32, i32) {
    %c0_i32 = arith.constant 0 : i32
    %c0_i32_0 = arith.constant 0 : i32
    %c0_i32_1 = arith.constant 0 : i32
    %c0_i32_2 = arith.constant 0 : i32
    return %c0_i32, %c0_i32_0, %c0_i32_1 : i32, i32, i32
  }
  func.func @transform_6(%arg0: i32, %arg1: i32) -> (i32, i32, i32) {
    %c0_i32 = arith.constant 0 : i32
    %c0_i32_0 = arith.constant 0 : i32
    %c0_i32_1 = arith.constant 0 : i32
    %c0_i32_2 = arith.constant 0 : i32
    return %c0_i32, %c0_i32_0, %c0_i32_1 : i32, i32, i32
  }
  func.func @transform_7(%arg0: i32, %arg1: i32) -> (i32, i32, i32) {
    %c0_i32 = arith.constant 0 : i32
    %c0_i32_0 = arith.constant 0 : i32
    return %arg0, %arg1, %c0_i32 : i32, i32, i32
  }
}

</mosaic_0001>

<bundles_post_ra>
// kernel: tpu_custom_call.1
= control target key start
LH: loop header
LB: loop body
LE: loop exit
PB: predicated region body
PF: predicated region fallthrough
CT: control target
= control target key end

     0   :  { %s10718_s0 = inlined_call_operand.hbm [shape: bf16[2,256,128], index: 0, kind: input, shape index: {}]   ;;  %s10719_s1 = inlined_call_operand.hbm [shape: bf16[2,2,64,128], index: 1, kind: input, shape index: {}]   ;;  %s10720_s2 = inlined_call_operand.hbm [shape: bf16[2,8,16,128], index: 2, kind: input, shape index: {}]   ;;  %s10721_s3 = inlined_call_operand.hbm [shape: bf16[3,256,384], index: 3, kind: input, shape index: {}]   ;;  %s10722_s4 = inlined_call_operand.vmem [shape: f32[1,1,128], index: 4, kind: input, shape index: {}]   ;;  %s10723_s5 = inlined_call_operand.hbm [shape: bf16[3,128,384], index: 5, kind: input, shape index: {}]   ;;  %s10724_s6 = inlined_call_operand.vmem [shape: f32[1,1,128], index: 6, kind: input, shape index: {}]   ;;  %s10725_s7 = inlined_call_operand.hbm [shape: f32[2,256,128], index: 7, kind: output, shape index: {}]  }
   0x1   :  { %10853 = sst [smem:[#allocation86_spill]] %s10721_s3 }
   0x2   :  { %10854 = sst [smem:[#allocation87_spill]] %s10722_s4 }
   0x3   :  { %10855 = sst [smem:[#allocation88_spill]] %s10724_s6 }
   0x4   :  { %10856 = sst [smem:[#allocation89_spill]] %s10725_s7 }
   0x5   :  { %12 = vsyncpa [#allocation5], 0 }
   0x6   :  { %14 = vsyncpa [#allocation5 + $0x1], 0 }
   0x7   :  { %15 = vsyncpa [#allocation8], 0 }
   0x8   :  { %17 = vsyncpa [#allocation8 + $0x1], 0 }
   0x9   :  { %18 = vsyncpa [#allocation11], 0 }
   0xa   :  { %19 = vsyncpa [#allocation6], 0 }
   0xb   :  { %21 = vsyncpa [#allocation6 + $0x1], 0  ;;  %s8063_s24 = smov 0   ;;  %s8065_s25 = smov 0  }
   0xc   :  { %s8067_s26 = smov 0   ;;  %s8069_s27 = smov 0  }
   0xd   :  { %s8071_s28 = smov 0   ;;  %s8073_s29 = smov 0  }
   0xe   :  { %s8075_s30 = smov 0   ;;  %s8077_s8 = smov 0  }
   0xf   :  { %s8079_s9 = smov 0   ;;  %s8081_s10 = smov 0  }
  0x10   :  { %s8083_s11 = smov 0  }
  0x11 LB: > { %10857 = sst [smem:[#allocation19_spill]] %s7983_s27  ;;  %s8117_s12 = sadd.s32 4294967295, %s8011_s11   ;;  %s8011_s11 = sphi %s8083_s11, %s27_s11   ;;  %s8007_s10 = sphi %s8081_s10, %s11324_s10   ;;  %s8003_s9 = sphi %s8079_s9, %s11323_s9   ;;  %s7999_s8 = sphi %s8077_s8, %s11322_s8   ;;  %s7995_s30 = sphi %s8075_s30, %s11321_s30   ;;  %s7991_s29 = sphi %s8073_s29, %s11320_s29   ;;  %s7987_s28 = sphi %s8071_s28, %s11319_s28   ;;  %s7983_s27 = sphi %s8069_s27, %s11318_s27   ;;  %s7979_s26 = sphi %s8067_s26, %s11317_s26   ;;  %s7975_s25 = sphi %s8065_s25, %s11316_s25   ;;  %s7971_s24 = sphi %s8063_s24, %s11315_s24  }
  0x12   : > { %10858 = sst [smem:[#allocation20_spill]] %s7991_s29  ;;  %p115_p0 = scmp.ne.s32.totalorder %s7975_s25, %s7971_s24 }
  0x13   : > { %10859 = sst [smem:[#allocation21_spill]] %s7995_s30  ;;  %p62_p1 = scmp.eq.s32.totalorder %s8117_s12, 0 }
  0x14   : > { %10860 = sst [smem:[#allocation22_spill]] %s7999_s8  ;;  %p225_p2 = scmp.eq.s32.totalorder %s8117_s12, 3 }
  0x15   : > { %10861 = sst [smem:[#allocation23_spill]] %s8117_s12  ;;  %p5915_p3 = scmp.ge.s32.totalorder %s8011_s11, 1 }
  0x16   : > { %p238_p4 = scmp.lt.s32.totalorder %s8011_s11, 5  ;;  %p8126_p5 = por %p115_p0, %p62_p1 }
  0x17   : > { %s10865_s3 = sld [smem:[#allocation86_spill]]  ;;  %s8013_s18 = smov [#allocation10]  }
  0x18   : > { %s10862_s13 = scalar_select %p8126_p5, 1, 0 }
  0x19   : > { %p8130_p6 = pnand %p5915_p3, %p238_p4  ;;  %s251_s19 = sshll.u32 %s8013_s18, 4  ;;  %s252_s19 = int_to_ptr.vmem [resolvable:$true] %s251_s19 }
  0x1a   : > { %10863 = sst [smem:[#allocation24_spill]] %s10862_s13  ;;  %s10726_s21 = smov 192  }
  0x1b   : > { %p7596_p7 = pneg %p8130_p6  ;;  %s10727_s22 = smov 12  }
  0x1c   : > { %s5914_s23 = sadd.s32 4294967294, %s8011_s11   ;;  %s36_s24 = sadd.s32 1, %s8003_s9 }
  0x1d   : > { %s249_s17 = sshll.u32 %s10865_s3, 4  ;;  %p8141_p8 = pnand %p7596_p7, %p62_p1  ;;  %s250_s17 = int_to_ptr.hbm [resolvable:$true] %s249_s17 }
  0x1e   : > { %p37_p9 = scmp.ge.s32.totalorder %s36_s24, 2  ;;  %s39_s15 = sadd.s32 1, %s8007_s10 }
  0x1f   : > { %7599 = dma.hbm_to_vmem [thread:$0]  (!%p8141_p8), %s250_s17, 18432, %s252_s19, [#allocation11], %s10726_s21, %s10726_s21, %s10727_s22  }
  0x20   : > { %s48_s16 = sadd.s32 1, %s7991_s29  ;;  %p55_p10 = scmp.ne.s32.totalorder %s7991_s29, %s7987_s28 }
  0x21   : > { %s11326_s24 = smov (%p37_p9, %s36_s24), 0  ;;  %s11328_s15 = smov (!%p37_p9, %s39_s15), %s8007_s10 }
  0x22   : > { %10867 = sst [smem:[#allocation25_spill]] %s11326_s24  ;;  %s44_s18 = ssub.s32 %s8003_s9, %s11326_s24 }
  0x23   : > { %p10728_p11 = scmp.eq.s32.totalorder %s8011_s11, 0  ;;  %p41_p12 = scmp.ge.s32.totalorder %s11328_s15, 2 }
  0x24   : > { %p61_p13 = scmp.ne.s32.totalorder %s7987_s28, %s7983_s27  ;;  %p8168_p3 = por %p225_p2, %p55_p10 }
  0x25   : > { %p57_p0 = por %p10728_p11, %p55_p10  ;;  %s11330_s15 = smov (%p41_p12, %s11328_s15), 0 }
  0x26   : > { %s10868_s17 = scalar_select %p8168_p3, 1, 0 }
  0x27   : > { %10870 = sst [smem:[#allocation27_spill]] %s11330_s15  ;;  %p8176_p4 = por %p62_p1, %p61_p13 }
  0x28   : > { %10869 = sst [smem:[#allocation26_spill]] %s10868_s17  ;;  %p231_p7 = scmp.eq.s32.totalorder %s5914_s23, 3 }
  0x29   : > { %s10871_s19 = scalar_select %p8176_p4, 1, 0 }
  0x2a   : > { %s8182_s21 = ssub.s32 %s8007_s10, %s11330_s15  ;;  %p7619_p9 = scmp.lt.s32.totalorder %s8011_s11, 4 }
  0x2b   : > { %10872 = sst [smem:[#allocation28_spill]] %s10871_s19  ;;  %s45_s22 = sor.u32 %s44_s18, %s8182_s21 }
  0x2c   : > { %p100_p2 = scmp.eq.s32.totalorder %s8182_s21, 0  ;;  %p46_p10 = scmp.eq.s32.totalorder %s45_s22, 0 }
  0x2d   : > { %p8187_p11 = por %p231_p7, %p61_p13  ;;  %s8192_s24 = sand.u32 1, %s7991_s29  }
  0x2e   : > { %p8196_p12 = pnand %p7619_p9, %p57_p0  ;;  %s309_s15 = sand.u32 1, %s8011_s11  }
  0x2f   : > { %s10873_s3 = scalar_select %p8187_p11, 1, 0 }
  0x30   : > { %s8201_s23 = scalar_select %p46_p10, %s7991_s29, %s48_s16  }
  0x31   : > { %10874 = sst [smem:[#allocation29_spill]] %s10873_s3  ;;  %s5923_s17 = sshll.u32 %s8192_s24, 5 }
  0x32   : > { %10876 = sst [smem:[#allocation30_spill]] %s8201_s23  ;;  %s5924_s7 = sshll.u32 %s8003_s9, 3 }
  0x33   : > { %s5925_s18 = sshll.u32 %s8007_s10, 4  ;;  %s313_s22 = scalar_lea.vmem [#allocation7], %s5923_s17 }
  0x34   : > { %s323_s8 = sshll.u32 %s313_s22, 4  ;;  %s318_s6 = sadd.s32 %s5925_s18, %s5924_s7  ;;  %s324_s8 = int_to_ptr.vmem [resolvable:$true] %s323_s8 }
  0x35   : > { %s5926_s3 = sshll.u32 %s318_s6, 2  ;;  %s266_s13 = sshll.u32 %s10723_s5, 4  ;;  %s267_s13 = int_to_ptr.hbm [resolvable:$true] %s266_s13 }
  0x36   : > { %s320_s29 = scalar_lea.hbm %s10719_s1, %s5926_s3  ;;  %s8016_s17 = smov [#allocation12]  }
  0x37   : > { %s321_s12 = sshll.u32 %s320_s29, 4  ;;  %s268_s22 = sshll.u32 %s8016_s17, 4  ;;  %s322_s12 = int_to_ptr.hbm [resolvable:$true] %s321_s12  ;;  %s269_s22 = int_to_ptr.vmem [resolvable:$true] %s268_s22 }
  0x38   : > { %s8213_s19 = scalar_lea.sflag [#allocation8], %s309_s15  ;;  %s10744_s7 = smov 64  }
  0x39   : > { %s8018_s6 = smov 4   ;;  %s10877_s3 = smov 12  }
  0x3a   : > { %7609 = dma.hbm_to_vmem [thread:$0]  (!%p8196_p12), %s322_s12, 512, %s324_s8, %s8213_s19, %s10744_s7, %s10744_s7, %s8018_s6  }
  0x3b   : > { %s10878_s4 = smov 192   ;;  %s5919_s29 = sshll.u32 %s8192_s24, 6 }
  0x3c   : > { %7602 = dma.hbm_to_vmem [thread:$0]  (!%p8141_p8), %s267_s13, 9216, %s269_s22, [#allocation11], %s10878_s4, %s10878_s4, %s10877_s3  }
  0x3d   : > { %s5920_s30 = sshll.u32 %s8003_s9, 4  ;;  %s5921_s15 = sshll.u32 %s8007_s10, 5 }
  0x3e   : > { %s294_s23 = sadd.s32 %s5921_s15, %s5920_s30  ;;  %s289_s18 = scalar_lea.vmem [#allocation4], %s5919_s29 }
  0x3f   : > { %s299_s8 = sshll.u32 %s289_s18, 4  ;;  %s5922_s12 = sshll.u32 %s294_s23, 2  ;;  %s300_s8 = int_to_ptr.vmem [resolvable:$true] %s299_s8 }
  0x40   : > { %s296_s17 = scalar_lea.hbm %s10718_s0, %s5922_s12  ;;  %s102_s13 = sadd.s32 1, %s7979_s26 }
  0x41   : > { %s297_s7 = sshll.u32 %s296_s17, 4  ;;  %s286_s22 = scalar_lea.sflag [#allocation5], %s8192_s24  ;;  %s298_s7 = int_to_ptr.hbm [resolvable:$true] %s297_s7 }
  0x42   : > { %s10879_s3 = smov 64   ;;  %p109_p8 = scmp.ne.s32.totalorder %s7979_s26, %s7975_s25 }
  0x43   : > { %7606 = dma.hbm_to_vmem [thread:$0]  (!%p8196_p12), %s298_s7, 1024, %s300_s8, %s286_s22, %s10879_s3, %s10879_s3, %s8018_s6  }
  0x44   : > { %s8242_s4 = scalar_select %p100_p2, %s7979_s26, %s102_s13  }
  0x45   : > { %s335_s29 = sand.u32 1, %s7979_s26   ;;  %s7078_s15 = sshll.u32 %s8007_s10, 6 }
  0x46   : > { %s5927_s30 = sshll.u32 %s335_s29, 6  ;;  %p10880_p13 = scmp.eq.s32.totalorder %s8011_s11, 0 }
  0x47   : > { %s342_s12 = scalar_lea.hbm %s10720_s2, %s7078_s15  ;;  %s337_s20 = scalar_lea.vmem [#allocation9], %s5927_s30 }
  0x48   : > { %p111_p0 = por %p109_p8, %p10880_p13  ;;  %s345_s24 = sshll.u32 %s337_s20, 4  ;;  %s346_s24 = int_to_ptr.vmem [resolvable:$true] %s345_s24 }
  0x49   : > { %s343_s27 = sshll.u32 %s342_s12, 4  ;;  %357 = sbr.rel (%p8130_p6) target bundleno = 1933 (0x78d), region = 48  ;;  %s344_s27 = int_to_ptr.hbm [resolvable:$true] %s343_s27 }
  0x4a   : > { %p7610_p7 = pnand %p7619_p9, %p111_p0 }
  0x4c   : > { %7612 = dma.hbm_to_vmem [thread:$0]  (!%p7610_p7), %s344_s27, 1024, %s346_s24, %s8213_s19, %s10879_s3, %s10879_s3, %s8018_s6  }
  0x4e   : > { %s8262_s7 = sand.u32 1, %s7987_s28  }
  0x4f   : > { %s5931_s8 = sshll.u32 %s8262_s7, 6  ;;  %s360_s16 = scalar_lea.sflag [#allocation5], %s8262_s7 }
  0x50   : > { %s8266_s17 = scalar_lea.vmem [#allocation4], %s5931_s8 }
  0x51   : > { %7950 = dma.done.wait (%p8176_p4), %s360_s16, 1024  }
  0x52   : > { %7952 = vsyncadd (%p8176_p4), %s360_s16, 4294966272  ;;  %s10882_s13 = sld [smem:[#allocation23_spill]]  ;;  %s5932_s19 = sshll.u32 %s8262_s7, 5 }
  0x53   : > { %s8274_s22 = scalar_lea.vmem [#allocation7], %s5932_s19 }
  0x58   : > { %s369_s14 = sand.u32 1, %s10882_s13  }
  0x59   : > { %s370_s6 = scalar_lea.sflag [#allocation8], %s369_s14 }
  0x5a   : > { %7954 = dma.done.wait (%p8176_p4), %s370_s6, 512  }
  0x5b   : > { %7956 = vsyncadd (%p8176_p4), %s370_s6, 4294966784  ;;  %s381_s29 = sand.u32 1, %s7975_s25  }
  0x5c   : > { %s5933_s30 = sshll.u32 %s381_s29, 6 }
  0x5d   : > { %s8281_s15 = scalar_lea.vmem [#allocation9], %s5933_s30 }
  0x5e   : > { %7958 = dma.done.wait (%p8126_p5), %s370_s6, 1024  }
  0x5f   : > { %7960 = vsyncadd (%p8126_p5), %s370_s6, 4294966272 }
  0x60   : > { %7962 = dma.done.wait (%p62_p1), [#allocation11], 27648  }
  0x61   : > { %7964 = vsyncadd (%p62_p1), [#allocation11], 4294939648  ;;  %s10884_s23 = sld [smem:[#allocation21_spill]]  ;;  %s5936_s18 = sshll.u32 %s8262_s7, 7  ;;  %v6252_v0 = vld [vmem:[#allocation10 + $0xa8] sm:$0xf] }
  0x62   : > { %v7173_v1 = vld [vmem:[#allocation10 + $0xb0] sm:$0xf0]  ;;  %v6240_v2 = vld [vmem:[#allocation10 + $0x90] sm:$0xf]  ;;  %v7170_v4 = vld [vmem:[#allocation10 + $0x98] sm:$0xf0] }
  0x63   : > { %v6253_v3 = vor.u32 %v7173_v1, %v6252_v0  ;;  %v6241_v5 = vor.u32 %v7170_v4, %v6240_v2  ;;  %v6228_v6 = vld [vmem:[#allocation10 + $0x78] sm:$0xf]  ;;  %v7167_v7 = vld [vmem:[#allocation10 + $0x80] sm:$0xf0]  ;;  %v461_v9 = vld [vmem:[%s8266_s17 + $0x3c] sm:$0xf] }
  0x64   : > { %v460_v8 = vld [vmem:[%s8266_s17 + $0x38] sm:$0xf]  ;;  %v6216_v10 = vld [vmem:[#allocation10 + $0x60] sm:$0xf]  ;;  %v7164_v11 = vld [vmem:[#allocation10 + $0x68] sm:$0xf0]  ;;  %v6229_v12 = vor.u32 %v7167_v7, %v6228_v6 }
  0x65   : > { %7532 = vmatpush.bf16.msra.mxu1 %v6253_v3  ;;  %1563 = vmatpush.bf16.msra.mxu0 %v6253_v3  ;;  %476 = vst [vmem:[#allocation2 + $0x90] sm:$0xf] %v460_v8  ;;  %v7172_v13 = vld [vmem:[#allocation10 + $0xac] sm:$0xf]  ;;  %v6254_v14 = vld [vmem:[#allocation10 + $0xb4] sm:$0xf0]  ;;  %v6217_v24 = vor.u32 %v7164_v11, %v6216_v10 }
  0x66   : > { %477 = vst [vmem:[#allocation2 + $0x98] sm:$0xf] %v461_v9  ;;  %v6257_v15 = vor.u32 %v7172_v13, %v6254_v14  ;;  %v7196_v16 = vld [vmem:[#allocation10 + $0x16c] sm:$0xf]  ;;  %v6350_v17 = vld [vmem:[#allocation10 + $0x174] sm:$0xf0] }
  0x67   : > { %s8293_s12 = sshll.u32 %s10884_s23, 3  ;;  %v7169_v18 = vld [vmem:[#allocation10 + $0x94] sm:$0xf]  ;;  %v6353_v19 = vor.u32 %v7196_v16, %v6350_v17  ;;  %v6242_v20 = vld [vmem:[#allocation10 + $0x9c] sm:$0xf0] }
  0x68   : > { %s8296_s20 = sadd.s32 4294967294, %s8293_s12  ;;  %s8300_s27 = sadd.s32 4294967295, %s8293_s12  ;;  %v7193_v21 = vld [vmem:[#allocation10 + $0x154] sm:$0xf]  ;;  %v6338_v22 = vld [vmem:[#allocation10 + $0x15c] sm:$0xf0]  ;;  %1695 = vmatpush.bf16.msra.mxu2 %v6257_v15  ;;  %v6245_v23 = vor.u32 %v7169_v18, %v6242_v20 }
  0x69   : > { %s488_s24 = scvt.s32.f32 %s8296_s20  ;;  %7533 = vmatpush.bf16.msra.mxu1 %v6241_v5  ;;  %1564 = vmatpush.bf16.msra.mxu0 %v6241_v5  ;;  %s535_s8 = scvt.s32.f32 %s8300_s27  ;;  %v6204_v25 = vld [vmem:[#allocation10 + $0x48] sm:$0xf]  ;;  %v6341_v26 = vor.u32 %v7193_v21, %v6338_v22  ;;  %v7166_v27 = vld [vmem:[#allocation10 + $0x7c] sm:$0xf]  ;;  %v7161_v29 = vld [vmem:[#allocation10 + $0x50] sm:$0xf0] }
  0x6a   : > { %1760 = vmatpush.bf16.msra.mxu3 %v6353_v19  ;;  %v6230_v28 = vld [vmem:[#allocation10 + $0x84] sm:$0xf0]  ;;  %v7190_v30 = vld [vmem:[#allocation10 + $0x13c] sm:$0xf]  ;;  %v6192_v32 = vld [vmem:[#allocation10 + $0x30] sm:$0xf]  ;;  %v6205_v37 = vor.u32 %v7161_v29, %v6204_v25  ;;  %s581_s30 = scvt.s32.f32 %s8293_s12 }
  0x6b   : > { %s8304_s21 = smul.f32 0.46666667, %s488_s24  ;;  %v6326_v31 = vld [vmem:[#allocation10 + $0x144] sm:$0xf0]  ;;  %v7158_v33 = vld [vmem:[#allocation10 + $0x38] sm:$0xf0]  ;;  %v6233_v34 = vor.u32 %v7166_v27, %v6230_v28 }
  0x6c   : > { %s8308_s13 = smul.f32 0.46666667, %s535_s8  ;;  %1696 = vmatpush.bf16.msra.mxu2 %v6245_v23  ;;  %v7163_v35 = vld [vmem:[#allocation10 + $0x64] sm:$0xf]  ;;  %v478_v36 = vld [vmem:[%s8274_s22 + $0x10] sm:$0xf]  ;;  %v6329_v38 = vor.u32 %v7190_v30, %v6326_v31  ;;  %v6193_v44 = vor.u32 %v7158_v33, %v6192_v32 }
  0x6d   : > { %7534 = vmatpush.bf16.msra.mxu1 %v6229_v12  ;;  %s490_s16 = sfloor.f32 %s8304_s21  ;;  %1565 = vmatpush.bf16.msra.mxu0 %v6229_v12  ;;  %v6218_v39 = vld [vmem:[#allocation10 + $0x6c] sm:$0xf0]  ;;  %v479_v40 = vld [vmem:[%s8274_s22 + $0x14] sm:$0xf]  ;;  %482 = vst [vmem:[#allocation2 + $0xa0] sm:$0xf] %v478_v36 }
  0x6e   : > { %s8311_s14 = scvt.f32.s32 %s490_s16  ;;  %1761 = vmatpush.bf16.msra.mxu3 %v6341_v26  ;;  %v7187_v41 = vld [vmem:[#allocation10 + $0x124] sm:$0xf]  ;;  %v6314_v42 = vld [vmem:[#allocation10 + $0x12c] sm:$0xf0]  ;;  %483 = vst [vmem:[#allocation2 + $0xa8] sm:$0xf] %v479_v40  ;;  %v6221_v43 = vor.u32 %v7163_v35, %v6218_v39  ;;  %s537_s19 = sfloor.f32 %s8308_s13 }
  0x6f   : > { %p501_p1 = scmp.ge.s32.totalorder %s8296_s20, 0  ;;  %p502_p6 = scmp.lt.s32.totalorder %s8296_s20, 16  ;;  %v6180_v45 = vld [vmem:[#allocation10 + $0x18] sm:$0xf]  ;;  %v6317_v46 = vor.u32 %v7187_v41, %v6314_v42  ;;  %v7160_v47 = vld [vmem:[#allocation10 + $0x4c] sm:$0xf] }
  0x70   : > { %1697 = vmatpush.bf16.msra.mxu2 %v6233_v34  ;;  %p492_p5 = scmp.gt.s32.totalorder %s8311_s14, 0  ;;  %v6206_v48 = vld [vmem:[#allocation10 + $0x54] sm:$0xf0]  ;;  %v7155_v49 = vld [vmem:[#allocation10 + $0x20] sm:$0xf0]  ;;  %p5938_p4 = scmp.lt.s32.totalorder %s8311_s14, 7 }
  0x71   : > { %7535 = vmatpush.bf16.msra.mxu1 %v6217_v24  ;;  %1566 = vmatpush.bf16.msra.mxu0 %v6217_v24  ;;  %v7184_v50 = vld [vmem:[#allocation10 + $0x10c] sm:$0xf]  ;;  %v6302_v51 = vld [vmem:[#allocation10 + $0x114] sm:$0xf0]  ;;  %p548_p9 = scmp.ge.s32.totalorder %s8300_s27, 0  ;;  %v6209_v54 = vor.u32 %v7160_v47, %v6206_v48  ;;  %v6181_v55 = vor.u32 %v7155_v49, %v6180_v45  ;;  %s8323_s3 = scvt.f32.s32 %s537_s19 }
  0x72   : > { %1762 = vmatpush.bf16.msra.mxu3 %v6329_v38  ;;  %v6168_v52 = vld [vmem:[#allocation10] sm:$0xf]  ;;  %v7152_v53 = vld [vmem:[#allocation10 + $0x8] sm:$0xf0]  ;;  %s493_s6 = scalar_select %p492_p5, %s8311_s14, 0  ;;  %v6305_v58 = vor.u32 %v7184_v50, %v6302_v51 }
  0x73   : > { %v6348_v56 = vld [vmem:[#allocation10 + $0x168] sm:$0xf]  ;;  %v7197_v57 = vld [vmem:[#allocation10 + $0x170] sm:$0xf0]  ;;  %v6194_v60 = vld [vmem:[#allocation10 + $0x3c] sm:$0xf0]  ;;  %p8332_p2 = pnand %p502_p6, %p501_p1  ;;  %v6169_v9 = vor.u32 %v7152_v53, %v6168_v52 }
  0x74   : > { %1698 = vmatpush.bf16.msra.mxu2 %v6221_v43  ;;  %v7157_v59 = vld [vmem:[#allocation10 + $0x34] sm:$0xf]  ;;  %v6290_v62 = vld [vmem:[#allocation10 + $0xfc] sm:$0xf0]  ;;  %v480_v63 = vld [vmem:[%s8274_s22 + $0x18] sm:$0xf]  ;;  %v6349_v11 = vor.u32 %v7197_v57, %v6348_v56 }
  0x75   : > { %7536 = vmatpush.bf16.msra.mxu1 %v6205_v37  ;;  %1567 = vmatpush.bf16.msra.mxu0 %v6205_v37  ;;  %v7181_v61 = vld [vmem:[#allocation10 + $0xf4] sm:$0xf]  ;;  %v6144_v0 = vld [vmem:[#allocation2 + $0x90] sm:$0xf]  ;;  %v7146_v1 = vld [vmem:[#allocation2 + $0x94] sm:$0xf0]  ;;  %v6197_v6 = vor.u32 %v7157_v59, %v6194_v60 }
  0x76   : > { %1763 = vmatpush.bf16.msra.mxu3 %v6317_v46  ;;  %v7154_v2 = vld [vmem:[#allocation10 + $0x1c] sm:$0xf]  ;;  %v6182_v3 = vld [vmem:[#allocation10 + $0x24] sm:$0xf0]  ;;  %484 = vst [vmem:[#allocation2 + $0xb0] sm:$0xf] %v480_v63  ;;  %v6293_v10 = vor.u32 %v7181_v61, %v6290_v62  ;;  %v8341_v15 = vor.u32 %v7146_v1, %v6144_v0 }
  0x77   : > { %v481_v4 = vld [vmem:[%s8274_s22 + $0x1c] sm:$0xf]  ;;  %v438_v5 = vld [vmem:[%s8274_s22] sm:$0xf]  ;;  %v439_v8 = vld [vmem:[%s8274_s22 + $0x4] sm:$0xf]  ;;  %v6185_v16 = vor.u32 %v7154_v2, %v6182_v3 }
  0x78   : > { %1699 = vmatpush.bf16.msra.mxu2 %v6209_v54  ;;  %v7178_v7 = vld [vmem:[#allocation10 + $0xdc] sm:$0xf]  ;;  %485 = vst [vmem:[#allocation2 + $0xb8] sm:$0xf] %v481_v4  ;;  %s11332_s6 = smov (!%p5938_p4, %s493_s6), 7  ;;  %p539_p10 = scmp.gt.s32.totalorder %s8323_s3, 0 }
  0x79   : > { %7537 = vmatpush.bf16.msra.mxu1 %v6193_v44  ;;  %1568 = vmatpush.bf16.msra.mxu0 %v6193_v44  ;;  %442 = vst [vmem:[#allocation2] sm:$0xf] %v438_v5  ;;  %v6278_v12 = vld [vmem:[#allocation10 + $0xe4] sm:$0xf0]  ;;  %s496_s20 = sadd.s32 1, %s11332_s6  ;;  %s499_s24 = scvt.s32.f32 %s11332_s6 }
  0x7a   : > { %1764 = vmatpush.bf16.msra.mxu3 %v6305_v58  ;;  %443 = vst [vmem:[#allocation2 + $0x8] sm:$0xf] %v439_v8  ;;  %v6336_v13 = vld [vmem:[#allocation10 + $0x150] sm:$0xf]  ;;  %v7194_v14 = vld [vmem:[#allocation10 + $0x158] sm:$0xf0]  ;;  %v6281_v17 = vor.u32 %v7178_v7, %v6278_v12 }
  0x7b   : > { %p497_p12 = scmp.lt.s32.totalorder %s496_s20, 7  ;;  %s7081_s8 = sshll.u32 %s11332_s6, 3  ;;  %10886 = vst [vmem:[#allocation31_spill] sm:$0xff] %v8341_v15  ;;  %v7151_v18 = vld [vmem:[#allocation10 + $0x4] sm:$0xf]  ;;  %v6337_v21 = vor.u32 %v7194_v14, %v6336_v13 }
  0x7c   : > { %1700 = vmatpush.bf16.msra.mxu2 %v6197_v6  ;;  %s8344_s16 = ssub.f32 %s8304_s21, %s499_s24  ;;  %s510_s14 = scalar_lea.vmem %s8281_s15, %s7081_s8 [#allocation9]  ;;  %v6170_v19 = vld [vmem:[#allocation10 + $0xc] sm:$0xf0]  ;;  %v7175_v22 = vld [vmem:[#allocation10 + $0xc4] sm:$0xf]  ;;  %v6324_v24 = vld [vmem:[#allocation10 + $0x138] sm:$0xf] }
  0x7d   : > { %7538 = vmatpush.bf16.msra.mxu1 %v6181_v55  ;;  %1569 = vmatpush.bf16.msra.mxu0 %v6181_v55  ;;  %s11334_s20 = smov (!%p497_p12, %s496_s20), 7  ;;  %v7378_v20 = vld [vmem:[%s510_s14] sm:$0xff]   ;;  %v7191_v25 = vld [vmem:[#allocation10 + $0x140] sm:$0xf0]  ;;  %v6173_v26 = vor.u32 %v7151_v18, %v6170_v19  ;;  %p5949_p8 = scmp.lt.s32.totalorder %s8323_s3, 7 }
  0x7e   : > { %1765 = vmatpush.bf16.msra.mxu3 %v6293_v10  ;;  %v6266_v23 = vld [vmem:[#allocation10 + $0xcc] sm:$0xf0]  ;;  %s5943_s19 = scalar_select %p8332_p2, 0.0, %s8344_s16  ;;  %v7379_v28 = vunpack.c.l.bf16 %v7378_v20  ;;  %v7380_v29 = vunpack.c.h.bf16 %v7378_v20  ;;  %v6325_v34 = vor.u32 %v7191_v25, %v6324_v24  ;;  %v6312_v35 = vld [vmem:[#allocation10 + $0x120] sm:$0xf] }
  0x7f   : > { %s506_s21 = ssub.f32 1.0, %s8344_s16  ;;  %s7082_s6 = sshll.u32 %s11334_s20, 3  ;;  %v6269_v30 = vor.u32 %v7175_v22, %v6266_v23  ;;  %v7188_v38 = vld [vmem:[#allocation10 + $0x128] sm:$0xf0]  ;;  %v440_v45 = vld [vmem:[%s8274_s22 + $0x8] sm:$0xf] }
  0x80   : > { %1701 = vmatpush.bf16.msra.mxu2 %v6185_v16  ;;  %v6072_v27 = vld [vmem:[#allocation2] sm:$0xf]  ;;  %s520_s24 = scalar_lea.vmem %s8281_s15, %s7082_s6 [#allocation9]  ;;  %v525_v33 = vstv %s5943_s19  ;;  %p549_p13 = scmp.lt.s32.totalorder %s8300_s27, 16  ;;  %v441_v46 = vld [vmem:[%s8274_s22 + $0xc] sm:$0xf]  ;;  %v6313_v47 = vor.u32 %v7188_v38, %v6312_v35 }
  0x81   : > { %7539 = vmatpush.bf16.msra.mxu1 %v6169_v9  ;;  %1570 = vmatpush.bf16.msra.mxu0 %v6169_v9  ;;  %v7128_v31 = vld [vmem:[#allocation2 + $0x4] sm:$0xf0]  ;;  %s11336_s21 = smov (%p8332_p2, %s506_s21), 0.0  ;;  %v7382_v32 = vld [vmem:[%s520_s24] sm:$0xff]   ;;  %s8364_s29 = smul.f32 0.46666667, %s581_s30 }
  0x82   : > { %1766 = vmatpush.bf16.msra.mxu3 %v6281_v17  ;;  %v7383_v36 = vunpack.c.l.bf16 %v7382_v32  ;;  %v7384_v37 = vunpack.c.h.bf16 %v7382_v32  ;;  %s540_s20 = scalar_select %p539_p10, %s8323_s3, 0  ;;  %v8359_v39 = vor.u32 %v7128_v31, %v6072_v27  ;;  %v515_v40 = vstv %s11336_s21  ;;  %v6300_v48 = vld [vmem:[#allocation10 + $0x108] sm:$0xf]  ;;  %444 = vst [vmem:[#allocation2 + $0x10] sm:$0xf] %v440_v45 }
  0x83   : > { %v516_v41 = vmul.f32 %v7379_v28, %v515_v40  ;;  %v517_v42 = vmul.f32 %v7380_v29, %v515_v40  ;;  %p8373_p0 = pnand %p549_p13, %p548_p9  ;;  %s583_s30 = sfloor.f32 %s8364_s29  ;;  %v7185_v51 = vld [vmem:[#allocation10 + $0x110] sm:$0xf0]  ;;  %445 = vst [vmem:[#allocation2 + $0x18] sm:$0xf] %v441_v46  ;;  %v6152_v54 = vld [vmem:[#allocation2 + $0xa0] sm:$0xf] }
  0x84   : > { %1616 = vmatmul.bf16.vlgmr.msra.gmra.mxu1 %v8341_v15  ;;  %1702 = vmatpush.bf16.msra.mxu2 %v6173_v26  ;;  %v526_v43 = vmul.f32 %v7383_v36, %v525_v33  ;;  %v527_v44 = vmul.f32 %v7384_v37, %v525_v33  ;;  %s11338_s20 = smov (!%p5949_p8, %s540_s20), 7  ;;  %v7148_v55 = vld [vmem:[#allocation2 + $0xa4] sm:$0xf0]  ;;  %v6301_v57 = vor.u32 %v7185_v51, %v6300_v48  ;;  %v6288_v58 = vld [vmem:[#allocation10 + $0xf0] sm:$0xf]  ;;  %s8388_s24 = scvt.f32.s32 %s583_s30 }
  0x85   : > { %1629 = vmatpush.bf16.msrb.mxu1 %v6349_v11  ;;  %1571 = vmatmul.bf16.vlgmr.msra.gmra.mxu0 %v8359_v39  ;;  %s543_s3 = sadd.s32 1, %s11338_s20  ;;  %s546_s16 = scvt.s32.f32 %s11338_s20  ;;  %v7182_v59 = vld [vmem:[#allocation10 + $0xf8] sm:$0xf0]  ;;  %v8383_v60 = vor.u32 %v7148_v55, %v6152_v54  ;;  %v6276_v4 = vld [vmem:[#allocation10 + $0xd8] sm:$0xf] }
  0x86   : > { %1767 = vmatpush.bf16.msra.mxu3 %v6269_v30  ;;  %v528_v49 = vadd.f32 %v526_v43, %v516_v41  ;;  %v529_v50 = vadd.f32 %v527_v44, %v517_v42  ;;  %p544_p7 = scmp.lt.s32.totalorder %s543_s3, 7  ;;  %s7085_s22 = sshll.u32 %s11338_s20, 3  ;;  %v6289_v1 = vor.u32 %v7182_v59, %v6288_v58  ;;  %v7179_v5 = vld [vmem:[#allocation10 + $0xe0] sm:$0xf0]  ;;  %v6264_v20 = vld [vmem:[#allocation10 + $0xc0] sm:$0xf] }
  0x87   : > { %1703 = vmatmul.bf16.vlgmr.msra.gmra.mxu2 %v8359_v39  ;;  %s547_s27 = ssub.f32 %s8308_s13, %s546_s16  ;;  %s557_s14 = scalar_lea.vmem %s8281_s15, %s7085_s22 [#allocation9]  ;;  %10888 = vst [vmem:[#allocation32_spill] sm:$0xff] %v8383_v60  ;;  %v6277_v16 = vor.u32 %v7179_v5, %v6276_v4  ;;  %v6356_v25 = vld [vmem:[#allocation10 + $0x170] sm:$0xf]  ;;  %v7198_v26 = vld [vmem:[#allocation10 + $0x178] sm:$0xf0] }
  0x88   : > { %v530_v52 = vpack.c.bf16 %v528_v49, %v528_v49  ;;  %v531_v53 = vpack.c.bf16 %v529_v50, %v529_v50  ;;  %s11340_s3 = smov (!%p544_p7, %s543_s3), 7  ;;  %v7386_v56 = vld [vmem:[%s557_s14] sm:$0xff]   ;;  %p585_p1 = scmp.gt.s32.totalorder %s8388_s24, 0  ;;  %v446_v27 = vld [vmem:[%s8266_s17] sm:$0xf]  ;;  %v6357_v30 = vor.u32 %v7198_v26, %v6356_v25 }
  0x89   : > { %1630 = vmatpush.bf16.msrb.mxu1 %v6337_v21  ;;  %s5954_s19 = scalar_select %p8373_p0, 0.0, %s547_s27  ;;  %v7387_v61 = vunpack.c.l.bf16 %v7386_v56  ;;  %v7388_v62 = vunpack.c.h.bf16 %v7386_v56  ;;  %v6080_v7 = vld [vmem:[#allocation2 + $0x10] sm:$0xf]  ;;  %v7176_v21 = vld [vmem:[#allocation10 + $0xc8] sm:$0xf0] }
  0x8a   : > { %532 = vst [vmem:[#allocation2 + $0x4] sm:$0xf] %v530_v52  ;;  %s553_s21 = ssub.f32 1.0, %s547_s27  ;;  %s7086_s6 = sshll.u32 %s11340_s3, 3  ;;  %v7130_v8 = vld [vmem:[#allocation2 + $0x14] sm:$0xf0]  ;;  %v6265_v28 = vor.u32 %v7176_v21, %v6264_v20 }
  0x8b   : > { %533 = vst [vmem:[#allocation2 + $0xc] sm:$0xf] %v531_v53  ;;  %s567_s13 = scalar_lea.vmem %s8281_s15, %s7086_s6 [#allocation9]  ;;  %v572_v0 = vstv %s5954_s19  ;;  %p5960_p5 = scmp.lt.s32.totalorder %s8388_s24, 7  ;;  %v8411_v22 = vor.u32 %v7130_v8, %v6080_v7  ;;  %v447_v29 = vld [vmem:[%s8266_s17 + $0x4] sm:$0xf] }
  0x8c   : > { %s11342_s21 = smov (%p8373_p0, %s553_s21), 0.0  ;;  %v7390_v63 = vld [vmem:[%s567_s13] sm:$0xff]   ;;  %p594_p6 = scmp.ge.s32.totalorder %s8293_s12, 0  ;;  %v6160_v32 = vld [vmem:[#allocation2 + $0xb0] sm:$0xf] }
  0x8d   : > { %1631 = vmatpush.bf16.msrb.mxu1 %v6325_v34  ;;  %v7391_v2 = vunpack.c.l.bf16 %v7390_v63  ;;  %v7392_v3 = vunpack.c.h.bf16 %v7390_v63  ;;  %v562_v6 = vstv %s11342_s21  ;;  %p595_p4 = scmp.lt.s32.totalorder %s8293_s12, 16  ;;  %s8405_s30 = sadd.s32 1, %s8293_s12  ;;  %462 = vst [vmem:[#allocation2 + $0x20] sm:$0xf] %v446_v27  ;;  %v7150_v33 = vld [vmem:[#allocation2 + $0xb4] sm:$0xf0] }
  0x8e   : > { %v563_v9 = vmul.f32 %v7387_v61, %v562_v6  ;;  %v564_v10 = vmul.f32 %v7388_v62, %v562_v6  ;;  %s586_s20 = scalar_select %p585_p1, %s8388_s24, 0  ;;  %463 = vst [vmem:[#allocation2 + $0x28] sm:$0xf] %v447_v29  ;;  %v8431_v38 = vor.u32 %v7150_v33, %v6160_v32  ;;  %v6344_v53 = vld [vmem:[#allocation10 + $0x158] sm:$0xf] }
  0x8f   : > { %v573_v11 = vmul.f32 %v7391_v2, %v572_v0  ;;  %v574_v12 = vmul.f32 %v7392_v3, %v572_v0  ;;  %p8400_p9 = pnand %p595_p4, %p594_p6  ;;  %s628_s3 = scvt.s32.f32 %s8405_s30  ;;  %v7195_v54 = vld [vmem:[#allocation10 + $0x160] sm:$0xf0]  ;;  %v448_v61 = vld [vmem:[%s8266_s17 + $0x8] sm:$0xf]  ;;  %v449_v62 = vld [vmem:[%s8266_s17 + $0xc] sm:$0xf] }
  0x90   : > { %s11344_s20 = smov (!%p5960_p5, %s586_s20), 7  ;;  %p641_p2 = scmp.ge.s32.totalorder %s8405_s30, 0  ;;  %10890 = vst [vmem:[#allocation33_spill] sm:$0xff] %v8431_v38  ;;  %v6345_v56 = vor.u32 %v7195_v54, %v6344_v53  ;;  %v451_v26 = vld [vmem:[%s8266_s17 + $0x14] sm:$0xf] }
  0x91   : > { %1632 = vmatpush.bf16.msrb.mxu1 %v6313_v47  ;;  %v7127_v13 = vld [vmem:[#allocation2 + $0x4] sm:$0xf]  ;;  %v575_v17 = vadd.f32 %v573_v11, %v563_v9  ;;  %v576_v18 = vadd.f32 %v574_v12, %v564_v10  ;;  %s589_s16 = sadd.s32 1, %s11344_s20  ;;  %s592_s22 = scvt.s32.f32 %s11344_s20  ;;  %464 = vst [vmem:[#allocation2 + $0x30] sm:$0xf] %v448_v61 }
  0x92   : > { %v6074_v14 = vld [vmem:[#allocation2 + $0x8] sm:$0xf0]  ;;  %p590_p10 = scmp.lt.s32.totalorder %s589_s16, 7  ;;  %s7089_s27 = sshll.u32 %s11344_s20, 3  ;;  %465 = vst [vmem:[#allocation2 + $0x38] sm:$0xf] %v449_v62 }
  0x93   : > { %v8409_v19 = vor.u32 %v7127_v13, %v6074_v14  ;;  %v577_v23 = vpack.c.bf16 %v575_v17, %v575_v17  ;;  %v578_v24 = vpack.c.bf16 %v576_v18, %v576_v18  ;;  %s593_s14 = ssub.f32 %s8364_s29, %s592_s22  ;;  %s603_s19 = scalar_lea.vmem %s8281_s15, %s7089_s27 [#allocation9]  ;;  %467 = vst [vmem:[#allocation2 + $0x48] sm:$0xf] %v451_v26  ;;  %v7192_v53 = vld [vmem:[#allocation10 + $0x148] sm:$0xf0] }
  0x94   : > { %1621 = vmatmul.bf16.gmra.mxu1 %v8383_v60  ;;  %s11346_s16 = smov (!%p590_p10, %s589_s16), 7  ;;  %v7394_v31 = vld [vmem:[%s603_s19] sm:$0xff]   ;;  %s8427_s24 = smul.f32 0.46666667, %s628_s3 }
  0x95   : > { %1633 = vmatpush.bf16.msrb.mxu1 %v6301_v57  ;;  %1768 = vmatmul.bf16.vlgmr.msra.gmra.mxu3 %v8409_v19  ;;  %579 = vst [vmem:[#allocation2 + $0x14] sm:$0xf] %v577_v23  ;;  %s5965_s21 = scalar_select %p8400_p9, 0.0, %s593_s14  ;;  %v7395_v34 = vunpack.c.l.bf16 %v7394_v31  ;;  %v7396_v35 = vunpack.c.h.bf16 %v7394_v31  ;;  %v6088_v49 = vld [vmem:[#allocation2 + $0x20] sm:$0xf] }
  0x96   : > { %1576 = vmatmul.bf16.gmra.mxu0 %v8411_v22  ;;  %580 = vst [vmem:[#allocation2 + $0x1c] sm:$0xf] %v578_v24  ;;  %s599_s6 = ssub.f32 1.0, %s593_s14  ;;  %s7090_s13 = sshll.u32 %s11346_s16, 3  ;;  %v7132_v50 = vld [vmem:[#allocation2 + $0x24] sm:$0xf0] }
  0x97   : > { %1708 = vmatmul.bf16.gmra.mxu2 %v8411_v22  ;;  %s613_s29 = scalar_lea.vmem %s8281_s15, %s7090_s13 [#allocation9]  ;;  %v618_v37 = vstv %s5965_s21  ;;  %s630_s20 = sfloor.f32 %s8427_s24  ;;  %v8453_v59 = vor.u32 %v7132_v50, %v6088_v49  ;;  %v450_v24 = vld [vmem:[%s8266_s17 + $0x10] sm:$0xf]  ;;  %v7174_v49 = vld [vmem:[#allocation10 + $0xb8] sm:$0xf0] }
  0x98   : > { %s11348_s6 = smov (%p8400_p9, %s599_s6), 0.0  ;;  %v7398_v36 = vld [vmem:[%s613_s29] sm:$0xff]   ;;  %p642_p12 = scmp.lt.s32.totalorder %s8405_s30, 16  ;;  %v6096_v9 = vld [vmem:[#allocation2 + $0x30] sm:$0xf] }
  0x99   : > { %1634 = vmatpush.bf16.msrb.mxu1 %v6289_v1  ;;  %v7399_v40 = vunpack.c.l.bf16 %v7398_v36  ;;  %v7400_v41 = vunpack.c.h.bf16 %v7398_v36  ;;  %v608_v42 = vstv %s11348_s6  ;;  %s7563_s16 = scvt.f32.s32 %s630_s20  ;;  %s8436_s22 = sadd.s32 2, %s8293_s12  ;;  %v7134_v10 = vld [vmem:[#allocation2 + $0x34] sm:$0xf0]  ;;  %466 = vst [vmem:[#allocation2 + $0x40] sm:$0xf] %v450_v24 }
  0x9a   : > { %v609_v45 = vmul.f32 %v7395_v34, %v608_v42  ;;  %v610_v46 = vmul.f32 %v7396_v35, %v608_v42  ;;  %s675_s8 = scvt.s32.f32 %s8436_s22  ;;  %p8444_p0 = pnand %p642_p12, %p641_p2  ;;  %v8494_v20 = vor.u32 %v7134_v10, %v6096_v9 }
  0x9b   : > { %v619_v47 = vmul.f32 %v7399_v40, %v618_v37  ;;  %v620_v48 = vmul.f32 %v7400_v41, %v618_v37  ;;  %p632_p8 = scmp.gt.s32.totalorder %s7563_s16, 0  ;;  %p5971_p13 = scmp.lt.s32.totalorder %s7563_s16, 7 }
  0x9c   : > { %v7129_v43 = vld [vmem:[#allocation2 + $0x14] sm:$0xf]  ;;  %s8450_s14 = smul.f32 0.46666667, %s675_s8  ;;  %p688_p7 = scmp.ge.s32.totalorder %s8436_s22, 0  ;;  %10894 = vst [vmem:[#allocation35_spill] sm:$0xff] %v8494_v20 }
  0x9d   : > { %1635 = vmatpush.bf16.msrb.mxu1 %v6277_v16  ;;  %v6082_v44 = vld [vmem:[#allocation2 + $0x18] sm:$0xf0]  ;;  %v621_v51 = vadd.f32 %v619_v47, %v609_v45  ;;  %v622_v52 = vadd.f32 %v620_v48, %v610_v46  ;;  %s633_s27 = scalar_select %p632_p8, %s7563_s16, 0  ;;  %v7136_v45 = vld [vmem:[#allocation2 + $0x44] sm:$0xf0] }
  0x9e   : > { %v8448_v55 = vor.u32 %v7129_v43, %v6082_v44  ;;  %s677_s30 = sfloor.f32 %s8450_s14  ;;  %p689_p1 = scmp.lt.s32.totalorder %s8436_s22, 16  ;;  %v6260_v48 = vld [vmem:[#allocation10 + $0xb0] sm:$0xf] }
  0x9f   : > { %v623_v57 = vpack.c.bf16 %v621_v51, %v621_v51  ;;  %v624_v58 = vpack.c.bf16 %v622_v52, %v622_v52  ;;  %s11350_s27 = smov (!%p5971_p13, %s633_s27), 7  ;;  %s8462_s21 = scvt.f32.s32 %s677_s30  ;;  %v6261_v51 = vor.u32 %v7174_v49, %v6260_v48  ;;  %v6332_v52 = vld [vmem:[#allocation10 + $0x140] sm:$0xf] }
  0xa0   : > { %s639_s19 = scvt.s32.f32 %s11350_s27  ;;  %s636_s6 = sadd.s32 1, %s11350_s27  ;;  %v6104_v44 = vld [vmem:[#allocation2 + $0x40] sm:$0xf]  ;;  %v6333_v54 = vor.u32 %v7192_v53, %v6332_v52 }
  0xa1   : > { %1636 = vmatpush.bf16.msrb.mxu1 %v6265_v28  ;;  %625 = vst [vmem:[#allocation2 + $0x24] sm:$0xf] %v623_v57  ;;  %s7093_s13 = sshll.u32 %s11350_s27, 3  ;;  %p637_p5 = scmp.lt.s32.totalorder %s636_s6, 7  ;;  %1825 = vmatpush.bf16.msrb.mxu0 %v6261_v51  ;;  %v452_v57 = vld [vmem:[%s8266_s17 + $0x18] sm:$0xf] }
  0xa2   : > { %626 = vst [vmem:[#allocation2 + $0x2c] sm:$0xf] %v624_v58  ;;  %s640_s29 = ssub.f32 %s8427_s24, %s639_s19  ;;  %s650_s20 = scalar_lea.vmem %s8281_s15, %s7093_s13 [#allocation9]  ;;  %v453_v58 = vld [vmem:[%s8266_s17 + $0x1c] sm:$0xf] }
  0xa3   : > { %p679_p6 = scmp.gt.s32.totalorder %s8462_s21, 0  ;;  %s11352_s6 = smov (!%p637_p5, %s636_s6), 7  ;;  %v7402_v63 = vld [vmem:[%s650_s20] sm:$0xff]   ;;  %468 = vst [vmem:[#allocation2 + $0x50] sm:$0xf] %v452_v57 }
  0xa4   : > { %1624 = vmatmul.bf16.gmra.mxu1 %v8431_v38  ;;  %s5976_s16 = scalar_select %p8444_p0, 0.0, %s640_s29  ;;  %v7403_v0 = vunpack.c.l.bf16 %v7402_v63  ;;  %v7404_v1 = vunpack.c.h.bf16 %v7402_v63  ;;  %469 = vst [vmem:[#allocation2 + $0x58] sm:$0xf] %v453_v58  ;;  %v6236_v57 = vld [vmem:[#allocation10 + $0x80] sm:$0xf] }
  0xa5   : > { %1891 = vmatpush.bf16.msra.mxu1 %v6357_v30  ;;  %1773 = vmatmul.bf16.gmra.mxu3 %v8448_v55  ;;  %s646_s8 = ssub.f32 1.0, %s640_s29  ;;  %s7094_s30 = sshll.u32 %s11352_s6, 3  ;;  %v7168_v58 = vld [vmem:[#allocation10 + $0x88] sm:$0xf0] }
  0xa6   : > { %1581 = vmatmul.bf16.gmra.mxu0 %v8453_v59  ;;  %s660_s27 = scalar_lea.vmem %s8281_s15, %s7094_s30 [#allocation9]  ;;  %p5982_p4 = scmp.lt.s32.totalorder %s8462_s21, 7  ;;  %v665_v3 = vstv %s5976_s16 }
  0xa7   : > { %1713 = vmatmul.bf16.gmra.mxu2 %v8453_v59  ;;  %s11354_s8 = smov (%p8444_p0, %s646_s8), 0.0  ;;  %v7406_v2 = vld [vmem:[%s660_s27] sm:$0xff]   ;;  %s8478_s19 = sadd.s32 3, %s8293_s12 }
  0xa8   : > { %v7131_v4 = vld [vmem:[#allocation2 + $0x24] sm:$0xf]  ;;  %v7407_v6 = vunpack.c.l.bf16 %v7406_v2  ;;  %v7408_v7 = vunpack.c.h.bf16 %v7406_v2  ;;  %s680_s24 = scalar_select %p679_p6, %s8462_s21, 0  ;;  %v655_v8 = vstv %s11354_s8 }
  0xa9   : > { %1892 = vmatpush.bf16.msra.mxu1 %v6345_v56  ;;  %v6090_v5 = vld [vmem:[#allocation2 + $0x28] sm:$0xf0]  ;;  %v656_v11 = vmul.f32 %v7403_v0, %v655_v8  ;;  %v657_v12 = vmul.f32 %v7404_v1, %v655_v8  ;;  %p8489_p9 = pnand %p689_p1, %p688_p7  ;;  %s722_s6 = scvt.s32.f32 %s8478_s19  ;;  %v8542_v56 = vor.u32 %v7136_v45, %v6104_v44 }
  0xaa   : > { %v666_v13 = vmul.f32 %v7407_v6, %v665_v3  ;;  %v667_v14 = vmul.f32 %v7408_v7, %v665_v3  ;;  %s11356_s24 = smov (!%p5982_p4, %s680_s24), 7  ;;  %v8483_v16 = vor.u32 %v7131_v4, %v6090_v5  ;;  %p735_p10 = scmp.ge.s32.totalorder %s8478_s19, 0 }
  0xab   : > { %s683_s13 = sadd.s32 1, %s11356_s24  ;;  %s686_s29 = scvt.s32.f32 %s11356_s24  ;;  %10896 = vst [vmem:[#allocation36_spill] sm:$0xff] %v8542_v56 }
  0xac   : > { %10892 = vst [vmem:[#allocation34_spill] sm:$0xff] %v8483_v16  ;;  %v668_v17 = vadd.f32 %v666_v13, %v656_v11  ;;  %v669_v18 = vadd.f32 %v667_v14, %v657_v12  ;;  %p684_p2 = scmp.lt.s32.totalorder %s683_s13, 7  ;;  %s7097_s21 = sshll.u32 %s11356_s24, 3  ;;  %v6112_v11 = vld [vmem:[#allocation2 + $0x50] sm:$0xf] }
  0xad   : > { %s687_s20 = ssub.f32 %s8450_s14, %s686_s29  ;;  %s697_s22 = scalar_lea.vmem %s8281_s15, %s7097_s21 [#allocation9]  ;;  %1893 = vmatpush.bf16.msra.mxu1 %v6333_v54  ;;  %v7138_v12 = vld [vmem:[#allocation2 + $0x54] sm:$0xf0] }
  0xae   : > { %v670_v21 = vpack.c.bf16 %v668_v17, %v668_v17  ;;  %v671_v23 = vpack.c.bf16 %v669_v18, %v669_v18  ;;  %s11358_s13 = smov (!%p684_p2, %s683_s13), 7  ;;  %v7410_v25 = vld [vmem:[%s697_s22] sm:$0xff]   ;;  %s8506_s27 = smul.f32 0.46666667, %s722_s6  ;;  %v6248_v17 = vld [vmem:[#allocation10 + $0x98] sm:$0xf] }
  0xaf   : > { %s5987_s16 = scalar_select %p8489_p9, 0.0, %s687_s20  ;;  %v7411_v27 = vunpack.c.l.bf16 %v7410_v25  ;;  %v7412_v28 = vunpack.c.h.bf16 %v7410_v25  ;;  %v7171_v18 = vld [vmem:[#allocation10 + $0xa0] sm:$0xf0] }
  0xb0   : > { %672 = vst [vmem:[#allocation2 + $0x34] sm:$0xf] %v670_v21  ;;  %s693_s8 = ssub.f32 1.0, %s687_s20  ;;  %s7098_s14 = sshll.u32 %s11358_s13, 3  ;;  %v6320_v21 = vld [vmem:[#allocation10 + $0x128] sm:$0xf]  ;;  %v6249_v26 = vor.u32 %v7171_v18, %v6248_v17 }
  0xb1   : > { %673 = vst [vmem:[#allocation2 + $0x3c] sm:$0xf] %v671_v23  ;;  %s707_s30 = scalar_lea.vmem %s8281_s15, %s7098_s14 [#allocation9]  ;;  %v712_v30 = vstv %s5987_s16  ;;  %s724_s24 = sfloor.f32 %s8506_s27 }
  0xb2   : > { %s11360_s8 = smov (%p8489_p9, %s693_s8), 0.0  ;;  %v7414_v29 = vld [vmem:[%s707_s30] sm:$0xff]   ;;  %s8512_s13 = scvt.f32.s32 %s724_s24  ;;  %1826 = vmatpush.bf16.msrb.mxu0 %v6249_v26 }
  0xb3   : > { %v7415_v31 = vunpack.c.l.bf16 %v7414_v29  ;;  %v7416_v32 = vunpack.c.h.bf16 %v7414_v29  ;;  %v702_v33 = vstv %s11360_s8  ;;  %s8515_s29 = sadd.s32 4, %s8293_s12  ;;  %p736_p12 = scmp.lt.s32.totalorder %s8478_s19, 16  ;;  %v8584_v29 = vor.u32 %v7138_v12, %v6112_v11 }
  0xb4   : > { %1637 = vmatmul.bf16.vlgmr.msrb.gmra.mxu1 %v8409_v19  ;;  %v703_v34 = vmul.f32 %v7411_v27, %v702_v33  ;;  %v704_v35 = vmul.f32 %v7412_v28, %v702_v33  ;;  %s769_s3 = scvt.s32.f32 %s8515_s29  ;;  %p726_p8 = scmp.gt.s32.totalorder %s8512_s13, 0  ;;  %v7189_v27 = vld [vmem:[#allocation10 + $0x130] sm:$0xf0] }
  0xb5   : > { %1778 = vmatmul.bf16.gmra.mxu3 %v8483_v16  ;;  %v713_v36 = vmul.f32 %v7415_v31, %v712_v30  ;;  %v714_v37 = vmul.f32 %v7416_v32, %v712_v30  ;;  %p5993_p13 = scmp.lt.s32.totalorder %s8512_s13, 7  ;;  %p782_p0 = scmp.ge.s32.totalorder %s8515_s29, 0  ;;  %v6321_v28 = vor.u32 %v7189_v27, %v6320_v21  ;;  %10898 = vst [vmem:[#allocation37_spill] sm:$0xff] %v8584_v29  ;;  %v454_v31 = vld [vmem:[%s8266_s17 + $0x20] sm:$0xf] }
  0xb6   : > { %1586 = vmatmul.bf16.gmra.mxu0 %v8494_v20  ;;  %s8521_s6 = smul.f32 0.46666667, %s769_s3  ;;  %p8530_p7 = pnand %p736_p12, %p735_p10  ;;  %v455_v32 = vld [vmem:[%s8266_s17 + $0x24] sm:$0xf]  ;;  %470 = vst [vmem:[#allocation2 + $0x60] sm:$0xf] %v454_v31 }
  0xb7   : > { %1718 = vmatmul.bf16.gmra.mxu2 %v8494_v20  ;;  %v7133_v40 = vld [vmem:[#allocation2 + $0x34] sm:$0xf]  ;;  %v715_v42 = vadd.f32 %v713_v36, %v703_v34  ;;  %v716_v43 = vadd.f32 %v714_v37, %v704_v35  ;;  %s727_s21 = scalar_select %p726_p8, %s8512_s13, 0  ;;  %1894 = vmatpush.bf16.msra.mxu1 %v6321_v28  ;;  %471 = vst [vmem:[#allocation2 + $0x68] sm:$0xf] %v455_v32 }
  0xb8   : > { %v6098_v41 = vld [vmem:[#allocation2 + $0x38] sm:$0xf0]  ;;  %s771_s22 = sfloor.f32 %s8521_s6  ;;  %p783_p1 = scmp.lt.s32.totalorder %s8515_s29, 16  ;;  %v6308_v28 = vld [vmem:[#allocation10 + $0x110] sm:$0xf] }
  0xb9   : > { %v717_v46 = vpack.c.bf16 %v715_v42, %v715_v42  ;;  %v718_v47 = vpack.c.bf16 %v716_v43, %v716_v43  ;;  %v8535_v50 = vor.u32 %v7133_v40, %v6098_v41  ;;  %s11362_s21 = smov (!%p5993_p13, %s727_s21), 7  ;;  %s8539_s16 = scvt.f32.s32 %s771_s22 }
  0xba   : > { %s730_s19 = sadd.s32 1, %s11362_s21  ;;  %s733_s8 = scvt.s32.f32 %s11362_s21 }
  0xbb   : > { %719 = vst [vmem:[#allocation2 + $0x44] sm:$0xf] %v717_v46  ;;  %p731_p5 = scmp.lt.s32.totalorder %s730_s19, 7  ;;  %s7101_s14 = sshll.u32 %s11362_s21, 3 }
  0xbc   : > { %720 = vst [vmem:[#allocation2 + $0x4c] sm:$0xf] %v718_v47  ;;  %s734_s30 = ssub.f32 %s8506_s27, %s733_s8  ;;  %s744_s24 = scalar_lea.vmem %s8281_s15, %s7101_s14 [#allocation9] }
  0xbd   : > { %s11364_s19 = smov (!%p731_p5, %s730_s19), 7  ;;  %v7418_v61 = vld [vmem:[%s744_s24] sm:$0xff]   ;;  %p773_p6 = scmp.gt.s32.totalorder %s8539_s16, 0 }
  0xbe   : > { %s5998_s13 = scalar_select %p8530_p7, 0.0, %s734_s30  ;;  %v7419_v62 = vunpack.c.l.bf16 %v7418_v61  ;;  %v7420_v63 = vunpack.c.h.bf16 %v7418_v61  ;;  %v6120_v51 = vld [vmem:[#allocation2 + $0x60] sm:$0xf]  ;;  %v7140_v52 = vld [vmem:[#allocation2 + $0x64] sm:$0xf0] }
  0xbf   : > { %s740_s3 = ssub.f32 1.0, %s734_s30  ;;  %s7102_s21 = sshll.u32 %s11364_s19, 3 }
  0xc0   : > { %s754_s22 = scalar_lea.vmem %s8281_s15, %s7102_s21 [#allocation9]  ;;  %v759_v1 = vstv %s5998_s13  ;;  %p6004_p4 = scmp.lt.s32.totalorder %s8539_s16, 7 }
  0xc1   : > { %s11366_s3 = smov (%p8530_p7, %s740_s3), 0.0  ;;  %v7422_v0 = vld [vmem:[%s754_s22] sm:$0xff]   ;;  %s8560_s19 = sadd.s32 5, %s8293_s12 }
  0xc2   : > { %v7423_v2 = vunpack.c.l.bf16 %v7422_v0  ;;  %v7424_v3 = vunpack.c.h.bf16 %v7422_v0  ;;  %s774_s27 = scalar_select %p773_p6, %s8539_s16, 0  ;;  %v749_v4 = vstv %s11366_s3  ;;  %v7135_v9 = vld [vmem:[#allocation2 + $0x44] sm:$0xf] }
  0xc3   : > { %v750_v5 = vmul.f32 %v7419_v62, %v749_v4  ;;  %v751_v6 = vmul.f32 %v7420_v63, %v749_v4  ;;  %s8563_s8 = sadd.s32 6, %s8293_s12  ;;  %v6106_v10 = vld [vmem:[#allocation2 + $0x48] sm:$0xf0]  ;;  %p8571_p9 = pnand %p783_p1, %p782_p0  ;;  %v6237_v62 = vor.u32 %v7168_v58, %v6236_v57  ;;  %v8624_v63 = vor.u32 %v7140_v52, %v6120_v51 }
  0xc4   : > { %1642 = vmatmul.bf16.gmra.mxu1 %v8448_v55  ;;  %v760_v7 = vmul.f32 %v7423_v2, %v759_v1  ;;  %v761_v8 = vmul.f32 %v7424_v3, %v759_v1  ;;  %s11368_s27 = smov (!%p6004_p4, %s774_s27), 7  ;;  %s816_s16 = scvt.s32.f32 %s8560_s19  ;;  %v8579_v23 = vor.u32 %v7135_v9, %v6106_v10  ;;  %v456_v1 = vld [vmem:[%s8266_s17 + $0x28] sm:$0xf]  ;;  %v457_v2 = vld [vmem:[%s8266_s17 + $0x2c] sm:$0xf] }
  0xc5   : > { %1783 = vmatmul.bf16.gmra.mxu3 %v8535_v50  ;;  %s780_s14 = scvt.s32.f32 %s11368_s27  ;;  %s863_s30 = scvt.s32.f32 %s8563_s8  ;;  %10901 = vst [vmem:[#allocation39_spill] sm:$0xff] %v8624_v63  ;;  %1827 = vmatpush.bf16.msrb.mxu0 %v6237_v62 }
  0xc6   : > { %1591 = vmatmul.bf16.gmra.mxu0 %v8542_v56  ;;  %v762_v13 = vadd.f32 %v760_v7, %v750_v5  ;;  %v763_v14 = vadd.f32 %v761_v8, %v751_v6  ;;  %s777_s29 = sadd.s32 1, %s11368_s27  ;;  %s7105_s24 = sshll.u32 %s11368_s27, 3  ;;  %472 = vst [vmem:[#allocation2 + $0x70] sm:$0xf] %v456_v1 }
  0xc7   : > { %1723 = vmatmul.bf16.gmra.mxu2 %v8542_v56  ;;  %p778_p2 = scmp.lt.s32.totalorder %s777_s29, 7  ;;  %s781_s13 = ssub.f32 %s8521_s6, %s780_s14  ;;  %473 = vst [vmem:[#allocation2 + $0x78] sm:$0xf] %v457_v2 }
  0xc8   : > { %v764_v24 = vpack.c.bf16 %v762_v13, %v762_v13  ;;  %v765_v25 = vpack.c.bf16 %v763_v14, %v763_v14  ;;  %s791_s3 = scalar_lea.vmem %s8281_s15, %s7105_s24 [#allocation9]  ;;  %s8587_s21 = smul.f32 0.46666667, %s816_s16 }
  0xc9   : > { %s11370_s29 = smov (!%p778_p2, %s777_s29), 7  ;;  %v7426_v30 = vld [vmem:[%s791_s3] sm:$0xff]   ;;  %s787_s22 = ssub.f32 1.0, %s781_s13 }
  0xca   : > { %766 = vst [vmem:[#allocation2 + $0x54] sm:$0xf] %v764_v24  ;;  %s6009_s6 = scalar_select %p8571_p9, 0.0, %s781_s13  ;;  %v7427_v33 = vunpack.c.l.bf16 %v7426_v30  ;;  %v7428_v34 = vunpack.c.h.bf16 %v7426_v30  ;;  %v7186_v30 = vld [vmem:[#allocation10 + $0x118] sm:$0xf0] }
  0xcb   : > { %767 = vst [vmem:[#allocation2 + $0x5c] sm:$0xf] %v765_v25  ;;  %s7106_s27 = sshll.u32 %s11370_s29, 3  ;;  %s818_s14 = sfloor.f32 %s8587_s21 }
  0xcc   : > { %s801_s16 = scalar_lea.vmem %s8281_s15, %s7106_s27 [#allocation9]  ;;  %s11372_s22 = smov (%p8571_p9, %s787_s22), 0.0  ;;  %v806_v36 = vstv %s6009_s6 }
  0xcd   : > { %v7430_v35 = vld [vmem:[%s801_s16] sm:$0xff]   ;;  %s7571_s24 = scvt.f32.s32 %s818_s14  ;;  %p829_p10 = scmp.ge.s32.totalorder %s8560_s19, 0  ;;  %v796_v41 = vstv %s11372_s22  ;;  %v6128_v24 = vld [vmem:[#allocation2 + $0x70] sm:$0xf] }
  0xce   : > { %v7431_v37 = vunpack.c.l.bf16 %v7430_v35  ;;  %v7432_v40 = vunpack.c.h.bf16 %v7430_v35  ;;  %p830_p12 = scmp.lt.s32.totalorder %s8560_s19, 16  ;;  %s8604_s29 = smul.f32 0.46666667, %s863_s30  ;;  %v797_v42 = vmul.f32 %v7427_v33, %v796_v41  ;;  %v798_v43 = vmul.f32 %v7428_v34, %v796_v41  ;;  %v7142_v25 = vld [vmem:[#allocation2 + $0x74] sm:$0xf0] }
  0xcf   : > { %p820_p8 = scmp.gt.s32.totalorder %s7571_s24, 0  ;;  %p6015_p13 = scmp.lt.s32.totalorder %s7571_s24, 7  ;;  %v6309_v33 = vor.u32 %v7186_v30, %v6308_v28  ;;  %v8666_v34 = vor.u32 %v7142_v25, %v6128_v24  ;;  %v6224_v41 = vld [vmem:[#allocation10 + $0x68] sm:$0xf] }
  0xd0   : > { %v807_v44 = vmul.f32 %v7431_v37, %v806_v36  ;;  %v808_v45 = vmul.f32 %v7432_v40, %v806_v36  ;;  %s865_s20 = sfloor.f32 %s8604_s29  ;;  %p876_p0 = scmp.ge.s32.totalorder %s8563_s8, 0 }
  0xd1   : > { %s821_s13 = scalar_select %p820_p8, %s7571_s24, 0  ;;  %v7137_v48 = vld [vmem:[#allocation2 + $0x54] sm:$0xf]  ;;  %10904 = vst [vmem:[#allocation41_spill] sm:$0xff] %v8666_v34  ;;  %1895 = vmatpush.bf16.msra.mxu1 %v6309_v33 }
  0xd2   : > { %v809_v46 = vadd.f32 %v807_v44, %v797_v42  ;;  %v810_v47 = vadd.f32 %v808_v45, %v798_v43  ;;  %v6114_v49 = vld [vmem:[#allocation2 + $0x58] sm:$0xf0]  ;;  %p8612_p7 = pnand %p830_p12, %p829_p10  ;;  %s8616_s3 = scvt.f32.s32 %s865_s20  ;;  %v7165_v42 = vld [vmem:[#allocation10 + $0x70] sm:$0xf0]  ;;  %v458_v43 = vld [vmem:[%s8266_s17 + $0x30] sm:$0xf] }
  0xd3   : > { %s11374_s13 = smov (!%p6015_p13, %s821_s13), 7  ;;  %p877_p5 = scmp.lt.s32.totalorder %s8563_s8, 16  ;;  %v8622_v61 = vor.u32 %v7137_v48, %v6114_v49  ;;  %474 = vst [vmem:[#allocation2 + $0x80] sm:$0xf] %v458_v43 }
  0xd4   : > { %1647 = vmatmul.bf16.gmra.mxu1 %v8483_v16  ;;  %v811_v53 = vpack.c.bf16 %v809_v46, %v809_v46  ;;  %v812_v54 = vpack.c.bf16 %v810_v47, %v810_v47  ;;  %p867_p1 = scmp.gt.s32.totalorder %s8616_s3, 0  ;;  %s824_s19 = sadd.s32 1, %s11374_s13  ;;  %v6225_v46 = vor.u32 %v7165_v42, %v6224_v41  ;;  %v459_v47 = vld [vmem:[%s8266_s17 + $0x34] sm:$0xf] }
  0xd5   : > { %1788 = vmatmul.bf16.gmra.mxu3 %v8579_v23  ;;  %10900 = vst [vmem:[#allocation38_spill] sm:$0xff] %v8622_v61  ;;  %s827_s6 = scvt.s32.f32 %s11374_s13  ;;  %p825_p6 = scmp.lt.s32.totalorder %s824_s19, 7 }
  0xd6   : > { %1596 = vmatmul.bf16.gmra.mxu0 %v8584_v29  ;;  %813 = vst [vmem:[#allocation2 + $0x64] sm:$0xf] %v811_v53  ;;  %s7109_s22 = sshll.u32 %s11374_s13, 3  ;;  %p6026_p4 = scmp.lt.s32.totalorder %s8616_s3, 7 }
  0xd7   : > { %1728 = vmatmul.bf16.gmra.mxu2 %v8584_v29  ;;  %814 = vst [vmem:[#allocation2 + $0x6c] sm:$0xf] %v812_v54  ;;  %s828_s27 = ssub.f32 %s8587_s21, %s827_s6  ;;  %s838_s16 = scalar_lea.vmem %s8281_s15, %s7109_s22 [#allocation9]  ;;  %1828 = vmatpush.bf16.msrb.mxu0 %v6225_v46 }
  0xd8   : > { %s11376_s19 = smov (!%p825_p6, %s824_s19), 7  ;;  %v7434_v0 = vld [vmem:[%s838_s16] sm:$0xff]   ;;  %p8646_p9 = pnand %p877_p5, %p876_p0  ;;  %475 = vst [vmem:[#allocation2 + $0x88] sm:$0xf] %v459_v47 }
  0xd9   : > { %s6020_s14 = scalar_select %p8612_p7, 0.0, %s828_s27  ;;  %v7435_v3 = vunpack.c.l.bf16 %v7434_v0  ;;  %v7436_v4 = vunpack.c.h.bf16 %v7434_v0 }
  0xda   : > { %s834_s21 = ssub.f32 1.0, %s828_s27  ;;  %s7110_s24 = sshll.u32 %s11376_s19, 3 }
  0xdb   : > { %s848_s20 = scalar_lea.vmem %s8281_s15, %s7110_s24 [#allocation9]  ;;  %v853_v6 = vstv %s6020_s14  ;;  %s8651_s6 = sadd.s32 7, %s8293_s12 }
  0xdc   : > { %s11378_s21 = smov (%p8612_p7, %s834_s21), 0.0  ;;  %v7438_v5 = vld [vmem:[%s848_s20] sm:$0xff]   ;;  %s910_s30 = scvt.s32.f32 %s8651_s6 }
  0xdd   : > { %v7439_v7 = vunpack.c.l.bf16 %v7438_v5  ;;  %v7440_v8 = vunpack.c.h.bf16 %v7438_v5  ;;  %s868_s13 = scalar_select %p867_p1, %s8616_s3, 0  ;;  %v843_v9 = vstv %s11378_s21  ;;  %v7139_v18 = vld [vmem:[#allocation2 + $0x64] sm:$0xf] }
  0xde   : > { %v844_v10 = vmul.f32 %v7435_v3, %v843_v9  ;;  %v845_v11 = vmul.f32 %v7436_v4, %v843_v9  ;;  %s8657_s22 = sadd.s32 8, %s8293_s12  ;;  %v6122_v21 = vld [vmem:[#allocation2 + $0x68] sm:$0xf0]  ;;  %p923_p10 = scmp.ge.s32.totalorder %s8651_s6, 0  ;;  %v6136_v3 = vld [vmem:[#allocation2 + $0x80] sm:$0xf] }
  0xdf   : > { %v854_v12 = vmul.f32 %v7439_v7, %v853_v6  ;;  %v855_v13 = vmul.f32 %v7440_v8, %v853_v6  ;;  %s11380_s13 = smov (!%p6026_p4, %s868_s13), 7  ;;  %v8662_v32 = vor.u32 %v7139_v18, %v6122_v21  ;;  %p924_p13 = scmp.lt.s32.totalorder %s8651_s6, 16  ;;  %v7144_v4 = vld [vmem:[#allocation2 + $0x84] sm:$0xf0]  ;;  %v6212_v9 = vld [vmem:[#allocation10 + $0x50] sm:$0xf] }
  0xe0   : > { %s871_s8 = sadd.s32 1, %s11380_s13  ;;  %s874_s27 = scvt.s32.f32 %s11380_s13  ;;  %v8705_v7 = vor.u32 %v7144_v4, %v6136_v3 }
  0xe1   : > { %v856_v14 = vadd.f32 %v854_v12, %v844_v10  ;;  %v857_v17 = vadd.f32 %v855_v13, %v845_v11  ;;  %p872_p2 = scmp.lt.s32.totalorder %s871_s8, 7  ;;  %s7113_s16 = sshll.u32 %s11380_s13, 3  ;;  %10903 = vst [vmem:[#allocation40_spill] sm:$0xff] %v8662_v32  ;;  %v7162_v10 = vld [vmem:[#allocation10 + $0x58] sm:$0xf0] }
  0xe2   : > { %s875_s3 = ssub.f32 %s8604_s29, %s874_s27  ;;  %s885_s14 = scalar_lea.vmem %s8281_s15, %s7113_s16 [#allocation9]  ;;  %10907 = vst [vmem:[#allocation43_spill] sm:$0xff] %v8705_v7  ;;  %v6213_v13 = vor.u32 %v7162_v10, %v6212_v9 }
  0xe3   : > { %v858_v26 = vpack.c.bf16 %v856_v14, %v856_v14  ;;  %v859_v27 = vpack.c.bf16 %v857_v17, %v857_v17  ;;  %s11382_s8 = smov (!%p872_p2, %s871_s8), 7  ;;  %v7442_v31 = vld [vmem:[%s885_s14] sm:$0xff]   ;;  %s8671_s13 = smul.f32 0.46666667, %s910_s30  ;;  %v6296_v14 = vld [vmem:[#allocation10 + $0xf8] sm:$0xf] }
  0xe4   : > { %1652 = vmatmul.bf16.gmra.mxu1 %v8535_v50  ;;  %s6031_s21 = scalar_select %p8646_p9, 0.0, %s875_s3  ;;  %v7443_v35 = vunpack.c.l.bf16 %v7442_v31  ;;  %v7444_v36 = vunpack.c.h.bf16 %v7442_v31  ;;  %v7183_v17 = vld [vmem:[#allocation10 + $0x100] sm:$0xf0]  ;;  %1829 = vmatpush.bf16.msrb.mxu0 %v6213_v13 }
  0xe5   : > { %1793 = vmatmul.bf16.gmra.mxu3 %v8622_v61  ;;  %860 = vst [vmem:[#allocation2 + $0x74] sm:$0xf] %v858_v26  ;;  %s881_s24 = ssub.f32 1.0, %s875_s3  ;;  %s7114_s29 = sshll.u32 %s11382_s8, 3  ;;  %v6297_v24 = vor.u32 %v7183_v17, %v6296_v14 }
  0xe6   : > { %1601 = vmatmul.bf16.gmra.mxu0 %v8624_v63  ;;  %861 = vst [vmem:[#allocation2 + $0x7c] sm:$0xf] %v859_v27  ;;  %s895_s20 = scalar_lea.vmem %s8281_s15, %s7114_s29 [#allocation9]  ;;  %v900_v40 = vstv %s6031_s21  ;;  %s912_s8 = sfloor.f32 %s8671_s13 }
  0xe7   : > { %1733 = vmatmul.bf16.gmra.mxu2 %v8624_v63  ;;  %s11384_s24 = smov (%p8646_p9, %s881_s24), 0.0  ;;  %v7446_v37 = vld [vmem:[%s895_s20] sm:$0xff]   ;;  %s957_s27 = scvt.s32.f32 %s8657_s22  ;;  %1896 = vmatpush.bf16.msra.mxu1 %v6297_v24 }
  0xe8   : > { %v7447_v44 = vunpack.c.l.bf16 %v7446_v37  ;;  %v7448_v45 = vunpack.c.h.bf16 %v7446_v37  ;;  %v890_v48 = vstv %s11384_s24  ;;  %s7575_s19 = scvt.f32.s32 %s912_s8  ;;  %p8693_p0 = pnand %p924_p13, %p923_p10 }
  0xe9   : > { %v891_v49 = vmul.f32 %v7443_v35, %v890_v48  ;;  %v892_v51 = vmul.f32 %v7444_v36, %v890_v48  ;;  %s8683_s30 = smul.f32 0.46666667, %s957_s27  ;;  %p970_p5 = scmp.ge.s32.totalorder %s8657_s22, 0 }
  0xea   : > { %v901_v52 = vmul.f32 %v7447_v44, %v900_v40  ;;  %v902_v53 = vmul.f32 %v7448_v45, %v900_v40  ;;  %p914_p12 = scmp.gt.s32.totalorder %s7575_s19, 0  ;;  %p6037_p8 = scmp.lt.s32.totalorder %s7575_s19, 7 }
  0xeb   : > { %s959_s17 = sfloor.f32 %s8683_s30  ;;  %p971_p4 = scmp.lt.s32.totalorder %s8657_s22, 16 }
  0xec   : > { %v903_v54 = vadd.f32 %v901_v52, %v891_v49  ;;  %v904_v57 = vadd.f32 %v902_v53, %v892_v51  ;;  %s11386_s19 = smov (!%p914_p12, %s7575_s19), 0  ;;  %s8687_s16 = scvt.f32.s32 %s959_s17  ;;  %v7141_v1 = vld [vmem:[#allocation2 + $0x74] sm:$0xf] }
  0xed   : > { %s11388_s19 = smov (!%p6037_p8, %s11386_s19), 7  ;;  %v6130_v2 = vld [vmem:[#allocation2 + $0x78] sm:$0xf0]  ;;  %s8722_s17 = sadd.s32 9, %s8293_s12 }
  0xee   : > { %v905_v58 = vpack.c.bf16 %v903_v54, %v903_v54  ;;  %v906_v62 = vpack.c.bf16 %v904_v57, %v904_v57  ;;  %p961_p7 = scmp.gt.s32.totalorder %s8687_s16, 0  ;;  %s918_s14 = sadd.s32 1, %s11388_s19  ;;  %v8701_v5 = vor.u32 %v7141_v1, %v6130_v2 }
  0xef   : > { %s921_s21 = scvt.s32.f32 %s11388_s19  ;;  %p919_p1 = scmp.lt.s32.totalorder %s918_s14, 7 }
  0xf0   : > { %907 = vst [vmem:[#allocation2 + $0x84] sm:$0xf] %v905_v58  ;;  %s7117_s24 = sshll.u32 %s11388_s19, 3  ;;  %p6048_p6 = scmp.lt.s32.totalorder %s8687_s16, 7 }
  0xf1   : > { %908 = vst [vmem:[#allocation2 + $0x8c] sm:$0xf] %v906_v62  ;;  %s922_s29 = ssub.f32 %s8671_s13, %s921_s21  ;;  %s932_s6 = scalar_lea.vmem %s8281_s15, %s7117_s24 [#allocation9] }
  0xf2   : > { %10906 = vst [vmem:[#allocation42_spill] sm:$0xff] %v8701_v5  ;;  %s11390_s14 = smov (!%p919_p1, %s918_s14), 7  ;;  %v7450_v6 = vld [vmem:[%s932_s6] sm:$0xff]   ;;  %p8732_p9 = pnand %p971_p4, %p970_p5 }
  0xf3   : > { %s6042_s20 = scalar_select %p8693_p0, 0.0, %s922_s29  ;;  %v7451_v11 = vunpack.c.l.bf16 %v7450_v6  ;;  %v7452_v12 = vunpack.c.h.bf16 %v7450_v6 }
  0xf4   : > { %1657 = vmatmul.bf16.gmra.mxu1 %v8579_v23  ;;  %s928_s8 = ssub.f32 1.0, %s922_s29  ;;  %s7118_s27 = sshll.u32 %s11390_s14, 3 }
  0xf5   : > { %1798 = vmatmul.bf16.gmra.mxu3 %v8662_v32  ;;  %s942_s19 = scalar_lea.vmem %s8281_s15, %s7118_s27 [#allocation9]  ;;  %v947_v21 = vstv %s6042_s20  ;;  %s1004_s12 = scvt.s32.f32 %s8722_s17 }
  0xf6   : > { %1606 = vmatmul.bf16.gmra.mxu0 %v8666_v34  ;;  %s11392_s8 = smov (%p8693_p0, %s928_s8), 0.0  ;;  %v7454_v18 = vld [vmem:[%s942_s19] sm:$0xff]   ;;  %p1017_p8 = scmp.ge.s32.totalorder %s8722_s17, 0 }
  0xf7   : > { %1738 = vmatmul.bf16.gmra.mxu2 %v8666_v34  ;;  %v7455_v25 = vunpack.c.l.bf16 %v7454_v18  ;;  %v7456_v26 = vunpack.c.h.bf16 %v7454_v18  ;;  %s962_s13 = scalar_select %p961_p7, %s8687_s16, 0  ;;  %v937_v27 = vstv %s11392_s8  ;;  %v7143_v44 = vld [vmem:[#allocation2 + $0x84] sm:$0xf]  ;;  %v6200_v18 = vld [vmem:[#allocation10 + $0x38] sm:$0xf] }
  0xf8   : > { %v938_v30 = vmul.f32 %v7451_v11, %v937_v27  ;;  %v939_v31 = vmul.f32 %v7452_v12, %v937_v27  ;;  %v6138_v45 = vld [vmem:[#allocation2 + $0x88] sm:$0xf0]  ;;  %p1018_p13 = scmp.lt.s32.totalorder %s8722_s17, 16  ;;  %p6742_p1 = scmp.ne.s32.totalorder %s10884_s23, 0 }
  0xf9   : > { %v948_v33 = vmul.f32 %v7455_v25, %v947_v21  ;;  %v949_v35 = vmul.f32 %v7456_v26, %v947_v21  ;;  %s11394_s13 = smov (!%p6048_p6, %s962_s13), 7  ;;  %v8742_v47 = vor.u32 %v7143_v44, %v6138_v45  ;;  %v7159_v21 = vld [vmem:[#allocation10 + $0x40] sm:$0xf0] }
  0xfa   : > { %s965_s14 = sadd.s32 1, %s11394_s13  ;;  %s968_s21 = scvt.s32.f32 %s11394_s13  ;;  %v6201_v24 = vor.u32 %v7159_v21, %v6200_v18 }
  0xfb   : > { %v950_v37 = vadd.f32 %v948_v33, %v938_v30  ;;  %v951_v40 = vadd.f32 %v949_v35, %v939_v31  ;;  %p966_p2 = scmp.lt.s32.totalorder %s965_s14, 7  ;;  %s7121_s24 = sshll.u32 %s11394_s13, 3  ;;  %10909 = vst [vmem:[#allocation44_spill] sm:$0xff] %v8742_v47  ;;  %v6444_v31 = vld [vmem:[#allocation10 + $0x228] sm:$0xf] }
  0xfc   : > { %s969_s16 = ssub.f32 %s8683_s30, %s968_s21  ;;  %s979_s29 = scalar_lea.vmem %s8281_s15, %s7121_s24 [#allocation9]  ;;  %1830 = vmatpush.bf16.msrb.mxu0 %v6201_v24  ;;  %v7221_v33 = vld [vmem:[#allocation10 + $0x230] sm:$0xf0]  ;;  %v6540_v35 = vld [vmem:[#allocation10 + $0x2e8] sm:$0xf] }
  0xfd   : > { %v952_v42 = vpack.c.bf16 %v950_v37, %v950_v37  ;;  %v953_v43 = vpack.c.bf16 %v951_v40, %v951_v40  ;;  %s11396_s14 = smov (!%p966_p2, %s965_s14), 7  ;;  %v7458_v46 = vld [vmem:[%s979_s29] sm:$0xff]   ;;  %s8745_s30 = smul.f32 0.46666667, %s1004_s12 }
  0xfe   : > { %s6053_s22 = scalar_select %p8732_p9, 0.0, %s969_s16  ;;  %v7459_v48 = vunpack.c.l.bf16 %v7458_v46  ;;  %v7460_v49 = vunpack.c.h.bf16 %v7458_v46  ;;  %v7245_v37 = vld [vmem:[#allocation10 + $0x2f0] sm:$0xf0]  ;;  %v6284_v46 = vld [vmem:[#allocation10 + $0xe0] sm:$0xf] }
  0xff   : > { %954 = vst [vmem:[#allocation2 + $0x94] sm:$0xf] %v952_v42  ;;  %s975_s6 = ssub.f32 1.0, %s969_s16  ;;  %s7122_s20 = sshll.u32 %s11396_s14, 3 }
 0x100   : > { %955 = vst [vmem:[#allocation2 + $0x9c] sm:$0xf] %v953_v43  ;;  %s989_s8 = scalar_lea.vmem %s8281_s15, %s7122_s20 [#allocation9]  ;;  %v994_v53 = vstv %s6053_s22  ;;  %s1006_s27 = sfloor.f32 %s8745_s30 }
 0x101   : > { %v8689_v0 = vpop.f32.mrf.mxu1  ;;  %s11398_s6 = smov (%p8732_p9, %s975_s6), 0.0  ;;  %v7462_v52 = vld [vmem:[%s989_s8] sm:$0xff]   ;;  %s7579_s19 = scvt.f32.s32 %s1006_s27 }
 0x102   : > { %v8724_v28 = vpop.f32.mrf.mxu0  ;;  %v7463_v57 = vunpack.c.l.bf16 %v7462_v52  ;;  %v7464_v58 = vunpack.c.h.bf16 %v7462_v52  ;;  %v984_v62 = vstv %s11398_s6  ;;  %p8760_p0 = pnand %p1018_p13, %p1017_p8  ;;  %v6432_v52 = vld [vmem:[#allocation10 + $0x210] sm:$0xf]  ;;  %s11129_s20 = sld [smem:[#allocation87_spill]] }
 0x103   : > { %v985_v2 = vmul.f32 %v7459_v48, %v984_v62  ;;  %v986_v3 = vmul.f32 %v7460_v49, %v984_v62  ;;  %p1008_p10 = scmp.gt.s32.totalorder %s7579_s19, 0  ;;  %p6059_p12 = scmp.lt.s32.totalorder %s7579_s19, 7  ;;  %v7180_v48 = vld [vmem:[#allocation10 + $0xe8] sm:$0xf0] }
 0x104   : > { %1662 = vmatmul.bf16.gmra.mxu1 %v8622_v61  ;;  %v995_v4 = vmul.f32 %v7463_v57, %v994_v53  ;;  %v996_v6 = vmul.f32 %v7464_v58, %v994_v53  ;;  %v6285_v49 = vor.u32 %v7180_v48, %v6284_v46  ;;  %v7218_v53 = vld [vmem:[#allocation10 + $0x218] sm:$0xf0]  ;;  %v6504_v46 = vld [vmem:[#allocation10 + $0x2a0] sm:$0xf]  ;;  %s10025_s8 = scalar_lea.vmem [#allocation13], %s5936_s18 }
 0x105   : > { %1803 = vmatmul.bf16.gmra.mxu3 %v8701_v5  ;;  %s11400_s19 = smov (!%p1008_p10, %s7579_s19), 0  ;;  %v6433_v62 = vor.u32 %v7218_v53, %v6432_v52  ;;  %v6188_v52 = vld [vmem:[#allocation10 + $0x20] sm:$0xf]  ;;  %v7156_v53 = vld [vmem:[#allocation10 + $0x28] sm:$0xf0] }
 0x106   : > { %1611 = vmatmul.bf16.gmra.mxu0 %v8705_v7  ;;  %v997_v9 = vadd.f32 %v995_v4, %v985_v2  ;;  %v998_v10 = vadd.f32 %v996_v6, %v986_v3  ;;  %s11402_s19 = smov (!%p6059_p12, %s11400_s19), 7  ;;  %v7145_v26 = vld [vmem:[#allocation2 + $0x94] sm:$0xf]  ;;  %1897 = vmatpush.bf16.msra.mxu1 %v6285_v49 }
 0x107   : > { %1743 = vmatmul.bf16.gmra.mxu2 %v8705_v7  ;;  %s1012_s17 = sadd.s32 1, %s11402_s19  ;;  %s1015_s3 = scvt.s32.f32 %s11402_s19  ;;  %v6146_v27 = vld [vmem:[#allocation2 + $0x98] sm:$0xf0] }
 0x108   : > { %v999_v13 = vpack.c.bf16 %v997_v9, %v997_v9  ;;  %v1000_v14 = vpack.c.bf16 %v998_v10, %v998_v10  ;;  %p1013_p7 = scmp.lt.s32.totalorder %s1012_s17, 7  ;;  %s7125_s12 = sshll.u32 %s11402_s19, 3  ;;  %v8776_v44 = vor.u32 %v7145_v26, %v6146_v27 }
 0x109   : > { %v8709_v8 = vpop.f32.mrf.mxu1  ;;  %s8767_s14 = ssub.f32 %s8745_s30, %s1015_s3  ;;  %s1026_s21 = scalar_lea.vmem %s8281_s15, %s7125_s12 [#allocation9] }
 0x10a   : > { %v1704_v36 = vpop.f32.mrf.mxu2  ;;  %v8749_v54 = vpop.f32.mrf.mxu0  ;;  %1001 = vst [vmem:[#allocation2 + $0xa4] sm:$0xf] %v999_v13  ;;  %s11404_s17 = smov (!%p1013_p7, %s1012_s17), 7  ;;  %v7466_v42 = vld [vmem:[%s1026_s21] sm:$0xff]   ;;  %v7215_v13 = vld [vmem:[#allocation10 + $0x200] sm:$0xf0] }
 0x10b   : > { %1002 = vst [vmem:[#allocation2 + $0xac] sm:$0xf] %v1000_v14  ;;  %s6064_s24 = scalar_select %p8760_p0, 0.0, %s8767_s14  ;;  %v7467_v57 = vunpack.c.l.bf16 %v7466_v42  ;;  %v7468_v58 = vunpack.c.h.bf16 %v7466_v42  ;;  %v6516_v14 = vld [vmem:[#allocation10 + $0x2b8] sm:$0xf] }
 0x10c   : > { %s1022_s16 = ssub.f32 1.0, %s8767_s14  ;;  %s7126_s29 = sshll.u32 %s11404_s17, 3  ;;  %v7212_v42 = vld [vmem:[#allocation10 + $0x1e8] sm:$0xf0] }
 0x10d   : > { %s1036_s22 = scalar_lea.vmem %s8281_s15, %s7126_s29 [#allocation9]  ;;  %v1041_v10 = vstv %s6064_s24 }
 0x10e   : > { %s11406_s16 = smov (%p8760_p0, %s1022_s16), 0.0  ;;  %v7470_v2 = vld [vmem:[%s1036_s22] sm:$0xff]  }
 0x10f   : > { %v7471_v6 = vunpack.c.l.bf16 %v7470_v2  ;;  %v7472_v9 = vunpack.c.h.bf16 %v7470_v2  ;;  %v1031_v18 = vstv %s11406_s16 }
 0x110   : > { %v1032_v26 = vmul.f32 %v7467_v57, %v1031_v18  ;;  %v1033_v27 = vmul.f32 %v7468_v58, %v1031_v18  ;;  %v7236_v58 = vld [vmem:[#allocation10 + $0x2a8] sm:$0xf0]  ;;  %v6492_v18 = vld [vmem:[#allocation10 + $0x288] sm:$0xf] }
 0x111   : > { %v1622_v41 = vpop.f32.mrf.mxu1 }
 0x112   : > { %v1706_v51 = vpop.f32.mrf.mxu2  ;;  %v6541_v41 = vor.u32 %v7245_v37, %v6540_v35  ;;  %v1042_v35 = vmul.f32 %v7471_v6, %v1041_v10  ;;  %v6154_v6 = vld [vmem:[#allocation2 + $0xa8] sm:$0xf0] }
 0x113   : > { %v8764_v30 = vpop.f32.mrf.mxu0 }
 0x114   : > { %1667 = vmatmul.bf16.gmra.mxu1 %v8662_v32  ;;  %2652 = vmatpush.bf16.msrb.mxu3 %v6541_v41  ;;  %v6408_v41 = vld [vmem:[#allocation10 + $0x1e0] sm:$0xf]  ;;  %v1044_v48 = vadd.f32 %v1042_v35, %v1032_v26  ;;  %v6384_v35 = vld [vmem:[#allocation10 + $0x1b0] sm:$0xf] }
 0x115   : > { %1808 = vmatmul.bf16.gmra.mxu3 %v8742_v47  ;;  %v6409_v57 = vor.u32 %v7212_v42, %v6408_v41  ;;  %v6480_v41 = vld [vmem:[#allocation10 + $0x270] sm:$0xf] }
 0x117   : > { %1748 = vmatmul.bf16.gmra.mxu2 %v8341_v15 }
 0x118   : > { %v1769_v11 = vpop.f32.mrf.mxu3 }
 0x119   : > { %v1623_v1 = vpop.f32.mrf.mxu1  ;;  %v8756_v12 = vadd.f32 %v1769_v11, %v1704_v36  ;;  %v6445_v36 = vor.u32 %v7221_v33, %v6444_v31  ;;  %v6420_v11 = vld [vmem:[#allocation10 + $0x1f8] sm:$0xf] }
 0x11a   : > { %v8758_v17 = vpop.f32.mrf.mxu2  ;;  %v7242_v1 = vld [vmem:[#allocation10 + $0x2d8] sm:$0xf0]  ;;  %v6421_v24 = vor.u32 %v7215_v13, %v6420_v11  ;;  %v7209_v11 = vld [vmem:[#allocation10 + $0x1d0] sm:$0xf0]  ;;  %v1074_v13 = vlaneseq }
 0x11b   : > { %2586 = vmatpush.bf16.msrb.mxu2 %v6445_v36  ;;  %v8788_v21 = vpop.f32.mrf.mxu0  ;;  %v1043_v36 = vmul.f32 %v7472_v9, %v1041_v10  ;;  %v6396_v10 = vld [vmem:[#allocation10 + $0x1c8] sm:$0xf] }
 0x11c   : > { %v8806_v42 = vshrl.u32 %v1074_v13, 7  ;;  %v6360_v13 = vld [vmem:[#allocation10 + $0x180] sm:$0xf] }
 0x11d   : > { %v1045_v49 = vadd.f32 %v1043_v36, %v1033_v27  ;;  %v7206_v36 = vld [vmem:[#allocation10 + $0x1b8] sm:$0xf0] }
 0x11e   : > { %vm10786_vm0 = vcmp.lt.s32.totalorder %v8806_v42, 1  ;;  %vm10812_vm11 = vcmp.lt.s32.totalorder %v8806_v42, 7 }
 0x11f   : > { %2587 = vmatpush.bf16.msrb.mxu2 %v6433_v62  ;;  %v6189_v62 = vor.u32 %v7156_v53, %v6188_v52  ;;  %v1047_v2 = vpack.c.bf16 %v1045_v49, %v1045_v49  ;;  %v6372_v53 = vld [vmem:[#allocation10 + $0x198] sm:$0xf] }
 0x120   : > { %v1771_v40 = vpop.f32.mrf.mxu3 }
 0x121   : > { %v1625_v25 = vpop.f32.mrf.mxu1  ;;  %v8774_v43 = vadd.f32 %v1771_v40, %v1706_v51  ;;  %v6528_v51 = vld [vmem:[#allocation10 + $0x2d0] sm:$0xf]  ;;  %1831 = vmatpush.bf16.msrb.mxu0 %v6189_v62  ;;  %1049 = vst [vmem:[#allocation2 + $0xbc] sm:$0xf] %v1047_v2  ;;  %v6468_v62 = vld [vmem:[#allocation10 + $0x258] sm:$0xf] }
 0x122   : > { %v8779_v45 = vpop.f32.mrf.mxu2  ;;  %v6529_v4 = vor.u32 %v7242_v1, %v6528_v51  ;;  %v7239_v25 = vld [vmem:[#allocation10 + $0x2c0] sm:$0xf0]  ;;  %v6505_v51 = vor.u32 %v7236_v58, %v6504_v46  ;;  %v1046_v1 = vpack.c.bf16 %v1044_v48, %v1044_v48  ;;  %v6385_v46 = vor.u32 %v7206_v36, %v6384_v35  ;;  %v7230_v48 = vld [vmem:[#allocation10 + $0x278] sm:$0xf0]  ;;  %v7177_v35 = vld [vmem:[#allocation10 + $0xd0] sm:$0xf0] }
 0x123   : > { %v6517_v33 = vor.u32 %v7239_v25, %v6516_v14  ;;  %2588 = vmatpush.bf16.msrb.mxu2 %v6421_v24  ;;  %v6397_v14 = vor.u32 %v7209_v11, %v6396_v10  ;;  %v7233_v24 = vld [vmem:[#allocation10 + $0x290] sm:$0xf0]  ;;  %v6481_v49 = vor.u32 %v7230_v48, %v6480_v41  ;;  %v7224_v36 = vld [vmem:[#allocation10 + $0x248] sm:$0xf0] }
 0x124   : > { %1672 = vmatmul.bf16.gmra.mxu1 %v8701_v5  ;;  %2653 = vmatpush.bf16.msrb.mxu3 %v6529_v4  ;;  %1048 = vst [vmem:[#allocation2 + $0xb4] sm:$0xf] %v1046_v1  ;;  %v6493_v26 = vor.u32 %v7233_v24, %v6492_v18  ;;  %v6456_v18 = vld [vmem:[#allocation10 + $0x240] sm:$0xf] }
 0x125   : > { %1813 = vmatmul.bf16.gmra.mxu3 %v8776_v44 }
 0x127   : > { %1753 = vmatmul.bf16.gmra.mxu2 %v8383_v60 }
 0x128   : > { %v1774_v31 = vpop.f32.mrf.mxu3  ;;  %2654 = vmatpush.bf16.msrb.mxu3 %v6517_v33  ;;  %2589 = vmatpush.bf16.msrb.mxu2 %v6409_v57  ;;  %v7203_v57 = vld [vmem:[#allocation10 + $0x1a0] sm:$0xf0] }
 0x129   : > { %v8784_v3 = vpop.f32.mrf.mxu1  ;;  %v8791_v37 = vadd.f32 %v1774_v31, %v8758_v17  ;;  %v7147_v17 = vld [vmem:[#allocation2 + $0xa4] sm:$0xf]  ;;  %v8804_v31 = vpop.f32.mrf.mxu0  ;;  %v6373_v58 = vor.u32 %v7203_v57, %v6372_v53  ;;  %v6162_v53 = vld [vmem:[#allocation2 + $0xb8] sm:$0xf0] }
 0x12a   : > { %v8793_v40 = vpop.f32.mrf.mxu2 }
 0x12c   : > { %2655 = vmatpush.bf16.msrb.mxu3 %v6505_v51  ;;  %2590 = vmatpush.bf16.msrb.mxu2 %v6397_v14  ;;  %v7227_v51 = vld [vmem:[#allocation10 + $0x260] sm:$0xf0]  ;;  %v7200_v14 = vld [vmem:[#allocation10 + $0x188] sm:$0xf0] }
 0x130   : > { %v1776_v25 = vpop.f32.mrf.mxu3  ;;  %2656 = vmatpush.bf16.msrb.mxu3 %v6493_v26  ;;  %2591 = vmatpush.bf16.msrb.mxu2 %v6385_v46  ;;  %v6272_v26 = vld [vmem:[#allocation10 + $0xc8] sm:$0xf]  ;;  %v6457_v46 = vor.u32 %v7224_v36, %v6456_v18 }
 0x131   : > { %v1638_v4 = vpop.f32.mrf.mxu1  ;;  %v8800_v27 = vadd.f32 %v1776_v25, %v8779_v45  ;;  %v8824_v25 = vpop.f32.mrf.mxu0  ;;  %v6273_v41 = vor.u32 %v7177_v35, %v6272_v26 }
 0x132   : > { %v8796_v9 = vadd.f32 %v1638_v4, %v8724_v28  ;;  %v8802_v28 = vor.u32 %v7147_v17, %v6154_v6  ;;  %v1716_v33 = vpop.f32.mrf.mxu2  ;;  %v6469_v17 = vor.u32 %v7227_v51, %v6468_v62  ;;  %v1077_v6 = vadd.s32 16, %v8806_v42 }
 0x133   : > { %1898 = vmatpush.bf16.msra.mxu1 %v6273_v41 }
 0x134   : > { %1677 = vmatmul.bf16.gmra.mxu1 %v8742_v47  ;;  %2657 = vmatpush.bf16.msrb.mxu3 %v6481_v49  ;;  %v10746_v1 = vrot.slane %v8796_v9, 7  ;;  %v1101_v48 = vand.u32 15, %v1077_v6  ;;  %v7153_v6 = vld [vmem:[#allocation10 + $0x10] sm:$0xf0] }
 0x135   : > { %1818 = vmatmul.bf16.gmra.mxu3 %v8802_v28  ;;  %2592 = vmatpush.bf16.msrb.mxu2 %v6373_v58  ;;  %v10911_v58 = vmov 0 }
 0x136   : > { %vm8828_vm1 = vcmp.ge.s32.totalorder %v1101_v48, 1 }
 0x137   : > { %1756 = vmatmul.bf16.gmra.mxu2 %v8431_v38  ;;  %v10912_v58 = vsel %vm8828_vm1, 4294967295, %v10911_v58 }
 0x138   : > { %v1779_v4 = vpop.f32.mrf.mxu3  ;;  %2658 = vmatpush.bf16.msrb.mxu3 %v6469_v17  ;;  %10913 = vst [vmem:[#allocation45_spill] sm:$0xff] %v10912_v58  ;;  %v6176_v17 = vld [vmem:[#allocation10 + $0x8] sm:$0xf] }
 0x139   : > { %v1640_v52 = vpop.f32.mrf.mxu1  ;;  %v1587_v26 = vpop.f32.mrf.mxu0 }
 0x13a   : > { %v1641_v45 = vadd.f32 %v1640_v52, %v8749_v54  ;;  %v8815_v54 = vadd.f32 %v1779_v4, %v8793_v40  ;;  %v1719_v11 = vpop.f32.mrf.mxu2  ;;  %v6361_v40 = vor.u32 %v7200_v14, %v6360_v13 }
 0x13c   : > { %v1982_v2 = vrot.slane %v1641_v45, 7  ;;  %v7149_v45 = vld [vmem:[#allocation2 + $0xb4] sm:$0xf]  ;;  %2593 = vmatpush.bf16.msrb.mxu2 %v6361_v40  ;;  %2659 = vmatpush.bf16.msrb.mxu3 %v6457_v46  ;;  %v1079_v40 = vadd.s32 32, %v8806_v42 }
 0x13d   : > { %v8832_v51 = vor.u32 %v7149_v45, %v6162_v53 }
 0x13e   : > { %v2021_v10 = vsel %vm10786_vm0, %v10746_v1, %v1982_v2  ;;  %v1103_v48 = vand.u32 15, %v1079_v40 }
 0x13f   : > { %v8822_v24 = vadd.f32 %v2021_v10, %v8774_v43  ;;  %v6177_v10 = vor.u32 %v7153_v6, %v6176_v17  ;;  %v6446_v17 = vld [vmem:[#allocation10 + $0x234] sm:$0xf0]  ;;  %v7244_v6 = vld [vmem:[#allocation10 + $0x2ec] sm:$0xf] }
 0x140   : > { %v1781_v57 = vpop.f32.mrf.mxu3  ;;  %vm8853_vm2 = vcmp.ge.s32.totalorder %v1103_v48, 1 }
 0x141   : > { %v1643_v49 = vpop.f32.mrf.mxu1  ;;  %v1782_v62 = vadd.f32 %v1781_v57, %v1716_v33  ;;  %1832 = vmatpush.bf16.msrb.mxu0 %v6177_v10  ;;  %v10914_v57 = vmov 0 }
 0x142   : > { %v1644_v52 = vadd.f32 %v1643_v49, %v8764_v30  ;;  %v1721_v30 = vpop.f32.mrf.mxu2  ;;  %v10915_v57 = vsel %vm8853_vm2, 4294967295, %v10914_v57 }
 0x143   : > { %10916 = vst [vmem:[#allocation46_spill] sm:$0xff] %v10915_v57 }
 0x144   : > { %v1983_v43 = vrot.slane %v1644_v52, 7  ;;  %1682 = vmatmul.bf16.gmra.mxu1 %v8776_v44  ;;  %1833 = vmatmul.bf16.vlgmr.msrb.gmra.mxu0 %v8359_v39  ;;  %v1589_v52 = vpop.f32.mrf.mxu0 }
 0x145   : > { %1821 = vmatmul.bf16.gmra.mxu3 %v8832_v51 }
 0x146   : > { %v2020_v4 = vsel %vm10786_vm0, %v1982_v2, %v1983_v43 }
 0x147   : > { %v2073_v13 = vsel %vm8828_vm1, %v2020_v4, 0.0  ;;  %2594 = vmatmul.bf16.vlgmr.msrb.gmra.mxu2 %v8359_v39 }
 0x148   : > { %v8839_v14 = vadd.f32 %v2073_v13, %v8791_v37  ;;  %v1784_v35 = vpop.f32.mrf.mxu3  ;;  %v6542_v13 = vld [vmem:[#allocation10 + $0x2f4] sm:$0xf0] }
 0x149   : > { %v1645_v18 = vpop.f32.mrf.mxu1  ;;  %v1785_v36 = vadd.f32 %v1784_v35, %v1719_v11 }
 0x14a   : > { %v1646_v33 = vadd.f32 %v1645_v18, %v8788_v21  ;;  %v1724_v41 = vpop.f32.mrf.mxu2  ;;  %v6545_v18 = vor.u32 %v7244_v6, %v6542_v13 }
 0x14c   : > { %v1984_v2 = vrot.slane %v1646_v33, 7  ;;  %2783 = vmatpush.bf16.msrb.mxu1 %v6545_v18 }
 0x14e   : > { %v2019_v37 = vsel %vm10786_vm0, %v1983_v43, %v1984_v2 }
 0x14f   : > { %v8849_v46 = vadd.f32 %v2019_v37, %v8800_v27  ;;  %v7220_v27 = vld [vmem:[#allocation10 + $0x22c] sm:$0xf]  ;;  %v1081_v37 = vadd.s32 48, %v8806_v42 }
 0x150   : > { %v1786_v53 = vpop.f32.mrf.mxu3  ;;  %v6449_v10 = vor.u32 %v7220_v27, %v6446_v17 }
 0x151   : > { %v1648_v49 = vpop.f32.mrf.mxu1  ;;  %v1787_v11 = vadd.f32 %v1786_v53, %v1721_v30 }
 0x152   : > { %v1649_v21 = vadd.f32 %v1648_v49, %v8804_v31  ;;  %v1726_v4 = vpop.f32.mrf.mxu2  ;;  %2718 = vmatpush.bf16.msra.mxu0 %v6449_v10  ;;  %v1592_v49 = vpop.f32.mrf.mxu0  ;;  %v10917_v10 = vmov 0 }
 0x154   : > { %v1985_v45 = vrot.slane %v1649_v21, 7  ;;  %1687 = vmatmul.bf16.gmra.mxu1 %v8802_v28  ;;  %1838 = vmatmul.bf16.gmra.mxu0 %v8411_v22 }
 0x155   : > { %2660 = vmatmul.bf16.vlgmr.msrb.gmra.mxu3 %v8409_v19 }
 0x156   : > { %v2018_v43 = vsel %vm10786_vm0, %v1984_v2, %v1985_v45 }
 0x157   : > { %v2075_v31 = vsel %vm8853_vm2, %v2018_v43, 0.0  ;;  %2598 = vmatmul.bf16.gmra.mxu2 %v8411_v22  ;;  %v1105_v43 = vand.u32 15, %v1081_v37 }
 0x158   : > { %v8862_v33 = vadd.f32 %v2075_v31, %v8815_v54  ;;  %v1789_v40 = vpop.f32.mrf.mxu3 }
 0x159   : > { %v1650_v35 = vpop.f32.mrf.mxu1  ;;  %v1790_v48 = vadd.f32 %v1789_v40, %v1724_v41  ;;  %vm8874_vm3 = vcmp.ge.s32.totalorder %v1105_v43, 1 }
 0x15a   : > { %v1651_v30 = vadd.f32 %v1650_v35, %v8824_v25  ;;  %v1729_v21 = vpop.f32.mrf.mxu2  ;;  %v10918_v10 = vsel %vm8874_vm3, 4294967295, %v10917_v10 }
 0x15b   : > { %10919 = vst [vmem:[#allocation47_spill] sm:$0xff] %v10918_v10 }
 0x15c   : > { %v1986_v2 = vrot.slane %v1651_v30, 7 }
 0x15e   : > { %v2017_v54 = vsel %vm10786_vm0, %v1985_v45, %v1986_v2  ;;  %v1594_v45 = vpop.f32.mrf.mxu0 }
 0x15f   : > { %v8871_v53 = vadd.f32 %v2017_v54, %v1782_v62 }
 0x160   : > { %v1791_v6 = vpop.f32.mrf.mxu3 }
 0x161   : > { %v1653_v27 = vpop.f32.mrf.mxu1  ;;  %v1792_v13 = vadd.f32 %v1791_v6, %v1726_v4  ;;  %v1083_v4 = vadd.s32 64, %v8806_v42 }
 0x162   : > { %v1654_v25 = vadd.f32 %v1653_v27, %v1587_v26  ;;  %v1731_v31 = vpop.f32.mrf.mxu2  ;;  %v6434_v27 = vld [vmem:[#allocation10 + $0x21c] sm:$0xf0] }
 0x164   : > { %v1987_v17 = vrot.slane %v1654_v25, 7  ;;  %1690 = vmatmul.bf16.gmra.mxu1 %v8832_v51  ;;  %1843 = vmatmul.bf16.gmra.mxu0 %v8453_v59  ;;  %v7241_v25 = vld [vmem:[#allocation10 + $0x2d4] sm:$0xf] }
 0x165   : > { %2664 = vmatmul.bf16.gmra.mxu3 %v8448_v55 }
 0x166   : > { %v2016_v41 = vsel %vm10786_vm0, %v1986_v2, %v1987_v17 }
 0x167   : > { %v2077_v62 = vsel %vm8874_vm3, %v2016_v41, 0.0  ;;  %2603 = vmatmul.bf16.gmra.mxu2 %v8453_v59  ;;  %v1107_v41 = vand.u32 15, %v1083_v4 }
 0x168   : > { %v8882_v18 = vadd.f32 %v2077_v62, %v1785_v36  ;;  %v1794_v40 = vpop.f32.mrf.mxu3  ;;  %v7217_v36 = vld [vmem:[#allocation10 + $0x214] sm:$0xf] }
 0x169   : > { %v1655_v26 = vpop.f32.mrf.mxu1  ;;  %v1795_v2 = vadd.f32 %v1794_v40, %v1729_v21  ;;  %v6437_v6 = vor.u32 %v7217_v36, %v6434_v27  ;;  %vm8893_vm4 = vcmp.ge.s32.totalorder %v1107_v41, 1 }
 0x16a   : > { %v1656_v35 = vadd.f32 %v1655_v26, %v1589_v52  ;;  %v1734_v54 = vpop.f32.mrf.mxu2  ;;  %v6530_v52 = vld [vmem:[#allocation10 + $0x2dc] sm:$0xf0]  ;;  %v1597_v26 = vpop.f32.mrf.mxu0 }
 0x16b   : > { %2719 = vmatpush.bf16.msra.mxu0 %v6437_v6 }
 0x16c   : > { %v1988_v30 = vrot.slane %v1656_v35, 7  ;;  %v6533_v35 = vor.u32 %v7241_v25, %v6530_v52 }
 0x16e   : > { %v2015_v37 = vsel %vm10786_vm0, %v1987_v17, %v1988_v30  ;;  %2784 = vmatpush.bf16.msrb.mxu1 %v6533_v35  ;;  %v10920_v17 = vmov 0 }
 0x16f   : > { %v8890_v43 = vadd.f32 %v2015_v37, %v1787_v11  ;;  %v10921_v17 = vsel %vm8893_vm4, 4294967295, %v10920_v17 }
 0x170   : > { %v1796_v21 = vpop.f32.mrf.mxu3  ;;  %10922 = vst [vmem:[#allocation48_spill] sm:$0xff] %v10921_v17  ;;  %v6518_v17 = vld [vmem:[#allocation10 + $0x2c4] sm:$0xf0] }
 0x171   : > { %v1658_v62 = vpop.f32.mrf.mxu1  ;;  %v1797_v11 = vadd.f32 %v1796_v21, %v1731_v31  ;;  %v1085_v31 = vadd.s32 80, %v8806_v42 }
 0x172   : > { %v1659_v1 = vadd.f32 %v1658_v62, %v1592_v49  ;;  %v1736_v37 = vpop.f32.mrf.mxu2  ;;  %v1599_v27 = vpop.f32.mrf.mxu0 }
 0x173   : > { %v1109_v62 = vand.u32 15, %v1085_v31 }
 0x174   : > { %v1989_v10 = vrot.slane %v1659_v1, 7  ;;  %1899 = vmatmul.bf16.vlgmr.msra.gmra.mxu1 %v8409_v19  ;;  %1848 = vmatmul.bf16.gmra.mxu0 %v8494_v20 }
 0x175   : > { %2669 = vmatmul.bf16.gmra.mxu3 %v8483_v16  ;;  %vm8912_vm5 = vcmp.ge.s32.totalorder %v1109_v62, 1 }
 0x176   : > { %v2014_v40 = vsel %vm10786_vm0, %v1988_v30, %v1989_v10 }
 0x177   : > { %v2079_v4 = vsel %vm8893_vm4, %v2014_v40, 0.0  ;;  %2608 = vmatmul.bf16.gmra.mxu2 %v8494_v20 }
 0x178   : > { %v8901_v36 = vadd.f32 %v2079_v4, %v1790_v48  ;;  %v1799_v6 = vpop.f32.mrf.mxu3  ;;  %v10923_v4 = vmov 0 }
 0x179   : > { %v1660_v49 = vpop.f32.mrf.mxu1  ;;  %v1800_v30 = vadd.f32 %v1799_v6, %v1734_v54  ;;  %v10924_v4 = vsel %vm8912_vm5, 4294967295, %v10923_v4  ;;  %v7214_v6 = vld [vmem:[#allocation10 + $0x1fc] sm:$0xf] }
 0x17a   : > { %v1661_v1 = vadd.f32 %v1660_v49, %v1594_v45  ;;  %v1739_v41 = vpop.f32.mrf.mxu2  ;;  %10925 = vst [vmem:[#allocation49_spill] sm:$0xff] %v10924_v4 }
 0x17c   : > { %v1990_v25 = vrot.slane %v1661_v1, 7  ;;  %v1602_v1 = vpop.f32.mrf.mxu0 }
 0x17e   : > { %v2013_v52 = vsel %vm10786_vm0, %v1989_v10, %v1990_v25 }
 0x17f   : > { %v8909_v48 = vadd.f32 %v2013_v52, %v1792_v13  ;;  %v6422_v13 = vld [vmem:[#allocation10 + $0x204] sm:$0xf0]  ;;  %v7238_v52 = vld [vmem:[#allocation10 + $0x2bc] sm:$0xf] }
 0x180   : > { %v1801_v40 = vpop.f32.mrf.mxu3  ;;  %v6425_v31 = vor.u32 %v7214_v6, %v6422_v13  ;;  %v1087_v6 = vadd.s32 96, %v8806_v42 }
 0x181   : > { %v1663_v35 = vpop.f32.mrf.mxu1  ;;  %v1802_v49 = vadd.f32 %v1801_v40, %v1736_v37 }
 0x182   : > { %v1664_v21 = vadd.f32 %v1663_v35, %v1597_v26  ;;  %v1741_v10 = vpop.f32.mrf.mxu2  ;;  %v6521_v35 = vor.u32 %v7238_v52, %v6518_v17  ;;  %2720 = vmatpush.bf16.msra.mxu0 %v6425_v31 }
 0x184   : > { %v1991_v45 = vrot.slane %v1664_v21, 7  ;;  %1904 = vmatmul.bf16.gmra.mxu1 %v8448_v55  ;;  %1853 = vmatmul.bf16.gmra.mxu0 %v8542_v56  ;;  %v1604_v52 = vpop.f32.mrf.mxu0 }
 0x185   : > { %2674 = vmatmul.bf16.gmra.mxu3 %v8535_v50  ;;  %2785 = vmatpush.bf16.msrb.mxu1 %v6521_v35 }
 0x186   : > { %v2012_v54 = vsel %vm10786_vm0, %v1990_v25, %v1991_v45 }
 0x187   : > { %v2081_v26 = vsel %vm8912_vm5, %v2012_v54, 0.0  ;;  %2613 = vmatmul.bf16.gmra.mxu2 %v8542_v56 }
 0x188   : > { %v8920_v21 = vadd.f32 %v2081_v26, %v1795_v2  ;;  %v1804_v40 = vpop.f32.mrf.mxu3  ;;  %v1111_v26 = vand.u32 15, %v1087_v6 }
 0x189   : > { %v1665_v62 = vpop.f32.mrf.mxu1  ;;  %v1805_v13 = vadd.f32 %v1804_v40, %v1739_v41 }
 0x18a   : > { %v1666_v37 = vadd.f32 %v1665_v62, %v1599_v27  ;;  %v1744_v2 = vpop.f32.mrf.mxu2  ;;  %vm8931_vm6 = vcmp.ge.s32.totalorder %v1111_v26, 1 }
 0x18c   : > { %v1992_v25 = vrot.slane %v1666_v37, 7  ;;  %v10927_v37 = vmov 0 }
 0x18d   : > { %v10928_v37 = vsel %vm8931_vm6, 4294967295, %v10927_v37 }
 0x18e   : > { %v2011_v17 = vsel %vm10786_vm0, %v1991_v45, %v1992_v25  ;;  %10929 = vst [vmem:[#allocation51_spill] sm:$0xff] %v10928_v37  ;;  %v7235_v37 = vld [vmem:[#allocation10 + $0x2a4] sm:$0xf] }
 0x18f   : > { %v8928_v54 = vadd.f32 %v2011_v17, %v1797_v11 }
 0x190   : > { %v1806_v62 = vpop.f32.mrf.mxu3 }
 0x191   : > { %10926 = vst [vmem:[#allocation50_spill] sm:$0xff] %v8928_v54  ;;  %v1668_v31 = vpop.f32.mrf.mxu1  ;;  %v1807_v4 = vadd.f32 %v1806_v62, %v1741_v10  ;;  %v1089_v10 = vadd.s32 112, %v8806_v42 }
 0x192   : > { %v1669_v27 = vadd.f32 %v1668_v31, %v1602_v1  ;;  %v1746_v45 = vpop.f32.mrf.mxu2  ;;  %v1607_v1 = vpop.f32.mrf.mxu0 }
 0x194   : > { %v1993_v35 = vrot.slane %v1669_v27, 7  ;;  %1909 = vmatmul.bf16.gmra.mxu1 %v8483_v16  ;;  %1858 = vmatmul.bf16.gmra.mxu0 %v8584_v29 }
 0x195   : > { %2679 = vmatmul.bf16.gmra.mxu3 %v8579_v23 }
 0x196   : > { %v2010_v41 = vsel %vm10786_vm0, %v1992_v25, %v1993_v35 }
 0x197   : > { %v2083_v11 = vsel %vm8931_vm6, %v2010_v41, 0.0  ;;  %2618 = vmatmul.bf16.gmra.mxu2 %v8584_v29  ;;  %v7211_v41 = vld [vmem:[#allocation10 + $0x1e4] sm:$0xf] }
 0x198   : > { %v8939_v40 = vadd.f32 %v2083_v11, %v1800_v30  ;;  %v1809_v31 = vpop.f32.mrf.mxu3  ;;  %v6410_v11 = vld [vmem:[#allocation10 + $0x1ec] sm:$0xf0] }
 0x199   : > { %v1670_v6 = vpop.f32.mrf.mxu1  ;;  %v1810_v25 = vadd.f32 %v1809_v31, %v1744_v2  ;;  %v6413_v57 = vor.u32 %v7211_v41, %v6410_v11 }
 0x19a   : > { %10930 = vst [vmem:[#allocation52_spill] sm:$0xff] %v8939_v40  ;;  %v1671_v17 = vadd.f32 %v1670_v6, %v1604_v52  ;;  %v1749_v62 = vpop.f32.mrf.mxu2  ;;  %v6506_v52 = vld [vmem:[#allocation10 + $0x2ac] sm:$0xf0]  ;;  %v1113_v6 = vand.u32 15, %v1089_v10  ;;  %v1609_v29 = vpop.f32.mrf.mxu0 }
 0x19b   : > { %2721 = vmatpush.bf16.msra.mxu0 %v6413_v57 }
 0x19c   : > { %v1994_v26 = vrot.slane %v1671_v17, 7  ;;  %v6509_v17 = vor.u32 %v7235_v37, %v6506_v52  ;;  %vm8950_vm7 = vcmp.ge.s32.totalorder %v1113_v6, 1 }
 0x19e   : > { %v2009_v27 = vsel %vm10786_vm0, %v1993_v35, %v1994_v26  ;;  %2786 = vmatpush.bf16.msrb.mxu1 %v6509_v17  ;;  %v10931_v35 = vmov 0 }
 0x19f   : > { %v8947_v30 = vadd.f32 %v2009_v27, %v1802_v49  ;;  %v10932_v35 = vsel %vm8950_vm7, 4294967295, %v10931_v35 }
 0x1a0   : > { %v1811_v2 = vpop.f32.mrf.mxu3  ;;  %10933 = vst [vmem:[#allocation53_spill] sm:$0xff] %v10932_v35  ;;  %v7232_v35 = vld [vmem:[#allocation10 + $0x28c] sm:$0xf] }
 0x1a1   : > { %v1673_v58 = vpop.f32.mrf.mxu1  ;;  %v1812_v49 = vadd.f32 %v1811_v2, %v1746_v45  ;;  %v1091_v45 = vadd.s32 128, %v8806_v42 }
 0x1a2   : > { %v1674_v40 = vadd.f32 %v1673_v58, %v1607_v1  ;;  %v1751_v27 = vpop.f32.mrf.mxu2  ;;  %v1612_v41 = vpop.f32.mrf.mxu0 }
 0x1a3   : > { %v1115_v6 = vand.u32 15, %v1091_v45 }
 0x1a4   : > { %v1995_v54 = vrot.slane %v1674_v40, 7  ;;  %1914 = vmatmul.bf16.gmra.mxu1 %v8535_v50  ;;  %1863 = vmatmul.bf16.gmra.mxu0 %v8624_v63 }
 0x1a5   : > { %2684 = vmatmul.bf16.gmra.mxu3 %v8622_v61  ;;  %vm8969_vm8 = vcmp.ge.s32.totalorder %v1115_v6, 1 }
 0x1a6   : > { %v2008_v31 = vsel %vm10786_vm0, %v1994_v26, %v1995_v54 }
 0x1a7   : > { %v2085_v37 = vsel %vm8950_vm7, %v2008_v31, 0.0  ;;  %2623 = vmatmul.bf16.gmra.mxu2 %v8624_v63 }
 0x1a8   : > { %v8958_v58 = vadd.f32 %v2085_v37, %v1805_v13  ;;  %v1814_v10 = vpop.f32.mrf.mxu3  ;;  %v7208_v37 = vld [vmem:[#allocation10 + $0x1cc] sm:$0xf] }
 0x1a9   : > { %v1675_v57 = vpop.f32.mrf.mxu1  ;;  %v1815_v26 = vadd.f32 %v1814_v10, %v1749_v62 }
 0x1aa   : > { %v1676_v40 = vadd.f32 %v1675_v57, %v1609_v29  ;;  %v1754_v52 = vpop.f32.mrf.mxu2  ;;  %v6398_v57 = vld [vmem:[#allocation10 + $0x1d4] sm:$0xf0] }
 0x1ab   : > { %v6401_v10 = vor.u32 %v7208_v37, %v6398_v57 }
 0x1ac   : > { %v1996_v1 = vrot.slane %v1676_v40, 7  ;;  %v10934_v40 = vmov 0 }
 0x1ad   : > { %v10935_v40 = vsel %vm8969_vm8, 4294967295, %v10934_v40  ;;  %2722 = vmatpush.bf16.msra.mxu0 %v6401_v10 }
 0x1ae   : > { %v2007_v11 = vsel %vm10786_vm0, %v1995_v54, %v1996_v1  ;;  %10936 = vst [vmem:[#allocation54_spill] sm:$0xff] %v10935_v40  ;;  %v6494_v54 = vld [vmem:[#allocation10 + $0x294] sm:$0xf0] }
 0x1af   : > { %v8966_v13 = vadd.f32 %v2007_v11, %v1807_v4  ;;  %v6497_v11 = vor.u32 %v7232_v35, %v6494_v54  ;;  %v1093_v35 = vadd.s32 144, %v8806_v42 }
 0x1b0   : > { %v1816_v31 = vpop.f32.mrf.mxu3 }
 0x1b1   : > { %v1678_v17 = vpop.f32.mrf.mxu1  ;;  %v1817_v62 = vadd.f32 %v1816_v31, %v1751_v27  ;;  %2787 = vmatpush.bf16.msrb.mxu1 %v6497_v11  ;;  %v10937_v11 = vmov 0 }
 0x1b2   : > { %v1679_v2 = vadd.f32 %v1678_v17, %v1612_v41  ;;  %v1755_v45 = vpop.f32.mrf.mxu2  ;;  %v1614_v41 = vpop.f32.mrf.mxu0 }
 0x1b4   : > { %v1997_v29 = vrot.slane %v1679_v2, 7  ;;  %1919 = vmatmul.bf16.gmra.mxu1 %v8579_v23  ;;  %1868 = vmatmul.bf16.gmra.mxu0 %v8666_v34 }
 0x1b5   : > { %2689 = vmatmul.bf16.gmra.mxu3 %v8662_v32 }
 0x1b6   : > { %v2006_v4 = vsel %vm10786_vm0, %v1996_v1, %v1997_v29 }
 0x1b7   : > { %v2087_v52 = vsel %vm8969_vm8, %v2006_v4, 0.0  ;;  %2628 = vmatmul.bf16.gmra.mxu2 %v8666_v34 }
 0x1b8   : > { %v8977_v17 = vadd.f32 %v2087_v52, %v1810_v25  ;;  %v1819_v31 = vpop.f32.mrf.mxu3  ;;  %v1117_v25 = vand.u32 15, %v1093_v35 }
 0x1b9   : > { %v1680_v6 = vpop.f32.mrf.mxu1 }
 0x1ba   : > { %v1681_v27 = vadd.f32 %v1680_v6, %v1614_v41  ;;  %v1757_v37 = vpop.f32.mrf.mxu2  ;;  %vm8989_vm9 = vcmp.ge.s32.totalorder %v1117_v25, 1  ;;  %v6386_v25 = vld [vmem:[#allocation10 + $0x1bc] sm:$0xf0] }
 0x1bb   : > { %v10938_v11 = vsel %vm8989_vm9, 4294967295, %v10937_v11 }
 0x1bc   : > { %v1998_v2 = vrot.slane %v1681_v27, 7  ;;  %10939 = vst [vmem:[#allocation55_spill] sm:$0xff] %v10938_v11  ;;  %v6536_v11 = vld [vmem:[#allocation10 + $0x2d8] sm:$0xf] }
 0x1be   : > { %v2005_v1 = vsel %vm10786_vm0, %v1997_v29, %v1998_v2 }
 0x1bf   : > { %v8985_v57 = vadd.f32 %v2005_v1, %v1812_v49 }
 0x1c0   : > { %v1820_v45 = vpop.f32.mrf.mxu3 }
 0x1c1   : > { %v1683_v10 = vpop.f32.mrf.mxu1 }
 0x1c2   : > { %v1684_v54 = vadd.f32 %v1683_v10, %v8689_v0  ;;  %v1758_v52 = vpop.f32.mrf.mxu2  ;;  %v9000_v0 = vpop.f32.mrf.mxu0  ;;  %v7229_v10 = vld [vmem:[#allocation10 + $0x274] sm:$0xf] }
 0x1c4   : > { %v1999_v4 = vrot.slane %v1684_v54, 7  ;;  %1924 = vmatmul.bf16.gmra.mxu1 %v8622_v61  ;;  %1873 = vmatmul.bf16.gmra.mxu0 %v8705_v7 }
 0x1c5   : > { %2694 = vmatmul.bf16.gmra.mxu3 %v8701_v5 }
 0x1c6   : > { %v2004_v41 = vsel %vm10786_vm0, %v1998_v2, %v1999_v4 }
 0x1c7   : > { %v2089_v49 = vsel %vm8989_vm9, %v2004_v41, 0.0  ;;  %2633 = vmatmul.bf16.gmra.mxu2 %v8705_v7  ;;  %v6482_v41 = vld [vmem:[#allocation10 + $0x27c] sm:$0xf0] }
 0x1c8   : > { %v8997_v29 = vadd.f32 %v2089_v49, %v1815_v26  ;;  %v1822_v35 = vpop.f32.mrf.mxu3  ;;  %v7205_v26 = vld [vmem:[#allocation10 + $0x1b4] sm:$0xf] }
 0x1c9   : > { %v1685_v6 = vpop.f32.mrf.mxu1  ;;  %v6389_v45 = vor.u32 %v7205_v26, %v6386_v25  ;;  %v7222_v26 = vld [vmem:[#allocation10 + $0x238] sm:$0xf0]  ;;  %v6548_v25 = vld [vmem:[#allocation10 + $0x2f0] sm:$0xf] }
 0x1ca   : > { %10940 = vst [vmem:[#allocation56_spill] sm:$0xff] %v8997_v29  ;;  %v1686_v27 = vadd.f32 %v1685_v6, %v8709_v8  ;;  %v2595_v1 = vpop.f32.mrf.mxu2  ;;  %v9009_v52 = vpop.f32.mrf.mxu0  ;;  %v6485_v8 = vor.u32 %v7229_v10, %v6482_v41  ;;  %v6374_v29 = vld [vmem:[#allocation10 + $0x1a4] sm:$0xf0] }
 0x1cb   : > { %2723 = vmatpush.bf16.msra.mxu0 %v6389_v45  ;;  %v6452_v1 = vld [vmem:[#allocation10 + $0x230] sm:$0xf] }
 0x1cc   : > { %v2000_v31 = vrot.slane %v1686_v27, 7  ;;  %2788 = vmatpush.bf16.msrb.mxu1 %v6485_v8  ;;  %v6453_v10 = vor.u32 %v7222_v26, %v6452_v1  ;;  %v7226_v1 = vld [vmem:[#allocation10 + $0x25c] sm:$0xf] }
 0x1ce   : > { %v2003_v2 = vsel %vm10786_vm0, %v1999_v4, %v2000_v31  ;;  %2848 = vmatpush.bf16.msra.mxu2 %v6453_v10 }
 0x1cf   : > { %v9007_v37 = vadd.f32 %v2003_v2, %v1817_v62 }
 0x1d0   : > { %v1823_v49 = vpop.f32.mrf.mxu3 }
 0x1d1   : > { %10941 = vst [vmem:[#allocation57_spill] sm:$0xff] %v9007_v37  ;;  %v1688_v54 = vpop.f32.mrf.mxu1  ;;  %v7202_v37 = vld [vmem:[#allocation10 + $0x19c] sm:$0xf] }
 0x1d2   : > { %v2596_v6 = vpop.f32.mrf.mxu2  ;;  %v9013_v62 = vpop.f32.mrf.mxu0  ;;  %v7246_v54 = vld [vmem:[#allocation10 + $0x2f8] sm:$0xf0] }
 0x1d3   : > { %v6549_v41 = vor.u32 %v7246_v54, %v6548_v25  ;;  %v6377_v25 = vor.u32 %v7202_v37, %v6374_v29 }
 0x1d4   : > { %1929 = vmatmul.bf16.gmra.mxu1 %v8662_v32  ;;  %1878 = vmatmul.bf16.gmra.mxu0 %v8341_v15 }
 0x1d5   : > { %2699 = vmatmul.bf16.gmra.mxu3 %v8742_v47  ;;  %2724 = vmatpush.bf16.msra.mxu0 %v6377_v25 }
 0x1d6   : > { %2914 = vmatpush.bf16.msra.mxu3 %v6549_v41  ;;  %v6428_v41 = vld [vmem:[#allocation10 + $0x200] sm:$0xf] }
 0x1d7   : > { %2638 = vmatmul.bf16.gmra.mxu2 %v8341_v15  ;;  %v7243_v15 = vld [vmem:[#allocation10 + $0x2e0] sm:$0xf0] }
 0x1d8   : > { %v2661_v4 = vpop.f32.mrf.mxu3  ;;  %v6537_v26 = vor.u32 %v7243_v15, %v6536_v11  ;;  %v7240_v15 = vld [vmem:[#allocation10 + $0x2c8] sm:$0xf0]  ;;  %v10943_v11 = vmov 0 }
 0x1d9   : > { %v1689_v27 = vpop.f32.mrf.mxu1  ;;  %v7219_v4 = vld [vmem:[#allocation10 + $0x220] sm:$0xf0] }
 0x1da   : > { %v2599_v31 = vpop.f32.mrf.mxu2  ;;  %v9017_v2 = vpop.f32.mrf.mxu0  ;;  %v6440_v27 = vld [vmem:[#allocation10 + $0x218] sm:$0xf]  ;;  %2915 = vmatpush.bf16.msra.mxu3 %v6537_v26  ;;  %v7213_v26 = vld [vmem:[#allocation10 + $0x1f0] sm:$0xf0] }
 0x1db   : > { %v6441_v40 = vor.u32 %v7219_v4, %v6440_v27  ;;  %v6524_v27 = vld [vmem:[#allocation10 + $0x2c0] sm:$0xf] }
 0x1dd   : > { %2849 = vmatpush.bf16.msra.mxu2 %v6441_v40  ;;  %v10946_v40 = vrot.slane %v8796_v9, 7 }
 0x1e0   : > { %v2662_v45 = vpop.f32.mrf.mxu3 }
 0x1e1   : > { %v1691_v35 = vpop.f32.mrf.mxu1  ;;  %v9020_v8 = vadd.f32 %v2662_v45, %v2596_v6  ;;  %v6470_v6 = vld [vmem:[#allocation10 + $0x264] sm:$0xf0] }
 0x1e2   : > { %v2601_v49 = vpop.f32.mrf.mxu2  ;;  %v1099_v35 = vand.u32 15, %v8806_v42  ;;  %v9024_v54 = vpop.f32.mrf.mxu0  ;;  %v6473_v45 = vor.u32 %v7226_v1, %v6470_v6 }
 0x1e3   : > { %10942 = vst [vmem:[#allocation58_spill] sm:$0xff] %v9020_v8  ;;  %v7216_v8 = vld [vmem:[#allocation10 + $0x208] sm:$0xf0] }
 0x1e4   : > { %1934 = vmatmul.bf16.gmra.mxu1 %v8701_v5  ;;  %v6429_v4 = vor.u32 %v7216_v8, %v6428_v41  ;;  %vm9028_vm10 = vcmp.ge.s32.totalorder %v1099_v35, 1  ;;  %1883 = vmatmul.bf16.gmra.mxu0 %v8383_v60  ;;  %v6416_v35 = vld [vmem:[#allocation10 + $0x1e8] sm:$0xf] }
 0x1e5   : > { %2704 = vmatmul.bf16.gmra.mxu3 %v8776_v44  ;;  %v10944_v11 = vsel %vm9028_vm10, 4294967295, %v10943_v11  ;;  %2789 = vmatpush.bf16.msrb.mxu1 %v6473_v45  ;;  %v6417_v6 = vor.u32 %v7213_v26, %v6416_v35  ;;  %v7237_v45 = vld [vmem:[#allocation10 + $0x2b0] sm:$0xf0] }
 0x1e6   : > { %10945 = vst [vmem:[#allocation59_spill] sm:$0xff] %v10944_v11  ;;  %2850 = vmatpush.bf16.msra.mxu2 %v6429_v4  ;;  %v6362_v11 = vld [vmem:[#allocation10 + $0x18c] sm:$0xf0] }
 0x1e7   : > { %2643 = vmatmul.bf16.gmra.mxu2 %v8383_v60  ;;  %v7223_v60 = vld [vmem:[#allocation10 + $0x244] sm:$0xf] }
 0x1e8   : > { %v2665_v37 = vpop.f32.mrf.mxu3 }
 0x1e9   : > { %v1692_v7 = vpop.f32.mrf.mxu1 }
 0x1ea   : > { %v1693_v10 = vadd.f32 %v1692_v7, %v8784_v3  ;;  %v6525_v7 = vor.u32 %v7240_v15, %v6524_v27  ;;  %v9033_v3 = vadd.f32 %v2665_v37, %v2599_v31  ;;  %v2604_v8 = vpop.f32.mrf.mxu2  ;;  %v9042_v4 = vpop.f32.mrf.mxu0  ;;  %2851 = vmatpush.bf16.msra.mxu2 %v6417_v6  ;;  %v6404_v15 = vld [vmem:[#allocation10 + $0x1d0] sm:$0xf]  ;;  %v6488_v6 = vld [vmem:[#allocation10 + $0x278] sm:$0xf] }
 0x1ec   : > { %v2001_v29 = vrot.slane %v1693_v10, 7  ;;  %2916 = vmatpush.bf16.msra.mxu3 %v6525_v7  ;;  %v6512_v10 = vld [vmem:[#allocation10 + $0x2a8] sm:$0xf]  ;;  %v6500_v7 = vld [vmem:[#allocation10 + $0x290] sm:$0xf] }
 0x1ed   : > { %v6513_v31 = vor.u32 %v7237_v45, %v6512_v10  ;;  %v7207_v10 = vld [vmem:[#allocation10 + $0x1c0] sm:$0xf0] }
 0x1ee   : > { %v2022_v1 = vsel %vm10786_vm0, %v2001_v29, %v10946_v40  ;;  %v7210_v29 = vld [vmem:[#allocation10 + $0x1d8] sm:$0xf0] }
 0x1ef   : > { %v2071_v25 = vsel %vm9028_vm10, %v2022_v1, 0.0  ;;  %v6405_v37 = vor.u32 %v7210_v29, %v6404_v15  ;;  %v7234_v40 = vld [vmem:[#allocation10 + $0x298] sm:$0xf0] }
 0x1f0   : > { %v2225_v41 = vadd.f32 %v2071_v25, %v8756_v12  ;;  %2917 = vmatpush.bf16.msra.mxu3 %v6513_v31  ;;  %v2667_v1 = vpop.f32.mrf.mxu3  ;;  %v6501_v35 = vor.u32 %v7234_v40, %v6500_v7  ;;  %v6392_v25 = vld [vmem:[#allocation10 + $0x1b8] sm:$0xf]  ;;  %v7204_v7 = vld [vmem:[#allocation10 + $0x1a8] sm:$0xf0]  ;;  %v1076_v40 = vadd.s32 8, %v8806_v42 }
 0x1f1   : > { %v1900_v27 = vpop.f32.mrf.mxu1  ;;  %v9046_v26 = vadd.f32 %v2667_v1, %v2601_v49  ;;  %2852 = vmatpush.bf16.msra.mxu2 %v6405_v37  ;;  %v6393_v45 = vor.u32 %v7207_v10, %v6392_v25  ;;  %v6380_v49 = vld [vmem:[#allocation10 + $0x1a0] sm:$0xf] }
 0x1f2   : > { %v1901_v9 = vadd.f32 %v1900_v27, %v9000_v0  ;;  %v2606_v12 = vpop.f32.mrf.mxu2  ;;  %v7231_v0 = vld [vmem:[#allocation10 + $0x280] sm:$0xf0]  ;;  %v9049_v15 = vpop.f32.mrf.mxu0  ;;  %v6476_v37 = vld [vmem:[#allocation10 + $0x260] sm:$0xf]  ;;  %v6381_v1 = vor.u32 %v7204_v7, %v6380_v49  ;;  %v1100_v49 = vand.u32 15, %v1076_v40 }
 0x1f3   : > { %10947 = vst [vmem:[#allocation60_spill] sm:$0xff] %v9046_v26  ;;  %v6489_v31 = vor.u32 %v7231_v0, %v6488_v6  ;;  %v6368_v7 = vld [vmem:[#allocation10 + $0x188] sm:$0xf] }
 0x1f4   : > { %1939 = vmatmul.bf16.gmra.mxu1 %v8742_v47  ;;  %2918 = vmatpush.bf16.msra.mxu3 %v6501_v35  ;;  %v7228_v35 = vld [vmem:[#allocation10 + $0x268] sm:$0xf0]  ;;  %v2115_v25 = vrot.slane %v1901_v9, 1  ;;  %vm9065_vm12 = vcmp.le.s32.totalorder %v1100_v49, 14  ;;  %v1078_v49 = vadd.s32 24, %v8806_v42 }
 0x1f5   : > { %2709 = vmatmul.bf16.gmra.mxu3 %v8802_v28  ;;  %2853 = vmatpush.bf16.msra.mxu2 %v6393_v45  ;;  %v6477_v45 = vor.u32 %v7228_v35, %v6476_v37  ;;  %v6464_v37 = vld [vmem:[#allocation10 + $0x248] sm:$0xf] }
 0x1f6   : > { %1887 = vmatmul.bf16.gmra.mxu0 %v8431_v38 }
 0x1f7   : > { %2648 = vmatmul.bf16.gmra.mxu2 %v8431_v38  ;;  %v7201_v38 = vld [vmem:[#allocation10 + $0x190] sm:$0xf0] }
 0x1f8   : > { %2919 = vmatpush.bf16.msra.mxu3 %v6489_v31  ;;  %v2670_v6 = vpop.f32.mrf.mxu3 }
 0x1f9   : > { %v1902_v27 = vpop.f32.mrf.mxu1  ;;  %v9056_v0 = vadd.f32 %v2670_v6, %v2604_v8  ;;  %2854 = vmatpush.bf16.msra.mxu2 %v6381_v1  ;;  %v7225_v8 = vld [vmem:[#allocation10 + $0x250] sm:$0xf0] }
 0x1fa   : > { %v1903_v29 = vadd.f32 %v1902_v27, %v9009_v52  ;;  %v2609_v31 = vpop.f32.mrf.mxu2  ;;  %v7199_v27 = vld [vmem:[#allocation10 + $0x184] sm:$0xf]  ;;  %v9062_v1 = vpop.f32.mrf.mxu0  ;;  %v6465_v6 = vor.u32 %v7225_v8, %v6464_v37  ;;  %v1102_v37 = vand.u32 15, %v1078_v49 }
 0x1fb   : > { %10948 = vst [vmem:[#allocation61_spill] sm:$0xff] %v9056_v0  ;;  %v6365_v9 = vor.u32 %v7199_v27, %v6362_v11 }
 0x1fc   : > { %v2116_v10 = vrot.slane %v1903_v29, 1  ;;  %2920 = vmatpush.bf16.msra.mxu3 %v6477_v45  ;;  %v6458_v29 = vld [vmem:[#allocation10 + $0x24c] sm:$0xf0]  ;;  %vm9096_vm13 = vcmp.le.s32.totalorder %v1102_v37, 14 }
 0x1fd   : > { %v6461_v47 = vor.u32 %v7223_v60, %v6458_v29  ;;  %2725 = vmatpush.bf16.msra.mxu0 %v6365_v9 }
 0x1fe   : > { %v2156_v52 = vsel %vm10812_vm11, %v2115_v25, %v2116_v10  ;;  %v6369_v25 = vor.u32 %v7201_v38, %v6368_v7 }
 0x1ff   : > { %v9060_v26 = vadd.f32 %v2225_v41, %v2156_v52  ;;  %2790 = vmatpush.bf16.msrb.mxu1 %v6461_v47  ;;  %v10949_v41 = vmov 0 }
 0x200   : > { %2855 = vmatpush.bf16.msra.mxu2 %v6369_v25  ;;  %2921 = vmatpush.bf16.msra.mxu3 %v6465_v6  ;;  %v10950_v41 = vsel %vm9065_vm12, 4294967295, %v10949_v41  ;;  %v2672_v60 = vpop.f32.mrf.mxu3  ;;  %v10952_v25 = vmov 0 }
 0x201   : > { %v1905_v35 = vpop.f32.mrf.mxu1  ;;  %10951 = vst [vmem:[#allocation62_spill] sm:$0xff] %v10950_v41  ;;  %v9070_v40 = vadd.f32 %v2672_v60, %v2606_v12  ;;  %v10953_v25 = vsel %vm9096_vm13, 4294967295, %v10952_v25 }
 0x202   : > { %v1906_v0 = vadd.f32 %v1905_v35, %v9013_v62  ;;  %v2611_v38 = vpop.f32.mrf.mxu2  ;;  %v9080_v27 = vpop.f32.mrf.mxu0  ;;  %10954 = vst [vmem:[#allocation63_spill] sm:$0xff] %v10953_v25 }
 0x204   : > { %v2117_v11 = vrot.slane %v1906_v0, 1  ;;  %1944 = vmatmul.bf16.gmra.mxu1 %v8776_v44 }
 0x205   : > { %2714 = vmatmul.bf16.gmra.mxu3 %v8832_v51 }
 0x206   : > { %v2155_v45 = vsel %vm10812_vm11, %v2116_v10, %v2117_v11  ;;  %2726 = vmatmul.bf16.vlgmr.msra.gmra.mxu0 %v8359_v39 }
 0x207   : > { %v2206_v62 = vsel %vm9065_vm12, %v2155_v45, 0.0  ;;  %2856 = vmatmul.bf16.vlgmr.msra.gmra.mxu2 %v8359_v39 }
 0x208   : > { %v9077_v47 = vadd.f32 %v8822_v24, %v2206_v62  ;;  %v2675_v10 = vpop.f32.mrf.mxu3 }
 0x209   : > { %v1907_v52 = vpop.f32.mrf.mxu1  ;;  %v9086_v9 = vadd.f32 %v2675_v10, %v2609_v31 }
 0x20a   : > { %v1908_v0 = vadd.f32 %v1907_v52, %v9017_v2  ;;  %v2614_v29 = vpop.f32.mrf.mxu2  ;;  %v9093_v2 = vpop.f32.mrf.mxu0  ;;  %v7269_v52 = vld [vmem:[#allocation10 + $0x3b0] sm:$0xf0] }
 0x20c   : > { %v2118_v12 = vrot.slane %v1908_v0, 1  ;;  %v6732_v0 = vld [vmem:[#allocation10 + $0x468] sm:$0xf] }
 0x20e   : > { %v2154_v24 = vsel %vm10812_vm11, %v2117_v11, %v2118_v12 }
 0x20f   : > { %v9091_v7 = vadd.f32 %v8839_v14, %v2154_v24  ;;  %v7293_v24 = vld [vmem:[#allocation10 + $0x470] sm:$0xf0] }
 0x210   : > { %v2677_v31 = vpop.f32.mrf.mxu3 }
 0x211   : > { %v1910_v8 = vpop.f32.mrf.mxu1  ;;  %v9101_v60 = vadd.f32 %v2677_v31, %v2611_v38 }
 0x212   : > { %v1911_v35 = vadd.f32 %v1910_v8, %v9024_v54  ;;  %v2616_v11 = vpop.f32.mrf.mxu2  ;;  %v6636_v54 = vld [vmem:[#allocation10 + $0x3a8] sm:$0xf]  ;;  %v9111_v38 = vpop.f32.mrf.mxu0 }
 0x213   : > { %v6637_v10 = vor.u32 %v7269_v52, %v6636_v54 }
 0x214   : > { %v2119_v6 = vrot.slane %v1911_v35, 1  ;;  %1949 = vmatmul.bf16.gmra.mxu1 %v8802_v28 }
 0x215   : > { %2922 = vmatmul.bf16.vlgmr.msra.gmra.mxu3 %v8409_v19  ;;  %3483 = vmatpush.bf16.msrb.mxu0 %v6637_v10 }
 0x216   : > { %v2153_v14 = vsel %vm10812_vm11, %v2118_v12, %v2119_v6  ;;  %v6733_v12 = vor.u32 %v7293_v24, %v6732_v0  ;;  %2729 = vmatmul.bf16.gmra.mxu0 %v8411_v22 }
 0x217   : > { %v2208_v45 = vsel %vm9096_vm13, %v2153_v14, 0.0  ;;  %2859 = vmatmul.bf16.gmra.mxu2 %v8411_v22 }
 0x218   : > { %v9108_v62 = vadd.f32 %v8849_v46, %v2208_v45  ;;  %v1080_v46 = vadd.s32 40, %v8806_v42  ;;  %v2680_v35 = vpop.f32.mrf.mxu3  ;;  %3549 = vmatpush.bf16.msra.mxu1 %v6733_v12 }
 0x219   : > { %v1912_v49 = vpop.f32.mrf.mxu1  ;;  %v9117_v31 = vadd.f32 %v2680_v35, %v2614_v29 }
 0x21a   : > { %10955 = vst [vmem:[#allocation64_spill] sm:$0xff] %v9108_v62  ;;  %v1913_v37 = vadd.f32 %v1912_v49, %v9042_v4  ;;  %v2619_v45 = vpop.f32.mrf.mxu2  ;;  %v1104_v4 = vand.u32 15, %v1080_v46  ;;  %v9124_v0 = vpop.f32.mrf.mxu0 }
 0x21c   : > { %v2120_v8 = vrot.slane %v1913_v37, 1  ;;  %vm9127_vm14 = vcmp.le.s32.totalorder %v1104_v4, 14  ;;  %v1082_v4 = vadd.s32 56, %v8806_v42 }
 0x21e   : > { %v2152_v14 = vsel %vm10812_vm11, %v2119_v6, %v2120_v8 }
 0x21f   : > { %v9122_v54 = vadd.f32 %v8862_v33, %v2152_v14 }
 0x220   : > { %v2682_v29 = vpop.f32.mrf.mxu3 }
 0x221   : > { %10956 = vst [vmem:[#allocation65_spill] sm:$0xff] %v9122_v54  ;;  %v1915_v52 = vpop.f32.mrf.mxu1  ;;  %v9132_v37 = vadd.f32 %v2682_v29, %v2616_v11  ;;  %v6624_v29 = vld [vmem:[#allocation10 + $0x390] sm:$0xf] }
 0x222   : > { %v1916_v49 = vadd.f32 %v1915_v52, %v9049_v15  ;;  %v2621_v6 = vpop.f32.mrf.mxu2  ;;  %v9142_v35 = vpop.f32.mrf.mxu0 }
 0x224   : > { %v2121_v24 = vrot.slane %v1916_v49, 1  ;;  %1953 = vmatmul.bf16.gmra.mxu1 %v8832_v51 }
 0x225   : > { %2925 = vmatmul.bf16.gmra.mxu3 %v8448_v55 }
 0x226   : > { %v2151_v33 = vsel %vm10812_vm11, %v2120_v8, %v2121_v24  ;;  %2734 = vmatmul.bf16.gmra.mxu0 %v8453_v59 }
 0x227   : > { %v2210_v12 = vsel %vm9127_vm14, %v2151_v33, 0.0  ;;  %2864 = vmatmul.bf16.gmra.mxu2 %v8453_v59  ;;  %v7266_v33 = vld [vmem:[#allocation10 + $0x398] sm:$0xf0] }
 0x228   : > { %v9139_v46 = vadd.f32 %v8871_v53, %v2210_v12  ;;  %v2685_v8 = vpop.f32.mrf.mxu3  ;;  %v6720_v12 = vld [vmem:[#allocation10 + $0x450] sm:$0xf]  ;;  %v6625_v41 = vor.u32 %v7266_v33, %v6624_v29 }
 0x229   : > { %v1917_v15 = vpop.f32.mrf.mxu1  ;;  %v9148_v52 = vadd.f32 %v2685_v8, %v2619_v45 }
 0x22a   : > { %10959 = vst [vmem:[#allocation66_spill] sm:$0xff] %v9139_v46  ;;  %v1918_v14 = vadd.f32 %v1917_v15, %v9062_v1  ;;  %v2624_v49 = vpop.f32.mrf.mxu2  ;;  %v7290_v46 = vld [vmem:[#allocation10 + $0x458] sm:$0xf0]  ;;  %v1106_v15 = vand.u32 15, %v1082_v4  ;;  %3484 = vmatpush.bf16.msrb.mxu0 %v6625_v41  ;;  %v9155_v62 = vpop.f32.mrf.mxu0 }
 0x22c   : > { %v2122_v11 = vrot.slane %v1918_v14, 1  ;;  %v6721_v14 = vor.u32 %v7290_v46, %v6720_v12  ;;  %vm9158_vm15 = vcmp.le.s32.totalorder %v1106_v15, 14  ;;  %v1084_v12 = vadd.s32 72, %v8806_v42 }
 0x22e   : > { %v2150_v53 = vsel %vm10812_vm11, %v2121_v24, %v2122_v11  ;;  %3550 = vmatpush.bf16.msra.mxu1 %v6721_v14 }
 0x22f   : > { %v9153_v1 = vadd.f32 %v8882_v18, %v2150_v53 }
 0x230   : > { %v2687_v29 = vpop.f32.mrf.mxu3 }
 0x231   : > { %10960 = vst [vmem:[#allocation67_spill] sm:$0xff] %v9153_v1  ;;  %v1920_v54 = vpop.f32.mrf.mxu1  ;;  %v9163_v33 = vadd.f32 %v2687_v29, %v2621_v6  ;;  %v1108_v29 = vand.u32 15, %v1084_v12 }
 0x232   : > { %v1921_v45 = vadd.f32 %v1920_v54, %v9080_v27  ;;  %v2626_v46 = vpop.f32.mrf.mxu2  ;;  %v9173_v4 = vpop.f32.mrf.mxu0 }
 0x233   : > { %vm9189_vm0 = vcmp.le.s32.totalorder %v1108_v29, 14  ;;  %v7263_v29 = vld [vmem:[#allocation10 + $0x380] sm:$0xf0] }
 0x234   : > { %v2123_v8 = vrot.slane %v1921_v45, 1  ;;  %2791 = vmatmul.bf16.vlgmr.msrb.gmra.mxu1 %v8409_v19 }
 0x235   : > { %2930 = vmatmul.bf16.gmra.mxu3 %v8483_v16 }
 0x236   : > { %v2149_v18 = vsel %vm10812_vm11, %v2122_v11, %v2123_v8  ;;  %2739 = vmatmul.bf16.gmra.mxu0 %v8494_v20 }
 0x237   : > { %v2212_v41 = vsel %vm9158_vm15, %v2149_v18, 0.0  ;;  %2869 = vmatmul.bf16.gmra.mxu2 %v8494_v20 }
 0x238   : > { %v9170_v27 = vadd.f32 %v8890_v43, %v2212_v41  ;;  %v2690_v11 = vpop.f32.mrf.mxu3 }
 0x239   : > { %v1922_v54 = vpop.f32.mrf.mxu1  ;;  %v9179_v15 = vadd.f32 %v2690_v11, %v2624_v49 }
 0x23a   : > { %10963 = vst [vmem:[#allocation68_spill] sm:$0xff] %v9170_v27  ;;  %v1923_v53 = vadd.f32 %v1922_v54, %v9093_v2  ;;  %v2629_v14 = vpop.f32.mrf.mxu2  ;;  %v9186_v2 = vpop.f32.mrf.mxu0  ;;  %v10965_v54 = vmov 0  ;;  %v7287_v27 = vld [vmem:[#allocation10 + $0x440] sm:$0xf0] }
 0x23b   : > { %v10966_v54 = vsel %vm9189_vm0, 4294967295, %v10965_v54 }
 0x23c   : > { %v2124_v6 = vrot.slane %v1923_v53, 1  ;;  %10967 = vst [vmem:[#allocation70_spill] sm:$0xff] %v10966_v54 }
 0x23e   : > { %v2148_v43 = vsel %vm10812_vm11, %v2123_v8, %v2124_v6 }
 0x23f   : > { %v9184_v45 = vadd.f32 %v8901_v36, %v2148_v43 }
 0x240   : > { %v2692_v49 = vpop.f32.mrf.mxu3 }
 0x241   : > { %10964 = vst [vmem:[#allocation69_spill] sm:$0xff] %v9184_v45  ;;  %v1925_v18 = vpop.f32.mrf.mxu1  ;;  %v9194_v11 = vadd.f32 %v2692_v49, %v2626_v46 }
 0x242   : > { %v1926_v41 = vadd.f32 %v1925_v18, %v9111_v38  ;;  %v2631_v8 = vpop.f32.mrf.mxu2  ;;  %v6612_v38 = vld [vmem:[#allocation10 + $0x378] sm:$0xf]  ;;  %v9204_v46 = vpop.f32.mrf.mxu0 }
 0x243   : > { %v6708_v18 = vld [vmem:[#allocation10 + $0x438] sm:$0xf] }
 0x244   : > { %v2125_v53 = vrot.slane %v1926_v41, 1  ;;  %2794 = vmatmul.bf16.gmra.mxu1 %v8448_v55  ;;  %v6613_v41 = vor.u32 %v7263_v29, %v6612_v38 }
 0x245   : > { %2935 = vmatmul.bf16.gmra.mxu3 %v8535_v50 }
 0x246   : > { %v2147_v36 = vsel %vm10812_vm11, %v2124_v6, %v2125_v53  ;;  %v6709_v6 = vor.u32 %v7287_v27, %v6708_v18  ;;  %3485 = vmatpush.bf16.msrb.mxu0 %v6613_v41  ;;  %v10970_v41 = vmov 0 }
 0x247   : > { %v2214_v12 = vsel %vm9189_vm0, %v2147_v36, 0.0  ;;  %2874 = vmatmul.bf16.gmra.mxu2 %v8542_v56  ;;  %2744 = vmatmul.bf16.gmra.mxu0 %v8542_v56  ;;  %v6696_v56 = vld [vmem:[#allocation10 + $0x420] sm:$0xf] }
 0x248   : > { %v9201_v43 = vadd.f32 %v8909_v48, %v2214_v12  ;;  %v1086_v48 = vadd.s32 88, %v8806_v42  ;;  %v2695_v12 = vpop.f32.mrf.mxu3  ;;  %3551 = vmatpush.bf16.msra.mxu1 %v6709_v6 }
 0x249   : > { %v1927_v45 = vpop.f32.mrf.mxu1 }
 0x24a   : > { %10968 = vst [vmem:[#allocation71_spill] sm:$0xff] %v9201_v43  ;;  %v1928_v49 = vadd.f32 %v1927_v45, %v9124_v0  ;;  %v9210_v43 = vadd.f32 %v2695_v12, %v2629_v14  ;;  %v2634_v29 = vpop.f32.mrf.mxu2  ;;  %v1110_v0 = vand.u32 15, %v1086_v48  ;;  %v9217_v45 = vpop.f32.mrf.mxu0  ;;  %v10974_v12 = vld [vmem:[#allocation50_spill] sm:$0xff] }
 0x24c   : > { %v2126_v36 = vrot.slane %v1928_v49, 1  ;;  %vm9220_vm12 = vcmp.le.s32.totalorder %v1110_v0, 14 }
 0x24d   : > { %v10971_v41 = vsel %vm9220_vm12, 4294967295, %v10970_v41 }
 0x24e   : > { %v2146_v38 = vsel %vm10812_vm11, %v2125_v53, %v2126_v36  ;;  %10972 = vst [vmem:[#allocation73_spill] sm:$0xff] %v10971_v41 }
 0x24f   : > { %v9215_v20 = vadd.f32 %v8920_v21, %v2146_v38 }
 0x250   : > { %v2697_v14 = vpop.f32.mrf.mxu3 }
 0x251   : > { %10969 = vst [vmem:[#allocation72_spill] sm:$0xff] %v9215_v20  ;;  %v1930_v27 = vpop.f32.mrf.mxu1  ;;  %v9225_v6 = vadd.f32 %v2697_v14, %v2631_v8  ;;  %v1088_v14 = vadd.s32 104, %v8806_v42 }
 0x252   : > { %v1931_v18 = vadd.f32 %v1930_v27, %v9142_v35  ;;  %v2636_v53 = vpop.f32.mrf.mxu2  ;;  %v9235_v0 = vpop.f32.mrf.mxu0 }
 0x253   : > { %10973 = vst [vmem:[#allocation74_spill] sm:$0xff] %v9225_v6  ;;  %v7284_v6 = vld [vmem:[#allocation10 + $0x428] sm:$0xf0] }
 0x254   : > { %v2127_v49 = vrot.slane %v1931_v18, 1  ;;  %2799 = vmatmul.bf16.gmra.mxu1 %v8483_v16  ;;  %v10976_v18 = vld [vmem:[#allocation37_spill] sm:$0xff]  ;;  %v6697_v54 = vor.u32 %v7284_v6, %v6696_v56 }
 0x255   : > { %2940 = vmatmul.bf16.gmra.mxu3 %v8579_v23 }
 0x256   : > { %v2145_v21 = vsel %vm10812_vm11, %v2126_v36, %v2127_v49  ;;  %3552 = vmatpush.bf16.msra.mxu1 %v6697_v54 }
 0x257   : > { %v2216_v48 = vsel %vm9220_vm12, %v2145_v21, 0.0  ;;  %2879 = vmatmul.bf16.gmra.mxu2 %v10976_v18  ;;  %2749 = vmatmul.bf16.gmra.mxu0 %v10976_v18  ;;  %v7277_v18 = vld [vmem:[#allocation10 + $0x3f4] sm:$0xf] }
 0x258   : > { %v9232_v38 = vadd.f32 %v10974_v12, %v2216_v48  ;;  %v2700_v36 = vpop.f32.mrf.mxu3  ;;  %v6600_v12 = vld [vmem:[#allocation10 + $0x360] sm:$0xf] }
 0x259   : > { %v1932_v35 = vpop.f32.mrf.mxu1  ;;  %v9241_v20 = vadd.f32 %v2700_v36, %v2634_v29 }
 0x25a   : > { %10975 = vst [vmem:[#allocation50_spill] sm:$0xff] %v9232_v38  ;;  %v1933_v27 = vadd.f32 %v1932_v35, %v9155_v62  ;;  %v2639_v48 = vpop.f32.mrf.mxu2  ;;  %v7260_v38 = vld [vmem:[#allocation10 + $0x368] sm:$0xf0]  ;;  %v9248_v1 = vpop.f32.mrf.mxu0 }
 0x25b   : > { %v6601_v41 = vor.u32 %v7260_v38, %v6600_v12  ;;  %v10977_v62 = vld [vmem:[#allocation52_spill] sm:$0xff] }
 0x25c   : > { %v2128_v8 = vrot.slane %v1933_v27, 1  ;;  %v1112_v27 = vand.u32 15, %v1088_v14 }
 0x25d   : > { %3486 = vmatpush.bf16.msrb.mxu0 %v6601_v41 }
 0x25e   : > { %v2144_v21 = vsel %vm10812_vm11, %v2127_v49, %v2128_v8  ;;  %vm9251_vm10 = vcmp.le.s32.totalorder %v1112_v27, 14  ;;  %v10979_v49 = vmov 0 }
 0x25f   : > { %v9246_v35 = vadd.f32 %v10977_v62, %v2144_v21  ;;  %v10980_v49 = vsel %vm9251_vm10, 4294967295, %v10979_v49  ;;  %v1090_v21 = vadd.s32 120, %v8806_v42 }
 0x260   : > { %10981 = vst [vmem:[#allocation75_spill] sm:$0xff] %v10980_v49  ;;  %v2702_v38 = vpop.f32.mrf.mxu3 }
 0x261   : > { %10978 = vst [vmem:[#allocation52_spill] sm:$0xff] %v9246_v35  ;;  %v1935_v16 = vpop.f32.mrf.mxu1  ;;  %v9256_v12 = vadd.f32 %v2702_v38, %v2636_v53  ;;  %v1114_v38 = vand.u32 15, %v1090_v21 }
 0x262   : > { %v1936_v29 = vadd.f32 %v1935_v16, %v9173_v4  ;;  %v2641_v6 = vpop.f32.mrf.mxu2  ;;  %v9266_v54 = vpop.f32.mrf.mxu0 }
 0x263   : > { %vm9280_vm9 = vcmp.le.s32.totalorder %v1114_v38, 14  ;;  %v7257_v38 = vld [vmem:[#allocation10 + $0x350] sm:$0xf0] }
 0x264   : > { %v2129_v36 = vrot.slane %v1936_v29, 1  ;;  %2804 = vmatmul.bf16.gmra.mxu1 %v8535_v50 }
 0x265   : > { %2945 = vmatmul.bf16.gmra.mxu3 %v8622_v61 }
 0x266   : > { %v2143_v56 = vsel %vm10812_vm11, %v2128_v8, %v2129_v36 }
 0x267   : > { %v2218_v41 = vsel %vm9251_vm10, %v2143_v56, 0.0  ;;  %2884 = vmatmul.bf16.gmra.mxu2 %v8624_v63  ;;  %2754 = vmatmul.bf16.gmra.mxu0 %v8624_v63 }
 0x268   : > { %v9263_v16 = vadd.f32 %v8947_v30, %v2218_v41  ;;  %v2705_v8 = vpop.f32.mrf.mxu3 }
 0x269   : > { %v1937_v4 = vpop.f32.mrf.mxu1  ;;  %v9272_v62 = vadd.f32 %v2705_v8, %v2639_v48 }
 0x26a   : > { %10982 = vst [vmem:[#allocation76_spill] sm:$0xff] %v9263_v16  ;;  %v1938_v14 = vadd.f32 %v1937_v4, %v9186_v2  ;;  %v2644_v27 = vpop.f32.mrf.mxu2  ;;  %v1886_v2 = vpop.f32.mrf.mxu0  ;;  %v10984_v4 = vmov 0 }
 0x26b   : > { %v10985_v4 = vsel %vm9280_vm9, 4294967295, %v10984_v4 }
 0x26c   : > { %v2130_v53 = vrot.slane %v1938_v14, 1  ;;  %10986 = vst [vmem:[#allocation78_spill] sm:$0xff] %v10985_v4 }
 0x26e   : > { %v2142_v30 = vsel %vm10812_vm11, %v2129_v36, %v2130_v53 }
 0x26f   : > { %v9277_v29 = vadd.f32 %v8958_v58, %v2142_v30 }
 0x270   : > { %v2707_v48 = vpop.f32.mrf.mxu3 }
 0x271   : > { %10983 = vst [vmem:[#allocation77_spill] sm:$0xff] %v9277_v29  ;;  %v1940_v56 = vpop.f32.mrf.mxu1  ;;  %v9285_v8 = vadd.f32 %v2707_v48, %v2641_v6  ;;  %v7281_v29 = vld [vmem:[#allocation10 + $0x410] sm:$0xf0] }
 0x272   : > { %v1941_v41 = vadd.f32 %v1940_v56, %v9204_v46  ;;  %v2646_v58 = vpop.f32.mrf.mxu2  ;;  %v6588_v46 = vld [vmem:[#allocation10 + $0x348] sm:$0xf] }
 0x273   : > { %10987 = vst [vmem:[#allocation79_spill] sm:$0xff] %v9285_v8  ;;  %v6684_v56 = vld [vmem:[#allocation10 + $0x408] sm:$0xf]  ;;  %v1888_v6 = vpop.f32.mrf.mxu0 }
 0x274   : > { %v2131_v14 = vrot.slane %v1941_v41, 1  ;;  %2809 = vmatmul.bf16.gmra.mxu1 %v8579_v23  ;;  %v6589_v41 = vor.u32 %v7257_v38, %v6588_v46  ;;  %v6685_v16 = vor.u32 %v7281_v29, %v6684_v56 }
 0x275   : > { %2950 = vmatmul.bf16.gmra.mxu3 %v8662_v32 }
 0x276   : > { %v2141_v36 = vsel %vm10812_vm11, %v2130_v53, %v2131_v14  ;;  %3487 = vmatpush.bf16.msrb.mxu0 %v6589_v41  ;;  %3553 = vmatpush.bf16.msra.mxu1 %v6685_v16  ;;  %v10991_v41 = vmov 0 }
 0x277   : > { %v2220_v21 = vsel %vm9280_vm9, %v2141_v36, 0.0  ;;  %2889 = vmatmul.bf16.gmra.mxu2 %v8666_v34  ;;  %v1092_v36 = vadd.s32 136, %v8806_v42  ;;  %2759 = vmatmul.bf16.gmra.mxu0 %v8666_v34  ;;  %vm11005_vm9 = vcmp.lt.s32.totalorder %v8806_v42, 1  ;;  %v7268_v34 = vld [vmem:[#allocation10 + $0x3ac] sm:$0xf] }
 0x278   : > { %v9292_v30 = vadd.f32 %v8966_v13, %v2220_v21  ;;  %v2710_v13 = vpop.f32.mrf.mxu3 }
 0x279   : > { %v1942_v2 = vpop.f32.mrf.mxu1  ;;  %v9299_v21 = vadd.f32 %v2710_v13, %v2644_v27 }
 0x27a   : > { %10988 = vst [vmem:[#allocation80_spill] sm:$0xff] %v9292_v30  ;;  %v1943_v48 = vadd.f32 %v1942_v2, %v9217_v45  ;;  %v2649_v38 = vpop.f32.mrf.mxu2  ;;  %v1116_v45 = vand.u32 15, %v1092_v36 }
 0x27b   : > { %10989 = vst [vmem:[#allocation81_spill] sm:$0xff] %v9299_v21  ;;  %v1889_v56 = vpop.f32.mrf.mxu0  ;;  %v6576_v38 = vld [vmem:[#allocation10 + $0x330] sm:$0xf] }
 0x27c   : > { %v2132_v53 = vrot.slane %v1943_v48, 1  ;;  %vm9307_vm8 = vcmp.le.s32.totalorder %v1116_v45, 14  ;;  %v7254_v45 = vld [vmem:[#allocation10 + $0x338] sm:$0xf0] }
 0x27d   : > { %v10992_v41 = vsel %vm9307_vm8, 4294967295, %v10991_v41  ;;  %v6577_v56 = vor.u32 %v7254_v45, %v6576_v38 }
 0x27e   : > { %v2140_v46 = vsel %vm10812_vm11, %v2131_v14, %v2132_v53  ;;  %10993 = vst [vmem:[#allocation83_spill] sm:$0xff] %v10992_v41 }
 0x27f   : > { %v9304_v6 = vadd.f32 %v8977_v17, %v2140_v46  ;;  %3488 = vmatpush.bf16.msrb.mxu0 %v6577_v56 }
 0x280   : > { %v2712_v27 = vpop.f32.mrf.mxu3 }
 0x281   : > { %10990 = vst [vmem:[#allocation82_spill] sm:$0xff] %v9304_v6  ;;  %v1945_v29 = vpop.f32.mrf.mxu1  ;;  %v9312_v48 = vadd.f32 %v2712_v27, %v2646_v58  ;;  %v10996_v27 = vld [vmem:[#allocation43_spill] sm:$0xff] }
 0x282   : > { %v1946_v2 = vadd.f32 %v1945_v29, %v9235_v0  ;;  %v2650_v17 = vpop.f32.mrf.mxu2  ;;  %v6672_v29 = vld [vmem:[#allocation10 + $0x3f0] sm:$0xf] }
 0x283   : > { %10994 = vst [vmem:[#allocation84_spill] sm:$0xff] %v9312_v48  ;;  %v2727_v46 = vpop.f32.mrf.mxu0 }
 0x284   : > { %v2133_v16 = vrot.slane %v1946_v2, 1  ;;  %2814 = vmatmul.bf16.gmra.mxu1 %v8622_v61  ;;  %v7278_v2 = vld [vmem:[#allocation10 + $0x3f8] sm:$0xf0]  ;;  %v10997_v46 = vld [vmem:[#allocation56_spill] sm:$0xff] }
 0x285   : > { %2955 = vmatmul.bf16.gmra.mxu3 %v8701_v5  ;;  %v6710_v61 = vld [vmem:[#allocation10 + $0x444] sm:$0xf0] }
 0x286   : > { %v2139_v14 = vsel %vm10812_vm11, %v2132_v53, %v2133_v16  ;;  %v6673_v53 = vor.u32 %v7278_v2, %v6672_v29  ;;  %v10999_v29 = vld [vmem:[#allocation58_spill] sm:$0xff]  ;;  %v11000_v2 = vmov 0 }
 0x287   : > { %v2222_v36 = vsel %vm9307_vm8, %v2139_v14, 0.0  ;;  %2894 = vmatmul.bf16.gmra.mxu2 %v10996_v27  ;;  %v1094_v14 = vadd.s32 152, %v8806_v42  ;;  %2764 = vmatmul.bf16.gmra.mxu0 %v10996_v27 }
 0x288   : > { %v9319_v13 = vadd.f32 %v8985_v57, %v2222_v36  ;;  %v2715_v6 = vpop.f32.mrf.mxu3  ;;  %3554 = vmatpush.bf16.msra.mxu1 %v6673_v53 }
 0x289   : > { %v1947_v0 = vpop.f32.mrf.mxu1  ;;  %v2981_v6 = vrot.slane %v9033_v3, 7 }
 0x28a   : > { %10995 = vst [vmem:[#allocation85_spill] sm:$0xff] %v9319_v13  ;;  %v1948_v58 = vadd.f32 %v1947_v0, %v9248_v1  ;;  %v2857_v36 = vpop.f32.mrf.mxu2  ;;  %v1118_v1 = vand.u32 15, %v1094_v14 }
 0x28b   : > { %v2728_v38 = vpop.f32.mrf.mxu0 }
 0x28c   : > { %v2134_v17 = vrot.slane %v1948_v58, 1  ;;  %v2980_v58 = vrot.slane %v10999_v29, 7  ;;  %vm9334_vm8 = vcmp.le.s32.totalorder %v1118_v1, 14  ;;  %v11006_v1 = vld [vmem:[#allocation44_spill] sm:$0xff]  ;;  %v11007_v38 = vld [vmem:[#allocation31_spill] sm:$0xff] }
 0x28d   : > { %v11001_v2 = vsel %vm9334_vm8, 4294967295, %v11000_v2 }
 0x28e   : > { %v2138_v57 = vsel %vm10812_vm11, %v2133_v16, %v2134_v17  ;;  %11002 = vst [vmem:[#allocation58_spill] sm:$0xff] %v11001_v2  ;;  %v9348_v3 = vsel %vm11005_vm9, %v2980_v58, %v2981_v6  ;;  %v11011_v2 = vld [vmem:[#allocation32_spill] sm:$0xff] }
 0x28f   : > { %v9329_v13 = vadd.f32 %v10997_v46, %v2138_v57 }
 0x290   : > { %v2716_v16 = vpop.f32.mrf.mxu3 }
 0x291   : > { %10998 = vst [vmem:[#allocation56_spill] sm:$0xff] %v9329_v13  ;;  %v1950_v0 = vpop.f32.mrf.mxu1  ;;  %v11008_v16 = vld [vmem:[#allocation60_spill] sm:$0xff]  ;;  %v6660_v13 = vld [vmem:[#allocation10 + $0x3d8] sm:$0xf] }
 0x292   : > { %v1951_v45 = vadd.f32 %v1950_v0, %v9266_v54  ;;  %v2858_v14 = vpop.f32.mrf.mxu2  ;;  %v11003_v54 = vld [vmem:[#allocation57_spill] sm:$0xff] }
 0x293   : > { %v9351_v0 = vpop.f32.mrf.mxu0  ;;  %v11009_v14 = vld [vmem:[#allocation61_spill] sm:$0xff] }
 0x294   : > { %v2135_v56 = vrot.slane %v1951_v45, 1  ;;  %2819 = vmatmul.bf16.gmra.mxu1 %v8662_v32  ;;  %v6734_v32 = vld [vmem:[#allocation10 + $0x474] sm:$0xf0] }
 0x295   : > { %2960 = vmatmul.bf16.gmra.mxu3 %v11006_v1 }
 0x296   : > { %v2137_v53 = vsel %vm10812_vm11, %v2134_v17, %v2135_v56  ;;  %vm11010_vm11 = vmmov %vm11005_vm9 }
 0x297   : > { %v2224_v57 = vsel %vm9334_vm8, %v2137_v53, 0.0  ;;  %2899 = vmatmul.bf16.gmra.mxu2 %v11007_v38  ;;  %2769 = vmatmul.bf16.gmra.mxu0 %v11007_v38  ;;  %v2982_v53 = vrot.slane %v11008_v16, 7  ;;  %vm11014_vm8 = vcmp.lt.s32.totalorder %v8806_v42, 7 }
 0x298   : > { %v9344_v36 = vadd.f32 %v11003_v54, %v2224_v57  ;;  %v2923_v45 = vpop.f32.mrf.mxu3  ;;  %v2983_v57 = vrot.slane %v11009_v14, 7  ;;  %v7275_v14 = vld [vmem:[#allocation10 + $0x3e0] sm:$0xf0] }
 0x299   : > { %v1952_v46 = vpop.f32.mrf.mxu1  ;;  %v9362_v45 = vsel %vm11005_vm9, %v2981_v6, %v2982_v53 }
 0x29a   : > { %11004 = vst [vmem:[#allocation57_spill] sm:$0xff] %v9344_v36  ;;  %v2860_v17 = vpop.f32.mrf.mxu2  ;;  %v6564_v46 = vld [vmem:[#allocation10 + $0x318] sm:$0xf]  ;;  %v7251_v36 = vld [vmem:[#allocation10 + $0x320] sm:$0xf0] }
 0x29b   : > { %v9355_v56 = vpop.f32.mrf.mxu0  ;;  %v6565_v16 = vor.u32 %v7251_v36, %v6564_v46 }
 0x29d   : > { %3489 = vmatpush.bf16.msrb.mxu0 %v6565_v16  ;;  %v7289_v16 = vld [vmem:[#allocation10 + $0x454] sm:$0xf] }
 0x2a0   : > { %v2924_v58 = vpop.f32.mrf.mxu3 }
 0x2a1   : > { %v1954_v29 = vpop.f32.mrf.mxu1  ;;  %v6661_v58 = vor.u32 %v7275_v14, %v6660_v13  ;;  %v7265_v13 = vld [vmem:[#allocation10 + $0x394] sm:$0xf]  ;;  %v6626_v14 = vld [vmem:[#allocation10 + $0x39c] sm:$0xf0] }
 0x2a2   : > { %v2862_v54 = vpop.f32.mrf.mxu2  ;;  %v9366_v29 = vsel %vm11010_vm11, %v2982_v53, %v2983_v57  ;;  %v6638_v53 = vld [vmem:[#allocation10 + $0x3b4] sm:$0xf0]  ;;  %vm11012_vm11 = vmmov %vm11005_vm9 }
 0x2a3   : > { %v9369_v27 = vpop.f32.mrf.mxu0  ;;  %3555 = vmatpush.bf16.msra.mxu1 %v6661_v58  ;;  %v6641_v41 = vor.u32 %v7268_v34, %v6638_v53  ;;  %v2984_v58 = vrot.slane %v9070_v40, 7  ;;  %v6722_v34 = vld [vmem:[#allocation10 + $0x45c] sm:$0xf0] }
 0x2a4   : > { %2824 = vmatmul.bf16.gmra.mxu1 %v8701_v5 }
 0x2a5   : > { %2965 = vmatmul.bf16.gmra.mxu3 %v8776_v44  ;;  %3615 = vmatpush.bf16.msrb.mxu2 %v6641_v41  ;;  %v7262_v41 = vld [vmem:[#allocation10 + $0x37c] sm:$0xf] }
 0x2a7   : > { %2904 = vmatmul.bf16.gmra.mxu2 %v11011_v2  ;;  %2774 = vmatmul.bf16.gmra.mxu0 %v11011_v2  ;;  %v7286_v2 = vld [vmem:[#allocation10 + $0x43c] sm:$0xf] }
 0x2a8   : > { %v2926_v5 = vpop.f32.mrf.mxu3 }
 0x2a9   : > { %v1955_v38 = vpop.f32.mrf.mxu1  ;;  %v2927_v6 = vadd.f32 %v2926_v5, %v2860_v17  ;;  %v6629_v17 = vor.u32 %v7265_v13, %v6626_v14  ;;  %v6713_v14 = vor.u32 %v7286_v2, %v6710_v61  ;;  %v7256_v61 = vld [vmem:[#allocation10 + $0x34c] sm:$0xf]  ;;  %v6590_v2 = vld [vmem:[#allocation10 + $0x354] sm:$0xf0] }
 0x2aa   : > { %v2865_v30 = vpop.f32.mrf.mxu2  ;;  %v7292_v38 = vld [vmem:[#allocation10 + $0x46c] sm:$0xf]  ;;  %v6593_v35 = vor.u32 %v7256_v61, %v6590_v2  ;;  %v7253_v61 = vld [vmem:[#allocation10 + $0x334] sm:$0xf]  ;;  %v6578_v2 = vld [vmem:[#allocation10 + $0x33c] sm:$0xf0] }
 0x2ab   : > { %v9373_v36 = vpop.f32.mrf.mxu0  ;;  %v6737_v46 = vor.u32 %v7292_v38, %v6734_v32  ;;  %v3041_v53 = vrot.slane %v2927_v6, 1  ;;  %3616 = vmatpush.bf16.msrb.mxu2 %v6629_v17  ;;  %v6614_v38 = vld [vmem:[#allocation10 + $0x384] sm:$0xf0]  ;;  %v7283_v17 = vld [vmem:[#allocation10 + $0x424] sm:$0xf] }
 0x2ac   : > { %v6617_v40 = vor.u32 %v7262_v41, %v6614_v38 }
 0x2ad   : > { %3680 = vmatpush.bf16.msrb.mxu3 %v6737_v46  ;;  %v9380_v46 = vsel %vm11012_vm11, %v2983_v57, %v2984_v58  ;;  %v11015_v57 = vld [vmem:[#allocation33_spill] sm:$0xff]  ;;  %vm11018_vm11 = vmmov %vm11005_vm9 }
 0x2af   : > { %3617 = vmatpush.bf16.msrb.mxu2 %v6617_v40  ;;  %v6552_v40 = vld [vmem:[#allocation10 + $0x300] sm:$0xf] }
 0x2b0   : > { %v2928_v5 = vpop.f32.mrf.mxu3 }
 0x2b1   : > { %v2792_v48 = vpop.f32.mrf.mxu1  ;;  %v2929_v63 = vadd.f32 %v2928_v5, %v2862_v54  ;;  %v6602_v5 = vld [vmem:[#allocation10 + $0x36c] sm:$0xf0] }
 0x2b2   : > { %v6725_v48 = vor.u32 %v7289_v16, %v6722_v34  ;;  %v2867_v4 = vpop.f32.mrf.mxu2  ;;  %v7259_v16 = vld [vmem:[#allocation10 + $0x364] sm:$0xf] }
 0x2b3   : > { %v3042_v32 = vrot.slane %v2929_v63, 1  ;;  %v9391_v13 = vpop.f32.mrf.mxu0 }
 0x2b4   : > { %2829 = vmatmul.bf16.gmra.mxu1 %v11006_v1  ;;  %3681 = vmatpush.bf16.msrb.mxu3 %v6725_v48  ;;  %v11013_v1 = vrot.slane %v9086_v9, 7 }
 0x2b5   : > { %v3081_v63 = vsel %vm11014_vm8, %v3041_v53, %v3042_v32  ;;  %2970 = vmatmul.bf16.gmra.mxu3 %v8802_v28 }
 0x2b6   : > { %v9386_v6 = vsel %vm11005_vm9, %v2984_v58, %v11013_v1  ;;  %v6605_v1 = vor.u32 %v7259_v16, %v6602_v5  ;;  %v6698_v58 = vld [vmem:[#allocation10 + $0x42c] sm:$0xf0]  ;;  %v7272_v16 = vld [vmem:[#allocation10 + $0x3c8] sm:$0xf0] }
 0x2b7   : > { %2909 = vmatmul.bf16.gmra.mxu2 %v11015_v57  ;;  %2779 = vmatmul.bf16.gmra.mxu0 %v11015_v57  ;;  %v6701_v41 = vor.u32 %v7283_v17, %v6698_v58  ;;  %v6686_v17 = vld [vmem:[#allocation10 + $0x414] sm:$0xf0]  ;;  %v3021_v58 = vsel %vm8828_vm1, %v9348_v3, 0.0 }
 0x2b8   : > { %3682 = vmatpush.bf16.msrb.mxu3 %v6713_v14  ;;  %v2931_v34 = vpop.f32.mrf.mxu3  ;;  %3618 = vmatpush.bf16.msrb.mxu2 %v6605_v1  ;;  %v6648_v14 = vld [vmem:[#allocation10 + $0x3c0] sm:$0xf] }
 0x2b9   : > { %v2793_v54 = vpop.f32.mrf.mxu1  ;;  %v2932_v48 = vadd.f32 %v2931_v34, %v2865_v30  ;;  %v7280_v30 = vld [vmem:[#allocation10 + $0x40c] sm:$0xf] }
 0x2ba   : > { %v9395_v53 = vpop.f32.mrf.mxu2  ;;  %v7248_v54 = vld [vmem:[#allocation10 + $0x308] sm:$0xf0] }
 0x2bb   : > { %v3043_v38 = vrot.slane %v2932_v48, 1  ;;  %v6553_v57 = vor.u32 %v7248_v54, %v6552_v40  ;;  %v9399_v5 = vpop.f32.mrf.mxu0  ;;  %v6649_v48 = vor.u32 %v7272_v16, %v6648_v14  ;;  %v2987_v40 = vrot.slane %v9117_v31, 7  ;;  %v7250_v16 = vld [vmem:[#allocation10 + $0x31c] sm:$0xf] }
 0x2bc   : > { %3683 = vmatpush.bf16.msrb.mxu3 %v6701_v41  ;;  %3619 = vmatpush.bf16.msrb.mxu2 %v6593_v35  ;;  %v6689_v41 = vor.u32 %v7280_v30, %v6686_v17  ;;  %v6566_v30 = vld [vmem:[#allocation10 + $0x324] sm:$0xf0]  ;;  %v11017_v17 = vrot.slane %v9086_v9, 7 }
 0x2bd   : > { %v3080_v8 = vsel %vm11014_vm8, %v3042_v32, %v3043_v38  ;;  %3490 = vmatpush.bf16.msrb.mxu0 %v6553_v57  ;;  %v2986_v32 = vrot.slane %v9101_v60, 7  ;;  %3556 = vmatpush.bf16.msra.mxu1 %v6649_v48 }
 0x2c0   : > { %v2933_v49 = vpop.f32.mrf.mxu3  ;;  %3684 = vmatpush.bf16.msrb.mxu3 %v6689_v41  ;;  %v3083_v41 = vsel %vm9096_vm13, %v3080_v8, 0.0 }
 0x2c1   : > { %v2795_v21 = vpop.f32.mrf.mxu1  ;;  %v2934_v1 = vadd.f32 %v2933_v49, %v2867_v4  ;;  %v7274_v49 = vld [vmem:[#allocation10 + $0x3dc] sm:$0xf]  ;;  %v6662_v4 = vld [vmem:[#allocation10 + $0x3e4] sm:$0xf0] }
 0x2c2   : > { %v2796_v34 = vadd.f32 %v2795_v21, %v9351_v0  ;;  %v6581_v21 = vor.u32 %v7253_v61, %v6578_v2  ;;  %v6674_v0 = vld [vmem:[#allocation10 + $0x3fc] sm:$0xf0]  ;;  %v2872_v14 = vpop.f32.mrf.mxu2  ;;  %v6665_v48 = vor.u32 %v7274_v49, %v6662_v4  ;;  %v7247_v2 = vld [vmem:[#allocation10 + $0x304] sm:$0xf]  ;;  %v3023_v4 = vsel %vm8853_vm2, %v9366_v29, 0.0 }
 0x2c3   : > { %v6677_v3 = vor.u32 %v7277_v18, %v6674_v0  ;;  %v3044_v57 = vrot.slane %v2934_v1, 1  ;;  %v9421_v18 = vsel %vm11005_vm9, %v2986_v32, %v2987_v40  ;;  %v6650_v1 = vld [vmem:[#allocation10 + $0x3cc] sm:$0xf0] }
 0x2c4   : > { %v3102_v54 = vadd.f32 %v3021_v58, %v2796_v34  ;;  %2834 = vmatmul.bf16.gmra.mxu1 %v8776_v44  ;;  %3620 = vmatpush.bf16.msrb.mxu2 %v6581_v21  ;;  %v9415_v34 = vsel %vm11018_vm11, %v11017_v17, %v2986_v32  ;;  %v6569_v58 = vor.u32 %v7250_v16, %v6566_v30  ;;  %v9426_v9 = vpop.f32.mrf.mxu0  ;;  %v7271_v21 = vld [vmem:[#allocation10 + $0x3c4] sm:$0xf]  ;;  %vm11019_vm11 = vmmov %vm11014_vm8 }
 0x2c5   : > { %3685 = vmatpush.bf16.msrb.mxu3 %v6677_v3 }
 0x2c6   : > { %v3122_v35 = vadd.f32 %v3102_v54, %v3081_v63  ;;  %2975 = vmatmul.bf16.gmra.mxu3 %v8832_v51  ;;  %v6554_v54 = vld [vmem:[#allocation10 + $0x30c] sm:$0xf0] }
 0x2c7   : > { %3491 = vmatmul.bf16.vlgmr.msrb.gmra.mxu0 %v8359_v39 }
 0x2c8   : > { %v9409_v60 = vadd.f32 %v3122_v35, %v9060_v26  ;;  %v3079_v26 = vsel %vm11014_vm8, %v3043_v38, %v3044_v57  ;;  %3621 = vmatpush.bf16.msrb.mxu2 %v6569_v58  ;;  %v2936_v0 = vpop.f32.mrf.mxu3  ;;  %v6557_v38 = vor.u32 %v7247_v2, %v6554_v54  ;;  %v6653_v35 = vor.u32 %v7271_v21, %v6650_v1  ;;  %vm11021_vm8 = vmmov %vm11005_vm9 }
 0x2c9   : > { %v2797_v63 = vpop.f32.mrf.mxu1  ;;  %3686 = vmatpush.bf16.msrb.mxu3 %v6665_v48  ;;  %v2937_v3 = vadd.f32 %v2936_v0, %v9395_v53  ;;  %v6740_v0 = vld [vmem:[#allocation10 + $0x470] sm:$0xf] }
 0x2ca   : > { %v2798_v61 = vadd.f32 %v2797_v63, %v9355_v56  ;;  %v2875_v30 = vpop.f32.mrf.mxu2  ;;  %v2988_v63 = vrot.slane %v9132_v37, 7 }
 0x2cb   : > { %v3045_v8 = vrot.slane %v2937_v3, 1 }
 0x2cc   : > { %v3103_v32 = vadd.f32 %v9362_v45, %v2798_v61  ;;  %3622 = vmatpush.bf16.msrb.mxu2 %v6557_v38  ;;  %v9439_v58 = vpop.f32.mrf.mxu0  ;;  %v9456_v37 = vsel %vm11005_vm9, %v2987_v40, %v2988_v63  ;;  %vm11023_vm9 = vmmov %vm11019_vm11 }
 0x2cd   : > { %3687 = vmatpush.bf16.msrb.mxu3 %v6653_v35  ;;  %v3078_v45 = vsel %vm11019_vm11, %v3044_v57, %v3045_v8 }
 0x2ce   : > { %v3123_v16 = vadd.f32 %v3103_v32, %v3083_v41  ;;  %v7270_v32 = vld [vmem:[#allocation10 + $0x3b8] sm:$0xf0]  ;;  %v3085_v40 = vsel %vm9127_vm14, %v3078_v45, 0.0 }
 0x2cf   : > { %3623 = vmatmul.bf16.vlgmr.msrb.gmra.mxu2 %v8359_v39 }
 0x2d0   : > { %v9435_v56 = vadd.f32 %v3123_v16, %v9077_v47  ;;  %v2989_v47 = vrot.slane %v9148_v52, 7  ;;  %v2938_v41 = vpop.f32.mrf.mxu3 }
 0x2d1   : > { %v2800_v17 = vpop.f32.mrf.mxu1  ;;  %v2939_v61 = vadd.f32 %v2938_v41, %v2872_v14 }
 0x2d2   : > { %v2801_v49 = vadd.f32 %v2800_v17, %v9369_v27  ;;  %v2877_v2 = vpop.f32.mrf.mxu2  ;;  %v6644_v27 = vld [vmem:[#allocation10 + $0x3b0] sm:$0xf]  ;;  %v9460_v52 = vsel %vm11021_vm8, %v2988_v63, %v2989_v47 }
 0x2d3   : > { %v3046_v54 = vrot.slane %v2939_v61, 1  ;;  %v2990_v61 = vrot.slane %v9163_v33, 7 }
 0x2d4   : > { %v3104_v48 = vadd.f32 %v3023_v4, %v2801_v49  ;;  %2839 = vmatmul.bf16.gmra.mxu1 %v8802_v28  ;;  %v9465_v38 = vpop.f32.mrf.mxu0  ;;  %v11022_v4 = vld [vmem:[#allocation64_spill] sm:$0xff] }
 0x2d5   : > { %v3077_v14 = vsel %vm11019_vm11, %v3045_v8, %v3046_v54  ;;  %vm11026_vm11 = vmmov %vm11021_vm8 }
 0x2d6   : > { %v3124_v57 = vadd.f32 %v3104_v48, %v3079_v26  ;;  %3688 = vmatmul.bf16.vlgmr.msrb.gmra.mxu3 %v8409_v19  ;;  %v7294_v26 = vld [vmem:[#allocation10 + $0x478] sm:$0xf0] }
 0x2d7   : > { %v6741_v1 = vor.u32 %v7294_v26, %v6740_v0  ;;  %3494 = vmatmul.bf16.gmra.mxu0 %v8411_v22  ;;  %v11025_v26 = vld [vmem:[#allocation65_spill] sm:$0xff] }
 0x2d8   : > { %v9450_v21 = vadd.f32 %v3124_v57, %v9091_v7  ;;  %v6645_v7 = vor.u32 %v7270_v32, %v6644_v27  ;;  %v2941_v35 = vpop.f32.mrf.mxu3  ;;  %v2991_v57 = vrot.slane %v9179_v15, 7 }
 0x2d9   : > { %v2802_v29 = vpop.f32.mrf.mxu1  ;;  %3811 = vmatpush.bf16.msrb.mxu1 %v6741_v1  ;;  %v2942_v16 = vadd.f32 %v2941_v35, %v2875_v30  ;;  %v3025_v30 = vsel %vm8874_vm3, %v9386_v6, 0.0 }
 0x2da   : > { %v2803_v31 = vadd.f32 %v2802_v29, %v9373_v36  ;;  %3745 = vmatpush.bf16.msra.mxu0 %v6645_v7  ;;  %v2880_v17 = vpop.f32.mrf.mxu2  ;;  %v9496_v33 = vsel %vm11026_vm11, %v2990_v61, %v2991_v57 }
 0x2db   : > { %v3047_v49 = vrot.slane %v2942_v16, 1 }
 0x2dc   : > { %v3105_v3 = vadd.f32 %v9380_v46, %v2803_v31  ;;  %v9477_v41 = vpop.f32.mrf.mxu0 }
 0x2dd   : > { %v3076_v36 = vsel %vm11023_vm9, %v3046_v54, %v3047_v49 }
 0x2de   : > { %v3125_v8 = vadd.f32 %v3105_v3, %v3085_v40  ;;  %v3087_v1 = vsel %vm9158_vm15, %v3076_v36, 0.0 }
 0x2df   : > { %3626 = vmatmul.bf16.gmra.mxu2 %v8411_v22 }
 0x2e0   : > { %v9473_v63 = vadd.f32 %v3125_v8, %v11022_v4  ;;  %v2943_v32 = vpop.f32.mrf.mxu3  ;;  %v11027_v4 = vld [vmem:[#allocation66_spill] sm:$0xff] }
 0x2e1   : > { %v2805_v48 = vpop.f32.mrf.mxu1  ;;  %v2944_v0 = vadd.f32 %v2943_v32, %v2877_v2 }
 0x2e2   : > { %v2806_v46 = vadd.f32 %v2805_v48, %v9391_v13  ;;  %v2882_v29 = vpop.f32.mrf.mxu2  ;;  %v9492_v13 = vsel %vm11021_vm8, %v2989_v47, %v2990_v61  ;;  %v6632_v48 = vld [vmem:[#allocation10 + $0x398] sm:$0xf]  ;;  %vm11028_vm8 = vmmov %vm11023_vm9 }
 0x2e3   : > { %v3048_v7 = vrot.slane %v2944_v0, 1 }
 0x2e4   : > { %v3106_v27 = vadd.f32 %v3025_v30, %v2806_v46  ;;  %2844 = vmatmul.bf16.gmra.mxu1 %v8832_v51  ;;  %v9501_v2 = vpop.f32.mrf.mxu0  ;;  %v7267_v46 = vld [vmem:[#allocation10 + $0x3a0] sm:$0xf0]  ;;  %v6728_v30 = vld [vmem:[#allocation10 + $0x458] sm:$0xf] }
 0x2e5   : > { %v3075_v6 = vsel %vm11023_vm9, %v3047_v49, %v3048_v7  ;;  %v6633_v36 = vor.u32 %v7267_v46, %v6632_v48  ;;  %vm11032_vm9 = vmmov %vm11026_vm11 }
 0x2e6   : > { %v3126_v54 = vadd.f32 %v3106_v27, %v3077_v14  ;;  %3691 = vmatmul.bf16.gmra.mxu3 %v8448_v55  ;;  %v7291_v27 = vld [vmem:[#allocation10 + $0x460] sm:$0xf0] }
 0x2e7   : > { %3498 = vmatmul.bf16.gmra.mxu0 %v8453_v59  ;;  %v6729_v32 = vor.u32 %v7291_v27, %v6728_v30 }
 0x2e8   : > { %v9488_v31 = vadd.f32 %v3126_v54, %v11025_v26  ;;  %v2946_v40 = vpop.f32.mrf.mxu3  ;;  %v3027_v54 = vsel %vm8893_vm4, %v9421_v18, 0.0  ;;  %3746 = vmatpush.bf16.msra.mxu0 %v6633_v36  ;;  %v2992_v26 = vrot.slane %v9194_v11, 7  ;;  %v11035_v36 = vld [vmem:[#allocation35_spill] sm:$0xff] }
 0x2e9   : > { %v2807_v15 = vpop.f32.mrf.mxu1  ;;  %v2947_v3 = vadd.f32 %v2946_v40, %v2880_v17  ;;  %3812 = vmatpush.bf16.msrb.mxu1 %v6729_v32 }
 0x2ea   : > { %v2808_v14 = vadd.f32 %v2807_v15, %v9399_v5  ;;  %v2885_v16 = vpop.f32.mrf.mxu2  ;;  %v2993_v15 = vrot.slane %v9210_v43, 7  ;;  %v9528_v18 = vsel %vm11026_vm11, %v2991_v57, %v2992_v26  ;;  %vm11038_vm11 = vmmov %vm11028_vm8 }
 0x2eb   : > { %v3049_v8 = vrot.slane %v2947_v3, 1 }
 0x2ec   : > { %v3107_v47 = vadd.f32 %v9415_v34, %v2808_v14  ;;  %v9513_v34 = vpop.f32.mrf.mxu0  ;;  %v9532_v11 = vsel %vm11032_vm9, %v2992_v26, %v2993_v15  ;;  %v11036_v26 = vld [vmem:[#allocation68_spill] sm:$0xff] }
 0x2ed   : > { %v3074_v5 = vsel %vm11028_vm8, %v3048_v7, %v3049_v8 }
 0x2ee   : > { %v3127_v35 = vadd.f32 %v3107_v47, %v3087_v1  ;;  %v3089_v30 = vsel %vm9189_vm0, %v3074_v5, 0.0 }
 0x2ef   : > { %3629 = vmatmul.bf16.gmra.mxu2 %v8453_v59 }
 0x2f0   : > { %v9509_v49 = vadd.f32 %v3127_v35, %v11027_v4  ;;  %v2948_v7 = vpop.f32.mrf.mxu3 }
 0x2f1   : > { %v2810_v61 = vpop.f32.mrf.mxu1  ;;  %v2949_v1 = vadd.f32 %v2948_v7, %v2882_v29  ;;  %v11033_v29 = vld [vmem:[#allocation34_spill] sm:$0xff] }
 0x2f2   : > { %v2811_v17 = vadd.f32 %v2810_v61, %v9426_v9  ;;  %v2887_v40 = vpop.f32.mrf.mxu2  ;;  %v11030_v9 = vld [vmem:[#allocation67_spill] sm:$0xff] }
 0x2f3   : > { %v3050_v3 = vrot.slane %v2949_v1, 1  ;;  %v11040_v1 = vld [vmem:[#allocation74_spill] sm:$0xff] }
 0x2f4   : > { %v3108_v14 = vadd.f32 %v3027_v54, %v2811_v17  ;;  %3557 = vmatmul.bf16.vlgmr.msra.gmra.mxu1 %v8409_v19 }
 0x2f5   : > { %v3073_v4 = vsel %vm11028_vm8, %v3049_v8, %v3050_v3  ;;  %vm11043_vm8 = vmmov %vm11032_vm9 }
 0x2f6   : > { %v3128_v47 = vadd.f32 %v3108_v14, %v3075_v6  ;;  %3694 = vmatmul.bf16.gmra.mxu3 %v11033_v29  ;;  %v9537_v6 = vpop.f32.mrf.mxu0 }
 0x2f7   : > { %3503 = vmatmul.bf16.gmra.mxu0 %v11035_v36 }
 0x2f8   : > { %v9524_v35 = vadd.f32 %v3128_v47, %v11030_v9  ;;  %v2951_v61 = vpop.f32.mrf.mxu3  ;;  %v2994_v47 = vrot.slane %v11040_v1, 7  ;;  %v2995_v9 = vrot.slane %v9241_v20, 7 }
 0x2f9   : > { %v2812_v43 = vpop.f32.mrf.mxu1  ;;  %v2952_v27 = vadd.f32 %v2951_v61, %v2885_v16  ;;  %v3029_v16 = vsel %vm8912_vm5, %v9460_v52, 0.0 }
 0x2fa   : > { %11031 = vst [vmem:[#allocation60_spill] sm:$0xff] %v9524_v35  ;;  %v2813_v48 = vadd.f32 %v2812_v43, %v9439_v58  ;;  %v2890_v32 = vpop.f32.mrf.mxu2  ;;  %v9564_v52 = vsel %vm11032_vm9, %v2993_v15, %v2994_v47  ;;  %v9568_v20 = vsel %vm11043_vm8, %v2994_v47, %v2995_v9  ;;  %vm11048_vm9 = vmmov %vm11038_vm11 }
 0x2fb   : > { %v3051_v54 = vrot.slane %v2952_v27, 1  ;;  %v11041_v27 = vld [vmem:[#allocation69_spill] sm:$0xff] }
 0x2fc   : > { %v3109_v57 = vadd.f32 %v9456_v37, %v2813_v48 }
 0x2fd   : > { %v3072_v7 = vsel %vm11038_vm11, %v3050_v3, %v3051_v54 }
 0x2fe   : > { %v3129_v17 = vadd.f32 %v3109_v57, %v3089_v30  ;;  %v9549_v58 = vpop.f32.mrf.mxu0  ;;  %v3091_v15 = vsel %vm9220_vm12, %v3072_v7, 0.0 }
 0x2ff   : > { %3634 = vmatmul.bf16.gmra.mxu2 %v11035_v36 }
 0x300   : > { %v9545_v8 = vadd.f32 %v3129_v17, %v11036_v26  ;;  %v2953_v48 = vpop.f32.mrf.mxu3  ;;  %v7264_v26 = vld [vmem:[#allocation10 + $0x388] sm:$0xf0] }
 0x301   : > { %v2815_v14 = vpop.f32.mrf.mxu1  ;;  %v2954_v30 = vadd.f32 %v2953_v48, %v2887_v40 }
 0x302   : > { %11037 = vst [vmem:[#allocation61_spill] sm:$0xff] %v9545_v8  ;;  %v2816_v37 = vadd.f32 %v2815_v14, %v9465_v38  ;;  %v2892_v57 = vpop.f32.mrf.mxu2  ;;  %v6620_v38 = vld [vmem:[#allocation10 + $0x380] sm:$0xf] }
 0x303   : > { %v3052_v61 = vrot.slane %v2954_v30, 1  ;;  %v6716_v14 = vld [vmem:[#allocation10 + $0x440] sm:$0xf] }
 0x304   : > { %v3110_v43 = vadd.f32 %v3029_v16, %v2816_v37  ;;  %3560 = vmatmul.bf16.gmra.mxu1 %v8448_v55  ;;  %v7288_v16 = vld [vmem:[#allocation10 + $0x448] sm:$0xf0] }
 0x305   : > { %v3071_v40 = vsel %vm11038_vm11, %v3051_v54, %v3052_v61  ;;  %v6717_v48 = vor.u32 %v7288_v16, %v6716_v14  ;;  %vm11052_vm11 = vmmov %vm11043_vm8 }
 0x306   : > { %v3130_v3 = vadd.f32 %v3110_v43, %v3073_v4  ;;  %3699 = vmatmul.bf16.gmra.mxu3 %v8535_v50  ;;  %v6621_v4 = vor.u32 %v7264_v26, %v6620_v38  ;;  %v9573_v1 = vpop.f32.mrf.mxu0  ;;  %v11046_v26 = vld [vmem:[#allocation71_spill] sm:$0xff] }
 0x307   : > { %3813 = vmatpush.bf16.msrb.mxu1 %v6717_v48 }
 0x308   : > { %v9560_v17 = vadd.f32 %v3130_v3, %v11041_v27  ;;  %3747 = vmatpush.bf16.msra.mxu0 %v6621_v4  ;;  %v2956_v3 = vpop.f32.mrf.mxu3  ;;  %v11045_v27 = vld [vmem:[#allocation36_spill] sm:$0xff]  ;;  %v2997_v4 = vrot.slane %v9272_v62, 7 }
 0x309   : > { %v2817_v37 = vpop.f32.mrf.mxu1  ;;  %3508 = vmatmul.bf16.gmra.mxu0 %v11045_v27  ;;  %v2957_v54 = vadd.f32 %v2956_v3, %v2890_v32  ;;  %v3031_v32 = vsel %vm8931_vm6, %v9496_v33, 0.0 }
 0x30a   : > { %11042 = vst [vmem:[#allocation64_spill] sm:$0xff] %v9560_v17  ;;  %v2818_v43 = vadd.f32 %v2817_v37, %v9477_v41  ;;  %v2895_v17 = vpop.f32.mrf.mxu2  ;;  %v2996_v37 = vrot.slane %v9256_v12, 7 }
 0x30b   : > { %v3053_v38 = vrot.slane %v2957_v54, 1 }
 0x30c   : > { %v3111_v47 = vadd.f32 %v9492_v13, %v2818_v43  ;;  %v9604_v12 = vsel %vm11052_vm11, %v2996_v37, %v2997_v4 }
 0x30d   : > { %v3070_v41 = vsel %vm11048_vm9, %v3052_v61, %v3053_v38 }
 0x30e   : > { %v3131_v25 = vadd.f32 %v3111_v47, %v3091_v15  ;;  %v9585_v14 = vpop.f32.mrf.mxu0  ;;  %v11050_v47 = vld [vmem:[#allocation72_spill] sm:$0xff]  ;;  %v3093_v54 = vsel %vm9251_vm10, %v3070_v41, 0.0 }
 0x30f   : > { %3639 = vmatmul.bf16.gmra.mxu2 %v11045_v27 }
 0x310   : > { %v9581_v8 = vadd.f32 %v3131_v25, %v11046_v26  ;;  %v2958_v16 = vpop.f32.mrf.mxu3 }
 0x311   : > { %v2820_v35 = vpop.f32.mrf.mxu1  ;;  %v2959_v43 = vadd.f32 %v2958_v16, %v2892_v57 }
 0x312   : > { %11047 = vst [vmem:[#allocation65_spill] sm:$0xff] %v9581_v8  ;;  %v2821_v13 = vadd.f32 %v2820_v35, %v9501_v2  ;;  %v2897_v48 = vpop.f32.mrf.mxu2  ;;  %v9600_v2 = vsel %vm11043_vm8, %v2995_v9, %v2996_v37  ;;  %vm11057_vm8 = vmmov %vm11048_vm9 }
 0x313   : > { %v3054_v15 = vrot.slane %v2959_v43, 1  ;;  %v11055_v43 = vld [vmem:[#allocation50_spill] sm:$0xff] }
 0x314   : > { %v3112_v25 = vadd.f32 %v3031_v32, %v2821_v13  ;;  %3564 = vmatmul.bf16.gmra.mxu1 %v11033_v29  ;;  %v11054_v13 = vld [vmem:[#allocation37_spill] sm:$0xff] }
 0x315   : > { %v3069_v33 = vsel %vm11048_vm9, %v3053_v38, %v3054_v15  ;;  %vm11063_vm9 = vmmov %vm11052_vm11 }
 0x316   : > { %v3132_v61 = vadd.f32 %v3112_v25, %v3071_v40  ;;  %3704 = vmatmul.bf16.gmra.mxu3 %v8579_v23  ;;  %v9609_v35 = vpop.f32.mrf.mxu0 }
 0x318   : > { %v9596_v3 = vadd.f32 %v3132_v61, %v11050_v47  ;;  %v2961_v26 = vpop.f32.mrf.mxu3  ;;  %v6608_v61 = vld [vmem:[#allocation10 + $0x368] sm:$0xf]  ;;  %v7261_v47 = vld [vmem:[#allocation10 + $0x370] sm:$0xf0] }
 0x319   : > { %v2822_v62 = vpop.f32.mrf.mxu1  ;;  %3513 = vmatmul.bf16.gmra.mxu0 %v11054_v13  ;;  %v2962_v32 = vadd.f32 %v2961_v26, %v2895_v17  ;;  %v6609_v41 = vor.u32 %v7261_v47, %v6608_v61  ;;  %v11059_v26 = vld [vmem:[#allocation79_spill] sm:$0xff] }
 0x31a   : > { %11051 = vst [vmem:[#allocation66_spill] sm:$0xff] %v9596_v3  ;;  %v2823_v57 = vadd.f32 %v2822_v62, %v9513_v34  ;;  %v2900_v25 = vpop.f32.mrf.mxu2  ;;  %v6704_v3 = vld [vmem:[#allocation10 + $0x428] sm:$0xf]  ;;  %v7285_v62 = vld [vmem:[#allocation10 + $0x430] sm:$0xf0] }
 0x31b   : > { %v3055_v16 = vrot.slane %v2962_v32, 1  ;;  %3748 = vmatpush.bf16.msra.mxu0 %v6609_v41  ;;  %v2998_v32 = vrot.slane %v11059_v26, 7  ;;  %v11067_v26 = vld [vmem:[#allocation39_spill] sm:$0xff] }
 0x31c   : > { %v3113_v9 = vadd.f32 %v9528_v18, %v2823_v57  ;;  %v6705_v57 = vor.u32 %v7285_v62, %v6704_v3 }
 0x31d   : > { %v3068_v34 = vsel %vm11057_vm8, %v3054_v15, %v3055_v16 }
 0x31e   : > { %v3133_v37 = vadd.f32 %v3113_v9, %v3093_v54  ;;  %v9621_v18 = vpop.f32.mrf.mxu0  ;;  %v3033_v9 = vsel %vm8950_vm7, %v9532_v11, 0.0  ;;  %3814 = vmatpush.bf16.msrb.mxu1 %v6705_v57  ;;  %v9636_v11 = vsel %vm11052_vm11, %v2997_v4, %v2998_v32  ;;  %vm11070_vm11 = vmmov %vm11057_vm8  ;;  %v7258_v54 = vld [vmem:[#allocation10 + $0x358] sm:$0xf0] }
 0x31f   : > { %3644 = vmatmul.bf16.gmra.mxu2 %v11054_v13 }
 0x320   : > { %v9617_v38 = vadd.f32 %v3133_v37, %v11055_v43  ;;  %v11060_v37 = vld [vmem:[#allocation81_spill] sm:$0xff]  ;;  %v2963_v15 = vpop.f32.mrf.mxu3 }
 0x321   : > { %v2825_v8 = vpop.f32.mrf.mxu1  ;;  %v2999_v43 = vrot.slane %v11060_v37, 7  ;;  %v2964_v61 = vadd.f32 %v2963_v15, %v2897_v48  ;;  %v11064_v48 = vld [vmem:[#allocation38_spill] sm:$0xff] }
 0x322   : > { %11056 = vst [vmem:[#allocation67_spill] sm:$0xff] %v9617_v38  ;;  %v2826_v17 = vadd.f32 %v2825_v8, %v9537_v6  ;;  %v2902_v40 = vpop.f32.mrf.mxu2  ;;  %v11061_v6 = vld [vmem:[#allocation52_spill] sm:$0xff] }
 0x323   : > { %v3056_v7 = vrot.slane %v2964_v61, 1  ;;  %v9640_v3 = vsel %vm11063_vm9, %v2998_v32, %v2999_v43 }
 0x324   : > { %v3114_v38 = vadd.f32 %v3033_v9, %v2826_v17  ;;  %3569 = vmatmul.bf16.gmra.mxu1 %v8535_v50  ;;  %v11065_v17 = vld [vmem:[#allocation78_spill] sm:$0xff] }
 0x325   : > { %v3067_v62 = vsel %vm11057_vm8, %v3055_v16, %v3056_v7  ;;  %vm11066_vm13 = vnez %v11065_v17  ;;  %v6596_v17 = vld [vmem:[#allocation10 + $0x350] sm:$0xf]  ;;  %vm11076_vm8 = vcmp.lt.s32.totalorder %v8806_v42, 1 }
 0x326   : > { %v3134_v47 = vadd.f32 %v3114_v38, %v3069_v33  ;;  %3709 = vmatmul.bf16.gmra.mxu3 %v11064_v48  ;;  %v9645_v33 = vpop.f32.mrf.mxu0  ;;  %v3095_v57 = vsel %vm11066_vm13, %v3068_v34, 0.0  ;;  %v11071_v34 = vld [vmem:[#allocation54_spill] sm:$0xff] }
 0x327   : > { %vm11072_vm9 = vnez %v11071_v34 }
 0x328   : > { %v9632_v8 = vadd.f32 %v3134_v47, %v11061_v6  ;;  %v2966_v9 = vpop.f32.mrf.mxu3  ;;  %v11068_v47 = vld [vmem:[#allocation76_spill] sm:$0xff] }
 0x329   : > { %v2827_v41 = vpop.f32.mrf.mxu1  ;;  %3518 = vmatmul.bf16.gmra.mxu0 %v11067_v26  ;;  %v2967_v32 = vadd.f32 %v2966_v9, %v2900_v25  ;;  %v3035_v25 = vsel %vm11072_vm9, %v9568_v20, 0.0 }
 0x32a   : > { %11062 = vst [vmem:[#allocation34_spill] sm:$0xff] %v9632_v8  ;;  %v2828_v38 = vadd.f32 %v2827_v41, %v9549_v58  ;;  %v2905_v15 = vpop.f32.mrf.mxu2  ;;  %v11073_v41 = vld [vmem:[#allocation84_spill] sm:$0xff] }
 0x32b   : > { %v3057_v61 = vrot.slane %v2967_v32, 1 }
 0x32c   : > { %v3115_v4 = vadd.f32 %v9564_v52, %v2828_v38  ;;  %v3000_v38 = vrot.slane %v11073_v41, 7 }
 0x32d   : > { %v3066_v8 = vsel %vm11070_vm11, %v3056_v7, %v3057_v61 }
 0x32e   : > { %v3135_v37 = vadd.f32 %v3115_v4, %v3095_v57  ;;  %v9657_v58 = vpop.f32.mrf.mxu0 }
 0x32f   : > { %3649 = vmatmul.bf16.gmra.mxu2 %v11067_v26 }
 0x330   : > { %v9653_v16 = vadd.f32 %v3135_v37, %v11068_v47  ;;  %v2968_v4 = vpop.f32.mrf.mxu3  ;;  %v11074_v47 = vld [vmem:[#allocation77_spill] sm:$0xff] }
 0x331   : > { %v2830_v6 = vpop.f32.mrf.mxu1  ;;  %v2969_v9 = vadd.f32 %v2968_v4, %v2902_v40  ;;  %v6597_v40 = vor.u32 %v7258_v54, %v6596_v17  ;;  %v11081_v54 = vld [vmem:[#allocation80_spill] sm:$0xff] }
 0x332   : > { %11069 = vst [vmem:[#allocation35_spill] sm:$0xff] %v9653_v16  ;;  %v2831_v52 = vadd.f32 %v2830_v6, %v9573_v1  ;;  %v2907_v37 = vpop.f32.mrf.mxu2  ;;  %v6692_v1 = vld [vmem:[#allocation10 + $0x410] sm:$0xf]  ;;  %v9671_v6 = vsel %vm11076_vm8, %v2999_v43, %v3000_v38  ;;  %vm11083_vm8 = vmmov %vm11070_vm11 }
 0x333   : > { %v3058_v7 = vrot.slane %v2969_v9, 1  ;;  %v11078_v9 = vld [vmem:[#allocation83_spill] sm:$0xff]  ;;  %3749 = vmatpush.bf16.msra.mxu0 %v6597_v40  ;;  %v11080_v38 = vld [vmem:[#allocation41_spill] sm:$0xff] }
 0x334   : > { %v3116_v57 = vadd.f32 %v3035_v25, %v2831_v52  ;;  %3574 = vmatmul.bf16.gmra.mxu1 %v8579_v23  ;;  %v11077_v25 = vld [vmem:[#allocation40_spill] sm:$0xff]  ;;  %vm11079_vm1 = vnez %v11078_v9 }
 0x335   : > { %v3065_v52 = vsel %vm11070_vm11, %v3057_v61, %v3058_v7 }
 0x336   : > { %v3136_v32 = vadd.f32 %v3116_v57, %v3067_v62  ;;  %3714 = vmatmul.bf16.gmra.mxu3 %v11077_v25  ;;  %v7282_v62 = vld [vmem:[#allocation10 + $0x418] sm:$0xf0]  ;;  %v2780_v41 = vpop.f32.mrf.mxu0 }
 0x337   : > { %v6693_v4 = vor.u32 %v7282_v62, %v6692_v1 }
 0x338   : > { %v9667_v16 = vadd.f32 %v3136_v32, %v11074_v47  ;;  %v3097_v32 = vsel %vm11079_vm1, %v3066_v8, 0.0  ;;  %v2971_v43 = vpop.f32.mrf.mxu3  ;;  %v11084_v8 = vld [vmem:[#allocation55_spill] sm:$0xff] }
 0x339   : > { %v2832_v20 = vpop.f32.mrf.mxu1  ;;  %3815 = vmatpush.bf16.msrb.mxu1 %v6693_v4  ;;  %3523 = vmatmul.bf16.gmra.mxu0 %v11080_v38  ;;  %vm11085_vm11 = vnez %v11084_v8 }
 0x33a   : > { %11075 = vst [vmem:[#allocation68_spill] sm:$0xff] %v9667_v16  ;;  %v2833_v57 = vadd.f32 %v2832_v20, %v9585_v14  ;;  %v2972_v16 = vadd.f32 %v2971_v43, %v2905_v15  ;;  %v2910_v34 = vpop.f32.mrf.mxu2  ;;  %v3037_v20 = vsel %vm11085_vm11, %v9604_v12, 0.0 }
 0x33c   : > { %v3117_v47 = vadd.f32 %v9600_v2, %v2833_v57  ;;  %v3059_v30 = vrot.slane %v2972_v16, 1 }
 0x33e   : > { %v3137_v61 = vadd.f32 %v3117_v47, %v3097_v32  ;;  %v3064_v14 = vsel %vm11083_vm8, %v3058_v7, %v3059_v30  ;;  %v2781_v1 = vpop.f32.mrf.mxu0  ;;  %v11086_v32 = vld [vmem:[#allocation82_spill] sm:$0xff]  ;;  %v1095_v7 = vadd.s32 160, %v8806_v42 }
 0x33f   : > { %3654 = vmatmul.bf16.gmra.mxu2 %v11080_v38  ;;  %v6680_v1 = vld [vmem:[#allocation10 + $0x3f8] sm:$0xf] }
 0x340   : > { %v9682_v17 = vadd.f32 %v3137_v61, %v11081_v54  ;;  %v2973_v16 = vpop.f32.mrf.mxu3  ;;  %v11088_v61 = vld [vmem:[#allocation42_spill] sm:$0xff] }
 0x341   : > { %v2835_v41 = vpop.f32.mrf.mxu1  ;;  %v2974_v40 = vadd.f32 %v2973_v16, %v2907_v37  ;;  %v6584_v54 = vld [vmem:[#allocation10 + $0x338] sm:$0xf] }
 0x342   : > { %11082 = vst [vmem:[#allocation74_spill] sm:$0xff] %v9682_v17  ;;  %v2836_v2 = vadd.f32 %v2835_v41, %v9609_v35  ;;  %v2912_v57 = vpop.f32.mrf.mxu2  ;;  %v7255_v41 = vld [vmem:[#allocation10 + $0x340] sm:$0xf0]  ;;  %v11092_v17 = vld [vmem:[#allocation85_spill] sm:$0xff] }
 0x343   : > { %v3060_v4 = vrot.slane %v2974_v40, 1 }
 0x344   : > { %v3118_v15 = vadd.f32 %v3037_v20, %v2836_v2  ;;  %3579 = vmatmul.bf16.gmra.mxu1 %v11064_v48  ;;  %v7279_v2 = vld [vmem:[#allocation10 + $0x400] sm:$0xf0]  ;;  %v11089_v20 = vld [vmem:[#allocation58_spill] sm:$0xff] }
 0x345   : > { %v3063_v35 = vsel %vm11083_vm8, %v3059_v30, %v3060_v4  ;;  %vm11090_vm11 = vnez %v11089_v20  ;;  %v6681_v16 = vor.u32 %v7279_v2, %v6680_v1  ;;  %v11098_v2 = vld [vmem:[#allocation56_spill] sm:$0xff] }
 0x346   : > { %v3138_v62 = vadd.f32 %v3118_v15, %v3065_v52  ;;  %3719 = vmatmul.bf16.gmra.mxu3 %v11088_v61  ;;  %v3492_v12 = vpop.f32.mrf.mxu0  ;;  %v6585_v52 = vor.u32 %v7255_v41, %v6584_v54  ;;  %v3099_v15 = vsel %vm11090_vm11, %v3064_v14, 0.0  ;;  %v1096_v14 = vadd.s32 168, %v8806_v42 }
 0x347   : > { %3816 = vmatpush.bf16.msrb.mxu1 %v6681_v16  ;;  %vm11097_vm11 = vcmp.lt.s32.totalorder %v8806_v42, 7 }
 0x348   : > { %v9693_v47 = vadd.f32 %v3138_v62, %v11086_v32  ;;  %v1119_v62 = vand.u32 15, %v1095_v7  ;;  %v11091_v32 = vld [vmem:[#allocation43_spill] sm:$0xff]  ;;  %3750 = vmatpush.bf16.msra.mxu0 %v6585_v52  ;;  %v1120_v41 = vand.u32 15, %v1096_v14  ;;  %v11105_v14 = vld [vmem:[#allocation57_spill] sm:$0xff] }
 0x349   : > { %v2837_v43 = vpop.f32.mrf.mxu1  ;;  %v2976_v57 = vpop.f32.mrf.mxu3  ;;  %3528 = vmatmul.bf16.gmra.mxu0 %v11091_v32 }
 0x34a   : > { %11087 = vst [vmem:[#allocation69_spill] sm:$0xff] %v9693_v47  ;;  %v2838_v37 = vadd.f32 %v2837_v43, %v9621_v18  ;;  %v2977_v30 = vadd.f32 %v2976_v57, %v2910_v34  ;;  %vm9707_vm8 = vcmp.ge.s32.totalorder %v1119_v62, 1  ;;  %v11094_v18 = vmov 0 }
 0x34b   : > { %v11095_v18 = vsel %vm9707_vm8, 4294967295, %v11094_v18 }
 0x34c   : > { %v3119_v40 = vadd.f32 %v9636_v11, %v2838_v37  ;;  %v3061_v47 = vrot.slane %v2977_v30, 1  ;;  %11096 = vst [vmem:[#allocation71_spill] sm:$0xff] %v11095_v18 }
 0x34e   : > { %v3139_v12 = vadd.f32 %v3119_v40, %v3099_v15  ;;  %v3062_v11 = vsel %vm11097_vm11, %v3060_v4, %v3061_v47  ;;  %v3493_v7 = vpop.f32.mrf.mxu0  ;;  %vm9723_vm11 = vcmp.le.s32.totalorder %v1120_v41, 14  ;;  %v11100_v4 = vmov 0  ;;  %v6668_v41 = vld [vmem:[#allocation10 + $0x3e0] sm:$0xf] }
 0x34f   : > { %3659 = vmatmul.bf16.gmra.mxu2 %v11091_v32  ;;  %v11101_v4 = vsel %vm9723_vm11, 4294967295, %v11100_v4  ;;  %v3101_v40 = vsel %vm9723_vm11, %v3062_v11, 0.0  ;;  %v7252_v11 = vld [vmem:[#allocation10 + $0x328] sm:$0xf0]  ;;  %vm11109_vm11 = vcmp.lt.s32.totalorder %v8806_v42, 1 }
 0x350   : > { %v9705_v8 = vadd.f32 %v3139_v12, %v11092_v17  ;;  %v3039_v17 = vsel %vm9707_vm8, %v9640_v3, 0.0  ;;  %11102 = vst [vmem:[#allocation37_spill] sm:$0xff] %v11101_v4  ;;  %vm11110_vm8 = vmmov %vm11109_vm11 }
 0x351   : > { %v2840_v43 = vpop.f32.mrf.mxu1  ;;  %v2978_v1 = vpop.f32.mrf.mxu3  ;;  %vm11111_vm1 = vmmov %vm11110_vm8 }
 0x352   : > { %11093 = vst [vmem:[#allocation36_spill] sm:$0xff] %v9705_v8  ;;  %v2841_v34 = vadd.f32 %v2840_v43, %v9645_v33  ;;  %v3624_v37 = vpop.f32.mrf.mxu2  ;;  %v11103_v33 = vld [vmem:[#allocation44_spill] sm:$0xff] }
 0x353   : > { %v7276_v1 = vld [vmem:[#allocation10 + $0x3e8] sm:$0xf0] }
 0x354   : > { %v3120_v54 = vadd.f32 %v3039_v17, %v2841_v34  ;;  %3584 = vmatmul.bf16.gmra.mxu1 %v11077_v25  ;;  %v6669_v37 = vor.u32 %v7276_v1, %v6668_v41 }
 0x356   : > { %v3140_v52 = vadd.f32 %v3120_v54, %v3063_v35  ;;  %3724 = vmatmul.bf16.gmra.mxu3 %v11103_v33  ;;  %v3495_v16 = vpop.f32.mrf.mxu0  ;;  %v11104_v35 = vld [vmem:[#allocation31_spill] sm:$0xff]  ;;  %3817 = vmatpush.bf16.msrb.mxu1 %v6669_v37 }
 0x357   : > { %v6572_v54 = vld [vmem:[#allocation10 + $0x320] sm:$0xf]  ;;  %v11107_v16 = vld [vmem:[#allocation32_spill] sm:$0xff] }
 0x358   : > { %v9721_v15 = vadd.f32 %v3140_v52, %v11098_v2 }
 0x359   : > { %v2842_v47 = vpop.f32.mrf.mxu1  ;;  %v3689_v57 = vpop.f32.mrf.mxu3  ;;  %3533 = vmatmul.bf16.gmra.mxu0 %v11104_v35 }
 0x35a   : > { %11099 = vst [vmem:[#allocation72_spill] sm:$0xff] %v9721_v15  ;;  %v2843_v3 = vadd.f32 %v2842_v47, %v9657_v58  ;;  %v3625_v30 = vpop.f32.mrf.mxu2 }
 0x35c   : > { %v3121_v62 = vadd.f32 %v9671_v6, %v2843_v3  ;;  %v6573_v6 = vor.u32 %v7252_v11, %v6572_v54  ;;  %v7273_v11 = vld [vmem:[#allocation10 + $0x3d0] sm:$0xf0] }
 0x35e   : > { %v3141_v12 = vadd.f32 %v3121_v62, %v3101_v40  ;;  %v3496_v34 = vpop.f32.mrf.mxu0  ;;  %3751 = vmatpush.bf16.msra.mxu0 %v6573_v6 }
 0x35f   : > { %3664 = vmatmul.bf16.gmra.mxu2 %v11104_v35 }
 0x360   : > { %v9734_v43 = vadd.f32 %v3141_v12, %v11105_v14  ;;  %v11108_v14 = vld [vmem:[#allocation33_spill] sm:$0xff] }
 0x361   : > { %v2845_v7 = vpop.f32.mrf.mxu1  ;;  %v3690_v58 = vpop.f32.mrf.mxu3 }
 0x362   : > { %11106 = vst [vmem:[#allocation50_spill] sm:$0xff] %v9734_v43  ;;  %v3627_v17 = vpop.f32.mrf.mxu2  ;;  %v6560_v7 = vld [vmem:[#allocation10 + $0x308] sm:$0xf]  ;;  %v7249_v58 = vld [vmem:[#allocation10 + $0x310] sm:$0xf0] }
 0x363   : > { %v6656_v17 = vld [vmem:[#allocation10 + $0x3c8] sm:$0xf]  ;;  %v6561_v54 = vor.u32 %v7249_v58, %v6560_v7 }
 0x364   : > { %3589 = vmatmul.bf16.gmra.mxu1 %v11088_v61  ;;  %v6657_v6 = vor.u32 %v7273_v11, %v6656_v17 }
 0x365   : > { %3752 = vmatpush.bf16.msra.mxu0 %v6561_v54 }
 0x366   : > { %3729 = vmatmul.bf16.gmra.mxu3 %v8776_v44  ;;  %v3499_v2 = vpop.f32.mrf.mxu0  ;;  %3818 = vmatpush.bf16.msrb.mxu1 %v6657_v6 }
 0x369   : > { %v2846_v52 = vpop.f32.mrf.mxu1  ;;  %v3692_v47 = vpop.f32.mrf.mxu3  ;;  %3538 = vmatmul.bf16.gmra.mxu0 %v11107_v16 }
 0x36a   : > { %v3628_v3 = vpop.f32.mrf.mxu2 }
 0x36e   : > { %v3501_v62 = vpop.f32.mrf.mxu0 }
 0x36f   : > { %3669 = vmatmul.bf16.gmra.mxu2 %v11107_v16 }
 0x371   : > { %v3558_v40 = vpop.f32.mrf.mxu1  ;;  %v3693_v57 = vpop.f32.mrf.mxu3 }
 0x374   : > { %3594 = vmatmul.bf16.gmra.mxu1 %v11103_v33 }
 0x376   : > { %3734 = vmatmul.bf16.gmra.mxu3 %v8802_v28  ;;  %v3504_v12 = vpop.f32.mrf.mxu0 }
 0x379   : > { %v3559_v30 = vpop.f32.mrf.mxu1  ;;  %3543 = vmatmul.bf16.gmra.mxu0 %v11108_v14 }
 0x37e   : > { %v3506_v1 = vpop.f32.mrf.mxu0 }
 0x37f   : > { %3674 = vmatmul.bf16.gmra.mxu2 %v11108_v14 }
 0x381   : > { %v3561_v41 = vpop.f32.mrf.mxu1 }
 0x384   : > { %3599 = vmatmul.bf16.gmra.mxu1 %v8776_v44 }
 0x386   : > { %3739 = vmatmul.bf16.gmra.mxu3 %v8832_v51  ;;  %v3509_v52 = vpop.f32.mrf.mxu0 }
 0x389   : > { %v3562_v37 = vpop.f32.mrf.mxu1  ;;  %3753 = vmatmul.bf16.vlgmr.msra.gmra.mxu0 %v8359_v39 }
 0x38a   : > { %v3563_v47 = vadd.f32 %v3562_v37, %v3496_v34 }
 0x38c   : > { %v3877_v30 = vrot.slane %v3563_v47, 7 }
 0x38e   : > { %v3511_v40 = vpop.f32.mrf.mxu0 }
 0x391   : > { %v3565_v3 = vpop.f32.mrf.mxu1 }
 0x392   : > { %v3566_v57 = vadd.f32 %v3565_v3, %v3499_v2 }
 0x394   : > { %v3878_v7 = vrot.slane %v3566_v57, 7  ;;  %3604 = vmatmul.bf16.gmra.mxu1 %v8802_v28 }
 0x396   : > { %v9751_v58 = vsel %vm11109_vm11, %v3877_v30, %v3878_v7  ;;  %v3514_v54 = vpop.f32.mrf.mxu0  ;;  %vm11112_vm11 = vmmov %vm11111_vm1 }
 0x399   : > { %v3567_v17 = vpop.f32.mrf.mxu1  ;;  %3757 = vmatmul.bf16.gmra.mxu0 %v8411_v22 }
 0x39a   : > { %v3568_v11 = vadd.f32 %v3567_v17, %v3501_v62 }
 0x39c   : > { %v3879_v41 = vrot.slane %v3568_v11, 7 }
 0x39e   : > { %v9756_v39 = vsel %vm11110_vm8, %v3878_v7, %v3879_v41  ;;  %v3516_v2 = vpop.f32.mrf.mxu0  ;;  %vm11113_vm8 = vmmov %vm11111_vm1 }
 0x3a1   : > { %v3570_v34 = vpop.f32.mrf.mxu1 }
 0x3a2   : > { %v3571_v6 = vadd.f32 %v3570_v34, %v3504_v12 }
 0x3a4   : > { %v3880_v37 = vrot.slane %v3571_v6, 7  ;;  %3609 = vmatmul.bf16.gmra.mxu1 %v8832_v51 }
 0x3a6   : > { %v9761_v47 = vsel %vm11111_vm1, %v3879_v41, %v3880_v37  ;;  %v3519_v57 = vpop.f32.mrf.mxu0 }
 0x3a9   : > { %v3572_v3 = vpop.f32.mrf.mxu1  ;;  %3760 = vmatmul.bf16.gmra.mxu0 %v8453_v59 }
 0x3aa   : > { %v3573_v62 = vadd.f32 %v3572_v3, %v3506_v1 }
 0x3ac   : > { %v3881_v30 = vrot.slane %v3573_v62, 7 }
 0x3ae   : > { %v9766_v22 = vsel %vm11112_vm11, %v3880_v37, %v3881_v30  ;;  %v3521_v17 = vpop.f32.mrf.mxu0  ;;  %vm11114_vm11 = vmmov %vm11111_vm1 }
 0x3b1   : > { %v3575_v7 = vpop.f32.mrf.mxu1 }
 0x3b2   : > { %v3576_v12 = vadd.f32 %v3575_v7, %v3509_v52 }
 0x3b4   : > { %v3882_v11 = vrot.slane %v3576_v12, 7  ;;  %3819 = vmatmul.bf16.vlgmr.msrb.gmra.mxu1 %v8409_v19 }
 0x3b6   : > { %v9771_v41 = vsel %vm11113_vm8, %v3881_v30, %v3882_v11  ;;  %v3524_v6 = vpop.f32.mrf.mxu0  ;;  %vm11115_vm8 = vmmov %vm11111_vm1 }
 0x3b9   : > { %v3577_v34 = vpop.f32.mrf.mxu1  ;;  %3765 = vmatmul.bf16.gmra.mxu0 %v11035_v36 }
 0x3ba   : > { %v3578_v1 = vadd.f32 %v3577_v34, %v3511_v40 }
 0x3bc   : > { %v3883_v3 = vrot.slane %v3578_v1, 7 }
 0x3be   : > { %v9776_v59 = vsel %vm11111_vm1, %v3882_v11, %v3883_v3  ;;  %v3526_v62 = vpop.f32.mrf.mxu0 }
 0x3c1   : > { %v3580_v37 = vpop.f32.mrf.mxu1 }
 0x3c2   : > { %v3581_v52 = vadd.f32 %v3580_v37, %v3514_v54 }
 0x3c4   : > { %v3884_v7 = vrot.slane %v3581_v52, 7  ;;  %3823 = vmatmul.bf16.gmra.mxu1 %v8448_v55 }
 0x3c6   : > { %v9781_v19 = vsel %vm11114_vm11, %v3883_v3, %v3884_v7  ;;  %v3529_v12 = vpop.f32.mrf.mxu0  ;;  %vm11116_vm11 = vmmov %vm11111_vm1 }
 0x3c9   : > { %v3582_v30 = vpop.f32.mrf.mxu1  ;;  %3770 = vmatmul.bf16.gmra.mxu0 %v11045_v27 }
 0x3ca   : > { %v3583_v40 = vadd.f32 %v3582_v30, %v3516_v2 }
 0x3cc   : > { %v3885_v34 = vrot.slane %v3583_v40, 7 }
 0x3ce   : > { %v9786_v36 = vsel %vm11115_vm8, %v3884_v7, %v3885_v34  ;;  %v3531_v1 = vpop.f32.mrf.mxu0  ;;  %vm11117_vm8 = vmmov %vm11111_vm1 }
 0x3d1   : > { %v3585_v11 = vpop.f32.mrf.mxu1 }
 0x3d2   : > { %v3586_v54 = vadd.f32 %v3585_v11, %v3519_v57 }
 0x3d4   : > { %v3886_v37 = vrot.slane %v3586_v54, 7  ;;  %3826 = vmatmul.bf16.gmra.mxu1 %v11033_v29 }
 0x3d6   : > { %v9791_v55 = vsel %vm11111_vm1, %v3885_v34, %v3886_v37  ;;  %v3534_v52 = vpop.f32.mrf.mxu0 }
 0x3d9   : > { %v3587_v3 = vpop.f32.mrf.mxu1  ;;  %3775 = vmatmul.bf16.gmra.mxu0 %v11054_v13 }
 0x3da   : > { %v3588_v2 = vadd.f32 %v3587_v3, %v3521_v17 }
 0x3dc   : > { %v3887_v30 = vrot.slane %v3588_v2, 7 }
 0x3de   : > { %v9796_v27 = vsel %vm11116_vm11, %v3886_v37, %v3887_v30  ;;  %v3536_v40 = vpop.f32.mrf.mxu0  ;;  %vm11118_vm11 = vmmov %vm11111_vm1 }
 0x3e1   : > { %v3590_v7 = vpop.f32.mrf.mxu1 }
 0x3e2   : > { %v3591_v57 = vadd.f32 %v3590_v7, %v3524_v6 }
 0x3e4   : > { %v3888_v11 = vrot.slane %v3591_v57, 7  ;;  %3831 = vmatmul.bf16.gmra.mxu1 %v8535_v50 }
 0x3e6   : > { %v9801_v29 = vsel %vm11117_vm8, %v3887_v30, %v3888_v11  ;;  %v3539_v54 = vpop.f32.mrf.mxu0  ;;  %vm11119_vm8 = vmmov %vm11111_vm1 }
 0x3e9   : > { %v3592_v34 = vpop.f32.mrf.mxu1  ;;  %3780 = vmatmul.bf16.gmra.mxu0 %v11067_v26 }
 0x3ea   : > { %v3593_v17 = vadd.f32 %v3592_v34, %v3526_v62 }
 0x3ec   : > { %v3889_v3 = vrot.slane %v3593_v17, 7 }
 0x3ee   : > { %v9806_v13 = vsel %vm11111_vm1, %v3888_v11, %v3889_v3  ;;  %v3541_v2 = vpop.f32.mrf.mxu0 }
 0x3f1   : > { %v3595_v37 = vpop.f32.mrf.mxu1 }
 0x3f2   : > { %v3596_v6 = vadd.f32 %v3595_v37, %v3529_v12 }
 0x3f4   : > { %v3890_v7 = vrot.slane %v3596_v6, 7  ;;  %3836 = vmatmul.bf16.gmra.mxu1 %v8579_v23 }
 0x3f6   : > { %v9811_v50 = vsel %vm11118_vm11, %v3889_v3, %v3890_v7  ;;  %v3544_v57 = vpop.f32.mrf.mxu0  ;;  %vm11120_vm11 = vmmov %vm11111_vm1 }
 0x3f9   : > { %v3597_v30 = vpop.f32.mrf.mxu1  ;;  %3785 = vmatmul.bf16.gmra.mxu0 %v11080_v38 }
 0x3fa   : > { %v3598_v62 = vadd.f32 %v3597_v30, %v3531_v1 }
 0x3fc   : > { %v3891_v34 = vrot.slane %v3598_v62, 7 }
 0x3fe   : > { %v9816_v26 = vsel %vm11119_vm8, %v3890_v7, %v3891_v34  ;;  %v3546_v17 = vpop.f32.mrf.mxu0  ;;  %vm11121_vm8 = vmmov %vm11111_vm1 }
 0x401   : > { %v3600_v11 = vpop.f32.mrf.mxu1 }
 0x402   : > { %v3601_v12 = vadd.f32 %v3600_v11, %v3534_v52 }
 0x404   : > { %v3892_v37 = vrot.slane %v3601_v12, 7  ;;  %3841 = vmatmul.bf16.gmra.mxu1 %v11064_v48 }
 0x406   : > { %v9821_v23 = vsel %vm11111_vm1, %v3891_v34, %v3892_v37  ;;  %v3754_v6 = vpop.f32.mrf.mxu0 }
 0x409   : > { %v3602_v3 = vpop.f32.mrf.mxu1  ;;  %3790 = vmatmul.bf16.gmra.mxu0 %v11091_v32 }
 0x40a   : > { %v3603_v1 = vadd.f32 %v3602_v3, %v3536_v40 }
 0x40c   : > { %v3893_v30 = vrot.slane %v3603_v1, 7 }
 0x40e   : > { %v9826_v38 = vsel %vm11120_vm11, %v3892_v37, %v3893_v30  ;;  %v3756_v62 = vpop.f32.mrf.mxu0  ;;  %vm11123_vm11 = vmmov %vm11111_vm1 }
 0x40f   : > { %v3695_v62 = vpop.f32.mrf.mxu3 }
 0x411   : > { %v3605_v7 = vpop.f32.mrf.mxu1 }
 0x412   : > { %v3606_v52 = vadd.f32 %v3605_v7, %v3539_v54 }
 0x414   : > { %v3894_v11 = vrot.slane %v3606_v52, 7  ;;  %3846 = vmatmul.bf16.gmra.mxu1 %v11077_v25 }
 0x416   : > { %v9831_v48 = vsel %vm11121_vm8, %v3893_v30, %v3894_v11  ;;  %v3758_v12 = vpop.f32.mrf.mxu0  ;;  %v3630_v30 = vpop.f32.mrf.mxu2  ;;  %vm11125_vm8 = vmmov %vm11111_vm1 }
 0x419   : > { %v3607_v34 = vpop.f32.mrf.mxu1  ;;  %3795 = vmatmul.bf16.gmra.mxu0 %v11104_v35 }
 0x41a   : > { %v3608_v40 = vadd.f32 %v3607_v34, %v3541_v2 }
 0x41c   : > { %v3895_v3 = vrot.slane %v3608_v40, 7  ;;  %v3697_v40 = vpop.f32.mrf.mxu3 }
 0x41e   : > { %v9836_v32 = vsel %vm11111_vm1, %v3894_v11, %v3895_v3  ;;  %v3759_v1 = vpop.f32.mrf.mxu0  ;;  %v3632_v12 = vpop.f32.mrf.mxu2  ;;  %vm11128_vm1 = vcmp.lt.s32.totalorder %v8806_v42, 7 }
 0x41f   : > { %11122 = vst [vmem:[#allocation79_spill] sm:$0xff] %v9836_v32 }
 0x421   : > { %v3610_v37 = vpop.f32.mrf.mxu1 }
 0x422   : > { %v3611_v54 = vadd.f32 %v3610_v37, %v3544_v57 }
 0x424   : > { %v3896_v7 = vrot.slane %v3611_v54, 7  ;;  %3851 = vmatmul.bf16.gmra.mxu1 %v11088_v61  ;;  %v3700_v54 = vpop.f32.mrf.mxu3 }
 0x426   : > { %v9841_v25 = vsel %vm11123_vm11, %v3895_v3, %v3896_v7  ;;  %v3761_v34 = vpop.f32.mrf.mxu0  ;;  %v3635_v1 = vpop.f32.mrf.mxu2  ;;  %vm11130_vm11 = vmmov %vm11128_vm1 }
 0x427   : > { %11124 = vst [vmem:[#allocation81_spill] sm:$0xff] %v9841_v25 }
 0x429   : > { %v3612_v2 = vpop.f32.mrf.mxu1  ;;  %3800 = vmatmul.bf16.gmra.mxu0 %v11107_v16 }
 0x42a   : > { %v3613_v52 = vadd.f32 %v3612_v2, %v3546_v17 }
 0x42c   : > { %v3897_v35 = vrot.slane %v3613_v52, 7 }
 0x42e   : > { %v9846_v11 = vsel %vm11125_vm8, %v3896_v7, %v3897_v35  ;;  %v3763_v3 = vpop.f32.mrf.mxu0  ;;  %v3637_v16 = vpop.f32.mrf.mxu2  ;;  %vm11131_vm8 = vmmov %vm11128_vm1 }
 0x42f   : > { %11126 = vst [vmem:[#allocation52_spill] sm:$0xff] %v9846_v11  ;;  %v3702_v7 = vpop.f32.mrf.mxu3 }
 0x431   : > { %v3820_v57 = vpop.f32.mrf.mxu1 }
 0x432   : > { %v9848_v61 = vadd.f32 %v3820_v57, %v3754_v6 }
 0x434   : > { %11127 = vst [vmem:[#allocation38_spill] sm:$0xff] %v9848_v61  ;;  %3856 = vmatmul.bf16.gmra.mxu1 %v11103_v33 }
 0x436   : > { %v3766_v17 = vpop.f32.mrf.mxu0  ;;  %v3640_v43 = vpop.f32.mrf.mxu2 }
 0x437   : > { %v3705_v15 = vpop.f32.mrf.mxu3 }
 0x439   : > { %v3822_v37 = vpop.f32.mrf.mxu1  ;;  %3805 = vmatmul.bf16.gmra.mxu0 %v11108_v14  ;;  %v3918_v14 = vsel %vm8853_vm2, %v9751_v58, 0.0 }
 0x43a   : > { %v3696_v37 = vadd.f32 %v3695_v62, %v3630_v30 }
 0x43c   : > { %v3999_v25 = vadd.f32 %v3918_v14, %v3696_v37 }
 0x43e   : > { %v3768_v35 = vpop.f32.mrf.mxu0 }
 0x441   : > { %v3824_v2 = vpop.f32.mrf.mxu1 }
 0x442   : > { %v9857_v2 = vpop.f32.mrf.mxu2 }
 0x444   : > { %3861 = vmatmul.bf16.gmra.mxu1 %v8776_v44  ;;  %v9859_v44 = vpop.f32.mrf.mxu3 }
 0x446   : > { %v3771_v57 = vpop.f32.mrf.mxu0 }
 0x449   : > { %v3825_v52 = vpop.f32.mrf.mxu1 }
 0x44a   : > { %v9864_v53 = vpop.f32.mrf.mxu2 }
 0x44c   : > { %v9866_v58 = vpop.f32.mrf.mxu3 }
 0x44e   : > { %v3773_v4 = vpop.f32.mrf.mxu0 }
 0x451   : > { %v3827_v6 = vpop.f32.mrf.mxu1 }
 0x452   : > { %v3828_v33 = vadd.f32 %v3827_v6, %v3761_v34  ;;  %v3698_v34 = vadd.f32 %v3697_v40, %v3632_v12  ;;  %v3701_v40 = vadd.f32 %v3700_v54, %v3635_v1 }
 0x454   : > { %3866 = vmatmul.bf16.gmra.mxu1 %v8802_v28  ;;  %v3939_v52 = vrot.slane %v3828_v33, 1 }
 0x459   : > { %v3829_v11 = vpop.f32.mrf.mxu1 }
 0x45a   : > { %v3830_v61 = vadd.f32 %v3829_v11, %v3763_v3  ;;  %v4000_v11 = vadd.f32 %v9756_v39, %v3698_v34 }
 0x45c   : > { %v3940_v8 = vrot.slane %v3830_v61, 1  ;;  %v9873_v61 = vld [vmem:[%s11129_s20] ss:$0 sm:$0xff] }
 0x45e   : > { %v3977_v32 = vsel %vm11128_vm1, %v3939_v52, %v3940_v8  ;;  %v9885_v52 = vpop.f32.mrf.mxu2 }
 0x45f   : > { %v4019_v28 = vadd.f32 %v3999_v25, %v3977_v32  ;;  %v3776_v25 = vpop.f32.mrf.mxu0 }
 0x461   : > { %v4039_v30 = vadd.f32 %v4019_v28, %v9409_v60  ;;  %v3832_v62 = vpop.f32.mrf.mxu1  ;;  %v9887_v28 = vpop.f32.mrf.mxu3 }
 0x462   : > { %v3833_v6 = vadd.f32 %v3832_v62, %v3766_v17 }
 0x463   : > { %v4063_v39 = vadd.f32 %v9873_v61, %v4039_v30 }
 0x464   : > { %v3941_v18 = vrot.slane %v3833_v6, 1  ;;  %3871 = vmatmul.bf16.gmra.mxu1 %v8832_v51  ;;  %v3920_v51 = vsel %vm8874_vm3, %v9761_v47, 0.0 }
 0x465   : > { %v4083_v62 = vmax.f32 %v4063_v39, 0.0 }
 0x466   : > { %v3976_v60 = vsel %vm11130_vm11, %v3940_v8, %v3941_v18  ;;  %v4001_v8 = vadd.f32 %v3920_v51, %v3701_v40  ;;  %v3650_v40 = vpop.f32.mrf.mxu2  ;;  %v3706_v51 = vadd.f32 %v3705_v15, %v3640_v43  ;;  %vm11132_vm11 = vmmov %vm11128_vm1 }
 0x467   : > { %v3980_v32 = vsel %vm9127_vm14, %v3976_v60, 0.0 }
 0x468   : > { %v4020_v12 = vadd.f32 %v4000_v11, %v3980_v32 }
 0x469   : > { %v3834_v3 = vpop.f32.mrf.mxu1 }
 0x46a   : > { %v4040_v17 = vadd.f32 %v4020_v12, %v9435_v56  ;;  %v3835_v33 = vadd.f32 %v3834_v3, %v3768_v35  ;;  %v3778_v56 = vpop.f32.mrf.mxu0  ;;  %v3703_v35 = vadd.f32 %v3702_v7, %v3637_v16 }
 0x46c   : > { %v4064_v37 = vadd.f32 %v9873_v61, %v4040_v17  ;;  %v3942_v14 = vrot.slane %v3835_v33, 1  ;;  %v4002_v60 = vadd.f32 %v9766_v22, %v3703_v35 }
 0x46e   : > { %v4084_v1 = vmax.f32 %v4064_v37, 0.0  ;;  %v3975_v54 = vsel %vm11131_vm8, %v3941_v18, %v3942_v14  ;;  %v3715_v18 = vpop.f32.mrf.mxu3  ;;  %vm11133_vm8 = vmmov %vm11128_vm1 }
 0x46f   : > { %v4021_v45 = vadd.f32 %v4001_v8, %v3975_v54 }
 0x470   : > { %v7476_v47 = vpack.c.bf16 %v4084_v1, %v4083_v62  ;;  %v3708_v1 = vadd.f32 %v9859_v44, %v9857_v2  ;;  %v3924_v2 = vsel %vm8912_vm5, %v9781_v19, 0.0  ;;  %v11134_v19 = vld [vmem:[#allocation60_spill] sm:$0xff] }
 0x471   : > { %v4041_v30 = vadd.f32 %v4021_v45, %v9450_v21  ;;  %v3837_v34 = vpop.f32.mrf.mxu1  ;;  %v3922_v21 = vsel %vm8893_vm4, %v9771_v41, 0.0 }
 0x472   : > { %7477 = vst [vmem:[#allocation3] sm:$0xff] %v7476_v47   ;;  %v3838_v6 = vadd.f32 %v3837_v34, %v3771_v57  ;;  %v3781_v57 = vpop.f32.mrf.mxu0  ;;  %v4003_v37 = vadd.f32 %v3922_v21, %v3706_v51 }
 0x473   : > { %v4065_v16 = vadd.f32 %v9873_v61, %v4041_v30  ;;  %v4004_v30 = vadd.f32 %v9776_v59, %v3708_v1 }
 0x474   : > { %v3943_v11 = vrot.slane %v3838_v6, 1 }
 0x476   : > { %v3974_v32 = vsel %vm11128_vm1, %v3942_v14, %v3943_v11  ;;  %v4085_v14 = vmax.f32 %v4065_v16, 0.0 }
 0x477   : > { %v3982_v12 = vsel %vm9158_vm15, %v3974_v32, 0.0 }
 0x478   : > { %v4022_v3 = vadd.f32 %v4002_v60, %v3982_v12 }
 0x479   : > { %v3839_v39 = vpop.f32.mrf.mxu1 }
 0x47a   : > { %v4042_v7 = vadd.f32 %v4022_v3, %v9473_v63  ;;  %v3840_v22 = vadd.f32 %v3839_v39, %v3773_v4  ;;  %v3652_v63 = vpop.f32.mrf.mxu2  ;;  %v3717_v4 = vpop.f32.mrf.mxu3 }
 0x47b   : > { %v3783_v47 = vpop.f32.mrf.mxu0 }
 0x47c   : > { %v4066_v17 = vadd.f32 %v9873_v61, %v4042_v7  ;;  %v3944_v33 = vrot.slane %v3840_v22, 1 }
 0x47e   : > { %v4086_v8 = vmax.f32 %v4066_v17, 0.0  ;;  %v3973_v15 = vsel %vm11132_vm11, %v3943_v11, %v3944_v33  ;;  %vm11135_vm11 = vmmov %vm11128_vm1 }
 0x47f   : > { %v4023_v43 = vadd.f32 %v4003_v37, %v3973_v15 }
 0x480   : > { %v7481_v62 = vpack.c.bf16 %v4086_v8, %v4085_v14 }
 0x481   : > { %v4043_v0 = vadd.f32 %v4023_v43, %v9488_v31  ;;  %v3842_v41 = vpop.f32.mrf.mxu1  ;;  %v3711_v31 = vadd.f32 %v9866_v58, %v9864_v53 }
 0x482   : > { %7523 = vst [vmem:[#allocation3 + $0x8] sm:$0xff] %v7481_v62   ;;  %v3843_v54 = vadd.f32 %v3842_v41, %v3776_v25  ;;  %v3655_v60 = vpop.f32.mrf.mxu2  ;;  %v3720_v32 = vpop.f32.mrf.mxu3  ;;  %v3716_v62 = vadd.f32 %v3715_v18, %v3650_v40 }
 0x483   : > { %v4067_v44 = vadd.f32 %v9873_v61, %v4043_v0  ;;  %v4005_v3 = vadd.f32 %v3924_v2, %v3711_v31  ;;  %v3786_v21 = vpop.f32.mrf.mxu0 }
 0x484   : > { %v3945_v45 = vrot.slane %v3843_v54, 1 }
 0x485   : > { %v4087_v51 = vmax.f32 %v4067_v44, 0.0  ;;  %v11140_v44 = vld [vmem:[#allocation64_spill] sm:$0xff] }
 0x486   : > { %v3972_v34 = vsel %vm11133_vm8, %v3944_v33, %v3945_v45  ;;  %vm11139_vm8 = vmmov %vm11128_vm1 }
 0x487   : > { %v3984_v35 = vsel %vm9189_vm0, %v3972_v34, 0.0 }
 0x488   : > { %v4024_v6 = vadd.f32 %v4004_v30, %v3984_v35 }
 0x489   : > { %v3844_v11 = vpop.f32.mrf.mxu1 }
 0x48a   : > { %v4044_v25 = vadd.f32 %v4024_v6, %v9509_v49  ;;  %v3845_v59 = vadd.f32 %v3844_v11, %v3778_v56  ;;  %v3713_v49 = vadd.f32 %v9887_v28, %v9885_v52  ;;  %v3657_v33 = vpop.f32.mrf.mxu2  ;;  %v3722_v37 = vpop.f32.mrf.mxu3  ;;  %v3926_v52 = vsel %vm8931_vm6, %v9791_v55, 0.0 }
 0x48b   : > { %v3788_v41 = vpop.f32.mrf.mxu0  ;;  %v4007_v34 = vadd.f32 %v3926_v52, %v3716_v62  ;;  %v3723_v52 = vadd.f32 %v3722_v37, %v3657_v33  ;;  %v3930_v33 = vsel %vm11072_vm9, %v9811_v50, 0.0  ;;  %vm11152_vm9 = vmmov %vm11128_vm1 }
 0x48c   : > { %v4068_v12 = vadd.f32 %v9873_v61, %v4044_v25  ;;  %v3946_v46 = vrot.slane %v3845_v59, 1  ;;  %v4006_v17 = vadd.f32 %v9786_v36, %v3713_v49  ;;  %v3718_v59 = vadd.f32 %v3717_v4, %v3652_v63  ;;  %v11143_v49 = vld [vmem:[#allocation65_spill] sm:$0xff] }
 0x48e   : > { %v4088_v39 = vmax.f32 %v4068_v12, 0.0  ;;  %v3971_v53 = vsel %vm11128_vm1, %v3945_v45, %v3946_v46 }
 0x48f   : > { %v4025_v58 = vadd.f32 %v4005_v3, %v3971_v53  ;;  %v4008_v3 = vadd.f32 %v9796_v27, %v3718_v59 }
 0x490   : > { %v7486_v5 = vpack.c.bf16 %v4088_v39, %v4087_v51 }
 0x491   : > { %v4045_v16 = vadd.f32 %v4025_v58, %v11134_v19  ;;  %v3847_v7 = vpop.f32.mrf.mxu1 }
 0x492   : > { %7524 = vst [vmem:[#allocation3 + $0x10] sm:$0xff] %v7486_v5   ;;  %v3848_v56 = vadd.f32 %v3847_v7, %v3781_v57  ;;  %v11138_v57 = vld [vmem:[#allocation61_spill] sm:$0xff]  ;;  %v3660_v31 = vpop.f32.mrf.mxu2  ;;  %v3725_v11 = vpop.f32.mrf.mxu3  ;;  %v3721_v5 = vadd.f32 %v3720_v32, %v3655_v60  ;;  %v3928_v7 = vsel %vm8950_vm7, %v9801_v29, 0.0  ;;  %v11145_v29 = vld [vmem:[#allocation66_spill] sm:$0xff] }
 0x493   : > { %v4069_v28 = vadd.f32 %v9873_v61, %v4045_v16 }
 0x494   : > { %v3947_v22 = vrot.slane %v3848_v56, 1 }
 0x495   : > { %v4089_v35 = vmax.f32 %v4069_v28, 0.0 }
 0x496   : > { %v3970_v14 = vsel %vm11135_vm11, %v3946_v46, %v3947_v22  ;;  %vm11144_vm11 = vmmov %vm11128_vm1 }
 0x497   : > { %v3986_v15 = vsel %vm9220_vm12, %v3970_v14, 0.0  ;;  %v4009_v14 = vadd.f32 %v3928_v7, %v3721_v5 }
 0x498   : > { %v4026_v43 = vadd.f32 %v4006_v17, %v3986_v15 }
 0x499   : > { %v3849_v0 = vpop.f32.mrf.mxu1 }
 0x49a   : > { %v4046_v36 = vadd.f32 %v4026_v43, %v11138_v57  ;;  %v3850_v54 = vadd.f32 %v3849_v0, %v3783_v47  ;;  %v3791_v47 = vpop.f32.mrf.mxu0  ;;  %v3662_v63 = vpop.f32.mrf.mxu2 }
 0x49b   : > { %v3727_v4 = vpop.f32.mrf.mxu3 }
 0x49c   : > { %v4070_v45 = vadd.f32 %v9873_v61, %v4046_v36  ;;  %v3948_v30 = vrot.slane %v3850_v54, 1  ;;  %v4010_v54 = vadd.f32 %v9806_v13, %v3723_v52 }
 0x49e   : > { %v4090_v6 = vmax.f32 %v4070_v45, 0.0  ;;  %v3969_v40 = vsel %vm11139_vm8, %v3947_v22, %v3948_v30  ;;  %vm11146_vm8 = vmmov %vm11128_vm1 }
 0x49f   : > { %v4027_v18 = vadd.f32 %v4007_v34, %v3969_v40  ;;  %v3726_v40 = vadd.f32 %v3725_v11, %v3660_v31 }
 0x4a0   : > { %v7491_v2 = vpack.c.bf16 %v4090_v6, %v4089_v35 }
 0x4a1   : > { %v4047_v55 = vadd.f32 %v4027_v18, %v11140_v44  ;;  %v3852_v25 = vpop.f32.mrf.mxu1  ;;  %v11149_v44 = vld [vmem:[#allocation67_spill] sm:$0xff] }
 0x4a2   : > { %7525 = vst [vmem:[#allocation3 + $0x18] sm:$0xff] %v7491_v2   ;;  %v3853_v12 = vadd.f32 %v3852_v25, %v3786_v21  ;;  %v3793_v8 = vpop.f32.mrf.mxu0  ;;  %v3665_v57 = vpop.f32.mrf.mxu2 }
 0x4a3   : > { %v4071_v21 = vadd.f32 %v9873_v61, %v4047_v55 }
 0x4a4   : > { %v3949_v46 = vrot.slane %v3853_v12, 1  ;;  %v4011_v12 = vadd.f32 %v3930_v33, %v3726_v40 }
 0x4a5   : > { %v4091_v15 = vmax.f32 %v4071_v21, 0.0 }
 0x4a6   : > { %v3968_v51 = vsel %vm11128_vm1, %v3948_v30, %v3949_v46 }
 0x4a7   : > { %v3988_v53 = vsel %vm9251_vm10, %v3968_v51, 0.0 }
 0x4a8   : > { %v4028_v58 = vadd.f32 %v4008_v3, %v3988_v53  ;;  %v11151_v53 = vld [vmem:[#allocation34_spill] sm:$0xff] }
 0x4a9   : > { %v3854_v19 = vpop.f32.mrf.mxu1 }
 0x4aa   : > { %v4048_v56 = vadd.f32 %v4028_v58, %v11143_v49  ;;  %v3855_v27 = vadd.f32 %v3854_v19, %v3788_v41  ;;  %v3730_v41 = vpop.f32.mrf.mxu3  ;;  %v3796_v35 = vpop.f32.mrf.mxu0  ;;  %v3728_v19 = vadd.f32 %v3727_v4, %v3662_v63 }
 0x4ac   : > { %v4072_v22 = vadd.f32 %v9873_v61, %v4048_v56  ;;  %v3950_v17 = vrot.slane %v3855_v27, 1  ;;  %v4012_v21 = vadd.f32 %v9816_v26, %v3728_v19 }
 0x4ae   : > { %v4092_v43 = vmax.f32 %v4072_v22, 0.0  ;;  %v3967_v60 = vsel %vm11144_vm11, %v3949_v46, %v3950_v17 }
 0x4af   : > { %v4029_v32 = vadd.f32 %v4009_v14, %v3967_v60  ;;  %v3731_v14 = vadd.f32 %v3730_v41, %v3665_v57  ;;  %v11157_v41 = vld [vmem:[#allocation68_spill] sm:$0xff] }
 0x4b0   : > { %v7496_v62 = vpack.c.bf16 %v4092_v43, %v4091_v15  ;;  %v11154_v15 = vld [vmem:[#allocation55_spill] sm:$0xff] }
 0x4b1   : > { %v4049_v0 = vadd.f32 %v4029_v32, %v11145_v29  ;;  %v3857_v1 = vpop.f32.mrf.mxu1  ;;  %vm11155_vm11 = vnez %v11154_v15  ;;  %v11156_v43 = vld [vmem:[#allocation35_spill] sm:$0xff] }
 0x4b2   : > { %7526 = vst [vmem:[#allocation3 + $0x20] sm:$0xff] %v7496_v62   ;;  %v3858_v28 = vadd.f32 %v3857_v1, %v3791_v47  ;;  %v3667_v47 = vpop.f32.mrf.mxu2  ;;  %v3732_v46 = vpop.f32.mrf.mxu3  ;;  %v3932_v63 = vsel %vm11155_vm11, %v9821_v23, 0.0  ;;  %vm11163_vm11 = vmmov %vm11146_vm8 }
 0x4b3   : > { %v4073_v37 = vadd.f32 %v9873_v61, %v4049_v0  ;;  %v3798_v58 = vpop.f32.mrf.mxu0 }
 0x4b4   : > { %v3951_v36 = vrot.slane %v3858_v28, 1 }
 0x4b5   : > { %v4093_v3 = vmax.f32 %v4073_v37, 0.0 }
 0x4b6   : > { %v3966_v45 = vsel %vm11146_vm8, %v3950_v17, %v3951_v36 }
 0x4b7   : > { %v3990_v34 = vsel %vm11066_vm13, %v3966_v45, 0.0  ;;  %vm11150_vm13 = vmmov %vm11128_vm1  ;;  %vm11153_vm1 = vnez %v11078_v9  ;;  %v4013_v9 = vadd.f32 %v3932_v63, %v3731_v14 }
 0x4b8   : > { %v4030_v6 = vadd.f32 %v4010_v54, %v3990_v34  ;;  %v3733_v54 = vadd.f32 %v3732_v46, %v3667_v47 }
 0x4b9   : > { %v3859_v18 = vpop.f32.mrf.mxu1 }
 0x4ba   : > { %v4050_v55 = vadd.f32 %v4030_v6, %v11149_v44  ;;  %v3860_v25 = vadd.f32 %v3859_v18, %v3793_v8  ;;  %v3670_v27 = vpop.f32.mrf.mxu2  ;;  %v3735_v22 = vpop.f32.mrf.mxu3  ;;  %v4014_v40 = vadd.f32 %v9826_v38, %v3733_v54 }
 0x4bb   : > { %v3801_v32 = vpop.f32.mrf.mxu0  ;;  %v3736_v37 = vadd.f32 %v3735_v22, %v3670_v27  ;;  %v1098_v27 = vadd.s32 184, %v8806_v42  ;;  %v11165_v22 = vld [vmem:[#allocation79_spill] sm:$0xff] }
 0x4bc   : > { %v4074_v13 = vadd.f32 %v9873_v61, %v4050_v55  ;;  %v3952_v59 = vrot.slane %v3860_v25, 1  ;;  %v11160_v55 = vld [vmem:[#allocation71_spill] sm:$0xff] }
 0x4be   : > { %v4094_v51 = vmax.f32 %v4074_v13, 0.0  ;;  %v3965_v31 = vsel %vm11150_vm13, %v3951_v36, %v3952_v59  ;;  %vm11158_vm13 = vmmov %vm11146_vm8 }
 0x4bf   : > { %v4031_v11 = vadd.f32 %v4011_v12, %v3965_v31 }
 0x4c0   : > { %v7501_v39 = vpack.c.bf16 %v4094_v51, %v4093_v3 }
 0x4c1   : > { %v4051_v50 = vadd.f32 %v4031_v11, %v11151_v53  ;;  %v3862_v5 = vpop.f32.mrf.mxu1  ;;  %v1097_v53 = vadd.s32 176, %v8806_v42 }
 0x4c2   : > { %7527 = vst [vmem:[#allocation3 + $0x28] sm:$0xff] %v7501_v39   ;;  %v3863_v16 = vadd.f32 %v3862_v5, %v3796_v35  ;;  %v3672_v45 = vpop.f32.mrf.mxu2  ;;  %v3737_v30 = vpop.f32.mrf.mxu3  ;;  %v11164_v5 = vld [vmem:[#allocation69_spill] sm:$0xff] }
 0x4c3   : > { %v4075_v4 = vadd.f32 %v9873_v61, %v4051_v50  ;;  %v3803_v6 = vpop.f32.mrf.mxu0 }
 0x4c4   : > { %v3953_v7 = vrot.slane %v3863_v16, 1 }
 0x4c5   : > { %v4095_v0 = vmax.f32 %v4075_v4, 0.0  ;;  %v11168_v4 = vld [vmem:[#allocation37_spill] sm:$0xff] }
 0x4c6   : > { %v3964_v49 = vsel %vm11152_vm9, %v3952_v59, %v3953_v7  ;;  %vm11159_vm9 = vnez %v11089_v20  ;;  %v11162_v59 = vld [vmem:[#allocation74_spill] sm:$0xff] }
 0x4c7   : > { %v3992_v56 = vsel %vm11153_vm1, %v3964_v49, 0.0  ;;  %vm11161_vm1 = vnez %v11160_v55  ;;  %v1121_v49 = vand.u32 15, %v1097_v53 }
 0x4c8   : > { %v4032_v17 = vadd.f32 %v4012_v21, %v3992_v56  ;;  %v3934_v25 = vsel %vm11161_vm1, %v9831_v48, 0.0 }
 0x4c9   : > { %v3864_v8 = vpop.f32.mrf.mxu1  ;;  %v4015_v31 = vadd.f32 %v3934_v25, %v3736_v37  ;;  %v11175_v25 = vld [vmem:[#allocation72_spill] sm:$0xff] }
 0x4ca   : > { %v4052_v60 = vadd.f32 %v4032_v17, %v11156_v43  ;;  %v3865_v26 = vadd.f32 %v3864_v8, %v3798_v58  ;;  %v3675_v46 = vpop.f32.mrf.mxu2  ;;  %v3740_v38 = vpop.f32.mrf.mxu3 }
 0x4cb   : > { %v3806_v50 = vpop.f32.mrf.mxu0 }
 0x4cc   : > { %v4076_v62 = vadd.f32 %v9873_v61, %v4052_v60  ;;  %v3954_v29 = vrot.slane %v3865_v26, 1  ;;  %v1122_v26 = vand.u32 15, %v1098_v27 }
 0x4ce   : > { %v4096_v1 = vmax.f32 %v4076_v62, 0.0  ;;  %v3963_v52 = vsel %vm11146_vm8, %v3953_v7, %v3954_v29  ;;  %v3738_v7 = vadd.f32 %v3737_v30, %v3672_v45  ;;  %vm2114_vm1 = vcmp.le.s32.totalorder %v1122_v26, 14 }
 0x4cf   : > { %v4033_v28 = vadd.f32 %v4013_v9, %v3963_v52 }
 0x4d0   : > { %v7506_v57 = vpack.c.bf16 %v4096_v1, %v4095_v0  ;;  %v4016_v17 = vadd.f32 %v11165_v22, %v3738_v7  ;;  %v11170_v0 = vld [vmem:[#allocation81_spill] sm:$0xff] }
 0x4d1   : > { %v4053_v36 = vadd.f32 %v4033_v28, %v11157_v41  ;;  %v3867_v23 = vpop.f32.mrf.mxu1  ;;  %v11171_v28 = vld [vmem:[#allocation36_spill] sm:$0xff] }
 0x4d2   : > { %7528 = vst [vmem:[#allocation3 + $0x30] sm:$0xff] %v7506_v57   ;;  %v3868_v34 = vadd.f32 %v3867_v23, %v3801_v32  ;;  %v3677_v14 = vpop.f32.mrf.mxu2  ;;  %v3742_v8 = vpop.f32.mrf.mxu3  ;;  %v3741_v32 = vadd.f32 %v3740_v38, %v3675_v46 }
 0x4d3   : > { %v4077_v13 = vadd.f32 %v9873_v61, %v4053_v36  ;;  %v3743_v62 = vadd.f32 %v3742_v8, %v3677_v14  ;;  %v11172_v36 = vld [vmem:[#allocation38_spill] sm:$0xff] }
 0x4d4   : > { %v3955_v35 = vrot.slane %v3868_v34, 1  ;;  %v3938_v23 = vrot.slane %v11172_v36, 1  ;;  %v11173_v34 = vld [vmem:[#allocation52_spill] sm:$0xff] }
 0x4d5   : > { %v4097_v20 = vmax.f32 %v4077_v13, 0.0 }
 0x4d6   : > { %v3962_v18 = vsel %vm11158_vm13, %v3954_v29, %v3955_v35  ;;  %vm10001_vm13 = vcmp.ge.s32.totalorder %v1121_v49, 1  ;;  %v3808_v29 = vpop.f32.mrf.mxu0 }
 0x4d7   : > { %v3994_v2 = vsel %vm11159_vm9, %v3962_v18, 0.0  ;;  %vm11169_vm9 = vnez %v11168_v4  ;;  %v3936_v1 = vsel %vm10001_vm13, %v11170_v0, 0.0 }
 0x4d8   : > { %v4034_v33 = vadd.f32 %v4014_v40, %v3994_v2  ;;  %v4017_v30 = vadd.f32 %v3936_v1, %v3741_v32 }
 0x4d9   : > { %v3869_v44 = vpop.f32.mrf.mxu1 }
 0x4da   : > { %v4054_v12 = vadd.f32 %v4034_v33, %v11162_v59  ;;  %v3870_v47 = vadd.f32 %v3869_v44, %v3803_v6  ;;  %v11176_v59 = vld [vmem:[#allocation50_spill] sm:$0xff] }
 0x4dc   : > { %v4078_v3 = vadd.f32 %v9873_v61, %v4054_v12  ;;  %v3956_v51 = vrot.slane %v3870_v47, 1 }
 0x4de   : > { %v4098_v11 = vmax.f32 %v4078_v3, 0.0  ;;  %v3961_v39 = vsel %vm11163_vm11, %v3955_v35, %v3956_v51  ;;  %v4018_v35 = vadd.f32 %v11173_v34, %v3743_v62  ;;  %vm11174_vm11 = vmmov %vm11146_vm8 }
 0x4df   : > { %v4035_v48 = vadd.f32 %v4015_v31, %v3961_v39 }
 0x4e0   : > { %v7511_v58 = vpack.c.bf16 %v4098_v11, %v4097_v20 }
 0x4e1   : > { %v4055_v19 = vadd.f32 %v4035_v48, %v11164_v5  ;;  %v3872_v16 = vpop.f32.mrf.mxu1 }
 0x4e2   : > { %7529 = vst [vmem:[#allocation3 + $0x38] sm:$0xff] %v7511_v58   ;;  %v3873_v21 = vadd.f32 %v3872_v16, %v3806_v50 }
 0x4e3   : > { %v4079_v52 = vadd.f32 %v9873_v61, %v4055_v19 }
 0x4e4   : > { %v3957_v56 = vrot.slane %v3873_v21, 1 }
 0x4e5   : > { %v4099_v6 = vmax.f32 %v4079_v52, 0.0 }
 0x4e6   : > { %v3960_v15 = vsel %vm11146_vm8, %v3956_v51, %v3957_v56 }
 0x4e7   : > { %v3996_v43 = vsel %vm11169_vm9, %v3960_v15, 0.0 }
 0x4e8   : > { %v4036_v60 = vadd.f32 %v4016_v17, %v3996_v43 }
 0x4e9   : > { %v3874_v9 = vpop.f32.mrf.mxu1 }
 0x4ea   : > { %v4056_v57 = vadd.f32 %v4036_v60, %v11171_v28  ;;  %v3875_v41 = vadd.f32 %v3874_v9, %v3808_v29 }
 0x4ec   : > { %v4080_v54 = vadd.f32 %v9873_v61, %v4056_v57  ;;  %v3958_v45 = vrot.slane %v3875_v41, 1 }
 0x4ee   : > { %v4100_v40 = vmax.f32 %v4080_v54, 0.0  ;;  %v3959_v18 = vsel %vm11174_vm11, %v3957_v56, %v3958_v45  ;;  %v3978_v2 = vsel %vm11146_vm8, %v3958_v45, %v3938_v23 }
 0x4ef   : > { %v3998_v33 = vsel %vm2114_vm1, %v3978_v2, 0.0  ;;  %v4037_v37 = vadd.f32 %v4017_v30, %v3959_v18 }
 0x4f0   : > { %v7516_v44 = vpack.c.bf16 %v4100_v40, %v4099_v6  ;;  %v4038_v55 = vadd.f32 %v4018_v35, %v3998_v33 }
 0x4f1   : > { %v4057_v13 = vadd.f32 %v4037_v37, %v11175_v25 }
 0x4f2   : > { %7530 = vst [vmem:[#allocation3 + $0x40] sm:$0xff] %v7516_v44   ;;  %v4058_v12 = vadd.f32 %v4038_v55, %v11176_v59 }
 0x4f3   : > { %v4081_v47 = vadd.f32 %v9873_v61, %v4057_v13 }
 0x4f4   : > { %v4082_v46 = vadd.f32 %v9873_v61, %v4058_v12 }
 0x4f5   : > { %v4101_v38 = vmax.f32 %v4081_v47, 0.0 }
 0x4f6   : > { %v4102_v3 = vmax.f32 %v4082_v46, 0.0  ;;  %4146 = sbr.rel (%p6742_p1) target bundleno = 1278 (0x4fe), region = 72 }
 0x4f8   : > { %v7521_v51 = vpack.c.bf16 %v4102_v3, %v4101_v38 }
 0x4fa   : > { %7531 = vst [vmem:[#allocation3 + $0x48] sm:$0xff] %v7521_v51  }
 0x4fb   : > { %v8019_v31 = vmov 0  }
 0x4fc   : > { %4147 = vst [vmem:[#allocation3] sm:$0xf] %v8019_v31 }
 0x4fd   : > { %4148 = vst [vmem:[#allocation3 + $0x4] sm:$0xf] %v8019_v31 }
 0x4fe PF: > { %s11177_s30 = sld [smem:[#allocation21_spill]] }
 0x504   : > { %p6743_p5 = scmp.ne.s32.totalorder %s11177_s30, 1 }
 0x506   : > { %4152 = sbr.rel (%p6743_p5) target bundleno = 1294 (0x50e), region = 76 }
 0x50b   : > { %v8020_v20 = vmov 0  }
 0x50c   : > { %4153 = vst [vmem:[#allocation3 + $0x48] sm:$0xf] %v8020_v20 }
 0x50d   : > { %4154 = vst [vmem:[#allocation3 + $0x4c] sm:$0xf] %v8020_v20 }
 0x50e PF: > { %v6870_v61 = vld [vmem:[#allocation12 + $0xa8] sm:$0xf]  ;;  %v7327_v11 = vld [vmem:[#allocation12 + $0xb0] sm:$0xf0]  ;;  %v7326_v39 = vld [vmem:[#allocation12 + $0xac] sm:$0xf] }
 0x50f   : > { %v6871_v53 = vor.u32 %v7327_v11, %v6870_v61  ;;  %v6872_v50 = vld [vmem:[#allocation12 + $0xb4] sm:$0xf0]  ;;  %v7350_v48 = vld [vmem:[#allocation12 + $0x16c] sm:$0xf]  ;;  %v6858_v16 = vld [vmem:[#allocation12 + $0x90] sm:$0xf] }
 0x510   : > { %v6968_v58 = vld [vmem:[#allocation12 + $0x174] sm:$0xf0]  ;;  %v6875_v5 = vor.u32 %v7326_v39, %v6872_v50  ;;  %v7324_v7 = vld [vmem:[#allocation12 + $0x98] sm:$0xf0]  ;;  %v7323_v21 = vld [vmem:[#allocation12 + $0x94] sm:$0xf] }
 0x511   : > { %v6971_v19 = vor.u32 %v7350_v48, %v6968_v58  ;;  %4395 = vmatpush.bf16.msra.mxu2 %v6871_v53  ;;  %v6859_v49 = vor.u32 %v7324_v7, %v6858_v16  ;;  %v6860_v56 = vld [vmem:[#allocation12 + $0x9c] sm:$0xf0]  ;;  %v7347_v27 = vld [vmem:[#allocation12 + $0x154] sm:$0xf]  ;;  %v6846_v8 = vld [vmem:[#allocation12 + $0x78] sm:$0xf] }
 0x512   : > { %v6956_v22 = vld [vmem:[#allocation12 + $0x15c] sm:$0xf0]  ;;  %4451 = vmatpush.bf16.msra.mxu3 %v6875_v5  ;;  %v6863_v17 = vor.u32 %v7323_v21, %v6860_v56  ;;  %v7321_v15 = vld [vmem:[#allocation12 + $0x80] sm:$0xf0]  ;;  %v7320_v63 = vld [vmem:[#allocation12 + $0x7c] sm:$0xf] }
 0x513   : > { %4909 = vmatpush.bf16.msrb.mxu0 %v6971_v19  ;;  %v6959_v14 = vor.u32 %v7347_v27, %v6956_v22  ;;  %v6848_v4 = vld [vmem:[#allocation12 + $0x84] sm:$0xf0]  ;;  %v7344_v43 = vld [vmem:[#allocation12 + $0x13c] sm:$0xf]  ;;  %v6847_v26 = vor.u32 %v7321_v15, %v6846_v8  ;;  %v6834_v29 = vld [vmem:[#allocation12 + $0x60] sm:$0xf] }
 0x514   : > { %v6944_v60 = vld [vmem:[#allocation12 + $0x144] sm:$0xf0]  ;;  %v6851_v32 = vor.u32 %v7320_v63, %v6848_v4  ;;  %v7318_v9 = vld [vmem:[#allocation12 + $0x68] sm:$0xf0]  ;;  %v7317_v0 = vld [vmem:[#allocation12 + $0x64] sm:$0xf] }
 0x515   : > { %4396 = vmatpush.bf16.msra.mxu2 %v6859_v49  ;;  %v6947_v62 = vor.u32 %v7344_v43, %v6944_v60  ;;  %v6836_v1 = vld [vmem:[#allocation12 + $0x6c] sm:$0xf0]  ;;  %v7341_v52 = vld [vmem:[#allocation12 + $0x124] sm:$0xf]  ;;  %v6835_v57 = vor.u32 %v7318_v9, %v6834_v29  ;;  %v6822_v23 = vld [vmem:[#allocation12 + $0x48] sm:$0xf] }
 0x516   : > { %4452 = vmatpush.bf16.msra.mxu3 %v6863_v17  ;;  %v6932_v28 = vld [vmem:[#allocation12 + $0x12c] sm:$0xf0]  ;;  %v6839_v41 = vor.u32 %v7317_v0, %v6836_v1  ;;  %v7315_v54 = vld [vmem:[#allocation12 + $0x50] sm:$0xf0]  ;;  %v7314_v45 = vld [vmem:[#allocation12 + $0x4c] sm:$0xf] }
 0x517   : > { %4910 = vmatpush.bf16.msrb.mxu0 %v6959_v14  ;;  %v6935_v36 = vor.u32 %v7341_v52, %v6932_v28  ;;  %v6824_v30 = vld [vmem:[#allocation12 + $0x54] sm:$0xf0]  ;;  %v7338_v34 = vld [vmem:[#allocation12 + $0x10c] sm:$0xf]  ;;  %v6823_v6 = vor.u32 %v7315_v54, %v6822_v23  ;;  %v6810_v2 = vld [vmem:[#allocation12 + $0x30] sm:$0xf] }
 0x518   : > { %v6920_v35 = vld [vmem:[#allocation12 + $0x114] sm:$0xf0]  ;;  %v6827_v40 = vor.u32 %v7314_v45, %v6824_v30  ;;  %v7312_v33 = vld [vmem:[#allocation12 + $0x38] sm:$0xf0]  ;;  %v7311_v37 = vld [vmem:[#allocation12 + $0x34] sm:$0xf] }
 0x519   : > { %4397 = vmatpush.bf16.msra.mxu2 %v6847_v26  ;;  %v6923_v18 = vor.u32 %v7338_v34, %v6920_v35  ;;  %v6812_v44 = vld [vmem:[#allocation12 + $0x3c] sm:$0xf0]  ;;  %v7335_v55 = vld [vmem:[#allocation12 + $0xf4] sm:$0xf]  ;;  %v6811_v13 = vor.u32 %v7312_v33, %v6810_v2  ;;  %v6798_v47 = vld [vmem:[#allocation12 + $0x18] sm:$0xf] }
 0x51a   : > { %4453 = vmatpush.bf16.msra.mxu3 %v6851_v32  ;;  %v6908_v25 = vld [vmem:[#allocation12 + $0xfc] sm:$0xf0]  ;;  %v6815_v59 = vor.u32 %v7311_v37, %v6812_v44  ;;  %v7309_v46 = vld [vmem:[#allocation12 + $0x20] sm:$0xf0]  ;;  %v7308_v38 = vld [vmem:[#allocation12 + $0x1c] sm:$0xf] }
 0x51b   : > { %4911 = vmatpush.bf16.msrb.mxu0 %v6947_v62  ;;  %v6911_v12 = vor.u32 %v7335_v55, %v6908_v25  ;;  %v6800_v3 = vld [vmem:[#allocation12 + $0x24] sm:$0xf0]  ;;  %v7332_v51 = vld [vmem:[#allocation12 + $0xdc] sm:$0xf]  ;;  %v6799_v20 = vor.u32 %v7309_v46, %v6798_v47  ;;  %v6786_v61 = vld [vmem:[#allocation12] sm:$0xf] }
 0x51c   : > { %v6896_v31 = vld [vmem:[#allocation12 + $0xe4] sm:$0xf0]  ;;  %v6803_v11 = vor.u32 %v7308_v38, %v6800_v3  ;;  %v7306_v53 = vld [vmem:[#allocation12 + $0x8] sm:$0xf0]  ;;  %v7305_v50 = vld [vmem:[#allocation12 + $0x4] sm:$0xf] }
 0x51d   : > { %4398 = vmatpush.bf16.msra.mxu2 %v6835_v57  ;;  %v6899_v39 = vor.u32 %v7332_v51, %v6896_v31  ;;  %v6788_v48 = vld [vmem:[#allocation12 + $0xc] sm:$0xf0]  ;;  %v7329_v58 = vld [vmem:[#allocation12 + $0xc4] sm:$0xf]  ;;  %v7328_v16 = vld [vmem:[#allocation12 + $0xb8] sm:$0xf0]  ;;  %v6787_v49 = vor.u32 %v7306_v53, %v6786_v61 }
 0x51e   : > { %4454 = vmatpush.bf16.msra.mxu3 %v6839_v41  ;;  %v6884_v5 = vld [vmem:[#allocation12 + $0xcc] sm:$0xf0]  ;;  %v6966_v7 = vld [vmem:[#allocation12 + $0x168] sm:$0xf]  ;;  %v7351_v21 = vld [vmem:[#allocation12 + $0x170] sm:$0xf0]  ;;  %v6791_v56 = vor.u32 %v7305_v50, %v6788_v48 }
 0x51f   : > { %4912 = vmatpush.bf16.msrb.mxu0 %v6935_v36  ;;  %v6878_v19 = vld [vmem:[#allocation12 + $0xb0] sm:$0xf]  ;;  %v6887_v27 = vor.u32 %v7329_v58, %v6884_v5  ;;  %v6967_v14 = vor.u32 %v7351_v21, %v6966_v7  ;;  %v6866_v8 = vld [vmem:[#allocation12 + $0x98] sm:$0xf]  ;;  %v7325_v15 = vld [vmem:[#allocation12 + $0xa0] sm:$0xf0] }
 0x520   : > { %v10029_v22 = vld [vmem:[#allocation3] sm:$0xff]  ;;  %v6879_v17 = vor.u32 %v7328_v16, %v6878_v19  ;;  %v7348_v4 = vld [vmem:[#allocation12 + $0x158] sm:$0xf0]  ;;  %v6867_v43 = vor.u32 %v7325_v15, %v6866_v8  ;;  %v6854_v26 = vld [vmem:[#allocation12 + $0x80] sm:$0xf]  ;;  %vm11178_vm13 = vcmp.lt.s32.totalorder %v8806_v42, 1 }
 0x521   : > { %4399 = vmatpush.bf16.msra.mxu2 %v6823_v6  ;;  %v6954_v63 = vld [vmem:[#allocation12 + $0x150] sm:$0xf]  ;;  %v7322_v32 = vld [vmem:[#allocation12 + $0x88] sm:$0xf0]  ;;  %v6942_v62 = vld [vmem:[#allocation12 + $0x138] sm:$0xf] }
 0x522   : > { %4455 = vmatpush.bf16.msra.mxu3 %v6827_v40  ;;  %v6955_v60 = vor.u32 %v7348_v4, %v6954_v63  ;;  %v7345_v29 = vld [vmem:[#allocation12 + $0x140] sm:$0xf0]  ;;  %v6855_v9 = vor.u32 %v7322_v32, %v6854_v26  ;;  %v10034_v1 = vld [vmem:[#allocation3 + $0x8] sm:$0xff]  ;;  %v6842_v52 = vld [vmem:[#allocation12 + $0x68] sm:$0xf]  ;;  %s11272_s27 = sld [smem:[#allocation88_spill]] }
 0x523   : > { %4913 = vmatpush.bf16.msrb.mxu0 %v6923_v18  ;;  %v6943_v0 = vor.u32 %v7345_v29, %v6942_v62  ;;  %v7319_v28 = vld [vmem:[#allocation12 + $0x70] sm:$0xf0]  ;;  %v6930_v57 = vld [vmem:[#allocation12 + $0x120] sm:$0xf]  ;;  %v7342_v36 = vld [vmem:[#allocation12 + $0x128] sm:$0xf0] }
 0x524   : > { %v6843_v41 = vor.u32 %v7319_v28, %v6842_v52  ;;  %v6931_v23 = vor.u32 %v7342_v36, %v6930_v57  ;;  %v10039_v54 = vld [vmem:[#allocation3 + $0x10] sm:$0xff]  ;;  %v10044_v45 = vld [vmem:[#allocation3 + $0x18] sm:$0xff]  ;;  %v6830_v30 = vld [vmem:[#allocation12 + $0x50] sm:$0xf]  ;;  %s11297_s19 = sld [smem:[#allocation21_spill]]  ;;  %s5707_s15 = sshll.u32 %s10025_s8, 4  ;;  %s5708_s15 = int_to_ptr.vmem [resolvable:$true] %s5707_s15 }
 0x525   : > { %4400 = vmatpush.bf16.msra.mxu2 %v6811_v13  ;;  %v7316_v34 = vld [vmem:[#allocation12 + $0x58] sm:$0xf0]  ;;  %v6918_v35 = vld [vmem:[#allocation12 + $0x108] sm:$0xf]  ;;  %v7339_v40 = vld [vmem:[#allocation12 + $0x110] sm:$0xf0] }
 0x526   : > { %4456 = vmatpush.bf16.msra.mxu3 %v6815_v59  ;;  %v6831_v6 = vor.u32 %v7316_v34, %v6830_v30  ;;  %v6919_v18 = vor.u32 %v7339_v40, %v6918_v35  ;;  %v10049_v2 = vld [vmem:[#allocation3 + $0x20] sm:$0xff]  ;;  %v6818_v33 = vld [vmem:[#allocation12 + $0x38] sm:$0xf]  ;;  %v7313_v37 = vld [vmem:[#allocation12 + $0x40] sm:$0xf0]  ;;  %s11298_s13 = sld [smem:[#allocation22_spill]] }
 0x527   : > { %4914 = vmatpush.bf16.msrb.mxu0 %v6911_v12  ;;  %v6906_v44 = vld [vmem:[#allocation12 + $0xf0] sm:$0xf]  ;;  %v6819_v55 = vor.u32 %v7313_v37, %v6818_v33  ;;  %v7336_v25 = vld [vmem:[#allocation12 + $0xf8] sm:$0xf0]  ;;  %v6806_v12 = vld [vmem:[#allocation12 + $0x20] sm:$0xf] }
 0x528   : > { %v6907_v13 = vor.u32 %v7336_v25, %v6906_v44  ;;  %v10054_v59 = vld [vmem:[#allocation3 + $0x28] sm:$0xff]  ;;  %v7310_v47 = vld [vmem:[#allocation12 + $0x28] sm:$0xf0]  ;;  %v7333_v3 = vld [vmem:[#allocation12 + $0xe0] sm:$0xf0]  ;;  %s11307_s16 = sld [smem:[#allocation89_spill]] }
 0x529   : > { %4401 = vmatpush.bf16.msra.mxu2 %v6799_v20  ;;  %v6894_v46 = vld [vmem:[#allocation12 + $0xd8] sm:$0xf]  ;;  %v6807_v38 = vor.u32 %v7310_v47, %v6806_v12  ;;  %v10059_v31 = vld [vmem:[#allocation3 + $0x30] sm:$0xff]  ;;  %v6974_v20 = vld [vmem:[#allocation12 + $0x170] sm:$0xf]  ;;  %s5693_s20 = scalar_lea.sflag [#allocation6], %s8262_s7 }
 0x52a   : > { %4457 = vmatpush.bf16.msra.mxu3 %v6803_v11  ;;  %v6895_v51 = vor.u32 %v7333_v3, %v6894_v46  ;;  %v7352_v61 = vld [vmem:[#allocation12 + $0x178] sm:$0xf0]  ;;  %v6962_v48 = vld [vmem:[#allocation12 + $0x158] sm:$0xf]  ;;  %v7349_v58 = vld [vmem:[#allocation12 + $0x160] sm:$0xf0] }
 0x52b   : > { %4915 = vmatpush.bf16.msrb.mxu0 %v6899_v39  ;;  %v6975_v11 = vor.u32 %v7352_v61, %v6974_v20  ;;  %v7070_v39 = vld [vmem:[#allocation12 + $0x230] sm:$0xf]  ;;  %v7376_v53 = vld [vmem:[#allocation12 + $0x238] sm:$0xf0]  ;;  %v6963_v5 = vor.u32 %v7349_v58, %v6962_v48  ;;  %v7058_v19 = vld [vmem:[#allocation12 + $0x218] sm:$0xf] }
 0x52c   : > { %v7071_v50 = vor.u32 %v7376_v53, %v7070_v39  ;;  %v7373_v16 = vld [vmem:[#allocation12 + $0x220] sm:$0xf0]  ;;  %v6950_v21 = vld [vmem:[#allocation12 + $0x140] sm:$0xf]  ;;  %v6938_v8 = vld [vmem:[#allocation12 + $0x128] sm:$0xf] }
 0x52d   : > { %4402 = vmatpush.bf16.msra.mxu2 %v6787_v49  ;;  %4964 = vmatpush.bf16.msra.mxu1 %v6975_v11  ;;  %v7059_v7 = vor.u32 %v7373_v16, %v7058_v19  ;;  %v7346_v49 = vld [vmem:[#allocation12 + $0x148] sm:$0xf0]  ;;  %v7343_v15 = vld [vmem:[#allocation12 + $0x130] sm:$0xf0]  ;;  %v7034_v4 = vld [vmem:[#allocation12 + $0x1e8] sm:$0xf] }
 0x52e   : > { %4458 = vmatpush.bf16.msra.mxu3 %v6791_v56  ;;  %v7046_v56 = vld [vmem:[#allocation12 + $0x200] sm:$0xf]  ;;  %v6939_v63 = vor.u32 %v7343_v15, %v6938_v8  ;;  %v6926_v32 = vld [vmem:[#allocation12 + $0x110] sm:$0xf]  ;;  %v7340_v62 = vld [vmem:[#allocation12 + $0x118] sm:$0xf0] }
 0x52f   : > { %4916 = vmatpush.bf16.msrb.mxu0 %v6887_v27  ;;  %v6951_v27 = vor.u32 %v7346_v49, %v6950_v21  ;;  %v6794_v29 = vld [vmem:[#allocation12 + $0x8] sm:$0xf]  ;;  %v6927_v52 = vor.u32 %v7340_v62, %v6926_v32  ;;  %v7330_v57 = vld [vmem:[#allocation12 + $0xc8] sm:$0xf0]  ;;  %v6914_v34 = vld [vmem:[#allocation12 + $0xf8] sm:$0xf] }
 0x530   : > { %4403 = vmatmul.bf16.vlgmr.msra.gmra.mxu2 %v10029_v22  ;;  %v7337_v35 = vld [vmem:[#allocation12 + $0x100] sm:$0xf0]  ;;  %v7010_v40 = vld [vmem:[#allocation12 + $0x1b8] sm:$0xf]  ;;  %v6902_v37 = vld [vmem:[#allocation12 + $0xe0] sm:$0xf] }
 0x531   : > { %4506 = vmatpush.bf16.msrb.mxu2 %v6879_v17  ;;  %4459 = vmatmul.bf16.vlgmr.msra.gmra.mxu3 %v10029_v22  ;;  %v7370_v17 = vld [vmem:[#allocation12 + $0x208] sm:$0xf0]  ;;  %v6998_v25 = vld [vmem:[#allocation12 + $0x1a0] sm:$0xf]  ;;  %v6890_v47 = vld [vmem:[#allocation12 + $0xc8] sm:$0xf] }
 0x532   : > { %4853 = vmatpush.bf16.msrb.mxu3 %v6967_v14  ;;  %4917 = vmatmul.bf16.vlgmr.msrb.gmra.mxu0 %v10029_v22  ;;  %v7047_v14 = vor.u32 %v7370_v17, %v7046_v56  ;;  %v7334_v44 = vld [vmem:[#allocation12 + $0xe8] sm:$0xf0]  ;;  %v7331_v46 = vld [vmem:[#allocation12 + $0xd0] sm:$0xf0]  ;;  %v6986_v3 = vld [vmem:[#allocation12 + $0x188] sm:$0xf] }
 0x533   : > { %5438 = vmatpush.bf16.msra.mxu0 %v7071_v50  ;;  %4965 = vmatpush.bf16.msra.mxu1 %v6963_v5  ;;  %v10069_v20 = vld [vmem:[#allocation3 + $0x40] sm:$0xff]  ;;  %v7062_v39 = vld [vmem:[#allocation12 + $0x228] sm:$0xf]  ;;  %v7374_v19 = vld [vmem:[#allocation12 + $0x22c] sm:$0xf]  ;;  %s7073_s17 = sshll.u32 %s11297_s19, 4 }
 0x534   : > { %v7375_v53 = vld [vmem:[#allocation12 + $0x230] sm:$0xf0]  ;;  %v7064_v16 = vld [vmem:[#allocation12 + $0x234] sm:$0xf0]  ;;  %vm11179_vm9 = vmmov %vm11178_vm13  ;;  %s7074_s3 = sshll.u32 %s11298_s13, 5  ;;  %s7897_s19 = scalar_lea.hbm %s11307_s16, 512 }
 0x535   : > { %4507 = vmatpush.bf16.msrb.mxu2 %v6867_v43  ;;  %v7367_v43 = vld [vmem:[#allocation12 + $0x1f0] sm:$0xf0]  ;;  %v7063_v50 = vor.u32 %v7375_v53, %v7062_v39  ;;  %v10083_v17 = vld [vmem:[#allocation3 + $0x48] sm:$0xff]  ;;  %vm11182_vm11 = vmmov %vm11179_vm9  ;;  %s5704_s12 = sadd.s32 %s7074_s3, %s7073_s17 }
 0x536   : > { %4854 = vmatpush.bf16.msrb.mxu3 %v6955_v60  ;;  %v10064_v60 = vld [vmem:[#allocation3 + $0x38] sm:$0xff]  ;;  %v7035_v26 = vor.u32 %v7367_v43, %v7034_v4  ;;  %v11180_v62 = vld [vmem:[#allocation45_spill] sm:$0xff]  ;;  %vm11183_vm8 = vmmov %vm11179_vm9  ;;  %s7075_s14 = sshll.u32 %s5704_s12, 3 }
 0x537   : > { %5439 = vmatpush.bf16.msra.mxu0 %v7059_v7  ;;  %4966 = vmatpush.bf16.msra.mxu1 %v6951_v27  ;;  %v10079_v7 = vor.u32 %v7374_v19, %v7064_v16  ;;  %vm11181_vm1 = vnez %v11180_v62  ;;  %s5706_s29 = scalar_lea.hbm %s11307_s16, %s7075_s14 }
 0x538   : > { %s5709_s6 = sshll.u32 %s5706_s29, 4  ;;  %s5710_s6 = int_to_ptr.hbm [resolvable:$true] %s5709_s6 }
 0x539   : > { %4508 = vmatpush.bf16.msrb.mxu2 %v6855_v9  ;;  %v7307_v9 = vld [vmem:[#allocation12 + $0x10] sm:$0xf0]  ;;  %s7891_s30 = sshra.s32 %s5710_s6, 4  ;;  %s7892_s30 = int_to_ptr.hbm [resolvable:$true] %s7891_s30 }
 0x53a   : > { %4855 = vmatpush.bf16.msrb.mxu3 %v6943_v0  ;;  %v6882_v0 = vld [vmem:[#allocation12 + $0xc0] sm:$0xf]  ;;  %v6795_v28 = vor.u32 %v7307_v9, %v6794_v29  ;;  %s7893_s23 = scalar_lea.hbm %s7892_s30, 128  ;;  %p7898_p2 = scmp.lt.s32.totalorder %s7892_s30, %s11307_s16 }
 0x53b   : > { %5440 = vmatpush.bf16.msra.mxu0 %v7047_v14  ;;  %4967 = vmatpush.bf16.msra.mxu1 %v6939_v63  ;;  %v6883_v36 = vor.u32 %v7330_v57, %v6882_v0  ;;  %v7050_v0 = vld [vmem:[#allocation12 + $0x210] sm:$0xf]  ;;  %p7894_p6 = scmp.ne.s32.totalorder %s7892_s30, %s7893_s23  ;;  %p7899_p10 = scmp.lt.s32.totalorder %s7897_s19, %s7893_s23 }
 0x53d   : > { %4509 = vmatpush.bf16.msrb.mxu2 %v6843_v41  ;;  %v7022_v41 = vld [vmem:[#allocation12 + $0x1d0] sm:$0xf]  ;;  %p7895_p4 = pnand %p7894_p6, %p8168_p3  ;;  %p7900_p12 = por %p7899_p10, %p7898_p2 }
 0x53e   : > { %4856 = vmatpush.bf16.msrb.mxu3 %v6931_v23  ;;  %v7364_v23 = vld [vmem:[#allocation12 + $0x1d8] sm:$0xf0] }
 0x53f   : > { %5441 = vmatpush.bf16.msra.mxu0 %v7035_v26  ;;  %4968 = vmatpush.bf16.msra.mxu1 %v6927_v52  ;;  %v7023_v30 = vor.u32 %v7364_v23, %v7022_v41  ;;  %v7372_v52 = vld [vmem:[#allocation12 + $0x218] sm:$0xf0]  ;;  %v7052_v41 = vld [vmem:[#allocation12 + $0x21c] sm:$0xf0]  ;;  %p7896_p9 = pneg %p7895_p4 }
 0x540   : > { %4408 = vmatmul.bf16.gmra.mxu2 %v10034_v1  ;;  %v7051_v57 = vor.u32 %v7372_v52, %v7050_v0 }
 0x541   : > { %4464 = vmatmul.bf16.gmra.mxu3 %v10034_v1  ;;  %4510 = vmatpush.bf16.msrb.mxu2 %v6831_v6  ;;  %v6915_v6 = vor.u32 %v7337_v35, %v6914_v34  ;;  %p7901_p8 = pnand %p7900_p12, %p7896_p9 }
 0x542   : > { %4920 = vmatmul.bf16.gmra.mxu0 %v10034_v1  ;;  %4857 = vmatpush.bf16.msrb.mxu3 %v6919_v18  ;;  %v7361_v18 = vld [vmem:[#allocation12 + $0x1c0] sm:$0xf0] }
 0x543   : > { %5442 = vmatpush.bf16.msra.mxu0 %v7023_v30  ;;  %v7011_v33 = vor.u32 %v7361_v18, %v7010_v40  ;;  %4969 = vmatpush.bf16.msra.mxu1 %v6915_v6 }
 0x545   : > { %4511 = vmatpush.bf16.msrb.mxu2 %v6819_v55  ;;  %v6903_v55 = vor.u32 %v7334_v44, %v6902_v37 }
 0x546   : > { %4858 = vmatpush.bf16.msrb.mxu3 %v6907_v13  ;;  %v7358_v13 = vld [vmem:[#allocation12 + $0x1a8] sm:$0xf0] }
 0x547   : > { %5443 = vmatpush.bf16.msra.mxu0 %v7011_v33  ;;  %v6999_v12 = vor.u32 %v7358_v13, %v6998_v25  ;;  %4970 = vmatpush.bf16.msra.mxu1 %v6903_v55 }
 0x549   : > { %4512 = vmatpush.bf16.msrb.mxu2 %v6807_v38  ;;  %v6891_v38 = vor.u32 %v7331_v46, %v6890_v47  ;;  %v7038_v47 = vld [vmem:[#allocation12 + $0x1f8] sm:$0xf]  ;;  %v7369_v46 = vld [vmem:[#allocation12 + $0x200] sm:$0xf0] }
 0x54a   : > { %4859 = vmatpush.bf16.msrb.mxu3 %v6895_v51  ;;  %v7355_v51 = vld [vmem:[#allocation12 + $0x190] sm:$0xf0] }
 0x54b   : > { %5444 = vmatpush.bf16.msra.mxu0 %v6999_v12  ;;  %v6987_v61 = vor.u32 %v7355_v51, %v6986_v3  ;;  %4971 = vmatpush.bf16.msra.mxu1 %v6891_v38  ;;  %v7039_v38 = vor.u32 %v7369_v46, %v7038_v47 }
 0x54d   : > { %4513 = vmatpush.bf16.msrb.mxu2 %v6795_v28  ;;  %v7371_v28 = vld [vmem:[#allocation12 + $0x214] sm:$0xf] }
 0x54e   : > { %4860 = vmatpush.bf16.msrb.mxu3 %v6883_v36  ;;  %4972 = vmatmul.bf16.vlgmr.msra.gmra.mxu1 %v10029_v22  ;;  %v10105_v36 = vor.u32 %v7371_v28, %v7052_v41  ;;  %v7026_v41 = vld [vmem:[#allocation12 + $0x1e0] sm:$0xf] }
 0x54f   : > { %5445 = vmatpush.bf16.msra.mxu0 %v6987_v61  ;;  %5327 = vmatpush.bf16.msrb.mxu1 %v7063_v50 }
 0x550   : > { %4413 = vmatmul.bf16.gmra.mxu2 %v10039_v54 }
 0x551   : > { %4469 = vmatmul.bf16.gmra.mxu3 %v10039_v54  ;;  %7540 = vmatpush.bf16.msra.mxu2 %v7063_v50  ;;  %v7368_v50 = vld [vmem:[#allocation12 + $0x1fc] sm:$0xf] }
 0x552   : > { %4925 = vmatmul.bf16.gmra.mxu0 %v10039_v54  ;;  %7548 = vmatpush.bf16.msra.mxu3 %v10079_v7 }
 0x553   : > { %5328 = vmatpush.bf16.msrb.mxu1 %v7051_v57 }
 0x555   : > { %7541 = vmatpush.bf16.msra.mxu2 %v7051_v57 }
 0x556   : > { %7549 = vmatpush.bf16.msra.mxu3 %v10105_v36 }
 0x557   : > { %5329 = vmatpush.bf16.msrb.mxu1 %v7039_v38 }
 0x559   : > { %7542 = vmatpush.bf16.msra.mxu2 %v7039_v38 }
 0x55e   : > { %4975 = vmatmul.bf16.gmra.mxu1 %v10034_v1 }
 0x560   : > { %4418 = vmatmul.bf16.gmra.mxu2 %v10044_v45 }
 0x561   : > { %4474 = vmatmul.bf16.gmra.mxu3 %v10044_v45 }
 0x562   : > { %4930 = vmatmul.bf16.gmra.mxu0 %v10044_v45 }
 0x56e   : > { %4980 = vmatmul.bf16.gmra.mxu1 %v10039_v54 }
 0x570   : > { %4423 = vmatmul.bf16.gmra.mxu2 %v10049_v2 }
 0x571   : > { %4479 = vmatmul.bf16.gmra.mxu3 %v10049_v2 }
 0x572   : > { %4935 = vmatmul.bf16.gmra.mxu0 %v10049_v2 }
 0x57e   : > { %4985 = vmatmul.bf16.gmra.mxu1 %v10044_v45 }
 0x580   : > { %4428 = vmatmul.bf16.gmra.mxu2 %v10054_v59 }
 0x581   : > { %4484 = vmatmul.bf16.gmra.mxu3 %v10054_v59 }
 0x582   : > { %4940 = vmatmul.bf16.gmra.mxu0 %v10054_v59 }
 0x58e   : > { %4990 = vmatmul.bf16.gmra.mxu1 %v10049_v2 }
 0x590   : > { %4433 = vmatmul.bf16.gmra.mxu2 %v10059_v31 }
 0x591   : > { %4489 = vmatmul.bf16.gmra.mxu3 %v10059_v31 }
 0x592   : > { %4945 = vmatmul.bf16.gmra.mxu0 %v10059_v31 }
 0x59e   : > { %4995 = vmatmul.bf16.gmra.mxu1 %v10054_v59 }
 0x5a0   : > { %4438 = vmatmul.bf16.gmra.mxu2 %v10064_v60 }
 0x5a1   : > { %4494 = vmatmul.bf16.gmra.mxu3 %v10064_v60 }
 0x5a2   : > { %4950 = vmatmul.bf16.gmra.mxu0 %v10064_v60 }
 0x5ae   : > { %5000 = vmatmul.bf16.gmra.mxu1 %v10059_v31 }
 0x5af   : > { %v4918_v11 = vpop.f32.mrf.mxu0 }
 0x5b0   : > { %4443 = vmatmul.bf16.gmra.mxu2 %v10069_v20 }
 0x5b1   : > { %4499 = vmatmul.bf16.gmra.mxu3 %v10069_v20 }
 0x5b2   : > { %4955 = vmatmul.bf16.gmra.mxu0 %v10069_v20 }
 0x5b3   : > { %v10075_v48 = vpop.f32.mrf.mxu2 }
 0x5b4   : > { %v10077_v58 = vpop.f32.mrf.mxu3  ;;  %v10852_v49 = vrot.slane %v10075_v48, 7 }
 0x5b7   : > { %v4919_v5 = vpop.f32.mrf.mxu0 }
 0x5b8   : > { %v7040_v5 = vld [vmem:[#allocation12 + $0x204] sm:$0xf0] }
 0x5b9   : > { %v10133_v19 = vor.u32 %v7368_v50, %v7040_v5 }
 0x5bb   : > { %v4406_v21 = vpop.f32.mrf.mxu2  ;;  %7550 = vmatpush.bf16.msra.mxu3 %v10133_v19 }
 0x5bc   : > { %v4563_v56 = vrot.slane %v4406_v21, 7  ;;  %v4462_v27 = vpop.f32.mrf.mxu3 }
 0x5be   : > { %v4593_v14 = vsel %vm11178_vm13, %v10852_v49, %v4563_v56  ;;  %vm11185_vm13 = vmmov %vm11183_vm8  ;;  %5005 = vmatmul.bf16.gmra.mxu1 %v10064_v60 }
 0x5bf   : > { %v10089_v8 = vpop.f32.mrf.mxu0  ;;  %v10091_v15 = vadd.f32 %v4593_v14, %v4462_v27 }
 0x5c0   : > { %4446 = vmatmul.bf16.gmra.mxu2 %v10083_v17 }
 0x5c1   : > { %4502 = vmatmul.bf16.gmra.mxu3 %v10083_v17 }
 0x5c2   : > { %4960 = vmatmul.bf16.gmra.mxu0 %v10083_v17 }
 0x5c3   : > { %v4409_v63 = vpop.f32.mrf.mxu2 }
 0x5c4   : > { %v4564_v4 = vrot.slane %v4409_v63, 7  ;;  %v4465_v43 = vpop.f32.mrf.mxu3 }
 0x5c6   : > { %v4592_v26 = vsel %vm11179_vm9, %v4563_v56, %v4564_v4  ;;  %vm11186_vm9 = vmmov %vm11183_vm8 }
 0x5c7   : > { %v10099_v32 = vpop.f32.mrf.mxu0  ;;  %v4597_v29 = vsel %vm11181_vm1, %v4592_v26, 0.0 }
 0x5c8   : > { %v10103_v9 = vadd.f32 %v4597_v29, %v4465_v43 }
 0x5cb   : > { %v4411_v23 = vpop.f32.mrf.mxu2 }
 0x5cc   : > { %v4565_v30 = vrot.slane %v4411_v23, 7  ;;  %v4467_v34 = vpop.f32.mrf.mxu3  ;;  %v7366_v23 = vld [vmem:[#allocation12 + $0x1e8] sm:$0xf0] }
 0x5ce   : > { %v4591_v35 = vsel %vm11182_vm11, %v4564_v4, %v4565_v30  ;;  %vm11188_vm11 = vmmov %vm11183_vm8  ;;  %5010 = vmatmul.bf16.gmra.mxu1 %v10069_v20 }
 0x5cf   : > { %v10110_v6 = vpop.f32.mrf.mxu0  ;;  %v10112_v40 = vadd.f32 %v4591_v35, %v4467_v34  ;;  %v7027_v34 = vor.u32 %v7366_v23, %v7026_v41  ;;  %v7028_v35 = vld [vmem:[#allocation12 + $0x1ec] sm:$0xf0] }
 0x5d0   : > { %4514 = vmatmul.bf16.vlgmr.msrb.gmra.mxu2 %v10029_v22 }
 0x5d1   : > { %4861 = vmatmul.bf16.vlgmr.msrb.gmra.mxu3 %v10029_v22  ;;  %7543 = vmatpush.bf16.msra.mxu2 %v7027_v34 }
 0x5d2   : > { %5446 = vmatmul.bf16.vlgmr.msra.gmra.mxu0 %v10029_v22  ;;  %5330 = vmatpush.bf16.msrb.mxu1 %v7027_v34  ;;  %v7362_v34 = vld [vmem:[#allocation12 + $0x1cc] sm:$0xf] }
 0x5d3   : > { %v4414_v18 = vpop.f32.mrf.mxu2 }
 0x5d4   : > { %v4566_v33 = vrot.slane %v4414_v18, 7  ;;  %v4470_v37 = vpop.f32.mrf.mxu3 }
 0x5d6   : > { %v4590_v44 = vsel %vm11183_vm8, %v4565_v30, %v4566_v33  ;;  %v7365_v30 = vld [vmem:[#allocation12 + $0x1e4] sm:$0xf] }
 0x5d7   : > { %v10120_v55 = vpop.f32.mrf.mxu0  ;;  %v4599_v13 = vsel %vm8853_vm2, %v4590_v44, 0.0  ;;  %v10156_v18 = vor.u32 %v7365_v30, %v7028_v35  ;;  %v7016_v35 = vld [vmem:[#allocation12 + $0x1d4] sm:$0xf0] }
 0x5d8   : > { %v10124_v12 = vadd.f32 %v4599_v13, %v4470_v37 }
 0x5d9   : > { %7551 = vmatpush.bf16.msra.mxu3 %v10156_v18 }
 0x5db   : > { %v4416_v3 = vpop.f32.mrf.mxu2 }
 0x5dc   : > { %v4567_v51 = vrot.slane %v4416_v3, 7  ;;  %v4472_v61 = vpop.f32.mrf.mxu3 }
 0x5de   : > { %v4589_v11 = vsel %vm11185_vm13, %v4566_v33, %v4567_v51  ;;  %vm11190_vm13 = vmmov %vm11183_vm8  ;;  %5015 = vmatmul.bf16.gmra.mxu1 %v10083_v17 }
 0x5df   : > { %v10128_v39 = vpop.f32.mrf.mxu0  ;;  %v10130_v53 = vadd.f32 %v4589_v11, %v4472_v61 }
 0x5e0   : > { %4519 = vmatmul.bf16.gmra.mxu2 %v10034_v1 }
 0x5e1   : > { %4865 = vmatmul.bf16.gmra.mxu3 %v10034_v1 }
 0x5e2   : > { %5450 = vmatmul.bf16.gmra.mxu0 %v10034_v1 }
 0x5e3   : > { %v4419_v16 = vpop.f32.mrf.mxu2 }
 0x5e4   : > { %v4568_v21 = vrot.slane %v4419_v16, 7  ;;  %v4475_v56 = vpop.f32.mrf.mxu3 }
 0x5e6   : > { %v4588_v27 = vsel %vm11186_vm9, %v4567_v51, %v4568_v21  ;;  %vm11191_vm9 = vmmov %vm11183_vm8 }
 0x5e7   : > { %v10141_v14 = vpop.f32.mrf.mxu0  ;;  %v4601_v4 = vsel %vm8874_vm3, %v4588_v27, 0.0 }
 0x5e8   : > { %v10145_v43 = vadd.f32 %v4601_v4, %v4475_v56  ;;  %v7363_v56 = vld [vmem:[#allocation12 + $0x1d0] sm:$0xf0] }
 0x5eb   : > { %v4421_v26 = vpop.f32.mrf.mxu2 }
 0x5ec   : > { %v4569_v29 = vrot.slane %v4421_v26, 7  ;;  %v4477_v0 = vpop.f32.mrf.mxu3 }
 0x5ee   : > { %v4587_v52 = vsel %vm11188_vm11, %v4568_v21, %v4569_v29  ;;  %v7014_v21 = vld [vmem:[#allocation12 + $0x1c8] sm:$0xf]  ;;  %vm11193_vm11 = vmmov %vm11183_vm8 }
 0x5ef   : > { %v10149_v28 = vpop.f32.mrf.mxu0  ;;  %v10151_v57 = vadd.f32 %v4587_v52, %v4477_v0  ;;  %v7015_v27 = vor.u32 %v7363_v56, %v7014_v21  ;;  %v7002_v56 = vld [vmem:[#allocation12 + $0x1b0] sm:$0xf] }
 0x5f0   : > { %4524 = vmatmul.bf16.gmra.mxu2 %v10039_v54 }
 0x5f1   : > { %4870 = vmatmul.bf16.gmra.mxu3 %v10039_v54  ;;  %7544 = vmatpush.bf16.msra.mxu2 %v7015_v27 }
 0x5f2   : > { %5453 = vmatmul.bf16.gmra.mxu0 %v10039_v54  ;;  %5331 = vmatpush.bf16.msrb.mxu1 %v7015_v27  ;;  %v7360_v27 = vld [vmem:[#allocation12 + $0x1b8] sm:$0xf0] }
 0x5f3   : > { %v4424_v33 = vpop.f32.mrf.mxu2 }
 0x5f4   : > { %v4570_v37 = vrot.slane %v4424_v33, 7  ;;  %v4480_v44 = vpop.f32.mrf.mxu3  ;;  %v10186_v33 = vor.u32 %v7362_v34, %v7016_v35 }
 0x5f6   : > { %v4586_v13 = vsel %vm11183_vm8, %v4569_v29, %v4570_v37  ;;  %7552 = vmatpush.bf16.msra.mxu3 %v10186_v33 }
 0x5f7   : > { %v10162_v47 = vpop.f32.mrf.mxu0  ;;  %v4603_v38 = vsel %vm8893_vm4, %v4586_v13, 0.0 }
 0x5f8   : > { %v10166_v3 = vadd.f32 %v4603_v38, %v4480_v44 }
 0x5fb   : > { %v4426_v51 = vpop.f32.mrf.mxu2 }
 0x5fc   : > { %v4571_v61 = vrot.slane %v4426_v51, 7  ;;  %v4482_v11 = vpop.f32.mrf.mxu3 }
 0x5fe   : > { %v4585_v50 = vsel %vm11190_vm13, %v4570_v37, %v4571_v61  ;;  %vm11197_vm13 = vmmov %vm11183_vm8 }
 0x5ff   : > { %v10170_v5 = vpop.f32.mrf.mxu0  ;;  %v10172_v16 = vadd.f32 %v4585_v50, %v4482_v11 }
 0x600   : > { %4529 = vmatmul.bf16.gmra.mxu2 %v10044_v45 }
 0x601   : > { %4875 = vmatmul.bf16.gmra.mxu3 %v10044_v45 }
 0x602   : > { %5458 = vmatmul.bf16.gmra.mxu0 %v10044_v45 }
 0x603   : > { %v4429_v4 = vpop.f32.mrf.mxu2 }
 0x604   : > { %v4572_v26 = vrot.slane %v4429_v4, 7  ;;  %v4485_v29 = vpop.f32.mrf.mxu3  ;;  %v7003_v4 = vor.u32 %v7360_v27, %v7002_v56 }
 0x606   : > { %v4584_v0 = vsel %vm11191_vm9, %v4571_v61, %v4572_v26  ;;  %7545 = vmatpush.bf16.msra.mxu2 %v7003_v4  ;;  %5332 = vmatpush.bf16.msrb.mxu1 %v7003_v4  ;;  %vm11200_vm9 = vmmov %vm11183_vm8 }
 0x607   : > { %v10180_v52 = vpop.f32.mrf.mxu0  ;;  %v4605_v23 = vsel %vm8912_vm5, %v4584_v0, 0.0  ;;  %v7359_v0 = vld [vmem:[#allocation12 + $0x1b4] sm:$0xf] }
 0x608   : > { %v10184_v30 = vadd.f32 %v4605_v23, %v4485_v29  ;;  %v7004_v23 = vld [vmem:[#allocation12 + $0x1bc] sm:$0xf0] }
 0x60b   : > { %v4431_v37 = vpop.f32.mrf.mxu2 }
 0x60c   : > { %v4573_v44 = vrot.slane %v4431_v37, 7  ;;  %v4487_v13 = vpop.f32.mrf.mxu3  ;;  %v10205_v37 = vor.u32 %v7359_v0, %v7004_v23 }
 0x60e   : > { %v4583_v38 = vsel %vm11193_vm11, %v4572_v26, %v4573_v44  ;;  %7553 = vmatpush.bf16.msra.mxu3 %v10205_v37  ;;  %vm11203_vm11 = vmmov %vm11183_vm8 }
 0x60f   : > { %v10191_v51 = vpop.f32.mrf.mxu0  ;;  %v10193_v61 = vadd.f32 %v4583_v38, %v4487_v13 }
 0x610   : > { %4534 = vmatmul.bf16.gmra.mxu2 %v10049_v2 }
 0x611   : > { %4880 = vmatmul.bf16.gmra.mxu3 %v10049_v2 }
 0x612   : > { %5463 = vmatmul.bf16.gmra.mxu0 %v10049_v2 }
 0x613   : > { %v4434_v11 = vpop.f32.mrf.mxu2 }
 0x614   : > { %v4574_v50 = vrot.slane %v4434_v11, 7  ;;  %v4490_v21 = vpop.f32.mrf.mxu3 }
 0x616   : > { %v4582_v26 = vsel %vm11183_vm8, %v4573_v44, %v4574_v50  ;;  %vm11206_vm8 = vcmp.lt.s32.totalorder %v8806_v42, 7 }
 0x617   : > { %v10201_v29 = vpop.f32.mrf.mxu0  ;;  %v4607_v35 = vsel %vm8931_vm6, %v4582_v26, 0.0 }
 0x618   : > { %11194 = vst [vmem:[#allocation39_spill] sm:$0xff] %v10201_v29  ;;  %v10207_v13 = vadd.f32 %v4607_v35, %v4490_v21  ;;  %v7357_v35 = vld [vmem:[#allocation12 + $0x1a0] sm:$0xf0] }
 0x61a   : > { %11196 = vst [vmem:[#allocation76_spill] sm:$0xff] %v10207_v13 }
 0x61b   : > { %v4436_v38 = vpop.f32.mrf.mxu2 }
 0x61c   : > { %v4575_v11 = vrot.slane %v4436_v38, 7  ;;  %v4492_v56 = vpop.f32.mrf.mxu3  ;;  %v7356_v38 = vld [vmem:[#allocation12 + $0x19c] sm:$0xf] }
 0x61e   : > { %v4581_v44 = vsel %vm11197_vm13, %v4574_v50, %v4575_v11  ;;  %v6990_v50 = vld [vmem:[#allocation12 + $0x198] sm:$0xf]  ;;  %vm11208_vm13 = vmmov %vm11200_vm9 }
 0x61f   : > { %v10212_v27 = vpop.f32.mrf.mxu0  ;;  %v10214_v49 = vadd.f32 %v4581_v44, %v4492_v56  ;;  %v6991_v44 = vor.u32 %v7357_v35, %v6990_v50 }
 0x620   : > { %11198 = vst [vmem:[#allocation84_spill] sm:$0xff] %v10212_v27  ;;  %4539 = vmatmul.bf16.gmra.mxu2 %v10054_v59 }
 0x621   : > { %11199 = vst [vmem:[#allocation77_spill] sm:$0xff] %v10214_v49  ;;  %4885 = vmatmul.bf16.gmra.mxu3 %v10054_v59  ;;  %7546 = vmatpush.bf16.msra.mxu2 %v6991_v44 }
 0x622   : > { %5468 = vmatmul.bf16.gmra.mxu0 %v10054_v59  ;;  %5333 = vmatpush.bf16.msrb.mxu1 %v6991_v44 }
 0x623   : > { %v4439_v21 = vpop.f32.mrf.mxu2 }
 0x624   : > { %v4576_v4 = vrot.slane %v4439_v21, 7  ;;  %v4495_v26 = vpop.f32.mrf.mxu3 }
 0x626   : > { %v4580_v0 = vsel %vm11200_vm9, %v4575_v11, %v4576_v4  ;;  %vm11209_vm9 = vmmov %vm11206_vm8 }
 0x627   : > { %v10222_v23 = vpop.f32.mrf.mxu0  ;;  %v4609_v56 = vsel %vm8950_vm7, %v4580_v0, 0.0  ;;  %v6992_v0 = vld [vmem:[#allocation12 + $0x1a4] sm:$0xf0] }
 0x628   : > { %11201 = vst [vmem:[#allocation40_spill] sm:$0xff] %v10222_v23  ;;  %v10226_v27 = vadd.f32 %v4609_v56, %v4495_v26  ;;  %v4973_v23 = vpop.f32.mrf.mxu1  ;;  %v6995_v26 = vor.u32 %v7356_v38, %v6992_v0 }
 0x62a   : > { %7554 = vmatpush.bf16.msra.mxu3 %v6995_v26 }
 0x62b   : > { %v4441_v59 = vpop.f32.mrf.mxu2 }
 0x62c   : > { %v4577_v49 = vrot.slane %v4441_v59, 7  ;;  %v4497_v29 = vpop.f32.mrf.mxu3  ;;  %v6978_v59 = vld [vmem:[#allocation12 + $0x180] sm:$0xf] }
 0x62e   : > { %v4579_v21 = vsel %vm11203_vm11, %v4576_v4, %v4577_v49 }
 0x62f   : > { %v10230_v13 = vpop.f32.mrf.mxu0  ;;  %v10232_v11 = vadd.f32 %v4579_v21, %v4497_v29  ;;  %v7354_v21 = vld [vmem:[#allocation12 + $0x188] sm:$0xf0] }
 0x630   : > { %11204 = vst [vmem:[#allocation41_spill] sm:$0xff] %v10230_v13  ;;  %4544 = vmatmul.bf16.gmra.mxu2 %v10059_v31  ;;  %v4974_v4 = vpop.f32.mrf.mxu1  ;;  %v7353_v13 = vld [vmem:[#allocation12 + $0x184] sm:$0xf] }
 0x631   : > { %11205 = vst [vmem:[#allocation80_spill] sm:$0xff] %v10232_v11  ;;  %4890 = vmatmul.bf16.gmra.mxu3 %v10059_v31  ;;  %v6979_v11 = vor.u32 %v7354_v21, %v6978_v59  ;;  %v11207_v21 = vrot.slane %v10075_v48, 7 }
 0x632   : > { %5473 = vmatmul.bf16.gmra.mxu0 %v10059_v31  ;;  %v6980_v31 = vld [vmem:[#allocation12 + $0x18c] sm:$0xf0] }
 0x633   : > { %v4444_v50 = vpop.f32.mrf.mxu2  ;;  %v6983_v38 = vor.u32 %v7353_v13, %v6980_v31  ;;  %7547 = vmatpush.bf16.msra.mxu2 %v6979_v11  ;;  %5334 = vmatpush.bf16.msrb.mxu1 %v6979_v11 }
 0x634   : > { %v4500_v35 = vpop.f32.mrf.mxu3 }
 0x635   : > { %7555 = vmatpush.bf16.msra.mxu3 %v6983_v38 }
 0x636   : > { %5335 = vmatmul.bf16.vlgmr.msrb.gmra.mxu1 %v10029_v22 }
 0x637   : > { %v10238_v49 = vpop.f32.mrf.mxu0  ;;  %5383 = vmatpush.bf16.msra.mxu1 %v10079_v7 }
 0x638   : > { %v4976_v44 = vpop.f32.mrf.mxu1 }
 0x639   : > { %v5069_v4 = vrot.slane %v4976_v44, 1 }
 0x63b   : > { %v4445_v29 = vpop.f32.mrf.mxu2  ;;  %5384 = vmatpush.bf16.msra.mxu1 %v10105_v36 }
 0x63c   : > { %v4501_v56 = vpop.f32.mrf.mxu3 }
 0x63f   : > { %v4961_v23 = vpop.f32.mrf.mxu0  ;;  %5385 = vmatpush.bf16.msra.mxu1 %v10133_v19 }
 0x640   : > { %4549 = vmatmul.bf16.gmra.mxu2 %v10064_v60  ;;  %v4978_v29 = vpop.f32.mrf.mxu1 }
 0x641   : > { %4895 = vmatmul.bf16.gmra.mxu3 %v10064_v60  ;;  %v5070_v56 = vrot.slane %v4978_v29, 1 }
 0x642   : > { %5478 = vmatmul.bf16.gmra.mxu0 %v10064_v60 }
 0x643   : > { %v4447_v0 = vpop.f32.mrf.mxu2  ;;  %v5101_v23 = vsel %vm11206_vm8, %v5069_v4, %v5070_v56  ;;  %5386 = vmatpush.bf16.msra.mxu1 %v10156_v18  ;;  %v11210_v4 = vld [vmem:[#allocation59_spill] sm:$0xff] }
 0x644   : > { %v4503_v50 = vpop.f32.mrf.mxu3  ;;  %vm11211_vm11 = vnez %v11210_v4 }
 0x647   : > { %v4962_v35 = vpop.f32.mrf.mxu0  ;;  %5387 = vmatpush.bf16.msra.mxu1 %v10186_v33 }
 0x648   : > { %v4981_v44 = vpop.f32.mrf.mxu1 }
 0x649   : > { %v5071_v31 = vrot.slane %v4981_v44, 1 }
 0x64b   : > { %v4448_v60 = vpop.f32.mrf.mxu2  ;;  %v5100_v36 = vsel %vm11209_vm9, %v5070_v56, %v5071_v31  ;;  %5388 = vmatpush.bf16.msra.mxu1 %v10205_v37  ;;  %vm11213_vm9 = vmmov %vm11206_vm8 }
 0x64c   : > { %v4578_v13 = vrot.slane %v4448_v60, 7  ;;  %v4504_v59 = vpop.f32.mrf.mxu3 }
 0x64e   : > { %v4594_v11 = vsel %vm11208_vm13, %v4578_v13, %v11207_v21  ;;  %vm11212_vm13 = vmmov %vm11206_vm8 }
 0x64f   : > { %v10253_v7 = vpop.f32.mrf.mxu0  ;;  %v4595_v18 = vsel %vm11211_vm11, %v4594_v11, 0.0  ;;  %5389 = vmatpush.bf16.msra.mxu1 %v6995_v26  ;;  %vm11214_vm11 = vmmov %vm11206_vm8 }
 0x650   : > { %4554 = vmatmul.bf16.gmra.mxu2 %v10069_v20  ;;  %v4983_v50 = vpop.f32.mrf.mxu1  ;;  %v4660_v59 = vadd.f32 %v4595_v18, %v10077_v58 }
 0x651   : > { %4900 = vmatmul.bf16.gmra.mxu3 %v10069_v20  ;;  %v5072_v35 = vrot.slane %v4983_v50, 1 }
 0x652   : > { %5483 = vmatmul.bf16.gmra.mxu0 %v10069_v20 }
 0x653   : > { %v4515_v48 = vpop.f32.mrf.mxu2  ;;  %v10268_v20 = vsel %vm11206_vm8, %v5071_v31, %v5072_v35  ;;  %5390 = vmatpush.bf16.msra.mxu1 %v6983_v38  ;;  %v11215_v38 = vld [vmem:[#allocation62_spill] sm:$0xff] }
 0x654   : > { %v4862_v19 = vpop.f32.mrf.mxu3  ;;  %v4611_v56 = vrot.slane %v4515_v48, 1  ;;  %vm11216_vm8 = vnez %v11215_v38 }
 0x656   : > { %5391 = vmatmul.bf16.vlgmr.msra.gmra.mxu1 %v10029_v22 }
 0x657   : > { %v5449_v0 = vpop.f32.mrf.mxu0 }
 0x658   : > { %v4986_v37 = vpop.f32.mrf.mxu1 }
 0x659   : > { %v5073_v11 = vrot.slane %v4986_v37, 1 }
 0x65b   : > { %v4517_v29 = vpop.f32.mrf.mxu2  ;;  %v10278_v31 = vsel %vm11213_vm9, %v5072_v35, %v5073_v11 }
 0x65c   : > { %v4612_v60 = vrot.slane %v4517_v29, 1  ;;  %v4863_v13 = vpop.f32.mrf.mxu3 }
 0x65d   : > { %v5020_v19 = vrot.slane %v4863_v13, 7 }
 0x65e   : > { %v4643_v33 = vsel %vm11212_vm13, %v4611_v56, %v4612_v60  ;;  %vm11217_vm13 = vcmp.lt.s32.totalorder %v8806_v42, 1 }
 0x65f   : > { %v5451_v21 = vpop.f32.mrf.mxu0  ;;  %v4676_v44 = vadd.f32 %v4660_v59, %v4643_v33 }
 0x660   : > { %4558 = vmatmul.bf16.gmra.mxu2 %v10083_v17  ;;  %v4988_v56 = vpop.f32.mrf.mxu1 }
 0x661   : > { %4905 = vmatmul.bf16.gmra.mxu3 %v10083_v17  ;;  %v5074_v59 = vrot.slane %v4988_v56, 1 }
 0x662   : > { %5488 = vmatmul.bf16.gmra.mxu0 %v10083_v17 }
 0x663   : > { %v4520_v26 = vpop.f32.mrf.mxu2  ;;  %v10293_v33 = vsel %vm11213_vm9, %v5073_v11, %v5074_v59 }
 0x664   : > { %v4613_v58 = vrot.slane %v4520_v26, 1  ;;  %v4866_v48 = vpop.f32.mrf.mxu3 }
 0x665   : > { %v5021_v0 = vrot.slane %v4866_v48, 7 }
 0x666   : > { %v4642_v50 = vsel %vm11214_vm11, %v4612_v60, %v4613_v58  ;;  %vm11218_vm11 = vmmov %vm11213_vm9 }
 0x667   : > { %v5452_v4 = vpop.f32.mrf.mxu0  ;;  %v4645_v18 = vsel %vm11216_vm8, %v4642_v50, 0.0  ;;  %v5052_v29 = vsel %vm11217_vm13, %v5020_v19, %v5021_v0 }
 0x668   : > { %v4677_v35 = vadd.f32 %v10091_v15, %v4645_v18  ;;  %v5053_v22 = vsel %vm11181_vm1, %v5052_v29, 0.0  ;;  %vm11219_vm1 = vmmov %vm11217_vm13  ;;  %v4991_v11 = vpop.f32.mrf.mxu1 }
 0x669   : > { %v5118_v13 = vadd.f32 %v5053_v22, %v10089_v8  ;;  %v11220_v8 = vld [vmem:[#allocation63_spill] sm:$0xff]  ;;  %v5075_v38 = vrot.slane %v4991_v11, 1  ;;  %vm11222_vm13 = vmmov %vm11213_vm9  ;;  %v5105_v11 = vsel %vm9127_vm14, %v10278_v31, 0.0 }
 0x66a   : > { %vm11221_vm8 = vnez %v11220_v8 }
 0x66b   : > { %v5134_v60 = vadd.f32 %v5118_v13, %v5101_v23  ;;  %v4522_v21 = vpop.f32.mrf.mxu2  ;;  %v5103_v4 = vsel %vm11221_vm8, %v5100_v36, 0.0 }
 0x66c   : > { %v4614_v37 = vrot.slane %v4522_v21, 1  ;;  %v4868_v26 = vpop.f32.mrf.mxu3 }
 0x66d   : > { %v10295_v48 = vadd.f32 %v5134_v60, %v4676_v44  ;;  %v5022_v19 = vrot.slane %v4868_v26, 7 }
 0x66e   : > { %v4641_v15 = vsel %vm11218_vm11, %v4613_v58, %v4614_v37  ;;  %v5096_v58 = vsel %vm11222_vm13, %v5074_v59, %v5075_v38  ;;  %vm11223_vm11 = vmmov %vm11219_vm1 }
 0x66f   : > { %v4678_v62 = vadd.f32 %v10103_v9, %v4641_v15  ;;  %v5051_v50 = vsel %vm11219_vm1, %v5021_v0, %v5022_v19  ;;  %vm11224_vm1 = vmmov %vm11213_vm9 }
 0x670   : > { %v5119_v23 = vadd.f32 %v5051_v50, %v10099_v32  ;;  %5338 = vmatmul.bf16.vlgmr.msra.gmra.mxu2 %v10034_v1  ;;  %vm11226_vm13 = vmmov %vm11223_vm11 }
 0x671   : > { %5394 = vmatmul.bf16.vlgmr.msra.gmra.mxu3 %v10034_v1  ;;  %v4993_v1 = vpop.f32.mrf.mxu1 }
 0x672   : > { %v5135_v44 = vadd.f32 %v5119_v23, %v5103_v4 }
 0x673   : > { %v4525_v18 = vpop.f32.mrf.mxu2 }
 0x674   : > { %v10309_v9 = vadd.f32 %v5135_v44, %v4677_v35  ;;  %v4615_v29 = vrot.slane %v4525_v18, 1  ;;  %v4871_v0 = vpop.f32.mrf.mxu3  ;;  %v5076_v35 = vrot.slane %v4993_v1, 1 }
 0x675   : > { %v5023_v56 = vrot.slane %v4871_v0, 7 }
 0x676   : > { %v4640_v36 = vsel %vm11213_vm9, %v4614_v37, %v4615_v29  ;;  %v10323_v21 = vsel %vm11224_vm1, %v5075_v38, %v5076_v35  ;;  %vm11227_vm9 = vmmov %vm11224_vm1 }
 0x677   : > { %v4647_v32 = vsel %vm11221_vm8, %v4640_v36, 0.0  ;;  %v5050_v22 = vsel %vm11223_vm11, %v5022_v19, %v5023_v56  ;;  %vm11225_vm8 = vmmov %vm11224_vm1 }
 0x678   : > { %v4679_v13 = vadd.f32 %v10112_v40, %v4647_v32  ;;  %v5055_v59 = vsel %vm8853_vm2, %v5050_v22, 0.0  ;;  %vm11228_vm11 = vmmov %vm11224_vm1 }
 0x679   : > { %v5120_v60 = vadd.f32 %v5055_v59, %v10110_v6  ;;  %v4996_v23 = vpop.f32.mrf.mxu1  ;;  %vm11229_vm1 = vmmov %vm11226_vm13 }
 0x67b   : > { %v5136_v37 = vadd.f32 %v5120_v60, %v10268_v20  ;;  %v4527_v26 = vpop.f32.mrf.mxu2 }
 0x67c   : > { %v4616_v15 = vrot.slane %v4527_v26, 1  ;;  %v4873_v50 = vpop.f32.mrf.mxu3 }
 0x67d   : > { %v10326_v8 = vadd.f32 %v5136_v37, %v4678_v62  ;;  %v5024_v19 = vrot.slane %v4873_v50, 7  ;;  %v5077_v62 = vrot.slane %v4996_v23, 1 }
 0x67e   : > { %v4639_v40 = vsel %vm11225_vm8, %v4615_v29, %v4616_v15 }
 0x67f   : > { %v4680_v4 = vadd.f32 %v10124_v12, %v4639_v40  ;;  %v5049_v6 = vsel %vm11226_vm13, %v5023_v56, %v5024_v19  ;;  %v5094_v44 = vsel %vm11227_vm9, %v5076_v35, %v5077_v62  ;;  %vm11230_vm13 = vmmov %vm11225_vm8  ;;  %v5107_v40 = vsel %vm9158_vm15, %v5096_v58, 0.0 }
 0x680   : > { %v5121_v20 = vadd.f32 %v5049_v6, %v10120_v55  ;;  %5342 = vmatmul.bf16.gmra.mxu2 %v10039_v54  ;;  %vm11231_vm9 = vmmov %vm11229_vm1 }
 0x681   : > { %5397 = vmatmul.bf16.gmra.mxu3 %v10039_v54  ;;  %v4998_v54 = vpop.f32.mrf.mxu1 }
 0x682   : > { %v5137_v38 = vadd.f32 %v5121_v20, %v5105_v11  ;;  %v5078_v1 = vrot.slane %v4998_v54, 1 }
 0x683   : > { %v4530_v12 = vpop.f32.mrf.mxu2 }
 0x684   : > { %v10341_v18 = vadd.f32 %v5137_v38, %v4679_v13  ;;  %v4617_v29 = vrot.slane %v4530_v12, 1  ;;  %v4876_v0 = vpop.f32.mrf.mxu3  ;;  %v10355_v59 = vsel %vm11225_vm8, %v5077_v62, %v5078_v1 }
 0x685   : > { %v5025_v56 = vrot.slane %v4876_v0, 7 }
 0x686   : > { %v4638_v31 = vsel %vm11228_vm11, %v4616_v15, %v4617_v29  ;;  %vm11232_vm11 = vmmov %vm11225_vm8 }
 0x687   : > { %v4649_v55 = vsel %vm9127_vm14, %v4638_v31, 0.0  ;;  %v5048_v36 = vsel %vm11229_vm1, %v5024_v19, %v5025_v56  ;;  %vm11233_vm1 = vmmov %vm11225_vm8 }
 0x688   : > { %v4681_v32 = vadd.f32 %v10130_v53, %v4649_v55  ;;  %v5057_v22 = vsel %vm8874_vm3, %v5048_v36, 0.0  ;;  %vm11234_vm8 = vmmov %vm11231_vm9 }
 0x689   : > { %v5122_v13 = vadd.f32 %v5057_v22, %v10128_v39  ;;  %v5001_v6 = vpop.f32.mrf.mxu1 }
 0x68a   : > { %v5079_v11 = vrot.slane %v5001_v6, 1 }
 0x68b   : > { %v5138_v35 = vadd.f32 %v5122_v13, %v10293_v33  ;;  %v4532_v60 = vpop.f32.mrf.mxu2 }
 0x68c   : > { %v4618_v37 = vrot.slane %v4532_v60, 1  ;;  %v4878_v26 = vpop.f32.mrf.mxu3  ;;  %v10372_v23 = vsel %vm11232_vm11, %v5078_v1, %v5079_v11  ;;  %vm11237_vm11 = vmmov %vm11234_vm8 }
 0x68d   : > { %v10358_v15 = vadd.f32 %v5138_v35, %v4680_v4  ;;  %v5026_v50 = vrot.slane %v4878_v26, 7  ;;  %v5109_v26 = vsel %vm9189_vm0, %v5094_v44, 0.0 }
 0x68e   : > { %v4637_v53 = vsel %vm11230_vm13, %v4617_v29, %v4618_v37  ;;  %vm11235_vm13 = vmmov %vm11233_vm1 }
 0x68f   : > { %v4682_v19 = vadd.f32 %v10145_v43, %v4637_v53  ;;  %v5047_v39 = vsel %vm11231_vm9, %v5025_v56, %v5026_v50  ;;  %vm11236_vm9 = vmmov %vm11233_vm1 }
 0x690   : > { %v5123_v33 = vadd.f32 %v5047_v39, %v10141_v14  ;;  %5347 = vmatmul.bf16.gmra.mxu2 %v10044_v45 }
 0x691   : > { %5402 = vmatmul.bf16.gmra.mxu3 %v10044_v45  ;;  %v5003_v29 = vpop.f32.mrf.mxu1 }
 0x692   : > { %v5139_v4 = vadd.f32 %v5123_v33, %v5107_v40  ;;  %v5080_v31 = vrot.slane %v5003_v29, 1 }
 0x693   : > { %v4535_v43 = vpop.f32.mrf.mxu2 }
 0x694   : > { %v10374_v20 = vadd.f32 %v5139_v4, %v4681_v32  ;;  %v4619_v62 = vrot.slane %v4535_v43, 1  ;;  %v4881_v38 = vpop.f32.mrf.mxu3  ;;  %v10388_v36 = vsel %vm11235_vm13, %v5079_v11, %v5080_v31  ;;  %vm11240_vm13 = vmmov %vm11237_vm11 }
 0x695   : > { %v5027_v12 = vrot.slane %v4881_v38, 7 }
 0x696   : > { %v4636_v58 = vsel %vm11233_vm1, %v4618_v37, %v4619_v62 }
 0x697   : > { %v4651_v14 = vsel %vm9158_vm15, %v4636_v58, 0.0  ;;  %v5046_v45 = vsel %vm11234_vm8, %v5026_v50, %v5027_v12  ;;  %vm11239_vm8 = vmmov %vm11233_vm1 }
 0x698   : > { %v4683_v0 = vadd.f32 %v10151_v57, %v4651_v14  ;;  %v5059_v56 = vsel %vm8893_vm4, %v5046_v45, 0.0 }
 0x699   : > { %v5124_v55 = vadd.f32 %v5059_v56, %v10149_v28  ;;  %v5006_v50 = vpop.f32.mrf.mxu1 }
 0x69a   : > { %v5081_v53 = vrot.slane %v5006_v50, 1 }
 0x69b   : > { %v5140_v54 = vadd.f32 %v5124_v55, %v10323_v21  ;;  %v4537_v32 = vpop.f32.mrf.mxu2 }
 0x69c   : > { %v4620_v22 = vrot.slane %v4537_v32, 1  ;;  %v4883_v1 = vpop.f32.mrf.mxu3  ;;  %v10405_v39 = vsel %vm11233_vm1, %v5080_v31, %v5081_v53  ;;  %v5111_v32 = vsel %vm9220_vm12, %v10372_v23, 0.0 }
 0x69d   : > { %v10391_v13 = vadd.f32 %v5140_v54, %v4682_v19  ;;  %v5028_v35 = vrot.slane %v4883_v1, 7  ;;  %v7723_v1 = vld [vmem:[#allocation3 + $0x28] sm:$0xff] }
 0x69e   : > { %v4635_v57 = vsel %vm11236_vm9, %v4619_v62, %v4620_v22  ;;  %vm11241_vm9 = vmmov %vm11233_vm1 }
 0x69f   : > { %v4684_v60 = vadd.f32 %v10166_v3, %v4635_v57  ;;  %v5045_v28 = vsel %vm11237_vm11, %v5027_v12, %v5028_v35  ;;  %vm11242_vm11 = vmmov %vm11233_vm1 }
 0x6a0   : > { %v5125_v21 = vadd.f32 %v5045_v28, %v10162_v47  ;;  %5352 = vmatmul.bf16.gmra.mxu2 %v10049_v2  ;;  %vm11243_vm1 = vmmov %vm11240_vm13 }
 0x6a1   : > { %5407 = vmatmul.bf16.gmra.mxu3 %v10049_v2  ;;  %v5008_v4 = vpop.f32.mrf.mxu1 }
 0x6a2   : > { %v5141_v19 = vadd.f32 %v5125_v21, %v5109_v26  ;;  %v5082_v38 = vrot.slane %v5008_v4, 1 }
 0x6a3   : > { %v4540_v3 = vpop.f32.mrf.mxu2 }
 0x6a4   : > { %v10407_v40 = vadd.f32 %v5141_v19, %v4683_v0  ;;  %v4621_v6 = vrot.slane %v4540_v3, 1  ;;  %v4886_v33 = vpop.f32.mrf.mxu3  ;;  %v10421_v58 = vsel %vm11241_vm9, %v5081_v53, %v5082_v38  ;;  %vm11246_vm9 = vmmov %vm11243_vm1 }
 0x6a5   : > { %v5029_v11 = vrot.slane %v4886_v33, 7 }
 0x6a6   : > { %v4634_v44 = vsel %vm11239_vm8, %v4620_v22, %v4621_v6 }
 0x6a7   : > { %v4653_v47 = vsel %vm9189_vm0, %v4634_v44, 0.0  ;;  %v5044_v2 = vsel %vm11240_vm13, %v5028_v35, %v5029_v11  ;;  %vm11245_vm13 = vmmov %vm11239_vm8 }
 0x6a8   : > { %v4685_v43 = vadd.f32 %v10172_v16, %v4653_v47  ;;  %v5061_v62 = vsel %vm8912_vm5, %v5044_v2, 0.0 }
 0x6a9   : > { %v5126_v12 = vadd.f32 %v5061_v62, %v10170_v5  ;;  %v5011_v22 = vpop.f32.mrf.mxu1 }
 0x6aa   : > { %v5083_v35 = vrot.slane %v5011_v22, 1 }
 0x6ab   : > { %v5142_v14 = vadd.f32 %v5126_v12, %v10355_v59  ;;  %v4542_v45 = vpop.f32.mrf.mxu2  ;;  %v11249_v12 = vld [vmem:[#allocation76_spill] sm:$0xff] }
 0x6ac   : > { %v4622_v29 = vrot.slane %v4542_v45, 1  ;;  %v4888_v0 = vpop.f32.mrf.mxu3 }
 0x6ad   : > { %v10424_v56 = vadd.f32 %v5142_v14, %v4684_v60  ;;  %v5030_v31 = vrot.slane %v4888_v0, 7  ;;  %v5088_v60 = vsel %vm11239_vm8, %v5082_v38, %v5083_v35 }
 0x6ae   : > { %v4633_v16 = vsel %vm11242_vm11, %v4621_v6, %v4622_v29  ;;  %vm11247_vm11 = vmmov %vm11239_vm8 }
 0x6af   : > { %v4686_v55 = vadd.f32 %v10184_v30, %v4633_v16  ;;  %v5043_v5 = vsel %vm11243_vm1, %v5029_v11, %v5030_v31  ;;  %vm11248_vm1 = vmmov %vm11239_vm8  ;;  %v7724_v16 = vld [vmem:[#allocation3 + $0x30] sm:$0xff] }
 0x6b0   : > { %v5127_v59 = vadd.f32 %v5043_v5, %v10180_v52  ;;  %5357 = vmatmul.bf16.gmra.mxu2 %v7723_v1  ;;  %vm11250_vm8 = vmmov %vm11246_vm9 }
 0x6b1   : > { %5412 = vmatmul.bf16.gmra.mxu3 %v7723_v1  ;;  %v5013_v19 = vpop.f32.mrf.mxu1 }
 0x6b2   : > { %v5143_v57 = vadd.f32 %v5127_v59, %v5111_v32  ;;  %v5084_v33 = vrot.slane %v5013_v19, 1  ;;  %v11258_v19 = vld [vmem:[#allocation84_spill] sm:$0xff] }
 0x6b3   : > { %v4545_v28 = vpop.f32.mrf.mxu2 }
 0x6b4   : > { %v10437_v30 = vadd.f32 %v5143_v57, %v4685_v43  ;;  %v4623_v26 = vrot.slane %v4545_v28, 1  ;;  %v4891_v50 = vpop.f32.mrf.mxu3  ;;  %v5087_v44 = vsel %vm11247_vm11, %v5083_v35, %v5084_v33  ;;  %vm11255_vm11 = vmmov %vm11250_vm8 }
 0x6b5   : > { %v5031_v21 = vrot.slane %v4891_v50, 7 }
 0x6b6   : > { %v4632_v23 = vsel %vm11245_vm13, %v4622_v29, %v4623_v26  ;;  %v5113_v29 = vsel %vm9251_vm10, %v10405_v39, 0.0  ;;  %vm11253_vm13 = vmmov %vm11248_vm1 }
 0x6b7   : > { %v4655_v52 = vsel %vm9220_vm12, %v4632_v23, 0.0  ;;  %v5042_v53 = vsel %vm11246_vm9, %v5030_v31, %v5031_v21  ;;  %vm11254_vm9 = vmmov %vm11248_vm1 }
 0x6b8   : > { %v4687_v3 = vadd.f32 %v10193_v61, %v4655_v52  ;;  %v5063_v6 = vsel %vm8931_vm6, %v5042_v53, 0.0 }
 0x6b9   : > { %v5128_v11 = vadd.f32 %v5063_v6, %v10191_v51  ;;  %v5016_v0 = vpop.f32.mrf.mxu1 }
 0x6bb   : > { %v5144_v47 = vadd.f32 %v5128_v11, %v10388_v36  ;;  %v4547_v2 = vpop.f32.mrf.mxu2  ;;  %v11252_v36 = vld [vmem:[#allocation39_spill] sm:$0xff] }
 0x6bc   : > { %v4624_v4 = vrot.slane %v4547_v2, 1  ;;  %v4893_v43 = vpop.f32.mrf.mxu3 }
 0x6bd   : > { %v10452_v62 = vadd.f32 %v5144_v47, %v4686_v55  ;;  %v5032_v38 = vrot.slane %v4893_v43, 7  ;;  %v5085_v55 = vrot.slane %v5016_v0, 1  ;;  %v11261_v0 = vld [vmem:[#allocation40_spill] sm:$0xff] }
 0x6be   : > { %v4631_v61 = vsel %vm11248_vm1, %v4623_v26, %v4624_v4 }
 0x6bf   : > { %v4688_v14 = vadd.f32 %v11249_v12, %v4631_v61  ;;  %v5041_v45 = vsel %vm11250_vm8, %v5031_v21, %v5032_v38  ;;  %v5086_v32 = vsel %vm11253_vm13, %v5084_v33, %v5085_v55  ;;  %v11256_v21 = vld [vmem:[#allocation77_spill] sm:$0xff]  ;;  %v11259_v12 = vld [vmem:[#allocation78_spill] sm:$0xff] }
 0x6c0   : > { %v5129_v31 = vadd.f32 %v5041_v45, %v11252_v36  ;;  %5362 = vmatmul.bf16.gmra.mxu2 %v7724_v16  ;;  %vm11260_vm13 = vnez %v11259_v12  ;;  %v7725_v36 = vld [vmem:[#allocation3 + $0x38] sm:$0xff] }
 0x6c1   : > { %5417 = vmatmul.bf16.gmra.mxu3 %v7724_v16  ;;  %v5018_v50 = vpop.f32.mrf.mxu1  ;;  %v5115_v45 = vsel %vm11260_vm13, %v5088_v60, 0.0 }
 0x6c2   : > { %v5145_v5 = vadd.f32 %v5129_v31, %v5113_v29  ;;  %v11267_v50 = vld [vmem:[#allocation41_spill] sm:$0xff] }
 0x6c3   : > { %v4550_v22 = vpop.f32.mrf.mxu2 }
 0x6c4   : > { %v10465_v59 = vadd.f32 %v5145_v5, %v4687_v3  ;;  %v4625_v1 = vrot.slane %v4550_v22, 1  ;;  %v4896_v35 = vpop.f32.mrf.mxu3 }
 0x6c5   : > { %v5033_v57 = vrot.slane %v4896_v35, 7 }
 0x6c6   : > { %v4630_v39 = vsel %vm11254_vm9, %v4624_v4, %v4625_v1  ;;  %vm11262_vm9 = vmmov %vm11248_vm1 }
 0x6c7   : > { %v4657_v28 = vsel %vm9251_vm10, %v4630_v39, 0.0  ;;  %v5040_v26 = vsel %vm11255_vm11, %v5032_v38, %v5033_v57  ;;  %vm11263_vm11 = vmmov %vm11250_vm8 }
 0x6c8   : > { %v4689_v23 = vadd.f32 %v11256_v21, %v4657_v28  ;;  %v5065_v53 = vsel %vm8950_vm7, %v5040_v26, 0.0  ;;  %v11265_v28 = vld [vmem:[#allocation54_spill] sm:$0xff] }
 0x6c9   : > { %v5130_v3 = vadd.f32 %v5065_v53, %v11258_v19  ;;  %v5336_v29 = vpop.f32.mrf.mxu1  ;;  %v5454_v19 = vpop.f32.mrf.mxu0 }
 0x6cb   : > { %v5146_v6 = vadd.f32 %v5130_v3, %v10421_v58  ;;  %v4552_v33 = vpop.f32.mrf.mxu2 }
 0x6cc   : > { %v4626_v11 = vrot.slane %v4552_v33, 1  ;;  %v4898_v47 = vpop.f32.mrf.mxu3 }
 0x6cd   : > { %v10478_v2 = vadd.f32 %v5146_v6, %v4688_v14  ;;  %v5034_v4 = vrot.slane %v4898_v47, 7  ;;  %v11268_v47 = vld [vmem:[#allocation83_spill] sm:$0xff] }
 0x6ce   : > { %v4629_v43 = vsel %vm11248_vm1, %v4625_v1, %v4626_v11  ;;  %vm11266_vm1 = vnez %v11265_v28 }
 0x6cf   : > { %v4690_v38 = vadd.f32 %v10226_v27, %v4629_v43  ;;  %v5039_v61 = vsel %vm11250_vm8, %v5033_v57, %v5034_v4  ;;  %v11264_v57 = vld [vmem:[#allocation80_spill] sm:$0xff] }
 0x6d0   : > { %v5131_v58 = vadd.f32 %v5039_v61, %v11261_v0  ;;  %5367 = vmatmul.bf16.gmra.mxu2 %v7725_v36  ;;  %v7726_v61 = vld [vmem:[#allocation3 + $0x40] sm:$0xff] }
 0x6d1   : > { %5422 = vmatmul.bf16.gmra.mxu3 %v7725_v36  ;;  %v5337_v35 = vpop.f32.mrf.mxu1 }
 0x6d2   : > { %v5147_v14 = vadd.f32 %v5131_v58, %v5115_v45 }
 0x6d3   : > { %v4555_v31 = vpop.f32.mrf.mxu2 }
 0x6d4   : > { %v10488_v16 = vadd.f32 %v5147_v14, %v4689_v23  ;;  %v4627_v55 = vrot.slane %v4555_v31, 1  ;;  %v4901_v5 = vpop.f32.mrf.mxu3 }
 0x6d5   : > { %v5035_v22 = vrot.slane %v4901_v5, 7 }
 0x6d6   : > { %v4628_v27 = vsel %vm11262_vm9, %v4626_v11, %v4627_v55  ;;  %vm11269_vm9 = vnez %v11268_v47  ;;  %v11300_v47 = vld [vmem:[#allocation55_spill] sm:$0xff] }
 0x6d7   : > { %v4659_v1 = vsel %vm11260_vm13, %v4628_v27, 0.0  ;;  %v5038_v60 = vsel %vm11263_vm11, %v5034_v4, %v5035_v22  ;;  %v5117_v4 = vsel %vm11269_vm9, %v5086_v32, 0.0  ;;  %vm11270_vm11 = vmmov %vm11250_vm8 }
 0x6d8   : > { %v4691_v39 = vadd.f32 %v11264_v57, %v4659_v1  ;;  %v5067_v26 = vsel %vm11266_vm1, %v5038_v60, 0.0 }
 0x6d9   : > { %v5132_v21 = vadd.f32 %v5067_v26, %v11267_v50  ;;  %v5392_v45 = vpop.f32.mrf.mxu1  ;;  %v5544_v26 = vrot.slane %v5454_v19, 1 }
 0x6db   : > { %v5148_v23 = vadd.f32 %v5132_v21, %v5087_v44  ;;  %v4557_v53 = vpop.f32.mrf.mxu2 }
 0x6dc   : > { %v4903_v3 = vpop.f32.mrf.mxu3 }
 0x6dd   : > { %v10500_v6 = vadd.f32 %v5148_v23, %v4690_v38  ;;  %v5036_v33 = vrot.slane %v4903_v3, 7  ;;  %v5456_v38 = vpop.f32.mrf.mxu0 }
 0x6de   : > { %v5545_v50 = vrot.slane %v5456_v38, 1 }
 0x6df   : > { %v5037_v11 = vsel %vm11250_vm8, %v5035_v22, %v5036_v33  ;;  %vm11271_vm8 = vcmp.lt.s32.totalorder %v8806_v42, 7 }
 0x6e0   : > { %v5133_v43 = vadd.f32 %v5037_v11, %v10238_v49  ;;  %5372 = vmatmul.bf16.gmra.mxu2 %v7726_v61  ;;  %v5574_v53 = vsel %vm11271_vm8, %v5544_v26, %v5545_v50  ;;  %v10522_v11 = vld [vmem:[%s11272_s27] ss:$0 sm:$0xff] }
 0x6e1   : > { %5427 = vmatmul.bf16.gmra.mxu3 %v7726_v61  ;;  %v5393_v36 = vpop.f32.mrf.mxu1 }
 0x6e2   : > { %v5149_v29 = vadd.f32 %v5133_v43, %v5117_v4 }
 0x6e3   : > { %v4559_v44 = vpop.f32.mrf.mxu2 }
 0x6e4   : > { %v10507_v0 = vadd.f32 %v5149_v29, %v4691_v39  ;;  %v4906_v58 = vpop.f32.mrf.mxu3 }
 0x6e5   : > { %v5459_v55 = vpop.f32.mrf.mxu0 }
 0x6e6   : > { %v5546_v3 = vrot.slane %v5459_v55, 1 }
 0x6eb   : > { %v4560_v14 = vpop.f32.mrf.mxu2 }
 0x6ec   : > { %v4907_v31 = vpop.f32.mrf.mxu3 }
 0x6ed   : > { %v5461_v5 = vpop.f32.mrf.mxu0 }
 0x6f0   : > { %5377 = vmatmul.bf16.gmra.mxu2 %v10083_v17 }
 0x6f1   : > { %5432 = vmatmul.bf16.gmra.mxu3 %v10083_v17 }
 0x6f3   : > { %v5339_v32 = vpop.f32.mrf.mxu2 }
 0x6f4   : > { %v5395_v49 = vpop.f32.mrf.mxu3 }
 0x6f5   : > { %v10511_v60 = vpop.f32.mrf.mxu0  ;;  %v5547_v49 = vrot.slane %v5461_v5, 1 }
 0x6fb   : > { %v5340_v22 = vpop.f32.mrf.mxu2 }
 0x6fc   : > { %v5396_v27 = vpop.f32.mrf.mxu3  ;;  %v5494_v35 = vrot.slane %v5340_v22, 7 }
 0x6fd   : > { %v5466_v45 = vpop.f32.mrf.mxu0 }
 0x703   : > { %v5343_v1 = vpop.f32.mrf.mxu2 }
 0x704   : > { %v5495_v57 = vrot.slane %v5343_v1, 7  ;;  %v5398_v39 = vpop.f32.mrf.mxu3 }
 0x706   : > { %v5526_v21 = vsel %vm11270_vm11, %v5494_v35, %v5495_v57  ;;  %vm11273_vm11 = vmmov %vm11271_vm8  ;;  %v5469_v35 = vpop.f32.mrf.mxu0 }
 0x707   : > { %v5527_v23 = vsel %vm8853_vm2, %v5526_v21, 0.0  ;;  %v5573_v25 = vsel %vm11273_vm11, %v5545_v50, %v5546_v3  ;;  %vm11274_vm2 = vcmp.lt.s32.totalorder %v8806_v42, 1 }
 0x708   : > { %v5592_v17 = vadd.f32 %v5527_v23, %v5398_v39  ;;  %v5577_v38 = vsel %vm9127_vm14, %v5573_v25, 0.0  ;;  %vm11275_vm8 = vmmov %vm11274_vm2 }
 0x709   : > { %vm11276_vm14 = vmmov %vm11273_vm11 }
 0x70a   : > { %v5608_v33 = vadd.f32 %v5592_v17, %v5574_v53  ;;  %v5572_v39 = vsel %vm11276_vm14, %v5546_v3, %v5547_v49  ;;  %vm11281_vm14 = vmmov %vm11274_vm2 }
 0x70b   : > { %v5345_v19 = vpop.f32.mrf.mxu2 }
 0x70c   : > { %v5624_v4 = vadd.f32 %v5608_v33, %v10295_v48  ;;  %v5496_v43 = vrot.slane %v5345_v19, 7  ;;  %v5400_v61 = vpop.f32.mrf.mxu3 }
 0x70e   : > { %v5644_v29 = vadd.f32 %v10522_v11, %v5624_v4  ;;  %v5525_v44 = vsel %vm11274_vm2, %v5495_v57, %v5496_v43  ;;  %v5471_v4 = vpop.f32.mrf.mxu0 }
 0x70f   : > { %v5593_v58 = vadd.f32 %v5525_v44, %v5400_v61 }
 0x710   : > { %v5660_v36 = vmax.f32 %v5644_v29, 0.0  ;;  %v5549_v29 = vrot.slane %v5466_v45, 1 }
 0x711   : > { %v5609_v14 = vadd.f32 %v5593_v58, %v5577_v38 }
 0x712   : > { %5676 = vst [vmem:[%s10025_s8] sm:$0xff] %v5660_v36 }
 0x713   : > { %v5625_v48 = vadd.f32 %v5609_v14, %v10309_v9  ;;  %v5348_v31 = vpop.f32.mrf.mxu2  ;;  %v5548_v9 = vrot.slane %v10511_v60, 1 }
 0x714   : > { %v5497_v55 = vrot.slane %v5348_v31, 7  ;;  %v5403_v32 = vpop.f32.mrf.mxu3 }
 0x715   : > { %v5645_v22 = vadd.f32 %v10522_v11, %v5625_v48  ;;  %v5571_v17 = vsel %vm11273_vm11, %v5547_v49, %v5548_v9  ;;  %v5550_v48 = vrot.slane %v5469_v35, 1 }
 0x716   : > { %v5524_v27 = vsel %vm11275_vm8, %v5496_v43, %v5497_v55  ;;  %v5579_v3 = vsel %vm9158_vm15, %v5571_v17, 0.0  ;;  %vm11278_vm15 = vmmov %vm11273_vm11 }
 0x717   : > { %v5661_v1 = vmax.f32 %v5645_v22, 0.0  ;;  %v5529_v10 = vsel %vm8874_vm3, %v5524_v27, 0.0  ;;  %vm11277_vm3 = vmmov %vm11274_vm2  ;;  %v5570_v14 = vsel %vm11278_vm15, %v5548_v9, %v5549_v29 }
 0x718   : > { %v5594_v57 = vadd.f32 %v5529_v10, %v5403_v32  ;;  %vm11279_vm8 = vmmov %vm11273_vm11 }
 0x719   : > { %5677 = vst [vmem:[%s10025_s8 + $0x8] sm:$0xff] %v5661_v1  ;;  %v5569_v22 = vsel %vm11279_vm8, %v5549_v29, %v5550_v48 }
 0x71a   : > { %v5610_v26 = vadd.f32 %v5594_v57, %v5572_v39  ;;  %v5581_v10 = vsel %vm9189_vm0, %v5569_v22, 0.0  ;;  %vm11282_vm0 = vmmov %vm11279_vm8 }
 0x71b   : > { %v5350_v5 = vpop.f32.mrf.mxu2  ;;  %vm11283_vm11 = vmmov %vm11282_vm0 }
 0x71c   : > { %v5626_v50 = vadd.f32 %v5610_v26, %v10326_v8  ;;  %v5498_v21 = vrot.slane %v5350_v5, 7  ;;  %v5405_v23 = vpop.f32.mrf.mxu3  ;;  %v5551_v5 = vrot.slane %v5471_v4, 1  ;;  %vm11291_vm8 = vmmov %vm11282_vm0 }
 0x71e   : > { %v5646_v63 = vadd.f32 %v10522_v11, %v5626_v50  ;;  %v5523_v53 = vsel %vm11277_vm3, %v5497_v55, %v5498_v21  ;;  %v5474_v55 = vpop.f32.mrf.mxu0  ;;  %vm11285_vm3 = vmmov %vm11274_vm2 }
 0x71f   : > { %v5595_v33 = vadd.f32 %v5523_v53, %v5405_v23  ;;  %v5568_v53 = vsel %vm11282_vm0, %v5550_v48, %v5551_v5  ;;  %vm11289_vm15 = vmmov %vm11285_vm3 }
 0x720   : > { %v5662_v60 = vmax.f32 %v5646_v63, 0.0 }
 0x721   : > { %v5611_v19 = vadd.f32 %v5595_v33, %v5579_v3 }
 0x722   : > { %5678 = vst [vmem:[%s10025_s8 + $0x10] sm:$0xff] %v5662_v60 }
 0x723   : > { %v5627_v8 = vadd.f32 %v5611_v19, %v10341_v18  ;;  %v5353_v43 = vpop.f32.mrf.mxu2 }
 0x724   : > { %v5499_v61 = vrot.slane %v5353_v43, 7  ;;  %v5408_v25 = vpop.f32.mrf.mxu3 }
 0x725   : > { %v5647_v44 = vadd.f32 %v10522_v11, %v5627_v8 }
 0x726   : > { %v5522_v58 = vsel %vm11274_vm2, %v5498_v21, %v5499_v61  ;;  %v5476_v21 = vpop.f32.mrf.mxu0 }
 0x727   : > { %v5663_v38 = vmax.f32 %v5647_v44, 0.0  ;;  %v5531_v24 = vsel %vm8893_vm4, %v5522_v58, 0.0  ;;  %vm11280_vm4 = vmmov %vm11274_vm2 }
 0x728   : > { %v5596_v36 = vadd.f32 %v5531_v24, %v5408_v25 }
 0x729   : > { %5679 = vst [vmem:[%s10025_s8 + $0x18] sm:$0xff] %v5663_v38 }
 0x72a   : > { %v5612_v18 = vadd.f32 %v5596_v36, %v5570_v14  ;;  %v5553_v14 = vrot.slane %v5476_v21, 1 }
 0x72b   : > { %v5355_v31 = vpop.f32.mrf.mxu2 }
 0x72c   : > { %v5628_v45 = vadd.f32 %v5612_v18, %v10358_v15  ;;  %v5500_v32 = vrot.slane %v5355_v31, 7  ;;  %v5410_v49 = vpop.f32.mrf.mxu3 }
 0x72e   : > { %v5648_v46 = vadd.f32 %v10522_v11, %v5628_v45  ;;  %v5521_v27 = vsel %vm11280_vm4, %v5499_v61, %v5500_v32  ;;  %v5479_v29 = vpop.f32.mrf.mxu0  ;;  %vm11293_vm4 = vmmov %vm11285_vm3 }
 0x72f   : > { %v5597_v1 = vadd.f32 %v5521_v27, %v5410_v49 }
 0x730   : > { %v5664_v35 = vmax.f32 %v5648_v46, 0.0 }
 0x731   : > { %v5613_v57 = vadd.f32 %v5597_v1, %v5581_v10 }
 0x732   : > { %5680 = vst [vmem:[%s10025_s8 + $0x20] sm:$0xff] %v5664_v35 }
 0x733   : > { %v5629_v15 = vadd.f32 %v5613_v57, %v10374_v20  ;;  %v5358_v39 = vpop.f32.mrf.mxu2  ;;  %v5552_v20 = vrot.slane %v5474_v55, 1 }
 0x734   : > { %v5501_v9 = vrot.slane %v5358_v39, 7  ;;  %v5413_v26 = vpop.f32.mrf.mxu3 }
 0x735   : > { %v5649_v50 = vadd.f32 %v10522_v11, %v5629_v15  ;;  %v5567_v8 = vsel %vm11283_vm11, %v5551_v5, %v5552_v20  ;;  %vm11301_vm11 = vnez %v11300_v47 }
 0x736   : > { %v5520_v23 = vsel %vm11281_vm14, %v5500_v32, %v5501_v9  ;;  %v5583_v25 = vsel %vm9220_vm12, %v5567_v8, 0.0  ;;  %vm11286_vm12 = vmmov %vm11282_vm0  ;;  %v5554_v32 = vrot.slane %v5479_v29, 1 }
 0x737   : > { %v5665_v17 = vmax.f32 %v5649_v50, 0.0  ;;  %v5533_v37 = vsel %vm8912_vm5, %v5520_v23, 0.0  ;;  %vm11284_vm5 = vmmov %vm11274_vm2  ;;  %v5566_v45 = vsel %vm11286_vm12, %v5552_v20, %v5553_v14 }
 0x738   : > { %v5598_v63 = vadd.f32 %v5533_v37, %v5413_v26  ;;  %vm11287_vm2 = vmmov %vm11282_vm0 }
 0x739   : > { %5681 = vst [vmem:[%s10025_s8 + $0x28] sm:$0xff] %v5665_v17  ;;  %v5565_v10 = vsel %vm11287_vm2, %v5553_v14, %v5554_v32  ;;  %vm11295_vm14 = vmmov %vm11282_vm0 }
 0x73a   : > { %v5614_v33 = vadd.f32 %v5598_v63, %v5568_v53  ;;  %v5585_v15 = vsel %vm9251_vm10, %v5565_v10, 0.0  ;;  %vm11290_vm10 = vmmov %vm11282_vm0 }
 0x73b   : > { %v5360_v3 = vpop.f32.mrf.mxu2 }
 0x73c   : > { %v5630_v60 = vadd.f32 %v5614_v33, %v10391_v13  ;;  %v5502_v19 = vrot.slane %v5360_v3, 7  ;;  %v5415_v4 = vpop.f32.mrf.mxu3 }
 0x73e   : > { %v5650_v43 = vadd.f32 %v10522_v11, %v5630_v60  ;;  %v5519_v41 = vsel %vm11284_vm5, %v5501_v9, %v5502_v19  ;;  %vm11303_vm5 = vmmov %vm11287_vm2 }
 0x73f   : > { %v5599_v61 = vadd.f32 %v5519_v41, %v5415_v4 }
 0x740   : > { %v5666_v44 = vmax.f32 %v5650_v43, 0.0 }
 0x741   : > { %v5615_v58 = vadd.f32 %v5599_v61, %v5583_v25 }
 0x742   : > { %5682 = vst [vmem:[%s10025_s8 + $0x30] sm:$0xff] %v5666_v44 }
 0x743   : > { %v5631_v13 = vadd.f32 %v5615_v58, %v10407_v40  ;;  %v5363_v38 = vpop.f32.mrf.mxu2  ;;  %v5481_v40 = vpop.f32.mrf.mxu0 }
 0x744   : > { %v5503_v24 = vrot.slane %v5363_v38, 7  ;;  %v5418_v36 = vpop.f32.mrf.mxu3  ;;  %v5555_v23 = vrot.slane %v5481_v40, 1 }
 0x745   : > { %v5651_v48 = vadd.f32 %v10522_v11, %v5631_v13 }
 0x746   : > { %v5518_v18 = vsel %vm11285_vm3, %v5502_v19, %v5503_v24  ;;  %v5564_v20 = vsel %vm11290_vm10, %v5554_v32, %v5555_v23 }
 0x747   : > { %v5667_v31 = vmax.f32 %v5651_v48, 0.0  ;;  %v5535_v54 = vsel %vm8931_vm6, %v5518_v18, 0.0  ;;  %vm11288_vm6 = vmmov %vm11285_vm3 }
 0x748   : > { %v5600_v55 = vadd.f32 %v5535_v54, %v5418_v36 }
 0x749   : > { %5683 = vst [vmem:[%s10025_s8 + $0x38] sm:$0xff] %v5667_v31 }
 0x74a   : > { %v5616_v49 = vadd.f32 %v5600_v55, %v5566_v45 }
 0x74b   : > { %v5365_v22 = vpop.f32.mrf.mxu2  ;;  %v5484_v5 = vpop.f32.mrf.mxu0 }
 0x74c   : > { %v5632_v46 = vadd.f32 %v5616_v49, %v10424_v56  ;;  %v5504_v27 = vrot.slane %v5365_v22, 7  ;;  %v5420_v1 = vpop.f32.mrf.mxu3 }
 0x74e   : > { %v5652_v34 = vadd.f32 %v10522_v11, %v5632_v46  ;;  %v5517_v35 = vsel %vm11288_vm6, %v5503_v24, %v5504_v27 }
 0x74f   : > { %v5601_v57 = vadd.f32 %v5517_v35, %v5420_v1 }
 0x750   : > { %v5668_v39 = vmax.f32 %v5652_v34, 0.0 }
 0x751   : > { %v5617_v9 = vadd.f32 %v5601_v57, %v5585_v15 }
 0x752   : > { %5684 = vst [vmem:[%s10025_s8 + $0x40] sm:$0xff] %v5668_v39 }
 0x753   : > { %v5633_v56 = vadd.f32 %v5617_v9, %v10437_v30  ;;  %v5368_v26 = vpop.f32.mrf.mxu2  ;;  %v5556_v30 = vrot.slane %v5484_v5, 1  ;;  %v5486_v43 = vpop.f32.mrf.mxu0 }
 0x754   : > { %v5505_v50 = vrot.slane %v5368_v26, 7  ;;  %v5423_v21 = vpop.f32.mrf.mxu3  ;;  %v5557_v24 = vrot.slane %v5486_v43, 1 }
 0x755   : > { %v5653_v17 = vadd.f32 %v10522_v11, %v5633_v56  ;;  %v5563_v8 = vsel %vm11291_vm8, %v5555_v23, %v5556_v30  ;;  %v5543_v23 = vrot.slane %v10253_v7, 1 }
 0x756   : > { %v5516_v37 = vsel %vm11289_vm15, %v5504_v27, %v5505_v50  ;;  %v5587_v25 = vsel %vm11260_vm13, %v5563_v8, 0.0  ;;  %vm11294_vm13 = vmmov %vm11282_vm0 }
 0x757   : > { %v5669_v63 = vmax.f32 %v5653_v17, 0.0  ;;  %v5537_v51 = vsel %vm8950_vm7, %v5516_v37, 0.0  ;;  %vm11292_vm7 = vmmov %vm11285_vm3  ;;  %v5562_v54 = vsel %vm11294_vm13, %v5556_v30, %v5557_v24 }
 0x758   : > { %v5602_v53 = vadd.f32 %v5537_v51, %v5423_v21 }
 0x759   : > { %5685 = vst [vmem:[%s10025_s8 + $0x48] sm:$0xff] %v5669_v63 }
 0x75a   : > { %v5618_v33 = vadd.f32 %v5602_v53, %v5564_v20 }
 0x75b   : > { %v5370_v3 = vpop.f32.mrf.mxu2  ;;  %v5489_v18 = vpop.f32.mrf.mxu0 }
 0x75c   : > { %v5634_v60 = vadd.f32 %v5618_v33, %v10452_v62  ;;  %v5506_v19 = vrot.slane %v5370_v3, 7  ;;  %v5425_v4 = vpop.f32.mrf.mxu3  ;;  %v11305_v3 = vld [vmem:[#allocation58_spill] sm:$0xff] }
 0x75d   : > { %vm11306_vm12 = vnez %v11305_v3 }
 0x75e   : > { %v5654_v52 = vadd.f32 %v10522_v11, %v5634_v60  ;;  %v5515_v41 = vsel %vm11292_vm7, %v5505_v50, %v5506_v19 }
 0x75f   : > { %v5603_v61 = vadd.f32 %v5515_v41, %v5425_v4 }
 0x760   : > { %v5670_v29 = vmax.f32 %v5654_v52, 0.0 }
 0x761   : > { %v5619_v44 = vadd.f32 %v5603_v61, %v5587_v25 }
 0x762   : > { %5686 = vst [vmem:[%s10025_s8 + $0x50] sm:$0xff] %v5670_v29 }
 0x763   : > { %v5635_v62 = vadd.f32 %v5619_v44, %v10465_v59  ;;  %v5373_v58 = vpop.f32.mrf.mxu2  ;;  %v5558_v59 = vrot.slane %v5489_v18, 1  ;;  %v5491_v57 = vpop.f32.mrf.mxu0 }
 0x764   : > { %v5507_v13 = vrot.slane %v5373_v58, 7  ;;  %v5428_v38 = vpop.f32.mrf.mxu3  ;;  %v5559_v26 = vrot.slane %v5491_v57, 1 }
 0x765   : > { %v5655_v36 = vadd.f32 %v10522_v11, %v5635_v62  ;;  %v5561_v22 = vsel %vm11295_vm14, %v5557_v24, %v5558_v59 }
 0x766   : > { %v5514_v14 = vsel %vm11293_vm4, %v5506_v19, %v5507_v13  ;;  %v5589_v1 = vsel %vm11269_vm9, %v5561_v22, 0.0  ;;  %vm11302_vm9 = vmmov %vm11287_vm2  ;;  %v5575_v53 = vsel %vm11303_vm5, %v5559_v26, %v5543_v23 }
 0x767   : > { %v5671_v48 = vmax.f32 %v5655_v36, 0.0  ;;  %v5539_v12 = vsel %vm11266_vm1, %v5514_v14, 0.0  ;;  %vm11296_vm1 = vmmov %vm11285_vm3  ;;  %v5591_v60 = vsel %vm11306_vm12, %v5575_v53, 0.0 }
 0x768   : > { %v5604_v31 = vadd.f32 %v5539_v12, %v5428_v38  ;;  %vm11299_vm0 = vmmov %vm11296_vm1 }
 0x769   : > { %5687 = vst [vmem:[%s10025_s8 + $0x58] sm:$0xff] %v5671_v48  ;;  %vm11304_vm3 = vmmov %vm11299_vm0 }
 0x76a   : > { %v5620_v55 = vadd.f32 %v5604_v31, %v5562_v54 }
 0x76b   : > { %v5375_v45 = vpop.f32.mrf.mxu2 }
 0x76c   : > { %v5636_v32 = vadd.f32 %v5620_v55, %v10478_v2  ;;  %v5508_v40 = vrot.slane %v5375_v45, 7  ;;  %v5430_v49 = vpop.f32.mrf.mxu3 }
 0x76e   : > { %v5656_v28 = vadd.f32 %v10522_v11, %v5636_v32  ;;  %v5513_v46 = vsel %vm11296_vm1, %v5507_v13, %v5508_v40 }
 0x76f   : > { %v5605_v27 = vadd.f32 %v5513_v46, %v5430_v49 }
 0x770   : > { %v5672_v10 = vmax.f32 %v5656_v28, 0.0 }
 0x771   : > { %v5621_v34 = vadd.f32 %v5605_v27, %v5589_v1 }
 0x772   : > { %5688 = vst [vmem:[%s10025_s8 + $0x60] sm:$0xff] %v5672_v10 }
 0x773   : > { %v5637_v2 = vadd.f32 %v5621_v34, %v10488_v16  ;;  %v5378_v35 = vpop.f32.mrf.mxu2  ;;  %v5560_v16 = vsel %vm11302_vm9, %v5558_v59, %v5559_v26 }
 0x774   : > { %v5509_v15 = vrot.slane %v5378_v35, 7  ;;  %v5433_v39 = vpop.f32.mrf.mxu3 }
 0x775   : > { %v5657_v9 = vadd.f32 %v10522_v11, %v5637_v2 }
 0x776   : > { %v5512_v56 = vsel %vm11299_vm0, %v5508_v40, %v5509_v15 }
 0x777   : > { %v5673_v5 = vmax.f32 %v5657_v9, 0.0  ;;  %v5541_v50 = vsel %vm11301_vm11, %v5512_v56, 0.0 }
 0x778   : > { %v5606_v21 = vadd.f32 %v5541_v50, %v5433_v39 }
 0x779   : > { %5689 = vst [vmem:[%s10025_s8 + $0x68] sm:$0xff] %v5673_v5 }
 0x77a   : > { %v5622_v17 = vadd.f32 %v5606_v21, %v5560_v16 }
 0x77b   : > { %v5380_v37 = vpop.f32.mrf.mxu2 }
 0x77c   : > { %v5638_v63 = vadd.f32 %v5622_v17, %v10500_v6  ;;  %v5510_v51 = vrot.slane %v5380_v37, 7  ;;  %v5435_v7 = vpop.f32.mrf.mxu3 }
 0x77e   : > { %v5658_v20 = vadd.f32 %v10522_v11, %v5638_v63  ;;  %v5511_v30 = vsel %vm11304_vm3, %v5509_v15, %v5510_v51 }
 0x77f   : > { %v5607_v33 = vadd.f32 %v5511_v30, %v5435_v7 }
 0x780   : > { %v5674_v19 = vmax.f32 %v5658_v20, 0.0 }
 0x781   : > { %v5623_v6 = vadd.f32 %v5607_v33, %v5591_v60 }
 0x782   : > { %5690 = vst [vmem:[%s10025_s8 + $0x70] sm:$0xff] %v5674_v19 }
 0x783   : > { %v5639_v4 = vadd.f32 %v5623_v6, %v10507_v0 }
 0x785   : > { %v5659_v42 = vadd.f32 %v10522_v11, %v5639_v4 }
 0x787   : > { %v5675_v8 = vmax.f32 %v5659_v42, 0.0 }
 0x789   : > { %5691 = vst [vmem:[%s10025_s8 + $0x78] sm:$0xff] %v5675_v8 }
 0x78a   : > { %7904 = shalt.err (!%p7901_p8)
}
 0x78b   : > { %s8021_s7 = smov 128   ;;  %s8022_s8 = smov 8  }
 0x78c   : > { %7594 = dma.vmem_to_hbm [thread:$0]  (%p8168_p3), %s5708_s15, 2048, %s5710_s6, %s5693_s20, %s8021_s7, %s8021_s7, %s8022_s8  }
 0x78d PF: > { %s11309_s3 = sld [smem:[#allocation19_spill]]  ;;  %p7622_p13 = scmp.ge.s32.totalorder %s8011_s11, 2 }
 0x78f   : > { %p7614_p0 = pnand %p7622_p13, %p8187_p11 }
 0x791   : > { %p7615_p7 = pneg %p7614_p0 }
 0x793   : > { %s5724_s14 = sand.u32 1, %s11309_s3  }
 0x794   : > { %s5725_s21 = scalar_lea.sflag [#allocation6], %s5724_s14 }
 0x795   : > { %7966 = dma.done.wait (%p7615_p7), %s5725_s21, 2048  }
 0x796   : > { %7968 = vsyncadd (%p7615_p7), %s5725_s21, 4294965248  ;;  %s27_s11 = sadd.s32 1, %s8011_s11   ;;  %s11311_s29 = sld [smem:[#allocation20_spill]] }
 0x797   : > { %p24_p1 = scmp.ge.s32.totalorder %s27_s11, 6   ;;  %s11312_s22 = sld [smem:[#allocation30_spill]] }
 0x798   : > { %s11313_s15 = sld [smem:[#allocation25_spill]]  ;;  %s11315_s24 = smov %s7975_s25 }
 0x799   : > { %s11314_s6 = sld [smem:[#allocation27_spill]]  ;;  %s11316_s25 = smov %s7979_s26 }
 0x79a   : > { %s11317_s26 = smov %s8242_s4  ;;  %s11318_s27 = smov %s7987_s28 }
 0x79b   : > { %s11321_s30 = smov %s8003_s9  ;;  %s11322_s8 = smov %s8007_s10 }
 0x79c   : > { %s11319_s28 = smov %s11311_s29  ;;  %26 = sbr.rel (!%p24_p1) target bundleno = 17 (0x11), region = 161 }
 0x79d   : > { %s11320_s29 = smov %s11312_s22 }
 0x79e   : > { %s11323_s9 = smov %s11313_s15 }
 0x79f   : > { %s11324_s10 = smov %s11314_s6 }
 0x7a1   :  { %5731 = vsyncpa [#allocation5], 1 }
 0x7a2   :  { %5733 = vsyncpa [#allocation5 + $0x1], 1 }
 0x7a3   :  { %5734 = vsyncpa [#allocation8], 1 }
 0x7a4   :  { %5736 = vsyncpa [#allocation8 + $0x1], 1 }
 0x7a5   :  { %5737 = vsyncpa [#allocation11], 1 }
 0x7a6   :  { %5738 = vsyncpa [#allocation6], 1 }
 0x7a7   :  { %5740 = vsyncpa [#allocation6 + $0x1], 1 }

</bundles_post_ra>
